<compile_context>
chip_gen: v7x
topology: tpu7x:2x2x1
jax: 0.10.0
libtpu: 0.0.40
codegen_flags: <defaults>
</compile_context>

<pallas_src>
import functools

import numpy as np
import jax
import jax.numpy as jnp
from jax import lax
from jax.experimental import pallas as pl
from jax.experimental.pallas import tpu as pltpu


# ------------------------------ Pallas kernel -------------------------------
def _deeplab_head_kernel(x_ref, w_ref, b_ref, o_ref, *, H, W, Cin, dils, pmax):
    """Fused  sum_i conv3x3_dilated_i(x) + bias  for one batch element.

    x_ref : (1, Hp, Wp, Cin)   bf16, Hp = H + 2*pmax, Wp = W + 2*pmax
    w_ref : (nbranch*9*Cin, Cout) bf16, rows ordered (branch, kh, kw, Cin)
    b_ref : (1, Cout)          f32, sum of all per-branch biases
    o_ref : (1, H*W, Cout)     f32
    """
    HW = H * W
    Cout = b_ref.shape[1]
    acc = jnp.zeros((HW, Cout), jnp.float32)

    idx = 0
    for d in dils:                       # static unroll over branches
        for kh in range(3):              # static unroll over 3x3 taps
            for kw in range(3):
                r0 = pmax + (kh - 1) * d
                c0 = pmax + (kw - 1) * d
                patch = x_ref[0, pl.ds(r0, H), pl.ds(c0, W), :]   # [H, W, Cin]
                patch = patch.reshape(HW, Cin)                    # [HW, Cin]
                wtap = w_ref[pl.ds(idx * Cin, Cin), :]            # [Cin, Cout]
                acc = acc + jnp.dot(patch, wtap,
                                    preferred_element_type=jnp.float32)
                idx += 1

    acc = acc + b_ref[...]                                        # broadcast bias
    o_ref[0] = acc.astype(o_ref.dtype)


# ------------------------------- host wrapper -------------------------------
def _build_weight_matrix(weights):
    """torch-layout [Cout, Cin, 3, 3] per branch -> [nbranch*9*Cin, Cout]."""
    rows = []
    for w in weights:
        for kh in range(3):
            for kw in range(3):
                rows.append(jnp.transpose(w[:, :, kh, kw], (1, 0)))  # [Cin, Cout]
    return jnp.concatenate(rows, axis=0)


def deeplab_classifier_forward(x_nchw, weights, biases, dilations, paddings):
    """out = sum_i conv2d(x, weights[i], bias=biases[i], k=3, s=1,
                          dilation=dilations[i], padding=paddings[i])"""
    # TODO(synk): only the standard DeepLab configuration padding == dilation is
    # implemented (the original module requires it anyway for the branch output
    # shapes to match so the in-place sum is valid).
    assert all(p == d for p, d in zip(paddings, dilations))

    N, Cin, H, W = x_nchw.shape
    Cout = weights[0].shape[0]
    pmax = int(max(paddings))
    Hp, Wp = H + 2 * pmax, W + 2 * pmax
    HW = H * W

    # NCHW -> NHWC, pad once by the maximum padding, cast MXU inputs to bf16.
    x_nhwc = jnp.transpose(x_nchw, (0, 2, 3, 1))
    x_pad = jnp.pad(x_nhwc, ((0, 0), (pmax, pmax), (pmax, pmax), (0, 0)))
    x_pad = x_pad.astype(jnp.bfloat16)

    w_all = _build_weight_matrix(weights).astype(jnp.bfloat16)     # [nb*9*Cin, Cout]
    bias_total = jnp.stack(biases).sum(axis=0).reshape(1, Cout).astype(jnp.float32)

    kernel = functools.partial(_deeplab_head_kernel, H=H, W=W, Cin=Cin,
                               dils=tuple(int(d) for d in dilations), pmax=pmax)

    out_flat = pl.pallas_call(
        kernel,
        out_shape=jax.ShapeDtypeStruct((N, HW, Cout), jnp.float32),
        grid=(N,),
        in_specs=[
            pl.BlockSpec((1, Hp, Wp, Cin), lambda n: (n, 0, 0, 0)),
            pl.BlockSpec(w_all.shape, lambda n: (0, 0)),
            pl.BlockSpec((1, Cout), lambda n: (0, 0)),
        ],
        out_specs=pl.BlockSpec((1, HW, Cout), lambda n: (n, 0, 0)),
        compiler_params=pltpu.CompilerParams(
            dimension_semantics=("parallel",)),
    )(x_pad, w_all, bias_total)

    out = out_flat.reshape(N, H, W, Cout)
    return jnp.transpose(out, (0, 3, 1, 2))                        # back to NCHW


# --------------------------- pure-JAX (XLA) reference ------------------------
def deeplab_classifier_reference(x, weights, biases, dilations, paddings):
    out = None
    for w, b, d, p in zip(weights, biases, dilations, paddings):
        y = lax.conv_general_dilated(
            x, w, window_strides=(1, 1), padding=[(p, p), (p, p)],
            rhs_dilation=(d, d),
            dimension_numbers=("NCHW", "OIHW", "NCHW"),
            precision=lax.Precision.HIGHEST)
        y = y + b[None, :, None, None]
        out = y if out is None else out + y
    return out


# ------------------------------------ main -----------------------------------
if __name__ == "__main__":
    BATCH, TOPFEATURES, H, W = 2, 32, 16, 16
    NCLASS = 16
    DILATIONS = (1, 2, 4, 8)
    PADDINGS = DILATIONS

    key = jax.random.PRNGKey(0)
    kx, kw, kb = jax.random.split(key, 3)
    x = jax.random.normal(kx, (BATCH, TOPFEATURES, H, W), jnp.float32)

    wkeys = jax.random.split(kw, len(DILATIONS))
    bkeys = jax.random.split(kb, len(DILATIONS))
    # weight.data.normal_(0, 0.01) as in the PyTorch module; small bias.
    weights = [0.01 * jax.random.normal(k, (NCLASS, TOPFEATURES, 3, 3), jnp.float32)
               for k in wkeys]
    bound = 1.0 / np.sqrt(TOPFEATURES * 9)
    biases = [jax.random.uniform(k, (NCLASS,), jnp.float32, -bound, bound)
              for k in bkeys]

    out = jax.block_until_ready(
        deeplab_classifier_forward(x, weights, biases, DILATIONS, PADDINGS))
    assert out.shape == (BATCH, NCLASS, H, W)

    # Tight check: reference computed on bf16-rounded inputs (exactly what the
    # kernel feeds the MXU, with f32 accumulation) -- validates the plumbing.
    x_bf = x.astype(jnp.bfloat16).astype(jnp.float32)
    w_bf = [w.astype(jnp.bfloat16).astype(jnp.float32) for w in weights]
    ref_bf = jax.block_until_ready(
        deeplab_classifier_reference(x_bf, w_bf, biases, DILATIONS, PADDINGS))
    np.testing.assert_allclose(np.asarray(out), np.asarray(ref_bf),
                               rtol=1e-3, atol=1e-3)

    # Loose check against the full-f32 module semantics (bf16 MXU inputs).
    ref = jax.block_until_ready(
        deeplab_classifier_reference(x, weights, biases, DILATIONS, PADDINGS))
    np.testing.assert_allclose(np.asarray(out), np.asarray(ref),
                               rtol=2e-2, atol=2e-2)

    print("KERNEL_OK")
</pallas_src>

<mosaic_0001>
module attributes {stable_mosaic.version = 11 : i64} {
  func.func @_deeplab_head_kernel(%arg0: i32, %arg1: memref<1x32x32x32xbf16, #tpu.memory_space<vmem>>, %arg2: memref<1152x16xbf16, #tpu.memory_space<vmem>>, %arg3: memref<1x16xf32, #tpu.memory_space<vmem>>, %arg4: memref<1x256x16xf32, #tpu.memory_space<vmem>>) attributes {dimension_semantics = [#tpu.dimension_semantics<parallel>], iteration_bounds = array<i64: 2>, scalar_prefetch = 0 : i64, scratch_operands = 0 : i64, tpu.core_type = #tpu.core_type<tc>, window_params = [{transform_indices = @transform_0, window_bounds = array<i64: 1, 32, 32, 32>}, {pipeline_mode = #tpu.pipeline_mode<synchronous>, transform_indices = @transform_1, window_bounds = array<i64: 1152, 16>}, {pipeline_mode = #tpu.pipeline_mode<synchronous>, transform_indices = @transform_2, window_bounds = array<i64: 1, 16>}, {transform_indices = @transform_3, window_bounds = array<i64: 1, 256, 16>}]} {
    %cst = arith.constant 0.000000e+00 : f32
    %0 = vector.broadcast %cst : f32 to vector<256x16xf32>
    %c0 = arith.constant 0 : index
    %c7 = arith.constant 7 : index
    %c7_0 = arith.constant 7 : index
    %c0_1 = arith.constant 0 : index
    %1 = vector.load %arg1[%c0, %c7, %c7_0, %c0_1] : memref<1x32x32x32xbf16, #tpu.memory_space<vmem>>, vector<1x16x16x32xbf16>
    %2 = vector.shape_cast %1 : vector<1x16x16x32xbf16> to vector<16x16x32xbf16>
    %3 = vector.shape_cast %2 : vector<16x16x32xbf16> to vector<256x32xbf16>
    %c0_2 = arith.constant 0 : index
    %c0_3 = arith.constant 0 : index
    %4 = vector.load %arg2[%c0_2, %c0_3] : memref<1152x16xbf16, #tpu.memory_space<vmem>>, vector<32x16xbf16>
    %cst_4 = arith.constant dense<0.000000e+00> : vector<256x16xf32>
    %5 = tpu.matmul %3, %4, %cst_4 {dimension_numbers = #tpu.dot_dimension_numbers<[1], [0], [0], [1], [0, 0, 1, 1], [], []>} : vector<256x32xbf16>, vector<32x16xbf16>, vector<256x16xf32> -> vector<256x16xf32>
    %6 = arith.addf %0, %5 : vector<256x16xf32>
    %c0_5 = arith.constant 0 : index
    %c7_6 = arith.constant 7 : index
    %c8 = arith.constant 8 : index
    %c0_7 = arith.constant 0 : index
    %7 = vector.load %arg1[%c0_5, %c7_6, %c8, %c0_7] : memref<1x32x32x32xbf16, #tpu.memory_space<vmem>>, vector<1x16x16x32xbf16>
    %8 = vector.shape_cast %7 : vector<1x16x16x32xbf16> to vector<16x16x32xbf16>
    %9 = vector.shape_cast %8 : vector<16x16x32xbf16> to vector<256x32xbf16>
    %c32 = arith.constant 32 : index
    %c0_8 = arith.constant 0 : index
    %10 = vector.load %arg2[%c32, %c0_8] : memref<1152x16xbf16, #tpu.memory_space<vmem>>, vector<32x16xbf16>
    %cst_9 = arith.constant dense<0.000000e+00> : vector<256x16xf32>
    %11 = tpu.matmul %9, %10, %cst_9 {dimension_numbers = #tpu.dot_dimension_numbers<[1], [0], [0], [1], [0, 0, 1, 1], [], []>} : vector<256x32xbf16>, vector<32x16xbf16>, vector<256x16xf32> -> vector<256x16xf32>
    %12 = arith.addf %6, %11 : vector<256x16xf32>
    %c0_10 = arith.constant 0 : index
    %c7_11 = arith.constant 7 : index
    %c9 = arith.constant 9 : index
    %c0_12 = arith.constant 0 : index
    %13 = vector.load %arg1[%c0_10, %c7_11, %c9, %c0_12] : memref<1x32x32x32xbf16, #tpu.memory_space<vmem>>, vector<1x16x16x32xbf16>
    %14 = vector.shape_cast %13 : vector<1x16x16x32xbf16> to vector<16x16x32xbf16>
    %15 = vector.shape_cast %14 : vector<16x16x32xbf16> to vector<256x32xbf16>
    %c64 = arith.constant 64 : index
    %c0_13 = arith.constant 0 : index
    %16 = vector.load %arg2[%c64, %c0_13] : memref<1152x16xbf16, #tpu.memory_space<vmem>>, vector<32x16xbf16>
    %cst_14 = arith.constant dense<0.000000e+00> : vector<256x16xf32>
    %17 = tpu.matmul %15, %16, %cst_14 {dimension_numbers = #tpu.dot_dimension_numbers<[1], [0], [0], [1], [0, 0, 1, 1], [], []>} : vector<256x32xbf16>, vector<32x16xbf16>, vector<256x16xf32> -> vector<256x16xf32>
    %18 = arith.addf %12, %17 : vector<256x16xf32>
    %c0_15 = arith.constant 0 : index
    %c8_16 = arith.constant 8 : index
    %c7_17 = arith.constant 7 : index
    %c0_18 = arith.constant 0 : index
    %19 = vector.load %arg1[%c0_15, %c8_16, %c7_17, %c0_18] : memref<1x32x32x32xbf16, #tpu.memory_space<vmem>>, vector<1x16x16x32xbf16>
    %20 = vector.shape_cast %19 : vector<1x16x16x32xbf16> to vector<16x16x32xbf16>
    %21 = vector.shape_cast %20 : vector<16x16x32xbf16> to vector<256x32xbf16>
    %c96 = arith.constant 96 : index
    %c0_19 = arith.constant 0 : index
    %22 = vector.load %arg2[%c96, %c0_19] : memref<1152x16xbf16, #tpu.memory_space<vmem>>, vector<32x16xbf16>
    %cst_20 = arith.constant dense<0.000000e+00> : vector<256x16xf32>
    %23 = tpu.matmul %21, %22, %cst_20 {dimension_numbers = #tpu.dot_dimension_numbers<[1], [0], [0], [1], [0, 0, 1, 1], [], []>} : vector<256x32xbf16>, vector<32x16xbf16>, vector<256x16xf32> -> vector<256x16xf32>
    %24 = arith.addf %18, %23 : vector<256x16xf32>
    %c0_21 = arith.constant 0 : index
    %c8_22 = arith.constant 8 : index
    %c8_23 = arith.constant 8 : index
    %c0_24 = arith.constant 0 : index
    %25 = vector.load %arg1[%c0_21, %c8_22, %c8_23, %c0_24] : memref<1x32x32x32xbf16, #tpu.memory_space<vmem>>, vector<1x16x16x32xbf16>
    %26 = vector.shape_cast %25 : vector<1x16x16x32xbf16> to vector<16x16x32xbf16>
    %27 = vector.shape_cast %26 : vector<16x16x32xbf16> to vector<256x32xbf16>
    %c128 = arith.constant 128 : index
    %c0_25 = arith.constant 0 : index
    %28 = vector.load %arg2[%c128, %c0_25] : memref<1152x16xbf16, #tpu.memory_space<vmem>>, vector<32x16xbf16>
    %cst_26 = arith.constant dense<0.000000e+00> : vector<256x16xf32>
    %29 = tpu.matmul %27, %28, %cst_26 {dimension_numbers = #tpu.dot_dimension_numbers<[1], [0], [0], [1], [0, 0, 1, 1], [], []>} : vector<256x32xbf16>, vector<32x16xbf16>, vector<256x16xf32> -> vector<256x16xf32>
    %30 = arith.addf %24, %29 : vector<256x16xf32>
    %c0_27 = arith.constant 0 : index
    %c8_28 = arith.constant 8 : index
    %c9_29 = arith.constant 9 : index
    %c0_30 = arith.constant 0 : index
    %31 = vector.load %arg1[%c0_27, %c8_28, %c9_29, %c0_30] : memref<1x32x32x32xbf16, #tpu.memory_space<vmem>>, vector<1x16x16x32xbf16>
    %32 = vector.shape_cast %31 : vector<1x16x16x32xbf16> to vector<16x16x32xbf16>
    %33 = vector.shape_cast %32 : vector<16x16x32xbf16> to vector<256x32xbf16>
    %c160 = arith.constant 160 : index
    %c0_31 = arith.constant 0 : index
    %34 = vector.load %arg2[%c160, %c0_31] : memref<1152x16xbf16, #tpu.memory_space<vmem>>, vector<32x16xbf16>
    %cst_32 = arith.constant dense<0.000000e+00> : vector<256x16xf32>
    %35 = tpu.matmul %33, %34, %cst_32 {dimension_numbers = #tpu.dot_dimension_numbers<[1], [0], [0], [1], [0, 0, 1, 1], [], []>} : vector<256x32xbf16>, vector<32x16xbf16>, vector<256x16xf32> -> vector<256x16xf32>
    %36 = arith.addf %30, %35 : vector<256x16xf32>
    %c0_33 = arith.constant 0 : index
    %c9_34 = arith.constant 9 : index
    %c7_35 = arith.constant 7 : index
    %c0_36 = arith.constant 0 : index
    %37 = vector.load %arg1[%c0_33, %c9_34, %c7_35, %c0_36] : memref<1x32x32x32xbf16, #tpu.memory_space<vmem>>, vector<1x16x16x32xbf16>
    %38 = vector.shape_cast %37 : vector<1x16x16x32xbf16> to vector<16x16x32xbf16>
    %39 = vector.shape_cast %38 : vector<16x16x32xbf16> to vector<256x32xbf16>
    %c192 = arith.constant 192 : index
    %c0_37 = arith.constant 0 : index
    %40 = vector.load %arg2[%c192, %c0_37] : memref<1152x16xbf16, #tpu.memory_space<vmem>>, vector<32x16xbf16>
    %cst_38 = arith.constant dense<0.000000e+00> : vector<256x16xf32>
    %41 = tpu.matmul %39, %40, %cst_38 {dimension_numbers = #tpu.dot_dimension_numbers<[1], [0], [0], [1], [0, 0, 1, 1], [], []>} : vector<256x32xbf16>, vector<32x16xbf16>, vector<256x16xf32> -> vector<256x16xf32>
    %42 = arith.addf %36, %41 : vector<256x16xf32>
    %c0_39 = arith.constant 0 : index
    %c9_40 = arith.constant 9 : index
    %c8_41 = arith.constant 8 : index
    %c0_42 = arith.constant 0 : index
    %43 = vector.load %arg1[%c0_39, %c9_40, %c8_41, %c0_42] : memref<1x32x32x32xbf16, #tpu.memory_space<vmem>>, vector<1x16x16x32xbf16>
    %44 = vector.shape_cast %43 : vector<1x16x16x32xbf16> to vector<16x16x32xbf16>
    %45 = vector.shape_cast %44 : vector<16x16x32xbf16> to vector<256x32xbf16>
    %c224 = arith.constant 224 : index
    %c0_43 = arith.constant 0 : index
    %46 = vector.load %arg2[%c224, %c0_43] : memref<1152x16xbf16, #tpu.memory_space<vmem>>, vector<32x16xbf16>
    %cst_44 = arith.constant dense<0.000000e+00> : vector<256x16xf32>
    %47 = tpu.matmul %45, %46, %cst_44 {dimension_numbers = #tpu.dot_dimension_numbers<[1], [0], [0], [1], [0, 0, 1, 1], [], []>} : vector<256x32xbf16>, vector<32x16xbf16>, vector<256x16xf32> -> vector<256x16xf32>
    %48 = arith.addf %42, %47 : vector<256x16xf32>
    %c0_45 = arith.constant 0 : index
    %c9_46 = arith.constant 9 : index
    %c9_47 = arith.constant 9 : index
    %c0_48 = arith.constant 0 : index
    %49 = vector.load %arg1[%c0_45, %c9_46, %c9_47, %c0_48] : memref<1x32x32x32xbf16, #tpu.memory_space<vmem>>, vector<1x16x16x32xbf16>
    %50 = vector.shape_cast %49 : vector<1x16x16x32xbf16> to vector<16x16x32xbf16>
    %51 = vector.shape_cast %50 : vector<16x16x32xbf16> to vector<256x32xbf16>
    %c256 = arith.constant 256 : index
    %c0_49 = arith.constant 0 : index
    %52 = vector.load %arg2[%c256, %c0_49] : memref<1152x16xbf16, #tpu.memory_space<vmem>>, vector<32x16xbf16>
    %cst_50 = arith.constant dense<0.000000e+00> : vector<256x16xf32>
    %53 = tpu.matmul %51, %52, %cst_50 {dimension_numbers = #tpu.dot_dimension_numbers<[1], [0], [0], [1], [0, 0, 1, 1], [], []>} : vector<256x32xbf16>, vector<32x16xbf16>, vector<256x16xf32> -> vector<256x16xf32>
    %54 = arith.addf %48, %53 : vector<256x16xf32>
    %c0_51 = arith.constant 0 : index
    %c6 = arith.constant 6 : index
    %c6_52 = arith.constant 6 : index
    %c0_53 = arith.constant 0 : index
    %55 = vector.load %arg1[%c0_51, %c6, %c6_52, %c0_53] : memref<1x32x32x32xbf16, #tpu.memory_space<vmem>>, vector<1x16x16x32xbf16>
    %56 = vector.shape_cast %55 : vector<1x16x16x32xbf16> to vector<16x16x32xbf16>
    %57 = vector.shape_cast %56 : vector<16x16x32xbf16> to vector<256x32xbf16>
    %c288 = arith.constant 288 : index
    %c0_54 = arith.constant 0 : index
    %58 = vector.load %arg2[%c288, %c0_54] : memref<1152x16xbf16, #tpu.memory_space<vmem>>, vector<32x16xbf16>
    %cst_55 = arith.constant dense<0.000000e+00> : vector<256x16xf32>
    %59 = tpu.matmul %57, %58, %cst_55 {dimension_numbers = #tpu.dot_dimension_numbers<[1], [0], [0], [1], [0, 0, 1, 1], [], []>} : vector<256x32xbf16>, vector<32x16xbf16>, vector<256x16xf32> -> vector<256x16xf32>
    %60 = arith.addf %54, %59 : vector<256x16xf32>
    %c0_56 = arith.constant 0 : index
    %c6_57 = arith.constant 6 : index
    %c8_58 = arith.constant 8 : index
    %c0_59 = arith.constant 0 : index
    %61 = vector.load %arg1[%c0_56, %c6_57, %c8_58, %c0_59] : memref<1x32x32x32xbf16, #tpu.memory_space<vmem>>, vector<1x16x16x32xbf16>
    %62 = vector.shape_cast %61 : vector<1x16x16x32xbf16> to vector<16x16x32xbf16>
    %63 = vector.shape_cast %62 : vector<16x16x32xbf16> to vector<256x32xbf16>
    %c320 = arith.constant 320 : index
    %c0_60 = arith.constant 0 : index
    %64 = vector.load %arg2[%c320, %c0_60] : memref<1152x16xbf16, #tpu.memory_space<vmem>>, vector<32x16xbf16>
    %cst_61 = arith.constant dense<0.000000e+00> : vector<256x16xf32>
    %65 = tpu.matmul %63, %64, %cst_61 {dimension_numbers = #tpu.dot_dimension_numbers<[1], [0], [0], [1], [0, 0, 1, 1], [], []>} : vector<256x32xbf16>, vector<32x16xbf16>, vector<256x16xf32> -> vector<256x16xf32>
    %66 = arith.addf %60, %65 : vector<256x16xf32>
    %c0_62 = arith.constant 0 : index
    %c6_63 = arith.constant 6 : index
    %c10 = arith.constant 10 : index
    %c0_64 = arith.constant 0 : index
    %67 = vector.load %arg1[%c0_62, %c6_63, %c10, %c0_64] : memref<1x32x32x32xbf16, #tpu.memory_space<vmem>>, vector<1x16x16x32xbf16>
    %68 = vector.shape_cast %67 : vector<1x16x16x32xbf16> to vector<16x16x32xbf16>
    %69 = vector.shape_cast %68 : vector<16x16x32xbf16> to vector<256x32xbf16>
    %c352 = arith.constant 352 : index
    %c0_65 = arith.constant 0 : index
    %70 = vector.load %arg2[%c352, %c0_65] : memref<1152x16xbf16, #tpu.memory_space<vmem>>, vector<32x16xbf16>
    %cst_66 = arith.constant dense<0.000000e+00> : vector<256x16xf32>
    %71 = tpu.matmul %69, %70, %cst_66 {dimension_numbers = #tpu.dot_dimension_numbers<[1], [0], [0], [1], [0, 0, 1, 1], [], []>} : vector<256x32xbf16>, vector<32x16xbf16>, vector<256x16xf32> -> vector<256x16xf32>
    %72 = arith.addf %66, %71 : vector<256x16xf32>
    %c0_67 = arith.constant 0 : index
    %c8_68 = arith.constant 8 : index
    %c6_69 = arith.constant 6 : index
    %c0_70 = arith.constant 0 : index
    %73 = vector.load %arg1[%c0_67, %c8_68, %c6_69, %c0_70] : memref<1x32x32x32xbf16, #tpu.memory_space<vmem>>, vector<1x16x16x32xbf16>
    %74 = vector.shape_cast %73 : vector<1x16x16x32xbf16> to vector<16x16x32xbf16>
    %75 = vector.shape_cast %74 : vector<16x16x32xbf16> to vector<256x32xbf16>
    %c384 = arith.constant 384 : index
    %c0_71 = arith.constant 0 : index
    %76 = vector.load %arg2[%c384, %c0_71] : memref<1152x16xbf16, #tpu.memory_space<vmem>>, vector<32x16xbf16>
    %cst_72 = arith.constant dense<0.000000e+00> : vector<256x16xf32>
    %77 = tpu.matmul %75, %76, %cst_72 {dimension_numbers = #tpu.dot_dimension_numbers<[1], [0], [0], [1], [0, 0, 1, 1], [], []>} : vector<256x32xbf16>, vector<32x16xbf16>, vector<256x16xf32> -> vector<256x16xf32>
    %78 = arith.addf %72, %77 : vector<256x16xf32>
    %c0_73 = arith.constant 0 : index
    %c8_74 = arith.constant 8 : index
    %c8_75 = arith.constant 8 : index
    %c0_76 = arith.constant 0 : index
    %79 = vector.load %arg1[%c0_73, %c8_74, %c8_75, %c0_76] : memref<1x32x32x32xbf16, #tpu.memory_space<vmem>>, vector<1x16x16x32xbf16>
    %80 = vector.shape_cast %79 : vector<1x16x16x32xbf16> to vector<16x16x32xbf16>
    %81 = vector.shape_cast %80 : vector<16x16x32xbf16> to vector<256x32xbf16>
    %c416 = arith.constant 416 : index
    %c0_77 = arith.constant 0 : index
    %82 = vector.load %arg2[%c416, %c0_77] : memref<1152x16xbf16, #tpu.memory_space<vmem>>, vector<32x16xbf16>
    %cst_78 = arith.constant dense<0.000000e+00> : vector<256x16xf32>
    %83 = tpu.matmul %81, %82, %cst_78 {dimension_numbers = #tpu.dot_dimension_numbers<[1], [0], [0], [1], [0, 0, 1, 1], [], []>} : vector<256x32xbf16>, vector<32x16xbf16>, vector<256x16xf32> -> vector<256x16xf32>
    %84 = arith.addf %78, %83 : vector<256x16xf32>
    %c0_79 = arith.constant 0 : index
    %c8_80 = arith.constant 8 : index
    %c10_81 = arith.constant 10 : index
    %c0_82 = arith.constant 0 : index
    %85 = vector.load %arg1[%c0_79, %c8_80, %c10_81, %c0_82] : memref<1x32x32x32xbf16, #tpu.memory_space<vmem>>, vector<1x16x16x32xbf16>
    %86 = vector.shape_cast %85 : vector<1x16x16x32xbf16> to vector<16x16x32xbf16>
    %87 = vector.shape_cast %86 : vector<16x16x32xbf16> to vector<256x32xbf16>
    %c448 = arith.constant 448 : index
    %c0_83 = arith.constant 0 : index
    %88 = vector.load %arg2[%c448, %c0_83] : memref<1152x16xbf16, #tpu.memory_space<vmem>>, vector<32x16xbf16>
    %cst_84 = arith.constant dense<0.000000e+00> : vector<256x16xf32>
    %89 = tpu.matmul %87, %88, %cst_84 {dimension_numbers = #tpu.dot_dimension_numbers<[1], [0], [0], [1], [0, 0, 1, 1], [], []>} : vector<256x32xbf16>, vector<32x16xbf16>, vector<256x16xf32> -> vector<256x16xf32>
    %90 = arith.addf %84, %89 : vector<256x16xf32>
    %c0_85 = arith.constant 0 : index
    %c10_86 = arith.constant 10 : index
    %c6_87 = arith.constant 6 : index
    %c0_88 = arith.constant 0 : index
    %91 = vector.load %arg1[%c0_85, %c10_86, %c6_87, %c0_88] : memref<1x32x32x32xbf16, #tpu.memory_space<vmem>>, vector<1x16x16x32xbf16>
    %92 = vector.shape_cast %91 : vector<1x16x16x32xbf16> to vector<16x16x32xbf16>
    %93 = vector.shape_cast %92 : vector<16x16x32xbf16> to vector<256x32xbf16>
    %c480 = arith.constant 480 : index
    %c0_89 = arith.constant 0 : index
    %94 = vector.load %arg2[%c480, %c0_89] : memref<1152x16xbf16, #tpu.memory_space<vmem>>, vector<32x16xbf16>
    %cst_90 = arith.constant dense<0.000000e+00> : vector<256x16xf32>
    %95 = tpu.matmul %93, %94, %cst_90 {dimension_numbers = #tpu.dot_dimension_numbers<[1], [0], [0], [1], [0, 0, 1, 1], [], []>} : vector<256x32xbf16>, vector<32x16xbf16>, vector<256x16xf32> -> vector<256x16xf32>
    %96 = arith.addf %90, %95 : vector<256x16xf32>
    %c0_91 = arith.constant 0 : index
    %c10_92 = arith.constant 10 : index
    %c8_93 = arith.constant 8 : index
    %c0_94 = arith.constant 0 : index
    %97 = vector.load %arg1[%c0_91, %c10_92, %c8_93, %c0_94] : memref<1x32x32x32xbf16, #tpu.memory_space<vmem>>, vector<1x16x16x32xbf16>
    %98 = vector.shape_cast %97 : vector<1x16x16x32xbf16> to vector<16x16x32xbf16>
    %99 = vector.shape_cast %98 : vector<16x16x32xbf16> to vector<256x32xbf16>
    %c512 = arith.constant 512 : index
    %c0_95 = arith.constant 0 : index
    %100 = vector.load %arg2[%c512, %c0_95] : memref<1152x16xbf16, #tpu.memory_space<vmem>>, vector<32x16xbf16>
    %cst_96 = arith.constant dense<0.000000e+00> : vector<256x16xf32>
    %101 = tpu.matmul %99, %100, %cst_96 {dimension_numbers = #tpu.dot_dimension_numbers<[1], [0], [0], [1], [0, 0, 1, 1], [], []>} : vector<256x32xbf16>, vector<32x16xbf16>, vector<256x16xf32> -> vector<256x16xf32>
    %102 = arith.addf %96, %101 : vector<256x16xf32>
    %c0_97 = arith.constant 0 : index
    %c10_98 = arith.constant 10 : index
    %c10_99 = arith.constant 10 : index
    %c0_100 = arith.constant 0 : index
    %103 = vector.load %arg1[%c0_97, %c10_98, %c10_99, %c0_100] : memref<1x32x32x32xbf16, #tpu.memory_space<vmem>>, vector<1x16x16x32xbf16>
    %104 = vector.shape_cast %103 : vector<1x16x16x32xbf16> to vector<16x16x32xbf16>
    %105 = vector.shape_cast %104 : vector<16x16x32xbf16> to vector<256x32xbf16>
    %c544 = arith.constant 544 : index
    %c0_101 = arith.constant 0 : index
    %106 = vector.load %arg2[%c544, %c0_101] : memref<1152x16xbf16, #tpu.memory_space<vmem>>, vector<32x16xbf16>
    %cst_102 = arith.constant dense<0.000000e+00> : vector<256x16xf32>
    %107 = tpu.matmul %105, %106, %cst_102 {dimension_numbers = #tpu.dot_dimension_numbers<[1], [0], [0], [1], [0, 0, 1, 1], [], []>} : vector<256x32xbf16>, vector<32x16xbf16>, vector<256x16xf32> -> vector<256x16xf32>
    %108 = arith.addf %102, %107 : vector<256x16xf32>
    %c0_103 = arith.constant 0 : index
    %c4 = arith.constant 4 : index
    %c4_104 = arith.constant 4 : index
    %c0_105 = arith.constant 0 : index
    %109 = vector.load %arg1[%c0_103, %c4, %c4_104, %c0_105] : memref<1x32x32x32xbf16, #tpu.memory_space<vmem>>, vector<1x16x16x32xbf16>
    %110 = vector.shape_cast %109 : vector<1x16x16x32xbf16> to vector<16x16x32xbf16>
    %111 = vector.shape_cast %110 : vector<16x16x32xbf16> to vector<256x32xbf16>
    %c576 = arith.constant 576 : index
    %c0_106 = arith.constant 0 : index
    %112 = vector.load %arg2[%c576, %c0_106] : memref<1152x16xbf16, #tpu.memory_space<vmem>>, vector<32x16xbf16>
    %cst_107 = arith.constant dense<0.000000e+00> : vector<256x16xf32>
    %113 = tpu.matmul %111, %112, %cst_107 {dimension_numbers = #tpu.dot_dimension_numbers<[1], [0], [0], [1], [0, 0, 1, 1], [], []>} : vector<256x32xbf16>, vector<32x16xbf16>, vector<256x16xf32> -> vector<256x16xf32>
    %114 = arith.addf %108, %113 : vector<256x16xf32>
    %c0_108 = arith.constant 0 : index
    %c4_109 = arith.constant 4 : index
    %c8_110 = arith.constant 8 : index
    %c0_111 = arith.constant 0 : index
    %115 = vector.load %arg1[%c0_108, %c4_109, %c8_110, %c0_111] : memref<1x32x32x32xbf16, #tpu.memory_space<vmem>>, vector<1x16x16x32xbf16>
    %116 = vector.shape_cast %115 : vector<1x16x16x32xbf16> to vector<16x16x32xbf16>
    %117 = vector.shape_cast %116 : vector<16x16x32xbf16> to vector<256x32xbf16>
    %c608 = arith.constant 608 : index
    %c0_112 = arith.constant 0 : index
    %118 = vector.load %arg2[%c608, %c0_112] : memref<1152x16xbf16, #tpu.memory_space<vmem>>, vector<32x16xbf16>
    %cst_113 = arith.constant dense<0.000000e+00> : vector<256x16xf32>
    %119 = tpu.matmul %117, %118, %cst_113 {dimension_numbers = #tpu.dot_dimension_numbers<[1], [0], [0], [1], [0, 0, 1, 1], [], []>} : vector<256x32xbf16>, vector<32x16xbf16>, vector<256x16xf32> -> vector<256x16xf32>
    %120 = arith.addf %114, %119 : vector<256x16xf32>
    %c0_114 = arith.constant 0 : index
    %c4_115 = arith.constant 4 : index
    %c12 = arith.constant 12 : index
    %c0_116 = arith.constant 0 : index
    %121 = vector.load %arg1[%c0_114, %c4_115, %c12, %c0_116] : memref<1x32x32x32xbf16, #tpu.memory_space<vmem>>, vector<1x16x16x32xbf16>
    %122 = vector.shape_cast %121 : vector<1x16x16x32xbf16> to vector<16x16x32xbf16>
    %123 = vector.shape_cast %122 : vector<16x16x32xbf16> to vector<256x32xbf16>
    %c640 = arith.constant 640 : index
    %c0_117 = arith.constant 0 : index
    %124 = vector.load %arg2[%c640, %c0_117] : memref<1152x16xbf16, #tpu.memory_space<vmem>>, vector<32x16xbf16>
    %cst_118 = arith.constant dense<0.000000e+00> : vector<256x16xf32>
    %125 = tpu.matmul %123, %124, %cst_118 {dimension_numbers = #tpu.dot_dimension_numbers<[1], [0], [0], [1], [0, 0, 1, 1], [], []>} : vector<256x32xbf16>, vector<32x16xbf16>, vector<256x16xf32> -> vector<256x16xf32>
    %126 = arith.addf %120, %125 : vector<256x16xf32>
    %c0_119 = arith.constant 0 : index
    %c8_120 = arith.constant 8 : index
    %c4_121 = arith.constant 4 : index
    %c0_122 = arith.constant 0 : index
    %127 = vector.load %arg1[%c0_119, %c8_120, %c4_121, %c0_122] : memref<1x32x32x32xbf16, #tpu.memory_space<vmem>>, vector<1x16x16x32xbf16>
    %128 = vector.shape_cast %127 : vector<1x16x16x32xbf16> to vector<16x16x32xbf16>
    %129 = vector.shape_cast %128 : vector<16x16x32xbf16> to vector<256x32xbf16>
    %c672 = arith.constant 672 : index
    %c0_123 = arith.constant 0 : index
    %130 = vector.load %arg2[%c672, %c0_123] : memref<1152x16xbf16, #tpu.memory_space<vmem>>, vector<32x16xbf16>
    %cst_124 = arith.constant dense<0.000000e+00> : vector<256x16xf32>
    %131 = tpu.matmul %129, %130, %cst_124 {dimension_numbers = #tpu.dot_dimension_numbers<[1], [0], [0], [1], [0, 0, 1, 1], [], []>} : vector<256x32xbf16>, vector<32x16xbf16>, vector<256x16xf32> -> vector<256x16xf32>
    %132 = arith.addf %126, %131 : vector<256x16xf32>
    %c0_125 = arith.constant 0 : index
    %c8_126 = arith.constant 8 : index
    %c8_127 = arith.constant 8 : index
    %c0_128 = arith.constant 0 : index
    %133 = vector.load %arg1[%c0_125, %c8_126, %c8_127, %c0_128] : memref<1x32x32x32xbf16, #tpu.memory_space<vmem>>, vector<1x16x16x32xbf16>
    %134 = vector.shape_cast %133 : vector<1x16x16x32xbf16> to vector<16x16x32xbf16>
    %135 = vector.shape_cast %134 : vector<16x16x32xbf16> to vector<256x32xbf16>
    %c704 = arith.constant 704 : index
    %c0_129 = arith.constant 0 : index
    %136 = vector.load %arg2[%c704, %c0_129] : memref<1152x16xbf16, #tpu.memory_space<vmem>>, vector<32x16xbf16>
    %cst_130 = arith.constant dense<0.000000e+00> : vector<256x16xf32>
    %137 = tpu.matmul %135, %136, %cst_130 {dimension_numbers = #tpu.dot_dimension_numbers<[1], [0], [0], [1], [0, 0, 1, 1], [], []>} : vector<256x32xbf16>, vector<32x16xbf16>, vector<256x16xf32> -> vector<256x16xf32>
    %138 = arith.addf %132, %137 : vector<256x16xf32>
    %c0_131 = arith.constant 0 : index
    %c8_132 = arith.constant 8 : index
    %c12_133 = arith.constant 12 : index
    %c0_134 = arith.constant 0 : index
    %139 = vector.load %arg1[%c0_131, %c8_132, %c12_133, %c0_134] : memref<1x32x32x32xbf16, #tpu.memory_space<vmem>>, vector<1x16x16x32xbf16>
    %140 = vector.shape_cast %139 : vector<1x16x16x32xbf16> to vector<16x16x32xbf16>
    %141 = vector.shape_cast %140 : vector<16x16x32xbf16> to vector<256x32xbf16>
    %c736 = arith.constant 736 : index
    %c0_135 = arith.constant 0 : index
    %142 = vector.load %arg2[%c736, %c0_135] : memref<1152x16xbf16, #tpu.memory_space<vmem>>, vector<32x16xbf16>
    %cst_136 = arith.constant dense<0.000000e+00> : vector<256x16xf32>
    %143 = tpu.matmul %141, %142, %cst_136 {dimension_numbers = #tpu.dot_dimension_numbers<[1], [0], [0], [1], [0, 0, 1, 1], [], []>} : vector<256x32xbf16>, vector<32x16xbf16>, vector<256x16xf32> -> vector<256x16xf32>
    %144 = arith.addf %138, %143 : vector<256x16xf32>
    %c0_137 = arith.constant 0 : index
    %c12_138 = arith.constant 12 : index
    %c4_139 = arith.constant 4 : index
    %c0_140 = arith.constant 0 : index
    %145 = vector.load %arg1[%c0_137, %c12_138, %c4_139, %c0_140] : memref<1x32x32x32xbf16, #tpu.memory_space<vmem>>, vector<1x16x16x32xbf16>
    %146 = vector.shape_cast %145 : vector<1x16x16x32xbf16> to vector<16x16x32xbf16>
    %147 = vector.shape_cast %146 : vector<16x16x32xbf16> to vector<256x32xbf16>
    %c768 = arith.constant 768 : index
    %c0_141 = arith.constant 0 : index
    %148 = vector.load %arg2[%c768, %c0_141] : memref<1152x16xbf16, #tpu.memory_space<vmem>>, vector<32x16xbf16>
    %cst_142 = arith.constant dense<0.000000e+00> : vector<256x16xf32>
    %149 = tpu.matmul %147, %148, %cst_142 {dimension_numbers = #tpu.dot_dimension_numbers<[1], [0], [0], [1], [0, 0, 1, 1], [], []>} : vector<256x32xbf16>, vector<32x16xbf16>, vector<256x16xf32> -> vector<256x16xf32>
    %150 = arith.addf %144, %149 : vector<256x16xf32>
    %c0_143 = arith.constant 0 : index
    %c12_144 = arith.constant 12 : index
    %c8_145 = arith.constant 8 : index
    %c0_146 = arith.constant 0 : index
    %151 = vector.load %arg1[%c0_143, %c12_144, %c8_145, %c0_146] : memref<1x32x32x32xbf16, #tpu.memory_space<vmem>>, vector<1x16x16x32xbf16>
    %152 = vector.shape_cast %151 : vector<1x16x16x32xbf16> to vector<16x16x32xbf16>
    %153 = vector.shape_cast %152 : vector<16x16x32xbf16> to vector<256x32xbf16>
    %c800 = arith.constant 800 : index
    %c0_147 = arith.constant 0 : index
    %154 = vector.load %arg2[%c800, %c0_147] : memref<1152x16xbf16, #tpu.memory_space<vmem>>, vector<32x16xbf16>
    %cst_148 = arith.constant dense<0.000000e+00> : vector<256x16xf32>
    %155 = tpu.matmul %153, %154, %cst_148 {dimension_numbers = #tpu.dot_dimension_numbers<[1], [0], [0], [1], [0, 0, 1, 1], [], []>} : vector<256x32xbf16>, vector<32x16xbf16>, vector<256x16xf32> -> vector<256x16xf32>
    %156 = arith.addf %150, %155 : vector<256x16xf32>
    %c0_149 = arith.constant 0 : index
    %c12_150 = arith.constant 12 : index
    %c12_151 = arith.constant 12 : index
    %c0_152 = arith.constant 0 : index
    %157 = vector.load %arg1[%c0_149, %c12_150, %c12_151, %c0_152] : memref<1x32x32x32xbf16, #tpu.memory_space<vmem>>, vector<1x16x16x32xbf16>
    %158 = vector.shape_cast %157 : vector<1x16x16x32xbf16> to vector<16x16x32xbf16>
    %159 = vector.shape_cast %158 : vector<16x16x32xbf16> to vector<256x32xbf16>
    %c832 = arith.constant 832 : index
    %c0_153 = arith.constant 0 : index
    %160 = vector.load %arg2[%c832, %c0_153] : memref<1152x16xbf16, #tpu.memory_space<vmem>>, vector<32x16xbf16>
    %cst_154 = arith.constant dense<0.000000e+00> : vector<256x16xf32>
    %161 = tpu.matmul %159, %160, %cst_154 {dimension_numbers = #tpu.dot_dimension_numbers<[1], [0], [0], [1], [0, 0, 1, 1], [], []>} : vector<256x32xbf16>, vector<32x16xbf16>, vector<256x16xf32> -> vector<256x16xf32>
    %162 = arith.addf %156, %161 : vector<256x16xf32>
    %c0_155 = arith.constant 0 : index
    %c0_156 = arith.constant 0 : index
    %c0_157 = arith.constant 0 : index
    %c0_158 = arith.constant 0 : index
    %163 = vector.load %arg1[%c0_155, %c0_156, %c0_157, %c0_158] : memref<1x32x32x32xbf16, #tpu.memory_space<vmem>>, vector<1x16x16x32xbf16>
    %164 = vector.shape_cast %163 : vector<1x16x16x32xbf16> to vector<16x16x32xbf16>
    %165 = vector.shape_cast %164 : vector<16x16x32xbf16> to vector<256x32xbf16>
    %c864 = arith.constant 864 : index
    %c0_159 = arith.constant 0 : index
    %166 = vector.load %arg2[%c864, %c0_159] : memref<1152x16xbf16, #tpu.memory_space<vmem>>, vector<32x16xbf16>
    %cst_160 = arith.constant dense<0.000000e+00> : vector<256x16xf32>
    %167 = tpu.matmul %165, %166, %cst_160 {dimension_numbers = #tpu.dot_dimension_numbers<[1], [0], [0], [1], [0, 0, 1, 1], [], []>} : vector<256x32xbf16>, vector<32x16xbf16>, vector<256x16xf32> -> vector<256x16xf32>
    %168 = arith.addf %162, %167 : vector<256x16xf32>
    %c0_161 = arith.constant 0 : index
    %c0_162 = arith.constant 0 : index
    %c8_163 = arith.constant 8 : index
    %c0_164 = arith.constant 0 : index
    %169 = vector.load %arg1[%c0_161, %c0_162, %c8_163, %c0_164] : memref<1x32x32x32xbf16, #tpu.memory_space<vmem>>, vector<1x16x16x32xbf16>
    %170 = vector.shape_cast %169 : vector<1x16x16x32xbf16> to vector<16x16x32xbf16>
    %171 = vector.shape_cast %170 : vector<16x16x32xbf16> to vector<256x32xbf16>
    %c896 = arith.constant 896 : index
    %c0_165 = arith.constant 0 : index
    %172 = vector.load %arg2[%c896, %c0_165] : memref<1152x16xbf16, #tpu.memory_space<vmem>>, vector<32x16xbf16>
    %cst_166 = arith.constant dense<0.000000e+00> : vector<256x16xf32>
    %173 = tpu.matmul %171, %172, %cst_166 {dimension_numbers = #tpu.dot_dimension_numbers<[1], [0], [0], [1], [0, 0, 1, 1], [], []>} : vector<256x32xbf16>, vector<32x16xbf16>, vector<256x16xf32> -> vector<256x16xf32>
    %174 = arith.addf %168, %173 : vector<256x16xf32>
    %c0_167 = arith.constant 0 : index
    %c0_168 = arith.constant 0 : index
    %c16 = arith.constant 16 : index
    %c0_169 = arith.constant 0 : index
    %175 = vector.load %arg1[%c0_167, %c0_168, %c16, %c0_169] : memref<1x32x32x32xbf16, #tpu.memory_space<vmem>>, vector<1x16x16x32xbf16>
    %176 = vector.shape_cast %175 : vector<1x16x16x32xbf16> to vector<16x16x32xbf16>
    %177 = vector.shape_cast %176 : vector<16x16x32xbf16> to vector<256x32xbf16>
    %c928 = arith.constant 928 : index
    %c0_170 = arith.constant 0 : index
    %178 = vector.load %arg2[%c928, %c0_170] : memref<1152x16xbf16, #tpu.memory_space<vmem>>, vector<32x16xbf16>
    %cst_171 = arith.constant dense<0.000000e+00> : vector<256x16xf32>
    %179 = tpu.matmul %177, %178, %cst_171 {dimension_numbers = #tpu.dot_dimension_numbers<[1], [0], [0], [1], [0, 0, 1, 1], [], []>} : vector<256x32xbf16>, vector<32x16xbf16>, vector<256x16xf32> -> vector<256x16xf32>
    %180 = arith.addf %174, %179 : vector<256x16xf32>
    %c0_172 = arith.constant 0 : index
    %c8_173 = arith.constant 8 : index
    %c0_174 = arith.constant 0 : index
    %c0_175 = arith.constant 0 : index
    %181 = vector.load %arg1[%c0_172, %c8_173, %c0_174, %c0_175] : memref<1x32x32x32xbf16, #tpu.memory_space<vmem>>, vector<1x16x16x32xbf16>
    %182 = vector.shape_cast %181 : vector<1x16x16x32xbf16> to vector<16x16x32xbf16>
    %183 = vector.shape_cast %182 : vector<16x16x32xbf16> to vector<256x32xbf16>
    %c960 = arith.constant 960 : index
    %c0_176 = arith.constant 0 : index
    %184 = vector.load %arg2[%c960, %c0_176] : memref<1152x16xbf16, #tpu.memory_space<vmem>>, vector<32x16xbf16>
    %cst_177 = arith.constant dense<0.000000e+00> : vector<256x16xf32>
    %185 = tpu.matmul %183, %184, %cst_177 {dimension_numbers = #tpu.dot_dimension_numbers<[1], [0], [0], [1], [0, 0, 1, 1], [], []>} : vector<256x32xbf16>, vector<32x16xbf16>, vector<256x16xf32> -> vector<256x16xf32>
    %186 = arith.addf %180, %185 : vector<256x16xf32>
    %c0_178 = arith.constant 0 : index
    %c8_179 = arith.constant 8 : index
    %c8_180 = arith.constant 8 : index
    %c0_181 = arith.constant 0 : index
    %187 = vector.load %arg1[%c0_178, %c8_179, %c8_180, %c0_181] : memref<1x32x32x32xbf16, #tpu.memory_space<vmem>>, vector<1x16x16x32xbf16>
    %188 = vector.shape_cast %187 : vector<1x16x16x32xbf16> to vector<16x16x32xbf16>
    %189 = vector.shape_cast %188 : vector<16x16x32xbf16> to vector<256x32xbf16>
    %c992 = arith.constant 992 : index
    %c0_182 = arith.constant 0 : index
    %190 = vector.load %arg2[%c992, %c0_182] : memref<1152x16xbf16, #tpu.memory_space<vmem>>, vector<32x16xbf16>
    %cst_183 = arith.constant dense<0.000000e+00> : vector<256x16xf32>
    %191 = tpu.matmul %189, %190, %cst_183 {dimension_numbers = #tpu.dot_dimension_numbers<[1], [0], [0], [1], [0, 0, 1, 1], [], []>} : vector<256x32xbf16>, vector<32x16xbf16>, vector<256x16xf32> -> vector<256x16xf32>
    %192 = arith.addf %186, %191 : vector<256x16xf32>
    %c0_184 = arith.constant 0 : index
    %c8_185 = arith.constant 8 : index
    %c16_186 = arith.constant 16 : index
    %c0_187 = arith.constant 0 : index
    %193 = vector.load %arg1[%c0_184, %c8_185, %c16_186, %c0_187] : memref<1x32x32x32xbf16, #tpu.memory_space<vmem>>, vector<1x16x16x32xbf16>
    %194 = vector.shape_cast %193 : vector<1x16x16x32xbf16> to vector<16x16x32xbf16>
    %195 = vector.shape_cast %194 : vector<16x16x32xbf16> to vector<256x32xbf16>
    %c1024 = arith.constant 1024 : index
    %c0_188 = arith.constant 0 : index
    %196 = vector.load %arg2[%c1024, %c0_188] : memref<1152x16xbf16, #tpu.memory_space<vmem>>, vector<32x16xbf16>
    %cst_189 = arith.constant dense<0.000000e+00> : vector<256x16xf32>
    %197 = tpu.matmul %195, %196, %cst_189 {dimension_numbers = #tpu.dot_dimension_numbers<[1], [0], [0], [1], [0, 0, 1, 1], [], []>} : vector<256x32xbf16>, vector<32x16xbf16>, vector<256x16xf32> -> vector<256x16xf32>
    %198 = arith.addf %192, %197 : vector<256x16xf32>
    %c0_190 = arith.constant 0 : index
    %c16_191 = arith.constant 16 : index
    %c0_192 = arith.constant 0 : index
    %c0_193 = arith.constant 0 : index
    %199 = vector.load %arg1[%c0_190, %c16_191, %c0_192, %c0_193] : memref<1x32x32x32xbf16, #tpu.memory_space<vmem>>, vector<1x16x16x32xbf16>
    %200 = vector.shape_cast %199 : vector<1x16x16x32xbf16> to vector<16x16x32xbf16>
    %201 = vector.shape_cast %200 : vector<16x16x32xbf16> to vector<256x32xbf16>
    %c1056 = arith.constant 1056 : index
    %c0_194 = arith.constant 0 : index
    %202 = vector.load %arg2[%c1056, %c0_194] : memref<1152x16xbf16, #tpu.memory_space<vmem>>, vector<32x16xbf16>
    %cst_195 = arith.constant dense<0.000000e+00> : vector<256x16xf32>
    %203 = tpu.matmul %201, %202, %cst_195 {dimension_numbers = #tpu.dot_dimension_numbers<[1], [0], [0], [1], [0, 0, 1, 1], [], []>} : vector<256x32xbf16>, vector<32x16xbf16>, vector<256x16xf32> -> vector<256x16xf32>
    %204 = arith.addf %198, %203 : vector<256x16xf32>
    %c0_196 = arith.constant 0 : index
    %c16_197 = arith.constant 16 : index
    %c8_198 = arith.constant 8 : index
    %c0_199 = arith.constant 0 : index
    %205 = vector.load %arg1[%c0_196, %c16_197, %c8_198, %c0_199] : memref<1x32x32x32xbf16, #tpu.memory_space<vmem>>, vector<1x16x16x32xbf16>
    %206 = vector.shape_cast %205 : vector<1x16x16x32xbf16> to vector<16x16x32xbf16>
    %207 = vector.shape_cast %206 : vector<16x16x32xbf16> to vector<256x32xbf16>
    %c1088 = arith.constant 1088 : index
    %c0_200 = arith.constant 0 : index
    %208 = vector.load %arg2[%c1088, %c0_200] : memref<1152x16xbf16, #tpu.memory_space<vmem>>, vector<32x16xbf16>
    %cst_201 = arith.constant dense<0.000000e+00> : vector<256x16xf32>
    %209 = tpu.matmul %207, %208, %cst_201 {dimension_numbers = #tpu.dot_dimension_numbers<[1], [0], [0], [1], [0, 0, 1, 1], [], []>} : vector<256x32xbf16>, vector<32x16xbf16>, vector<256x16xf32> -> vector<256x16xf32>
    %210 = arith.addf %204, %209 : vector<256x16xf32>
    %c0_202 = arith.constant 0 : index
    %c16_203 = arith.constant 16 : index
    %c16_204 = arith.constant 16 : index
    %c0_205 = arith.constant 0 : index
    %211 = vector.load %arg1[%c0_202, %c16_203, %c16_204, %c0_205] : memref<1x32x32x32xbf16, #tpu.memory_space<vmem>>, vector<1x16x16x32xbf16>
    %212 = vector.shape_cast %211 : vector<1x16x16x32xbf16> to vector<16x16x32xbf16>
    %213 = vector.shape_cast %212 : vector<16x16x32xbf16> to vector<256x32xbf16>
    %c1120 = arith.constant 1120 : index
    %c0_206 = arith.constant 0 : index
    %214 = vector.load %arg2[%c1120, %c0_206] : memref<1152x16xbf16, #tpu.memory_space<vmem>>, vector<32x16xbf16>
    %cst_207 = arith.constant dense<0.000000e+00> : vector<256x16xf32>
    %215 = tpu.matmul %213, %214, %cst_207 {dimension_numbers = #tpu.dot_dimension_numbers<[1], [0], [0], [1], [0, 0, 1, 1], [], []>} : vector<256x32xbf16>, vector<32x16xbf16>, vector<256x16xf32> -> vector<256x16xf32>
    %216 = arith.addf %210, %215 : vector<256x16xf32>
    %c0_208 = arith.constant 0 : index
    %c0_209 = arith.constant 0 : index
    %217 = vector.load %arg3[%c0_208, %c0_209] : memref<1x16xf32, #tpu.memory_space<vmem>>, vector<1x16xf32>
    %218 = vector.broadcast %217 : vector<1x16xf32> to vector<256x16xf32>
    %219 = arith.addf %216, %218 : vector<256x16xf32>
    %c0_210 = arith.constant 0 : index
    %c0_211 = arith.constant 0 : index
    %c0_212 = arith.constant 0 : index
    %220 = vector.load %arg4[%c0_210, %c0_211, %c0_212] : memref<1x256x16xf32, #tpu.memory_space<vmem>>, vector<1x256x16xf32>
    %221 = vector.shape_cast %220 : vector<1x256x16xf32> to vector<256x16xf32>
    %222 = vector.shape_cast %219 : vector<256x16xf32> to vector<1x256x16xf32>
    tpu.vector_store %arg4[%c0_210, %c0_211, %c0_212], %222 {strides = array<i32>} : memref<1x256x16xf32, #tpu.memory_space<vmem>>, vector<1x256x16xf32>,
    return
  }
  func.func @transform_0(%arg0: i32) -> (i32, i32, i32, i32) {
    %c0_i32 = arith.constant 0 : i32
    %c0_i32_0 = arith.constant 0 : i32
    %c0_i32_1 = arith.constant 0 : i32
    %c0_i32_2 = arith.constant 0 : i32
    return %arg0, %c0_i32, %c0_i32_0, %c0_i32_1 : i32, i32, i32, i32
  }
  func.func @transform_1(%arg0: i32) -> (i32, i32) {
    %c0_i32 = arith.constant 0 : i32
    %c0_i32_0 = arith.constant 0 : i32
    %c0_i32_1 = arith.constant 0 : i32
    return %c0_i32, %c0_i32_0 : i32, i32
  }
  func.func @transform_2(%arg0: i32) -> (i32, i32) {
    %c0_i32 = arith.constant 0 : i32
    %c0_i32_0 = arith.constant 0 : i32
    %c0_i32_1 = arith.constant 0 : i32
    return %c0_i32, %c0_i32_0 : i32, i32
  }
  func.func @transform_3(%arg0: i32) -> (i32, i32, i32) {
    %c0_i32 = arith.constant 0 : i32
    %c0_i32_0 = arith.constant 0 : i32
    %c0_i32_1 = arith.constant 0 : i32
    return %arg0, %c0_i32, %c0_i32_0 : i32, i32, i32
  }
}

</mosaic_0001>

<bundles_post_ra>
// kernel: tpu_custom_call.1
= control target key start
LH: loop header
LB: loop body
LE: loop exit
PB: predicated region body
PF: predicated region fallthrough
CT: control target
= control target key end

     0   :  { %8 = vsyncpa [#allocation3], 0  ;;  %s28057_s0 = inlined_call_operand.hbm [shape: bf16[2,32,32,32], index: 0, kind: input, shape index: {}]   ;;  %s28058_s1 = inlined_call_operand.vmem [shape: bf16[1152,16], index: 1, kind: input, shape index: {}]   ;;  %s28059_s2 = inlined_call_operand.vmem [shape: f32[1,16], index: 2, kind: input, shape index: {}]   ;;  %s28060_s3 = inlined_call_operand.vmem [shape: f32[2,256,16], index: 3, kind: output, shape index: {}]  }
   0x1   :  { %10 = vsyncpa [#allocation3 + $0x1], 0  ;;  %s22522_s12 = smov 0   ;;  %s22524_s13 = smov 0  }
   0x2   :  { %s22526_s14 = smov 0   ;;  %s22528_s15 = smov 0  }
   0x3 LB: > { %s22541_s16 = sadd.s32 4294967295, %s22497_s15   ;;  %s22544_s17 = sadd.s32 1, %s22497_s15   ;;  %s22497_s15 = sphi %s22528_s15, %s28352_s15   ;;  %s22493_s14 = sphi %s22526_s14, %s28351_s14   ;;  %s22489_s13 = sphi %s22524_s13, %s28350_s13   ;;  %s22485_s12 = sphi %s22522_s12, %s28349_s12  }
   0x4   : > { %s20_s18 = ssub.s32 %s22497_s15, %s22544_s17  ;;  %s23_s19 = sadd.s32 1, %s22493_s14 }
   0x5   : > { %p21_p0 = scmp.eq.s32.totalorder %s20_s18, 0  ;;  %p30_p1 = scmp.ne.s32.totalorder %s22493_s14, %s22489_s13 }
   0x6   : > { %p31_p2 = scmp.eq.s32.totalorder %s22497_s15, 0  ;;  %p36_p3 = scmp.ne.s32.totalorder %s22489_s13, %s22485_s12 }
   0x7   : > { %s22554_s20 = scalar_select %p21_p0, %s22493_s14, %s23_s19  }
   0x8   : > { %p32_p4 = por %p31_p2, %p30_p1  ;;  %p37_p5 = scmp.eq.s32.totalorder %s22541_s16, 0 }
   0x9   : > { %p22012_p6 = scmp.lt.s32.totalorder %s22497_s15, 2  ;;  %s134_s22 = sand.u32 1, %s22493_s14  }
   0xa   : > { %p22558_p7 = por %p37_p5, %p36_p3  ;;  %s16538_s23 = sshll.u32 %s134_s22, 9 }
   0xb   : > { %s18940_s24 = sshll.u32 %s22497_s15, 13  ;;  %s138_s28 = scalar_lea.vmem [#allocation2], %s16538_s23 }
   0xc   : > { %s22567_s27 = scalar_lea.hbm %s28057_s0, %s18940_s24  ;;  %s145_s29 = sshll.u32 %s138_s28, 4  ;;  %s22569_s29 = int_to_ptr.vmem [resolvable:$true] %s145_s29 }
   0xd   : > { %p22571_p8 = pnand %p22012_p6, %p32_p4  ;;  %s22576_s4 = scalar_lea.sflag [#allocation3], %s134_s22 }
   0xe   : > { %s22433_s5 = scalar_lea.hbm %s22567_s27, 8192  ;;  %s22438_s8 = scalar_lea.hbm %s28057_s0, 16384 }
   0xf   : > { %p22434_p10 = scmp.ne.s32.totalorder %s22567_s27, %s22433_s5  ;;  %p22435_p11 = pneg %p22571_p8 }
  0x10   : > { %p22439_p0 = scmp.lt.u32.totalorder %s22567_s27, %s28057_s0  ;;  %p22440_p1 = scmp.lt.u32.totalorder %s22438_s8, %s22433_s5 }
  0x11   : > { %p22436_p12 = pnand %p22435_p11, %p22434_p10  ;;  %p22442_p3 = scmp.lt.u32.totalorder %s22433_s5, %s22567_s27 }
  0x12   : > { %p22441_p2 = por %p22440_p1, %p22439_p0 }
  0x13   : > { %p22437_p13 = pneg %p22436_p12 }
  0x14   : > { %p22443_p4 = por %p22442_p3, %p22441_p2 }
  0x16   : > { %p22444_p5 = pnand %p22443_p4, %p22437_p13 }
  0x18   : > { %22447 = shalt.err (!%p22444_p5)
}
  0x19   : > { %s22448_s11 = scalar_lea.vmem %s22569_s29, 8192  ;;  %s22499_s12 = smov [#allocation2]  }
  0x1a   : > { %p22449_p6 = scmp.ne.s32.totalorder %s22569_s29, %s22448_s11  ;;  %s22453_s18 = sshll.u32 %s22499_s12, 4  ;;  %s22454_s18 = int_to_ptr.vmem [resolvable:$false] %s22453_s18 }
  0x1b   : > { %s22455_s19 = scalar_lea.vmem %s22454_s18, 16384  ;;  %p22456_p9 = scmp.lt.s32.totalorder %s22569_s29, %s22454_s18 }
  0x1c   : > { %p22451_p10 = pnand %p22449_p6, %p22435_p11  ;;  %p22457_p0 = scmp.lt.s32.totalorder %s22455_s19, %s22448_s11 }
  0x1e   : > { %p22452_p12 = pneg %p22451_p10  ;;  %p22458_p1 = por %p22457_p0, %p22456_p9 }
  0x20   : > { %p22459_p2 = pnand %p22458_p1, %p22452_p12 }
  0x22   : > { %22462 = shalt.err (!%p22459_p2)
}
  0x23   : > { %s22500_s22 = smov 64   ;;  %s22501_s23 = smov 4  }
  0x24   : > { %22011 = dma.hbm_to_vmem [thread:$0]  (!%p22571_p8), %s22567_s27, 8192, %s22569_s29, %s22576_s4, %s22500_s22, %s22500_s22, %s22501_s23  }
  0x25   : > { %p153_p11 = scmp.lt.s32.totalorder %s22497_s15, 3  ;;  %p28150_p13 = scmp.ge.s32.totalorder %s22497_s15, 1 }
  0x27   : > { %p154_p3 = pnand %p28150_p13, %p153_p11 }
  0x29   : > { %157 = sbr.rel (%p154_p3) target bundleno = 1451 (0x5ab), region = 32 }
  0x30   : > { %s159_s24 = sand.u32 1, %s22489_s13  }
  0x31   : > { %s16542_s25 = sshll.u32 %s159_s24, 9  ;;  %s160_s26 = scalar_lea.sflag [#allocation3], %s159_s24 }
  0x32   : > { %s22608_s28 = scalar_lea.vmem [#allocation2], %s16542_s25 }
  0x33   : > { %22480 = dma.done.wait (%p22558_p7), %s160_s26, 8192  }
  0x34   : > { %22482 = vsyncadd (%p22558_p7), %s160_s26, 4294959104  ;;  %vm241_vm0 = vsmask.f32 256  ;;  %vm242_vm1 = vsmask.f32 4368  ;;  %v22047_v0 = vld [vmem:[%s28058_s1 + $0x10] sm:$0xff]  }
  0x35   : > { %v22048_v1 = vld [vmem:[%s28058_s1 + $0x120] sm:$0xff]   ;;  %vm9461_vm2 = vcmask 1041408   ;;  %19590 = vmatprep.subr.bf16.mxu1 %v22047_v0  ;;  %v22049_v2 = vld [vmem:[%s28058_s1 + $0x18] sm:$0xff]   ;;  %vm9462_vm3 = vcmask 1045508   ;;  %v22050_v3 = vld [vmem:[%s28058_s1 + $0x128] sm:$0xff]   ;;  %vm696_vm4 = vcmask 261120  }
  0x36   : > { %20238 = vmatprep.subr.bf16.mxu0 %v22048_v1  ;;  %19591 = vmatpush3.bf16.msra.mxu1 %v22047_v0  ;;  %v16546_v4 = vld [vmem:[%s22608_s28 + $0x74] sm:$0xf]  ;;  %v16547_v5 = vld [vmem:[%s22608_s28 + $0x78] sm:$0xf]  ;;  %v17829_v6 = vld [vmem:[%s22608_s28 + $0x40] sm:$0xc] }
  0x37   : > { %20239 = vmatpush3.bf16.msra.mxu0 %v22048_v1  ;;  %19592 = vmatprep.subr.bf16.mxu1 %v22049_v2  ;;  %v250_v7 = vshrl.u32 %v16546_v4, 16  ;;  %v253_v8 = vshll.u32 %v16546_v4, 16  ;;  %v259_v9 = vshrl.u32 %v16547_v5, 16  ;;  %v262_v10 = vshll.u32 %v16547_v5, 16  ;;  %v22630_v11 = vld [vmem:[%s22608_s28 + $0x44] sm:$0xf]  ;;  %vm22634_vm5 = vmor %vm9461_vm2, %vm9462_vm3 }
  0x38   : > { %20240 = vmatprep.subr.bf16.mxu0 %v22050_v3  ;;  %v16609_v13 = vcombine.low %v16546_v4, %v16547_v5  ;;  %v17831_v14 = vld [vmem:[%s22608_s28 + $0x48] sm:$0x3]  ;;  %v17877_v15 = vrot.slane %v17829_v6, 10  ;;  %v9466_v16 = vrot.slane %v22630_v11, 6  ;;  %v16549_v17 = vld [vmem:[%s22608_s28 + $0x84] sm:$0xf]  ;;  %vm22659_vm6 = vmor %vm241_vm0, %vm242_vm1 }
  0x39   : > { %v252_v18 = vrot.slane %v250_v7, 7  ;;  %v261_v19 = vrot.slane %v259_v9, 7  ;;  %v9469_v20 = vrot.slane %v17831_v14, 6  ;;  %v16550_v21 = vld [vmem:[%s22608_s28 + $0x88] sm:$0xf]  ;;  %v272_v22 = vshrl.u32 %v16549_v17, 16 }
  0x3a   : > { %19593 = vmatpush3.bf16.msra.mxu1 %v22049_v2  ;;  %19594 = vmatprep.mubr.msk.bf16.mxu1 %vm696_vm4, %v16609_v13  ;;  %v9467_v23 = vsel %vm22634_vm5, %v17877_v15, %v9466_v16  ;;  %v9468_v24 = vrot.slane %v9466_v16, 4  ;;  %v275_v25 = vshll.u32 %v16549_v17, 16  ;;  %v281_v26 = vshrl.u32 %v16550_v21, 16  ;;  %v22053_v27 = vld [vmem:[%s28058_s1] sm:$0xff]   ;;  %v17832_v31 = vld [vmem:[%s22608_s28 + $0x50] sm:$0xc] }
  0x3b   : > { %20241 = vmatpush3.bf16.msra.mxu0 %v22050_v3  ;;  %v257_v28 = vrot.slane %v252_v18, 4  ;;  %v264_v29 = vor.u32 %v262_v10, %v261_v19  ;;  %v22648_v30 = vrot.slane %v272_v22, 7  ;;  %v284_v34 = vshll.u32 %v16550_v21, 16  ;;  %19626 = vmatprep.subr.bf16.mxu1 %v22053_v27  ;;  %v22654_v36 = vld [vmem:[%s22608_s28 + $0x54] sm:$0xf]  ;;  %v22064_v48 = vld [vmem:[%s28058_s1 + $0x8] sm:$0xff]  }
  0x3c   : > { %v9470_v32 = vsel %vm22634_vm5, %v9468_v24, %v9469_v20  ;;  %v283_v33 = vrot.slane %v281_v26, 7  ;;  %v16610_v35 = vcombine.low %v16549_v17, %v16550_v21  ;;  %28153 = vst [vmem:[#allocation5_spill] sm:$0xff] %v22654_v36  ;;  %v17834_v37 = vld [vmem:[%s22608_s28 + $0x58] sm:$0x3]  ;;  %v17878_v41 = vrot.slane %v17832_v31, 10  ;;  %v22055_v47 = vld [vmem:[%s28058_s1 + $0x130] sm:$0xff]  }
  0x3d   : > { %v17893_v39 = vcombine.low %v9467_v23, %v9470_v32  ;;  %v279_v40 = vrot.slane %v22648_v30, 4  ;;  %v22665_v42 = vld [vmem:[%s22608_s28 + $0x58] sm:$0xf]  ;;  %v22667_v43 = vor.u32 %v253_v8, %v252_v18  ;;  %v22670_v44 = vor.u32 %v275_v25, %v22648_v30  ;;  %v16552_v51 = vld [vmem:[%s22608_s28 + $0x94] sm:$0xf]  ;;  %20274 = vmatprep.subr.bf16.mxu0 %v22055_v47  ;;  %v22704_v1 = vld [vmem:[%s28058_s1 + $0x20] sm:$0xff]  }
  0x3e   : > { %28156 = vst [vmem:[#allocation6_spill] sm:$0xff] %v22665_v42  ;;  %19595 = vmatmul.mubr.msk.bf16.vlgmr.msra.gmra.mrb[0].mxu1 %vm696_vm4, %v16610_v35  ;;  %v9473_v45 = vrot.slane %v22654_v36, 6  ;;  %v9476_v46 = vrot.slane %v17834_v37, 6  ;;  %v286_v49 = vor.u32 %v284_v34, %v283_v33  ;;  %v22685_v52 = vld [vmem:[%s22608_s28 + $0x98] sm:$0xf]  ;;  %v22690_v54 = vsel %vm22659_vm6, %v257_v28, %v264_v29  ;;  %v22753_v31 = vld [vmem:[%s28058_s1 + $0x140] sm:$0xff]  }
  0x3f   : > { %20242 = vmatprep.mubr.msk.bf16.mxu0 %vm696_vm4, %v17893_v39  ;;  %19627 = vmatpush3.bf16.msra.mxu1 %v22053_v27  ;;  %v17835_v53 = vld [vmem:[%s22608_s28 + $0x60] sm:$0xc]  ;;  %v294_v57 = vshrl.u32 %v16552_v51, 16  ;;  %v297_v58 = vshll.u32 %v16552_v51, 16  ;;  %v22695_v59 = vld [vmem:[%s22608_s28 + $0x64] sm:$0xf]  ;;  %v16611_v62 = vcombine.low %v16552_v51, %v22685_v52 }
  0x40   : > { %v9474_v55 = vsel %vm22634_vm5, %v17878_v41, %v9473_v45  ;;  %v9475_v56 = vrot.slane %v9473_v45, 4  ;;  %19628 = vmatprep.subr.bf16.mxu1 %v22064_v48  ;;  %v303_v60 = vshrl.u32 %v22685_v52, 16  ;;  %v306_v61 = vshll.u32 %v22685_v52, 16  ;;  %v17837_v63 = vld [vmem:[%s22608_s28 + $0x68] sm:$0x3]  ;;  %v22065_v14 = vld [vmem:[%s28058_s1 + $0x138] sm:$0xff]  }
  0x41   : > { %v17879_v0 = vrot.slane %v17835_v53, 10  ;;  %v22708_v3 = vrot.slane %v294_v57, 7  ;;  %v9480_v4 = vrot.slane %v22695_v59, 6  ;;  %v9483_v5 = vrot.slane %v17837_v63, 6  ;;  %v22712_v6 = vld [vmem:[%s22608_s28 + $0xa4] sm:$0xf]  ;;  %19598 = vmatprep.mubr.msk.bf16.mxu1 %vm696_vm4, %v16611_v62 }
  0x42   : > { %v9477_v2 = vsel %vm22634_vm5, %v9475_v56, %v9476_v46  ;;  %v305_v8 = vrot.slane %v303_v60, 7  ;;  %v22716_v9 = vld [vmem:[%s22608_s28 + $0xa8] sm:$0xf]  ;;  %v316_v10 = vshrl.u32 %v22712_v6, 16  ;;  %v319_v13 = vshll.u32 %v22712_v6, 16  ;;  %28157 = vst [vmem:[#allocation7_spill] sm:$0xff] %v22753_v31 }
  0x43   : > { %v17894_v7 = vcombine.low %v9474_v55, %v9477_v2  ;;  %19629 = vmatpush3.bf16.msra.mxu1 %v22064_v48  ;;  %v9481_v15 = vsel %vm22634_vm5, %v17879_v0, %v9480_v4  ;;  %v9482_v16 = vrot.slane %v9480_v4, 4  ;;  %v325_v17 = vshrl.u32 %v22716_v9, 16  ;;  %v17838_v19 = vld [vmem:[%s22608_s28 + $0x70] sm:$0xc]  ;;  %v22735_v22 = vld [vmem:[%s22608_s28 + $0x74] sm:$0xf] }
  0x44   : > { %v328_v18 = vshll.u32 %v22716_v9, 16  ;;  %19662 = vmatprep.subr.bf16.mxu1 %v22704_v1  ;;  %v22730_v20 = vrot.slane %v316_v10, 7  ;;  %v16612_v21 = vcombine.low %v22712_v6, %v22716_v9  ;;  %v17840_v23 = vld [vmem:[%s22608_s28 + $0x78] sm:$0x3]  ;;  %v17880_v24 = vrot.slane %v17838_v19, 10  ;;  %p186_p7 = scmp.lt.s32.totalorder %s22541_s16, 1 }
  0x45   : > { %20243 = vmatmul.mubr.msk.bf16.vlgmr.msra.gmra.mrb[0].mxu0 %vm696_vm4, %v17894_v7  ;;  %v22740_v25 = vsel %vm22659_vm6, %v279_v40, %v286_v49  ;;  %v9484_v26 = vsel %vm22634_vm5, %v9482_v16, %v9483_v5  ;;  %v22744_v27 = vrot.slane %v325_v17, 7  ;;  %v9487_v28 = vrot.slane %v22735_v22, 6  ;;  %v22748_v30 = vld [vmem:[%s22608_s28 + $0xb4] sm:$0xf]  ;;  %v22757_v33 = vld [vmem:[%s22608_s28 + $0xb8] sm:$0xf] }
  0x46   : > { %20275 = vmatpush3.bf16.msra.mxu0 %v22055_v47  ;;  %v9490_v29 = vrot.slane %v17840_v23, 6  ;;  %v17895_v32 = vcombine.low %v9481_v15, %v9484_v26  ;;  %19599 = vmatmul.mubr.msk.bf16.gmra.mrb[4].mxu1 %vm696_vm4, %v16612_v21  ;;  %v338_v34 = vshrl.u32 %v22748_v30, 16  ;;  %v341_v35 = vshll.u32 %v22748_v30, 16  ;;  %v17841_v37 = vld [vmem:[%s22608_s28 + $0x80] sm:$0xc]  ;;  %s28354_s16 = smov (!%p186_p7, %s22541_s16), 1 }
  0x47   : > { %20276 = vmatprep.subr.bf16.mxu0 %v22065_v14  ;;  %v22763_v39 = vor.u32 %v297_v58, %v22708_v3  ;;  %v9488_v40 = vsel %vm22634_vm5, %v17880_v24, %v9487_v28  ;;  %v9489_v41 = vrot.slane %v9487_v28, 4  ;;  %v347_v45 = vshrl.u32 %v22757_v33, 16  ;;  %v22770_v47 = vld [vmem:[%s22608_s28 + $0x84] sm:$0xf]  ;;  %v17843_v51 = vld [vmem:[%s22608_s28 + $0x88] sm:$0x3] }
  0x48   : > { %v350_v46 = vshll.u32 %v22757_v33, 16  ;;  %20246 = vmatprep.mubr.msk.bf16.mxu0 %vm696_vm4, %v17895_v32  ;;  %v22773_v48 = vrot.slane %v338_v34, 7  ;;  %v16613_v49 = vcombine.low %v22748_v30, %v22757_v33  ;;  %v17881_v53 = vrot.slane %v17841_v37, 10  ;;  %v22784_v60 = vld [vmem:[%s22608_s28 + $0xc4] sm:$0xf]  ;;  %s18941_s24 = sshll.u32 %s28354_s16, 8 }
  0x49   : > { %v9494_v55 = vrot.slane %v22770_v47, 6  ;;  %v9491_v56 = vsel %vm22634_vm5, %v9489_v41, %v9490_v29  ;;  %v22781_v57 = vrot.slane %v347_v45, 7  ;;  %v9497_v58 = vrot.slane %v17843_v51, 6  ;;  %v22787_v62 = vld [vmem:[%s22608_s28 + $0xc8] sm:$0xf]  ;;  %s27946_s27 = scalar_lea.vmem %s28060_s3, %s18941_s24 }
  0x4a   : > { %20277 = vmatpush3.bf16.msra.mxu0 %v22065_v14  ;;  %v22791_v63 = vor.u32 %v306_v61, %v305_v8  ;;  %v17896_v0 = vcombine.low %v9488_v40, %v9491_v56  ;;  %19602 = vmatprep.mubr.msk.bf16.mxu1 %vm696_vm4, %v16613_v49  ;;  %v360_v5 = vshrl.u32 %v22784_v60, 16  ;;  %v17844_v7 = vld [vmem:[%s22608_s28 + $0x90] sm:$0xc]  ;;  %v22799_v10 = vld [vmem:[%s22608_s28 + $0x94] sm:$0xf]  ;;  %v363_v52 = vshll.u32 %v22784_v60, 16 }
  0x4b   : > { %v9495_v2 = vsel %vm22634_vm5, %v17881_v53, %v9494_v55  ;;  %v9496_v4 = vrot.slane %v9494_v55, 4  ;;  %20310 = vmatprep.subr.bf16.mxu0 %v22753_v31  ;;  %v369_v61 = vshrl.u32 %v22787_v62, 16  ;;  %v372_v8 = vshll.u32 %v22787_v62, 16  ;;  %v17846_v15 = vld [vmem:[%s22608_s28 + $0x98] sm:$0x3] }
  0x4c   : > { %v16614_v14 = vcombine.low %v22784_v60, %v22787_v62  ;;  %v22811_v17 = vrot.slane %v360_v5, 7  ;;  %v17882_v19 = vrot.slane %v17844_v7, 10  ;;  %v9501_v21 = vrot.slane %v22799_v10, 6  ;;  %v22815_v23 = vld [vmem:[%s22608_s28 + $0xd4] sm:$0xf] }
  0x4d   : > { %20247 = vmatmul.mubr.msk.bf16.gmra.mrb[4].mxu0 %vm696_vm4, %v17896_v0  ;;  %v9498_v16 = vsel %vm22634_vm5, %v9496_v4, %v9497_v58  ;;  %v22817_v26 = vrot.slane %v369_v61, 7  ;;  %v9504_v28 = vrot.slane %v17846_v15, 6  ;;  %v22820_v29 = vld [vmem:[%s22608_s28 + $0xd8] sm:$0xf]  ;;  %v382_v32 = vshrl.u32 %v22815_v23, 16 }
  0x4e   : > { %v17897_v24 = vcombine.low %v9495_v2, %v9498_v16  ;;  %19603 = vmatmul.mubr.msk.bf16.gmra.mrb[8].mxu1 %vm696_vm4, %v16614_v14  ;;  %v9502_v34 = vsel %vm22634_vm5, %v17882_v19, %v9501_v21  ;;  %v9503_v37 = vrot.slane %v9501_v21, 4  ;;  %v391_v41 = vshrl.u32 %v22820_v29, 16  ;;  %v17847_v45 = vld [vmem:[%s22608_s28 + $0xa0] sm:$0xc]  ;;  %v22836_v55 = vld [vmem:[%s22608_s28 + $0xa4] sm:$0xf] }
  0x4f   : > { %v22830_v49 = vrot.slane %v382_v32, 7  ;;  %v16615_v53 = vcombine.low %v22815_v23, %v22820_v29  ;;  %v17849_v56 = vld [vmem:[%s22608_s28 + $0xa8] sm:$0x3]  ;;  %v22842_v58 = vor.u32 %v319_v13, %v22730_v20  ;;  %v17883_v4 = vrot.slane %v17847_v45, 10  ;;  %v22850_v7 = vld [vmem:[%s22608_s28 + $0xe4] sm:$0xf] }
  0x50   : > { %20250 = vmatprep.mubr.msk.bf16.mxu0 %vm696_vm4, %v17897_v24  ;;  %v9505_v0 = vsel %vm22634_vm5, %v9503_v37, %v9504_v28  ;;  %v22846_v2 = vrot.slane %v391_v41, 7  ;;  %v9508_v5 = vrot.slane %v22836_v55, 6  ;;  %v9511_v14 = vrot.slane %v17849_v56, 6  ;;  %v22854_v6 = vld [vmem:[%s22608_s28 + $0xe8] sm:$0xf] }
  0x51   : > { %v17898_v61 = vcombine.low %v9502_v34, %v9505_v0  ;;  %19606 = vmatprep.mubr.msk.bf16.mxu1 %vm696_vm4, %v16615_v53  ;;  %v404_v13 = vshrl.u32 %v22850_v7, 16  ;;  %v413_v21 = vshrl.u32 %v22854_v6, 16  ;;  %v17850_v28 = vld [vmem:[%s22608_s28 + $0xb0] sm:$0xc]  ;;  %v16616_v34 = vcombine.low %v22850_v7, %v22854_v6  ;;  %v22868_v37 = vld [vmem:[%s22608_s28 + $0xb4] sm:$0xf] }
  0x52   : > { %v9509_v16 = vsel %vm22634_vm5, %v17883_v4, %v9508_v5  ;;  %v9510_v19 = vrot.slane %v9508_v5, 4  ;;  %v17852_v41 = vld [vmem:[%s22608_s28 + $0xb8] sm:$0x3]  ;;  %v17884_v45 = vrot.slane %v17850_v28, 10  ;;  %v22874_v53 = vor.u32 %v328_v18, %v22744_v27  ;;  %v17853_v27 = vld [vmem:[%s22608_s28 + $0xc0] sm:$0xc] }
  0x53   : > { %v22863_v32 = vrot.slane %v404_v13, 7  ;;  %v22879_v0 = vrot.slane %v413_v21, 7  ;;  %v9515_v4 = vrot.slane %v22868_v37, 6  ;;  %v9518_v5 = vrot.slane %v17852_v41, 6  ;;  %v22883_v13 = vld [vmem:[%s22608_s28 + $0xf4] sm:$0xf] }
  0x54   : > { %v9512_v56 = vsel %vm22634_vm5, %v9510_v19, %v9511_v14  ;;  %v22886_v50 = vld [vmem:[%s22608_s28 + $0xf8] sm:$0xf]  ;;  %v426_v9 = vshrl.u32 %v22883_v13, 16  ;;  %v22902_v41 = vld [vmem:[%s22608_s28 + $0xc4] sm:$0xf]  ;;  %v22962_v60 = vor.u32 %v372_v8, %v22817_v26  ;;  %vm5572_vm10 = vcmask 1040384  }
  0x55   : > { %20251 = vmatmul.mubr.msk.bf16.gmra.mrb[8].mxu0 %vm696_vm4, %v17898_v61  ;;  %v17899_v28 = vcombine.low %v9509_v16, %v9512_v56  ;;  %v22894_v61 = vor.u32 %v341_v35, %v22773_v48  ;;  %v9516_v14 = vsel %vm22634_vm5, %v17884_v45, %v9515_v4  ;;  %v9517_v16 = vrot.slane %v9515_v4, 4  ;;  %28158 = vst [vmem:[#allocation8_spill] sm:$0xff] %v22902_v41  ;;  %v17855_v35 = vld [vmem:[%s22608_s28 + $0xc8] sm:$0x3]  ;;  %v22916_v24 = vld [vmem:[%s22608_s28 + $0x104] sm:$0xf] }
  0x56   : > { %19607 = vmatmul.mubr.msk.bf16.gmra.mrb[12].mxu1 %vm696_vm4, %v16616_v34  ;;  %v435_v19 = vshrl.u32 %v22886_v50, 16  ;;  %v22905_v56 = vrot.slane %v426_v9, 7  ;;  %v16617_v30 = vcombine.low %v22883_v13, %v22886_v50  ;;  %v17885_v34 = vrot.slane %v17853_v27, 10  ;;  %v23005_v26 = vld [vmem:[%s22608_s28 + $0x124] sm:$0xf] }
  0x57   : > { %20254 = vmatprep.mubr.msk.bf16.mxu0 %vm696_vm4, %v17899_v28  ;;  %v9522_v18 = vrot.slane %v22902_v41, 6  ;;  %v9519_v45 = vsel %vm22634_vm5, %v9517_v16, %v9518_v5  ;;  %v9525_v21 = vrot.slane %v17855_v35, 6  ;;  %v22919_v28 = vld [vmem:[%s22608_s28 + $0x108] sm:$0xf]  ;;  %v22924_v9 = vor.u32 %v350_v46, %v22781_v57  ;;  %v17856_v46 = vld [vmem:[%s22608_s28 + $0xd0] sm:$0xc] }
  0x58   : > { %28159 = vst [vmem:[#allocation9_spill] sm:$0xff] %v22905_v56  ;;  %v22913_v4 = vrot.slane %v435_v19, 7  ;;  %v17900_v27 = vcombine.low %v9516_v14, %v9519_v45  ;;  %19610 = vmatprep.mubr.msk.bf16.mxu1 %vm696_vm4, %v16617_v30  ;;  %v448_v19 = vshrl.u32 %v22916_v24, 16  ;;  %v457_v15 = vshrl.u32 %v22919_v28, 16  ;;  %v17858_v30 = vld [vmem:[%s22608_s28 + $0xd8] sm:$0x3] }
  0x59   : > { %v9523_v5 = vsel %vm22634_vm5, %v17885_v34, %v9522_v18  ;;  %v9524_v16 = vrot.slane %v9522_v18, 4  ;;  %v16618_v33 = vcombine.low %v22916_v24, %v22919_v28  ;;  %v22941_v18 = vld [vmem:[%s22608_s28 + $0xd4] sm:$0xf]  ;;  %v17886_v34 = vrot.slane %v17856_v46, 10 }
  0x5a   : > { %v22938_v14 = vrot.slane %v448_v19, 7  ;;  %28160 = vst [vmem:[#allocation10_spill] sm:$0xff] %v22941_v18  ;;  %v22947_v45 = vor.u32 %v363_v52, %v22811_v17  ;;  %v22950_v35 = vrot.slane %v457_v15, 7  ;;  %v9529_v40 = vrot.slane %v22941_v18, 6  ;;  %v22957_v19 = vld [vmem:[%s22608_s28 + $0x118] sm:$0xf] }
  0x5b   : > { %v9526_v57 = vsel %vm22634_vm5, %v9524_v16, %v9525_v21  ;;  %v9532_v21 = vrot.slane %v17858_v30, 6  ;;  %v22954_v16 = vld [vmem:[%s22608_s28 + $0x114] sm:$0xf]  ;;  %v28161_v52 = vshll.u32 %v22815_v23, 16  ;;  %v28162_v15 = vshll.u32 %v22820_v29, 16 }
  0x5c   : > { %v17901_v51 = vcombine.low %v9523_v5, %v9526_v57  ;;  %v28163_v46 = vshll.u32 %v22850_v7, 16  ;;  %v9530_v62 = vsel %vm22634_vm5, %v17886_v34, %v9529_v40  ;;  %v9531_v8 = vrot.slane %v9529_v40, 4  ;;  %v17859_v29 = vld [vmem:[%s22608_s28 + $0xe0] sm:$0xc]  ;;  %v22991_v30 = vld [vmem:[%s22608_s28 + $0xe4] sm:$0xf] }
  0x5d   : > { %20255 = vmatmul.mubr.msk.bf16.gmra.mrb[12].mxu0 %vm696_vm4, %v17900_v27  ;;  %v22967_v27 = vor.u32 %v28161_v52, %v22830_v49  ;;  %v22972_v5 = vor.u32 %v28162_v15, %v22846_v2  ;;  %v470_v23 = vshrl.u32 %v22954_v16, 16  ;;  %v479_v2 = vshrl.u32 %v22957_v19, 16  ;;  %28165 = vst [vmem:[#allocation12_spill] sm:$0xff] %v22991_v30  ;;  %v23040_v36 = vld [vmem:[%s22608_s28 + $0x134] sm:$0xf] }
  0x5e   : > { %v22977_v57 = vor.u32 %v28163_v46, %v22863_v32  ;;  %20258 = vmatprep.mubr.msk.bf16.mxu0 %vm696_vm4, %v17901_v51  ;;  %19611 = vmatmul.mubr.msk.bf16.gmra.mrb[16].mxu1 %vm696_vm4, %v16618_v33  ;;  %v16619_v51 = vcombine.low %v22954_v16, %v22957_v19  ;;  %v17861_v33 = vld [vmem:[%s22608_s28 + $0xe8] sm:$0x3]  ;;  %v28166_v34 = vshll.u32 %v22854_v6, 16  ;;  %v9533_v52 = vsel %vm22634_vm5, %v9531_v8, %v9532_v21 }
  0x5f   : > { %v23001_v15 = vrot.slane %v470_v23, 7  ;;  %v17887_v46 = vrot.slane %v17859_v29, 10  ;;  %v9536_v7 = vrot.slane %v22991_v30, 6  ;;  %v17902_v18 = vcombine.low %v9530_v62, %v9533_v52  ;;  %v17862_v62 = vld [vmem:[%s22608_s28 + $0xf0] sm:$0xc] }
  0x60   : > { %28164 = vst [vmem:[#allocation11_spill] sm:$0xff] %v22977_v57  ;;  %v22997_v40 = vor.u32 %v28166_v34, %v22879_v0  ;;  %v23007_v31 = vrot.slane %v479_v2, 7  ;;  %19614 = vmatprep.mubr.msk.bf16.mxu1 %vm696_vm4, %v16619_v51  ;;  %v9539_v6 = vrot.slane %v17861_v33, 6  ;;  %v23011_v0 = vld [vmem:[%s22608_s28 + $0x128] sm:$0xf]  ;;  %v492_v34 = vshrl.u32 %v23005_v26, 16 }
  0x61   : > { %v9537_v21 = vsel %vm22634_vm5, %v17887_v46, %v9536_v7  ;;  %v9538_v8 = vrot.slane %v9536_v7, 4  ;;  %v501_v29 = vshrl.u32 %v23011_v0, 16  ;;  %v16620_v33 = vcombine.low %v23005_v26, %v23011_v0  ;;  %v23025_v52 = vld [vmem:[%s22608_s28 + $0xf4] sm:$0xf]  ;;  %v17864_v30 = vld [vmem:[%s22608_s28 + $0xf8] sm:$0x3] }
  0x62   : > { %v23019_v2 = vrot.slane %v492_v34, 7  ;;  %28167 = vst [vmem:[#allocation13_spill] sm:$0xff] %v23025_v52  ;;  %v28168_v46 = vshll.u32 %v22883_v13, 16  ;;  %v17888_v51 = vrot.slane %v17862_v62, 10  ;;  %v9543_v42 = vrot.slane %v23025_v52, 6 }
  0x63   : > { %v9540_v34 = vsel %vm22634_vm5, %v9538_v8, %v9539_v6  ;;  %v23036_v23 = vrot.slane %v501_v29, 7  ;;  %v9546_v57 = vrot.slane %v17864_v30, 6  ;;  %v23043_v13 = vld [vmem:[%s22608_s28 + $0x138] sm:$0xf]  ;;  %vm1223_vm7 = vsmask.f32 3328 }
  0x64   : > { %v23031_v7 = vor.u32 %v28168_v46, %v22905_v56  ;;  %v17903_v41 = vcombine.low %v9537_v21, %v9540_v34  ;;  %28170 = vst [vmem:[#allocation15_spill] sm:$0xff] %v23043_v13  ;;  %v514_v46 = vshrl.u32 %v23040_v36, 16  ;;  %v9544_v6 = vsel %vm22634_vm5, %v17888_v51, %v9543_v42  ;;  %v17865_v21 = vld [vmem:[%s22608_s28 + $0x100] sm:$0xc] }
  0x65   : > { %20259 = vmatmul.mubr.msk.bf16.gmra.mrb[16].mxu0 %vm696_vm4, %v17902_v18  ;;  %v9545_v8 = vrot.slane %v9543_v42, 4  ;;  %v523_v29 = vshrl.u32 %v23043_v13, 16  ;;  %v16621_v34 = vcombine.low %v23040_v36, %v23043_v13  ;;  %v17867_v18 = vld [vmem:[%s22608_s28 + $0x108] sm:$0x3]  ;;  %v17889_v51 = vrot.slane %v17865_v21, 10 }
  0x66   : > { %28169 = vst [vmem:[#allocation14_spill] sm:$0xff] %v23031_v7  ;;  %19615 = vmatmul.mubr.msk.bf16.gmra.mrb[20].mxu1 %vm696_vm4, %v16620_v33  ;;  %20262 = vmatprep.mubr.msk.bf16.mxu0 %vm696_vm4, %v17903_v41  ;;  %v23054_v30 = vrot.slane %v514_v46, 7  ;;  %v23059_v33 = vld [vmem:[%s22608_s28 + $0x104] sm:$0xf]  ;;  %v28172_v42 = vshll.u32 %v22886_v50, 16  ;;  %v9553_v7 = vrot.slane %v17867_v18, 6 }
  0x67   : > { %28171 = vst [vmem:[#allocation16_spill] sm:$0xff] %v23059_v33  ;;  %v9547_v62 = vsel %vm22634_vm5, %v9545_v8, %v9546_v57  ;;  %v23069_v41 = vrot.slane %v523_v29, 7  ;;  %v9550_v46 = vrot.slane %v23059_v33, 6  ;;  %v23073_v13 = vld [vmem:[%s22608_s28 + $0x144] sm:$0xf]  ;;  %19618 = vmatprep.mubr.msk.bf16.mxu1 %vm696_vm4, %v16621_v34  ;;  %v28176_v57 = vshll.u32 %v22916_v24, 16 }
  0x68   : > { %v23065_v52 = vor.u32 %v28172_v42, %v22913_v4  ;;  %28174 = vst [vmem:[#allocation18_spill] sm:$0xff] %v23073_v13  ;;  %v17904_v56 = vcombine.low %v9544_v6, %v9547_v62  ;;  %v23077_v21 = vld [vmem:[%s22608_s28 + $0x148] sm:$0xf]  ;;  %v536_v50 = vshrl.u32 %v23073_v13, 16  ;;  %v17868_v42 = vld [vmem:[%s22608_s28 + $0x110] sm:$0xc] }
  0x69   : > { %28173 = vst [vmem:[#allocation17_spill] sm:$0xff] %v23069_v41  ;;  %28175 = vst [vmem:[#allocation19_spill] sm:$0xff] %v23077_v21  ;;  %v23085_v8 = vor.u32 %v28176_v57, %v22938_v14  ;;  %v9551_v18 = vsel %vm22634_vm5, %v17889_v51, %v9550_v46  ;;  %v9552_v6 = vrot.slane %v9550_v46, 4  ;;  %v545_v29 = vshrl.u32 %v23077_v21, 16  ;;  %v23092_v34 = vld [vmem:[%s22608_s28 + $0x114] sm:$0xf] }
  0x6a   : > { %28178 = vst [vmem:[#allocation21_spill] sm:$0xff] %v23092_v34  ;;  %v23094_v33 = vrot.slane %v536_v50, 7  ;;  %v16622_v24 = vcombine.low %v23073_v13, %v23077_v21  ;;  %v17870_v57 = vld [vmem:[%s22608_s28 + $0x118] sm:$0x3]  ;;  %v17890_v4 = vrot.slane %v17868_v42, 10  ;;  %v9557_v41 = vrot.slane %v23092_v34, 6 }
  0x6b   : > { %28177 = vst [vmem:[#allocation20_spill] sm:$0xff] %v23085_v8  ;;  %v9554_v51 = vsel %vm22634_vm5, %v9552_v6, %v9553_v7  ;;  %v23103_v46 = vrot.slane %v545_v29, 7  ;;  %v9560_v62 = vrot.slane %v17870_v57, 6  ;;  %v23106_v50 = vld [vmem:[%s22608_s28 + $0x154] sm:$0xf]  ;;  %v28183_v21 = vshll.u32 %v22919_v28, 16 }
  0x6c   : > { %28179 = vst [vmem:[#allocation22_spill] sm:$0xff] %v23094_v33  ;;  %28181 = vst [vmem:[#allocation24_spill] sm:$0xff] %v23106_v50  ;;  %v23109_v33 = vld [vmem:[%s22608_s28 + $0x158] sm:$0xf]  ;;  %v17905_v42 = vcombine.low %v9551_v18, %v9554_v51  ;;  %v9559_v34 = vrot.slane %v9557_v41, 4  ;;  %v558_v7 = vshrl.u32 %v23106_v50, 16 }
  0x6d   : > { %20263 = vmatmul.mubr.msk.bf16.gmra.mrb[20].mxu0 %vm696_vm4, %v17904_v56  ;;  %28180 = vst [vmem:[#allocation23_spill] sm:$0xff] %v23103_v46  ;;  %28182 = vst [vmem:[#allocation25_spill] sm:$0xff] %v23109_v33  ;;  %v23114_v13 = vor.u32 %v28183_v21, %v22950_v35  ;;  %v9558_v56 = vsel %vm22634_vm5, %v17890_v4, %v9557_v41  ;;  %v17871_v6 = vld [vmem:[%s22608_s28 + $0x120] sm:$0xc]  ;;  %v23121_v29 = vld [vmem:[%s22608_s28 + $0x124] sm:$0xf]  ;;  %v16623_v21 = vcombine.low %v23106_v50, %v23109_v33 }
  0x6e   : > { %28184 = vst [vmem:[#allocation26_spill] sm:$0xff] %v23121_v29  ;;  %19619 = vmatmul.mubr.msk.bf16.gmra.mrb[24].mxu1 %vm696_vm4, %v16622_v24  ;;  %v567_v28 = vshrl.u32 %v23109_v33, 16  ;;  %v17873_v4 = vld [vmem:[%s22608_s28 + $0x128] sm:$0x3]  ;;  %20266 = vmatprep.mubr.msk.bf16.mxu0 %vm696_vm4, %v17905_v42  ;;  %v9561_v41 = vsel %vm22634_vm5, %v9559_v34, %v9560_v62  ;;  %v23133_v18 = vrot.slane %v558_v7, 7  ;;  %v17891_v24 = vrot.slane %v17871_v6, 10 }
  0x6f   : > { %v9564_v51 = vrot.slane %v23121_v29, 6  ;;  %v23137_v57 = vld [vmem:[%s22608_s28 + $0x164] sm:$0xf]  ;;  %v17906_v35 = vcombine.low %v9558_v56, %v9561_v41  ;;  %19622 = vmatprep.mubr.msk.bf16.mxu1 %vm696_vm4, %v16623_v21  ;;  %v9567_v33 = vrot.slane %v17873_v4, 6  ;;  %v23143_v42 = vld [vmem:[%s22608_s28 + $0x168] sm:$0xf] }
  0x70   : > { %28185 = vst [vmem:[#allocation27_spill] sm:$0xff] %v23133_v18  ;;  %28186 = vst [vmem:[#allocation28_spill] sm:$0xff] %v23137_v57  ;;  %v23139_v46 = vrot.slane %v567_v28, 7  ;;  %v580_v50 = vshrl.u32 %v23137_v57, 16  ;;  %v589_v6 = vshrl.u32 %v23143_v42, 16  ;;  %v16624_v21 = vcombine.low %v23137_v57, %v23143_v42 }
  0x71   : > { %28188 = vst [vmem:[#allocation30_spill] sm:$0xff] %v23143_v42  ;;  %v9565_v62 = vsel %vm22634_vm5, %v17891_v24, %v9564_v51  ;;  %v9566_v34 = vrot.slane %v9564_v51, 4  ;;  %v17874_v29 = vld [vmem:[%s22608_s28 + $0x130] sm:$0xc]  ;;  %v23157_v4 = vld [vmem:[%s22608_s28 + $0x134] sm:$0xf] }
  0x72   : > { %28187 = vst [vmem:[#allocation29_spill] sm:$0xff] %v23139_v46  ;;  %v23151_v56 = vrot.slane %v580_v50, 7  ;;  %v17876_v41 = vld [vmem:[%s22608_s28 + $0x138] sm:$0x3]  ;;  %v28190_v24 = vshll.u32 %v22954_v16, 16  ;;  %v23167_v46 = vrot.slane %v589_v6, 7 }
  0x73   : > { %v9568_v7 = vsel %vm22634_vm5, %v9566_v34, %v9567_v33  ;;  %v17892_v50 = vrot.slane %v17874_v29, 10  ;;  %v16545_v28 = vld [vmem:[%s22608_s28 + $0x70] sm:$0x8]  ;;  %v9574_v57 = vrot.slane %v17876_v41, 6  ;;  %v17927_v8 = vld [vmem:[%s22608_s28 + $0x48] sm:$0xf] }
  0x74   : > { %28189 = vst [vmem:[#allocation31_spill] sm:$0xff] %v23151_v56  ;;  %v23163_v51 = vor.u32 %v28190_v24, %v23001_v15  ;;  %v9571_v56 = vrot.slane %v23157_v4, 6  ;;  %v17907_v42 = vcombine.low %v9565_v62, %v9568_v7  ;;  %v245_v18 = vshrl.u32 %v16545_v28, 16  ;;  %v16548_v16 = vld [vmem:[%s22608_s28 + $0x80] sm:$0x8] }
  0x75   : > { %20267 = vmatmul.mubr.msk.bf16.gmra.mrb[24].mxu0 %vm696_vm4, %v17906_v35  ;;  %v28192_v24 = vshll.u32 %v22957_v19, 16  ;;  %v17943_v34 = vcombine.low %v22630_v11, %v17927_v8  ;;  %v267_v6 = vshrl.u32 %v16548_v16, 16  ;;  %v301_v62 = vrot.slane %v22708_v3, 4  ;;  %v16554_v41 = vld [vmem:[%s22608_s28 + $0xa0] sm:$0x8] }
  0x76   : > { %28191 = vst [vmem:[#allocation32_spill] sm:$0xff] %v23163_v51  ;;  %v9572_v33 = vsel %vm22634_vm5, %v17892_v50, %v9571_v56  ;;  %v9573_v29 = vrot.slane %v9571_v56, 4  ;;  %20270 = vmatprep.mubr.msk.bf16.mxu0 %vm696_vm4, %v17907_v42  ;;  %19623 = vmatmul.mubr.msk.bf16.gmra.mrb[28].mxu1 %vm696_vm4, %v16624_v21  ;;  %v16593_v35 = vrot.slane %v245_v18, 11  ;;  %v28194_v7 = vshll.u32 %v23011_v0, 16  ;;  %v16551_v42 = vld [vmem:[%s22608_s28 + $0x90] sm:$0x8] }
  0x77   : > { %v23177_v51 = vor.u32 %v28192_v24, %v23007_v31  ;;  %v28193_v31 = vshll.u32 %v23005_v26, 16  ;;  %v16594_v8 = vrot.slane %v267_v6, 11  ;;  %v23199_v18 = vld [vmem:[%s22608_s28 + $0x68] sm:$0xf]  ;;  %v323_v3 = vrot.slane %v22730_v20, 4 }
  0x78   : > { %v23193_v56 = vor.u32 %v28194_v7, %v23036_v23  ;;  %v9575_v11 = vsel %vm22634_vm5, %v9573_v29, %v9574_v57  ;;  %v28195_v26 = vshll.u32 %v23040_v36, 16  ;;  %v256_v0 = vsel %vm22659_vm6, %v16593_v35, %v22667_v43  ;;  %v23215_v50 = vld [vmem:[%s22608_s28 + $0x78] sm:$0xf]  ;;  %v16557_v24 = vld [vmem:[%s22608_s28 + $0xb0] sm:$0x8] }
  0x79   : > { %v23188_v19 = vor.u32 %v28193_v31, %v23019_v2  ;;  %v17908_v21 = vcombine.low %v9572_v33, %v9575_v11  ;;  %v289_v23 = vshrl.u32 %v16551_v42, 16  ;;  %v309_v57 = vsel %vm22659_vm6, %v301_v62, %v22791_v63  ;;  %v23225_v33 = vld [vmem:[%s22608_s28 + $0x88] sm:$0xf]  ;;  %v23235_v35 = vld [vmem:[%s22608_s28 + $0x98] sm:$0xf] }
  0x7a   : > { %v23205_v28 = vor.u32 %v28195_v26, %v23054_v30  ;;  %v16643_v20 = vcombine.low %v256_v0, %v22690_v54  ;;  %v278_v36 = vsel %vm22659_vm6, %v16594_v8, %v22670_v44  ;;  %v17945_v16 = vcombine.low %v22695_v59, %v23199_v18  ;;  %v16560_v44 = vld [vmem:[%s22608_s28 + $0xc0] sm:$0x8]  ;;  %v16563_v11 = vld [vmem:[%s22608_s28 + $0xd0] sm:$0x8]  ;;  %v23253_v26 = vld [vmem:[%s22608_s28 + $0xa8] sm:$0xf] }
  0x7b   : > { %v311_v43 = vshrl.u32 %v16554_v41, 16  ;;  %v16644_v29 = vcombine.low %v278_v36, %v22740_v25  ;;  %v16595_v63 = vrot.slane %v289_v23, 11  ;;  %v331_v6 = vsel %vm22659_vm6, %v323_v3, %v22874_v53  ;;  %v22082_v53 = vld [vmem:[%s28058_s1 + $0x28] sm:$0xff]   ;;  %v16566_v0 = vld [vmem:[%s22608_s28 + $0xe0] sm:$0x8]  ;;  %v28205_v18 = vld [vmem:[#allocation12_spill] sm:$0xff] }
  0x7c   : > { %v17946_v54 = vcombine.low %v22735_v22, %v23215_v50  ;;  %19630 = vmatprep.mubr.msk.bf16.mxu1 %vm696_vm4, %v16643_v20  ;;  %v333_v31 = vshrl.u32 %v16557_v24, 16  ;;  %v345_v7 = vrot.slane %v22773_v48, 4  ;;  %v17947_v25 = vcombine.low %v22770_v47, %v23225_v33  ;;  %v23272_v24 = vld [vmem:[%s22608_s28 + $0xc8] sm:$0xf] }
  0x7d   : > { %v16596_v62 = vrot.slane %v311_v43, 11  ;;  %20271 = vmatmul.mubr.msk.bf16.gmra.mrb[28].mxu0 %vm696_vm4, %v17908_v21  ;;  %v300_v8 = vsel %vm22659_vm6, %v16595_v63, %v22763_v39  ;;  %v355_v42 = vshrl.u32 %v16560_v44, 16  ;;  %v367_v3 = vrot.slane %v22811_v17, 4  ;;  %v23264_v17 = vld [vmem:[%s22608_s28 + $0xb8] sm:$0xf] }
  0x7e   : > { %v17948_v48 = vcombine.low %v22799_v10, %v23235_v35  ;;  %20278 = vmatprep.mubr.msk.bf16.mxu0 %vm696_vm4, %v17943_v34  ;;  %v16645_v23 = vcombine.low %v300_v8, %v309_v57  ;;  %v16597_v41 = vrot.slane %v333_v31, 11  ;;  %v353_v39 = vsel %vm22659_vm6, %v345_v7, %v22924_v9  ;;  %19631 = vmatmul.mubr.msk.bf16.vlgmr.msra.gmra.mrb[0].mxu1 %vm696_vm4, %v16644_v29  ;;  %v16569_v43 = vld [vmem:[%s22608_s28 + $0xf0] sm:$0x8]  ;;  %v16572_v31 = vld [vmem:[%s22608_s28 + $0x100] sm:$0x8] }
  0x7f   : > { %v322_v21 = vsel %vm22659_vm6, %v16596_v62, %v22842_v58  ;;  %v16598_v36 = vrot.slane %v355_v42, 11  ;;  %v375_v34 = vsel %vm22659_vm6, %v367_v3, %v22962_v60  ;;  %v377_v57 = vshrl.u32 %v16563_v11, 16  ;;  %v23277_v58 = vld [vmem:[%s28058_s1 + $0x30] sm:$0xff]   ;;  %19663 = vmatpush3.bf16.msra.mxu1 %v22704_v1  ;;  %v28196_v3 = vld [vmem:[#allocation9_spill] sm:$0xff] }
  0x80   : > { %v16646_v20 = vcombine.low %v322_v21, %v331_v6  ;;  %19634 = vmatprep.mubr.msk.bf16.mxu1 %vm696_vm4, %v16645_v23  ;;  %v344_v9 = vsel %vm22659_vm6, %v16597_v41, %v22894_v61  ;;  %v389_v29 = vrot.slane %v22830_v49, 4  ;;  %v17949_v60 = vcombine.low %v22836_v55, %v23253_v26  ;;  %19664 = vmatprep.subr.bf16.mxu1 %v22082_v53  ;;  %v16575_v23 = vld [vmem:[%s22608_s28 + $0x110] sm:$0x8] }
  0x81   : > { %v399_v63 = vshrl.u32 %v16566_v0, 16  ;;  %v16647_v6 = vcombine.low %v344_v9, %v353_v39  ;;  %v366_v44 = vsel %vm22659_vm6, %v16598_v36, %v22947_v45  ;;  %v16599_v1 = vrot.slane %v377_v57, 11  ;;  %v22084_v45 = vld [vmem:[%s28058_s1 + $0x148] sm:$0xff]   ;;  %v23310_v0 = vld [vmem:[%s22608_s28 + $0xd8] sm:$0xf]  ;;  %v28197_v41 = vld [vmem:[#allocation11_spill] sm:$0xff] }
  0x82   : > { %v411_v62 = vrot.slane %v22863_v32, 4  ;;  %v23292_v7 = vcombine.low %v366_v44, %v375_v34  ;;  %v397_v49 = vsel %vm22659_vm6, %v389_v29, %v22972_v5  ;;  %v17950_v11 = vcombine.low %v22868_v37, %v23264_v17  ;;  %v28198_v36 = vld [vmem:[#allocation8_spill] sm:$0xff]  ;;  %v23321_v57 = vld [vmem:[%s22608_s28 + $0xe8] sm:$0xf] }
  0x83   : > { %v16600_v61 = vrot.slane %v399_v63, 11  ;;  %v388_v32 = vsel %vm22659_vm6, %v16599_v1, %v22967_v27  ;;  %v421_v42 = vshrl.u32 %v16569_v43, 16  ;;  %v433_v5 = vrot.slane %v28196_v3, 4  ;;  %19665 = vmatpush3.bf16.msra.mxu1 %v22082_v53  ;;  %v28199_v43 = vld [vmem:[#allocation5_spill] sm:$0xff]  ;;  %v28200_v9 = vld [vmem:[#allocation6_spill] sm:$0xff]  ;;  %v28202_v53 = vld [vmem:[#allocation7_spill] sm:$0xff] }
  0x84   : > { %v419_v8 = vsel %vm22659_vm6, %v411_v62, %v22997_v40  ;;  %v23313_v21 = vcombine.low %v388_v32, %v397_v49  ;;  %v17951_v34 = vcombine.low %v28198_v36, %v23272_v24  ;;  %v443_v27 = vshrl.u32 %v16572_v31, 16  ;;  %v16578_v40 = vld [vmem:[%s22608_s28 + $0x120] sm:$0x8]  ;;  %19698 = vmatprep.subr.bf16.mxu1 %v23277_v58  ;;  %v28203_v49 = vld [vmem:[#allocation10_spill] sm:$0xff] }
  0x85   : > { %v410_v39 = vsel %vm22659_vm6, %v16600_v61, %v28197_v41  ;;  %v28201_v29 = vcombine.low %v28199_v43, %v28200_v9  ;;  %v16601_v44 = vrot.slane %v421_v42, 11  ;;  %v441_v1 = vsel %vm22659_vm6, %v433_v5, %v23065_v52  ;;  %v16581_v5 = vld [vmem:[%s22608_s28 + $0x130] sm:$0x8]  ;;  %v28207_v9 = vld [vmem:[#allocation13_spill] sm:$0xff]  ;;  %v17984_v36 = vld [vmem:[%s22608_s28 + $0x68] sm:$0xf] }
  0x86   : > { %v23328_v63 = vcombine.low %v410_v39, %v419_v8  ;;  %v455_v62 = vrot.slane %v22938_v14, 4  ;;  %v16602_v31 = vrot.slane %v443_v27, 11  ;;  %v17952_v61 = vcombine.low %v28203_v49, %v23310_v0  ;;  %v23344_v8 = vld [vmem:[%s22608_s28 + $0xf8] sm:$0xf]  ;;  %19635 = vmatmul.mubr.msk.bf16.gmra.mrb[4].mxu1 %vm696_vm4, %v16646_v20  ;;  %v28204_v14 = vld [vmem:[#allocation14_spill] sm:$0xff] }
  0x87   : > { %20279 = vmatmul.mubr.msk.bf16.vlgmr.msra.gmra.mrb[0].mxu0 %vm696_vm4, %v28201_v29  ;;  %v465_v32 = vshrl.u32 %v16575_v23, 16  ;;  %v477_v52 = vrot.slane %v23001_v15, 4  ;;  %v432_v42 = vsel %vm22659_vm6, %v16601_v44, %v28204_v14  ;;  %v487_v3 = vshrl.u32 %v16578_v40, 16  ;;  %v23359_v15 = vld [vmem:[%s28058_s1 + $0x150] sm:$0xff]   ;;  %19638 = vmatprep.mubr.msk.bf16.mxu1 %vm696_vm4, %v16647_v6  ;;  %v28206_v23 = vld [vmem:[#allocation20_spill] sm:$0xff] }
  0x88   : > { %20311 = vmatpush3.bf16.msra.mxu0 %v28202_v53  ;;  %20282 = vmatprep.mubr.msk.bf16.mxu0 %vm696_vm4, %v17945_v16  ;;  %v463_v59 = vsel %vm22659_vm6, %v455_v62, %v23114_v13  ;;  %v17953_v16 = vcombine.low %v28205_v18, %v23321_v57  ;;  %v23362_v20 = vcombine.low %v432_v42, %v441_v1  ;;  %v23371_v27 = vld [vmem:[%s22608_s28 + $0x108] sm:$0xf]  ;;  %v499_v6 = vrot.slane %v23019_v2, 4  ;;  %v16584_v44 = vld [vmem:[%s22608_s28 + $0x140] sm:$0x8]  ;;  %v28208_v1 = vld [vmem:[#allocation32_spill] sm:$0xff] }
  0x89   : > { %20312 = vmatprep.subr.bf16.mxu0 %v22084_v45  ;;  %v454_v13 = vsel %vm22659_vm6, %v16602_v31, %v28206_v23  ;;  %v16603_v41 = vrot.slane %v465_v32, 11  ;;  %v485_v39 = vsel %vm22659_vm6, %v477_v52, %v23177_v51  ;;  %v16604_v43 = vrot.slane %v487_v3, 11  ;;  %v28209_v31 = vld [vmem:[#allocation17_spill] sm:$0xff]  ;;  %v28210_v32 = vld [vmem:[#allocation15_spill] sm:$0xff]  ;;  %v23387_v42 = vld [vmem:[%s22608_s28 + $0x118] sm:$0xf] }
  0x8a   : > { %v23373_v40 = vcombine.low %v454_v13, %v463_v59  ;;  %v17954_v29 = vcombine.low %v28207_v9, %v23344_v8  ;;  %v509_v51 = vshrl.u32 %v16581_v5, 16  ;;  %v521_v53 = vrot.slane %v23054_v30, 4  ;;  %v28212_v3 = vld [vmem:[#allocation16_spill] sm:$0xff]  ;;  %v16587_v30 = vld [vmem:[%s22608_s28 + $0x150] sm:$0x8] }
  0x8b   : > { %v476_v62 = vsel %vm22659_vm6, %v16603_v41, %v28208_v1  ;;  %v28211_v52 = vshll.u32 %v28210_v32, 16  ;;  %v507_v59 = vsel %vm22659_vm6, %v499_v6, %v23193_v56  ;;  %v17955_v5 = vcombine.low %v28212_v3, %v23371_v27  ;;  %v23406_v1 = vld [vmem:[%s22608_s28 + $0x128] sm:$0xf]  ;;  %v28217_v32 = vld [vmem:[#allocation19_spill] sm:$0xff] }
  0x8c   : > { %20313 = vmatpush3.bf16.msra.mxu0 %v22084_v45  ;;  %v23389_v2 = vcombine.low %v476_v62, %v485_v39  ;;  %v498_v45 = vsel %vm22659_vm6, %v16604_v43, %v23188_v19  ;;  %v16605_v13 = vrot.slane %v509_v51, 11  ;;  %v531_v39 = vshrl.u32 %v16584_v44, 16  ;;  %v16590_v19 = vld [vmem:[%s22608_s28 + $0x160] sm:$0x8]  ;;  %v28213_v56 = vld [vmem:[#allocation22_spill] sm:$0xff]  ;;  %v28216_v51 = vld [vmem:[#allocation23_spill] sm:$0xff] }
  0x8d   : > { %v528_v14 = vor.u32 %v28211_v52, %v28209_v31  ;;  %20346 = vmatprep.subr.bf16.mxu0 %v23359_v15  ;;  %v23401_v23 = vcombine.low %v498_v45, %v507_v59  ;;  %v28214_v43 = vld [vmem:[#allocation18_spill] sm:$0xff]  ;;  %v543_v31 = vrot.slane %v28213_v56, 4  ;;  %v28218_v52 = vshll.u32 %v28217_v32, 16  ;;  %v28219_v44 = vld [vmem:[#allocation21_spill] sm:$0xff]  ;;  %v28220_v45 = vld [vmem:[#allocation27_spill] sm:$0xff] }
  0x8e   : > { %v28215_v6 = vshll.u32 %v28214_v43, 16  ;;  %v520_v22 = vsel %vm22659_vm6, %v16605_v13, %v23205_v28  ;;  %v16606_v50 = vrot.slane %v531_v39, 11  ;;  %v28221_v59 = vld [vmem:[#allocation24_spill] sm:$0xff]  ;;  %19639 = vmatmul.mubr.msk.bf16.gmra.mrb[8].mxu1 %vm696_vm4, %v23292_v7  ;;  %v565_v33 = vrot.slane %v28220_v45, 4  ;;  %v28224_v28 = vld [vmem:[#allocation25_spill] sm:$0xff] }
  0x8f   : > { %v529_v41 = vsel %vm22659_vm6, %v521_v53, %v528_v14  ;;  %20283 = vmatmul.mubr.msk.bf16.gmra.mrb[4].mxu0 %vm696_vm4, %v17946_v54  ;;  %v550_v53 = vor.u32 %v28218_v52, %v28216_v51  ;;  %v17956_v14 = vcombine.low %v28219_v44, %v23387_v42  ;;  %v553_v54 = vshrl.u32 %v16587_v30, 16  ;;  %v23443_v39 = vld [vmem:[%s22608_s28 + $0x138] sm:$0xf]  ;;  %19642 = vmatprep.mubr.msk.bf16.mxu1 %vm696_vm4, %v23313_v21  ;;  %v28226_v51 = vld [vmem:[#allocation26_spill] sm:$0xff]  ;;  %v16677_v52 = vld [vmem:[%s22608_s28 + $0x74] sm:$0xf] }
  0x90   : > { %v541_v62 = vor.u32 %v28215_v6, %v28213_v56  ;;  %20286 = vmatprep.mubr.msk.bf16.mxu0 %vm696_vm4, %v17947_v25  ;;  %v28222_v56 = vshll.u32 %v28221_v59, 16  ;;  %v23434_v6 = vcombine.low %v520_v22, %v529_v41  ;;  %v28223_v25 = vld [vmem:[#allocation29_spill] sm:$0xff]  ;;  %v28225_v13 = vshll.u32 %v28224_v28, 16  ;;  %v28228_v59 = vld [vmem:[#allocation28_spill] sm:$0xff] }
  0x91   : > { %v551_v47 = vsel %vm22659_vm6, %v543_v31, %v550_v53  ;;  %v16607_v41 = vrot.slane %v553_v54, 11  ;;  %v575_v32 = vshrl.u32 %v16590_v19, 16  ;;  %v16678_v28 = vld [vmem:[%s22608_s28 + $0x78] sm:$0xf]  ;;  %v28230_v54 = vld [vmem:[#allocation30_spill] sm:$0xff]  ;;  %vm5573_vm11 = vcmask 1044484  }
  0x92   : > { %v563_v43 = vor.u32 %v28222_v56, %v28220_v45  ;;  %v572_v30 = vor.u32 %v28225_v13, %v28223_v25  ;;  %v542_v7 = vsel %vm22659_vm6, %v16606_v50, %v541_v62  ;;  %v28227_v45 = vld [vmem:[#allocation31_spill] sm:$0xff]  ;;  %v28229_v56 = vshll.u32 %v28228_v59, 16  ;;  %v16679_v62 = vld [vmem:[%s22608_s28 + $0x7c] sm:$0x1]  ;;  %v17995_v42 = vld [vmem:[%s22608_s28 + $0xa4] sm:$0xc] }
  0x93   : > { %v23452_v53 = vcombine.low %v542_v7, %v551_v47  ;;  %v587_v25 = vrot.slane %v28227_v45, 4  ;;  %v16608_v19 = vrot.slane %v575_v32, 11  ;;  %v28231_v47 = vshll.u32 %v28230_v54, 16  ;;  %v17978_v7 = vld [vmem:[%s22608_s28 + $0x48] sm:$0xf]  ;;  %vm26492_vm12 = vmor %vm5572_vm10, %vm5573_vm11 }
  0x94   : > { %v573_v22 = vsel %vm22659_vm6, %v565_v33, %v572_v30  ;;  %v585_v21 = vor.u32 %v28229_v56, %v28227_v45  ;;  %v564_v50 = vsel %vm22659_vm6, %v16607_v41, %v563_v43  ;;  %v17977_v30 = vld [vmem:[%s22608_s28 + $0x44] sm:$0xc]  ;;  %vm1224_vm8 = vsmask.f32 7440 }
  0x95   : > { %v594_v13 = vor.u32 %v28231_v47, %v23167_v46  ;;  %v23471_v59 = vcombine.low %v564_v50, %v573_v22  ;;  %v1227_v45 = vshrl.u32 %v16677_v52, 16  ;;  %v1230_v41 = vshll.u32 %v16677_v52, 16  ;;  %v17979_v46 = vld [vmem:[%s22608_s28 + $0x4c] sm:$0x3]  ;;  %v16680_v54 = vld [vmem:[%s22608_s28 + $0x84] sm:$0xf]  ;;  %vm23502_vm9 = vmor %vm1223_vm7, %vm1224_vm8 }
  0x96   : > { %v586_v56 = vsel %vm22659_vm6, %v16608_v19, %v585_v21  ;;  %v1236_v32 = vshll.u32 %v16678_v28, 16  ;;  %v1240_v47 = vshrl.u32 %v16678_v28, 16  ;;  %v1246_v33 = vshll.u32 %v16679_v62, 16  ;;  %19643 = vmatmul.mubr.msk.bf16.gmra.mrb[12].mxu1 %vm696_vm4, %v23328_v63  ;;  %v16682_v28 = vld [vmem:[%s22608_s28 + $0x8c] sm:$0x1] }
  0x97   : > { %v595_v43 = vsel %vm22659_vm6, %v587_v25, %v594_v13  ;;  %20287 = vmatmul.mubr.msk.bf16.gmra.mrb[8].mxu0 %vm696_vm4, %v17948_v48  ;;  %v1229_v50 = vrot.slane %v1227_v45, 4  ;;  %v1232_v52 = vrot.slane %v1230_v41, 5  ;;  %v18025_v25 = vrot.slane %v17977_v30, 10  ;;  %v16681_v13 = vld [vmem:[%s22608_s28 + $0x88] sm:$0xf]  ;;  %19646 = vmatprep.mubr.msk.bf16.mxu1 %vm696_vm4, %v23362_v20 }
  0x98   : > { %v23483_v22 = vcombine.low %v586_v56, %v595_v43  ;;  %20290 = vmatprep.mubr.msk.bf16.mxu0 %vm696_vm4, %v17949_v60  ;;  %v1238_v21 = vrot.slane %v1236_v32, 5  ;;  %v10316_v19 = vrot.slane %v17978_v7, 6  ;;  %v1242_v10 = vrot.slane %v1240_v47, 4  ;;  %v17980_v7 = vld [vmem:[%s22608_s28 + $0x54] sm:$0xc] }
  0x99   : > { %v1248_v35 = vrot.slane %v1246_v33, 5  ;;  %v10319_v48 = vrot.slane %v17979_v46, 6  ;;  %v1251_v62 = vshrl.u32 %v16680_v54, 16  ;;  %v1233_v55 = vor.u32 %v1232_v52, %v1229_v50  ;;  %v17981_v43 = vld [vmem:[%s22608_s28 + $0x58] sm:$0xf] }
  0x9a   : > { %v23497_v26 = vsel %vm22634_vm5, %v18025_v25, %v10316_v19  ;;  %v10318_v60 = vrot.slane %v10316_v19, 4  ;;  %v1254_v30 = vshll.u32 %v16680_v54, 16  ;;  %v28232_v63 = vmov 0  ;;  %v17982_v50 = vld [vmem:[%s22608_s28 + $0x5c] sm:$0x3] }
  0x9b   : > { %v28233_v63 = vsel %vm23502_vm9, 4294967295, %v28232_v63  ;;  %v1243_v33 = vor.u32 %v1242_v10, %v1238_v21  ;;  %v1253_v45 = vrot.slane %v1251_v62, 4  ;;  %v1260_v56 = vshll.u32 %v16681_v13, 16  ;;  %v16683_v10 = vld [vmem:[%s22608_s28 + $0x94] sm:$0xf] }
  0x9c   : > { %28234 = vst [vmem:[#allocation9_spill] sm:$0xff] %v28233_v63  ;;  %v1264_v20 = vshrl.u32 %v16681_v13, 16  ;;  %v1234_v41 = vrot.slane %v1233_v55, 4  ;;  %v23509_v32 = vsel %vm22634_vm5, %v10318_v60, %v10319_v48  ;;  %v1256_v46 = vrot.slane %v1254_v30, 5  ;;  %v16684_v48 = vld [vmem:[%s22608_s28 + $0x98] sm:$0xf] }
  0x9d   : > { %v1270_v54 = vshll.u32 %v16682_v28, 16  ;;  %v1244_v47 = vrot.slane %v1243_v33, 4  ;;  %v18041_v52 = vcombine.low %v23497_v26, %v23509_v32  ;;  %v1262_v25 = vrot.slane %v1260_v56, 5  ;;  %v16685_v56 = vld [vmem:[%s22608_s28 + $0x9c] sm:$0x1] }
  0x9e   : > { %v1266_v19 = vrot.slane %v1264_v20, 4  ;;  %v1239_v13 = vsel %vm23502_vm9, %v1234_v41, %v1238_v21  ;;  %v1257_v62 = vor.u32 %v1256_v46, %v1253_v45  ;;  %v18026_v31 = vrot.slane %v17980_v7, 10  ;;  %19647 = vmatmul.mubr.msk.bf16.gmra.mrb[16].mxu1 %vm696_vm4, %v23373_v40  ;;  %v17985_v40 = vld [vmem:[%s22608_s28 + $0x6c] sm:$0x3] }
  0x9f   : > { %v1272_v55 = vrot.slane %v1270_v54, 5  ;;  %20291 = vmatmul.mubr.msk.bf16.gmra.mrb[12].mxu0 %vm696_vm4, %v17950_v11  ;;  %v1249_v28 = vsel %vm23502_vm9, %v1244_v47, %v1248_v35  ;;  %v10323_v30 = vrot.slane %v17981_v43, 6  ;;  %v10326_v33 = vrot.slane %v17982_v50, 6  ;;  %v17983_v11 = vld [vmem:[%s22608_s28 + $0x64] sm:$0xc]  ;;  %19650 = vmatprep.mubr.msk.bf16.mxu1 %vm696_vm4, %v23389_v2 }
  0xa0   : > { %v1267_v60 = vor.u32 %v1266_v19, %v1262_v25  ;;  %20294 = vmatprep.mubr.msk.bf16.mxu0 %vm696_vm4, %v17951_v34  ;;  %v23529_v21 = vcombine.low %v1239_v13, %v1249_v28  ;;  %v1258_v7 = vrot.slane %v1257_v62, 4  ;;  %v1275_v37 = vshrl.u32 %v16683_v10, 16  ;;  %v16686_v19 = vld [vmem:[%s22608_s28 + $0xa4] sm:$0xf]  ;;  %v16687_v62 = vld [vmem:[%s22608_s28 + $0xa8] sm:$0xf] }
  0xa1   : > { %v1278_v17 = vshll.u32 %v16683_v10, 16  ;;  %v23536_v45 = vsel %vm22634_vm5, %v18026_v31, %v10323_v30  ;;  %v10325_v20 = vrot.slane %v10323_v30, 4  ;;  %v1284_v24 = vshll.u32 %v16684_v48, 16  ;;  %v16688_v30 = vld [vmem:[%s22608_s28 + $0xac] sm:$0x1] }
  0xa2   : > { %v1268_v35 = vrot.slane %v1267_v60, 4  ;;  %v1263_v34 = vsel %vm23502_vm9, %v1258_v7, %v1262_v25  ;;  %v1277_v43 = vrot.slane %v1275_v37, 4  ;;  %v1288_v46 = vshrl.u32 %v16684_v48, 16 }
  0xa3   : > { %v1280_v41 = vrot.slane %v1278_v17, 5  ;;  %v23548_v31 = vsel %vm22634_vm5, %v10325_v20, %v10326_v33  ;;  %v1286_v50 = vrot.slane %v1284_v24, 5  ;;  %v1294_v47 = vshll.u32 %v16685_v56, 16  ;;  %v17986_v17 = vld [vmem:[%s22608_s28 + $0x74] sm:$0xc] }
  0xa4   : > { %v1273_v54 = vsel %vm23502_vm9, %v1268_v35, %v1272_v55  ;;  %v18042_v25 = vcombine.low %v23536_v45, %v23548_v31  ;;  %v1290_v13 = vrot.slane %v1288_v46, 4  ;;  %v18027_v28 = vrot.slane %v17983_v11, 10 }
  0xa5   : > { %v23551_v2 = vcombine.low %v1263_v34, %v1273_v54  ;;  %v1281_v10 = vor.u32 %v1280_v41, %v1277_v43  ;;  %v1296_v48 = vrot.slane %v1294_v47, 5  ;;  %v10330_v55 = vrot.slane %v17984_v36, 6  ;;  %v17987_v36 = vld [vmem:[%s22608_s28 + $0x78] sm:$0xf]  ;;  %v17988_v43 = vld [vmem:[%s22608_s28 + $0x7c] sm:$0x3] }
  0xa6   : > { %v10333_v60 = vrot.slane %v17985_v40, 6  ;;  %v1291_v7 = vor.u32 %v1290_v13, %v1286_v50  ;;  %v1299_v56 = vshrl.u32 %v16686_v19, 16  ;;  %v1302_v37 = vshll.u32 %v16686_v19, 16  ;;  %19651 = vmatmul.mubr.msk.bf16.gmra.mrb[20].mxu1 %vm696_vm4, %v23401_v23  ;;  %v16690_v47 = vld [vmem:[%s22608_s28 + $0xb8] sm:$0xf] }
  0xa7   : > { %v1282_v33 = vrot.slane %v1281_v10, 4  ;;  %20295 = vmatmul.mubr.msk.bf16.gmra.mrb[16].mxu0 %vm696_vm4, %v17952_v61  ;;  %v23564_v35 = vsel %vm22634_vm5, %v18027_v28, %v10330_v55  ;;  %v10332_v11 = vrot.slane %v10330_v55, 4  ;;  %v1308_v20 = vshll.u32 %v16687_v62, 16  ;;  %19654 = vmatprep.mubr.msk.bf16.mxu1 %vm696_vm4, %v23434_v6  ;;  %v16691_v28 = vld [vmem:[%s22608_s28 + $0xbc] sm:$0x1] }
  0xa8   : > { %v1312_v24 = vshrl.u32 %v16687_v62, 16  ;;  %20298 = vmatprep.mubr.msk.bf16.mxu0 %vm696_vm4, %v17953_v16  ;;  %v1292_v0 = vrot.slane %v1291_v7, 4  ;;  %v1301_v49 = vrot.slane %v1299_v56, 4  ;;  %v1304_v61 = vrot.slane %v1302_v37, 5  ;;  %v16689_v16 = vld [vmem:[%s22608_s28 + $0xb4] sm:$0xf] }
  0xa9   : > { %v1287_v34 = vsel %vm23502_vm9, %v1282_v33, %v1286_v50  ;;  %v23578_v41 = vsel %vm22634_vm5, %v10332_v11, %v10333_v60  ;;  %v1310_v46 = vrot.slane %v1308_v20, 5  ;;  %v1318_v18 = vshll.u32 %v16688_v30, 16  ;;  %v17989_v33 = vld [vmem:[%s22608_s28 + $0x84] sm:$0xc] }
  0xaa   : > { %v1314_v57 = vrot.slane %v1312_v24, 4  ;;  %v1297_v40 = vsel %vm23502_vm9, %v1292_v0, %v1296_v48  ;;  %v18043_v54 = vcombine.low %v23564_v35, %v23578_v41  ;;  %v1305_v23 = vor.u32 %v1304_v61, %v1301_v49 }
  0xab   : > { %v18028_v50 = vrot.slane %v17986_v17, 10  ;;  %v23588_v19 = vcombine.low %v1287_v34, %v1297_v40  ;;  %v1320_v13 = vrot.slane %v1318_v18, 5  ;;  %v10337_v62 = vrot.slane %v17987_v36, 6  ;;  %v17990_v17 = vld [vmem:[%s22608_s28 + $0x88] sm:$0xf] }
  0xac   : > { %v1315_v10 = vor.u32 %v1314_v57, %v1310_v46  ;;  %v1306_v55 = vrot.slane %v1305_v23, 4  ;;  %v10340_v60 = vrot.slane %v17988_v43, 6  ;;  %v1323_v6 = vshrl.u32 %v16689_v16, 16  ;;  %v17991_v34 = vld [vmem:[%s22608_s28 + $0x8c] sm:$0x3] }
  0xad   : > { %v1326_v30 = vshll.u32 %v16689_v16, 16  ;;  %v23594_v7 = vsel %vm22634_vm5, %v18028_v50, %v10337_v62  ;;  %v10339_v56 = vrot.slane %v10337_v62, 4  ;;  %v1332_v37 = vshll.u32 %v16690_v47, 16  ;;  %v16693_v18 = vld [vmem:[%s22608_s28 + $0xc8] sm:$0xf] }
  0xae   : > { %v1316_v48 = vrot.slane %v1315_v10, 4  ;;  %v1311_v11 = vsel %vm23502_vm9, %v1306_v55, %v1310_v46  ;;  %v1325_v20 = vrot.slane %v1323_v6, 4  ;;  %v1336_v36 = vshrl.u32 %v16690_v47, 16  ;;  %v16692_v46 = vld [vmem:[%s22608_s28 + $0xc4] sm:$0xf]  ;;  %19655 = vmatmul.mubr.msk.bf16.gmra.mrb[24].mxu1 %vm696_vm4, %v23452_v53 }
  0xaf   : > { %v1328_v24 = vrot.slane %v1326_v30, 5  ;;  %20299 = vmatmul.mubr.msk.bf16.gmra.mrb[20].mxu0 %vm696_vm4, %v17954_v29  ;;  %v23608_v49 = vsel %vm22634_vm5, %v10339_v56, %v10340_v60  ;;  %v1334_v61 = vrot.slane %v1332_v37, 5  ;;  %v1342_v43 = vshll.u32 %v16691_v28, 16  ;;  %v16694_v16 = vld [vmem:[%s22608_s28 + $0xcc] sm:$0x1]  ;;  %19658 = vmatprep.mubr.msk.bf16.mxu1 %vm696_vm4, %v23471_v59 }
  0xb0   : > { %v1321_v0 = vsel %vm23502_vm9, %v1316_v48, %v1320_v13  ;;  %20302 = vmatprep.mubr.msk.bf16.mxu0 %vm696_vm4, %v17955_v5  ;;  %v18044_v8 = vcombine.low %v23594_v7, %v23608_v49  ;;  %v1338_v29 = vrot.slane %v1336_v36, 4  ;;  %v18029_v23 = vrot.slane %v17989_v33, 10  ;;  %v17992_v5 = vld [vmem:[%s22608_s28 + $0x94] sm:$0xc]  ;;  %v17993_v62 = vld [vmem:[%s22608_s28 + $0x98] sm:$0xf] }
  0xb1   : > { %v23615_v57 = vcombine.low %v1311_v11, %v1321_v0  ;;  %v1329_v9 = vor.u32 %v1328_v24, %v1325_v20  ;;  %v1344_v40 = vrot.slane %v1342_v43, 5  ;;  %v10344_v27 = vrot.slane %v17990_v17, 6  ;;  %v17994_v6 = vld [vmem:[%s22608_s28 + $0x9c] sm:$0x3]  ;;  %v16695_v30 = vld [vmem:[%s22608_s28 + $0xd4] sm:$0xf] }
  0xb2   : > { %v10347_v3 = vrot.slane %v17991_v34, 6  ;;  %v1339_v47 = vor.u32 %v1338_v29, %v1334_v61  ;;  %v1347_v10 = vshrl.u32 %v16692_v46, 16  ;;  %v1350_v13 = vshll.u32 %v16692_v46, 16 }
  0xb3   : > { %v1330_v50 = vrot.slane %v1329_v9, 4  ;;  %v23629_v28 = vsel %vm22634_vm5, %v18029_v23, %v10344_v27  ;;  %v10346_v53 = vrot.slane %v10344_v27, 4  ;;  %v1356_v55 = vshll.u32 %v16693_v18, 16 }
  0xb4   : > { %v1360_v60 = vshrl.u32 %v16693_v18, 16  ;;  %v1340_v48 = vrot.slane %v1339_v47, 4  ;;  %v1349_v59 = vrot.slane %v1347_v10, 4  ;;  %v1352_v56 = vrot.slane %v1350_v13, 5  ;;  %v16697_v18 = vld [vmem:[%s22608_s28 + $0xdc] sm:$0x1] }
  0xb5   : > { %v1335_v33 = vsel %vm23502_vm9, %v1330_v50, %v1334_v61  ;;  %v23637_v37 = vsel %vm22634_vm5, %v10346_v53, %v10347_v3  ;;  %v1358_v17 = vrot.slane %v1356_v55, 5  ;;  %v1366_v20 = vshll.u32 %v16694_v16, 16  ;;  %v16696_v61 = vld [vmem:[%s22608_s28 + $0xd8] sm:$0xf] }
  0xb6   : > { %v1362_v11 = vrot.slane %v1360_v60, 4  ;;  %v1345_v24 = vsel %vm23502_vm9, %v1340_v48, %v1344_v40  ;;  %v18045_v36 = vcombine.low %v23629_v28, %v23637_v37  ;;  %v1353_v34 = vor.u32 %v1352_v56, %v1349_v59  ;;  %19659 = vmatmul.mubr.msk.bf16.gmra.mrb[28].mxu1 %vm696_vm4, %v23483_v22  ;;  %v17997_v22 = vld [vmem:[%s22608_s28 + $0xac] sm:$0x3]  ;;  %v16699_v59 = vld [vmem:[%s22608_s28 + $0xe8] sm:$0xf] }
  0xb7   : > { %v18030_v0 = vrot.slane %v17992_v5, 10  ;;  %20303 = vmatmul.mubr.msk.bf16.gmra.mrb[24].mxu0 %vm696_vm4, %v17956_v14  ;;  %v23648_v43 = vcombine.low %v1335_v33, %v1345_v24  ;;  %v1368_v9 = vrot.slane %v1366_v20, 5  ;;  %v10351_v29 = vrot.slane %v17993_v62, 6  ;;  %19666 = vmatprep.mubr.msk.bf16.mxu1 %vm696_vm4, %v23529_v21  ;;  %v16700_v24 = vld [vmem:[%s22608_s28 + $0xec] sm:$0x1] }
  0xb8   : > { %v1363_v46 = vor.u32 %v1362_v11, %v1358_v17  ;;  %v28235_v16 = vcombine.low %v28226_v51, %v23406_v1  ;;  %v1354_v40 = vrot.slane %v1353_v34, 4  ;;  %v10354_v23 = vrot.slane %v17994_v6, 6  ;;  %v17996_v1 = vld [vmem:[%s22608_s28 + $0xa8] sm:$0xf]  ;;  %v16698_v6 = vld [vmem:[%s22608_s28 + $0xe4] sm:$0xf] }
  0xb9   : > { %v1371_v27 = vshrl.u32 %v16695_v30, 16  ;;  %v1374_v3 = vshll.u32 %v16695_v30, 16  ;;  %v23660_v14 = vsel %vm22634_vm5, %v18030_v0, %v10351_v29  ;;  %v10353_v5 = vrot.slane %v10351_v29, 4  ;;  %v18008_v28 = vld [vmem:[%s22608_s28 + $0xe8] sm:$0xf] }
  0xba   : > { %20306 = vmatprep.mubr.msk.bf16.mxu0 %vm696_vm4, %v28235_v16  ;;  %v1364_v44 = vrot.slane %v1363_v46, 4  ;;  %v1380_v50 = vshll.u32 %v16696_v61, 16  ;;  %v1359_v51 = vsel %vm23502_vm9, %v1354_v40, %v1358_v17  ;;  %v1384_v13 = vshrl.u32 %v16696_v61, 16 }
  0xbb   : > { %v1373_v47 = vrot.slane %v1371_v27, 4  ;;  %v1376_v10 = vrot.slane %v1374_v3, 5  ;;  %v23672_v53 = vsel %vm22634_vm5, %v10353_v5, %v10354_v23  ;;  %v1390_v60 = vshll.u32 %v16697_v18, 16  ;;  %v17999_v27 = vld [vmem:[%s22608_s28 + $0xb8] sm:$0xf] }
  0xbc   : > { %v1369_v62 = vsel %vm23502_vm9, %v1364_v44, %v1368_v9  ;;  %v1382_v55 = vrot.slane %v1380_v50, 5  ;;  %v18046_v30 = vcombine.low %v23660_v14, %v23672_v53  ;;  %v1386_v48 = vrot.slane %v1384_v13, 4  ;;  %v17998_v9 = vld [vmem:[%s22608_s28 + $0xb4] sm:$0xc]  ;;  %v22093_v3 = vld [vmem:[%s28058_s1 + $0x38] sm:$0xff]  }
  0xbd   : > { %v23675_v21 = vcombine.low %v1359_v51, %v1369_v62  ;;  %v1377_v33 = vor.u32 %v1376_v10, %v1373_v47  ;;  %v1392_v56 = vrot.slane %v1390_v60, 5  ;;  %v18031_v17 = vrot.slane %v17995_v42, 10  ;;  %v18000_v5 = vld [vmem:[%s22608_s28 + $0xbc] sm:$0x3]  ;;  %v16702_v13 = vld [vmem:[%s22608_s28 + $0xf8] sm:$0xf] }
  0xbe   : > { %v10358_v11 = vrot.slane %v17996_v1, 6  ;;  %v10361_v20 = vrot.slane %v17997_v22, 6  ;;  %v1387_v0 = vor.u32 %v1386_v48, %v1382_v55  ;;  %v1395_v61 = vshrl.u32 %v16698_v6, 16  ;;  %19667 = vmatmul.mubr.msk.bf16.vlgmr.msra.gmra.mrb[0].mxu1 %vm696_vm4, %v23551_v2 }
  0xbf   : > { %v1378_v34 = vrot.slane %v1377_v33, 4  ;;  %v1398_v46 = vshll.u32 %v16698_v6, 16  ;;  %v28236_v29 = vcombine.low %v23157_v4, %v23443_v39  ;;  %v1404_v40 = vshll.u32 %v16699_v59, 16  ;;  %19699 = vmatpush3.bf16.msra.mxu1 %v23277_v58  ;;  %19670 = vmatprep.mubr.msk.bf16.mxu1 %vm696_vm4, %v23588_v19  ;;  %v16703_v58 = vld [vmem:[%s22608_s28 + $0xfc] sm:$0x1]  ;;  %v23722_v19 = vld [vmem:[%s28058_s1 + $0x40] sm:$0xff]  }
  0xc0   : > { %v23688_v18 = vsel %vm22634_vm5, %v18031_v17, %v10358_v11  ;;  %v10360_v16 = vrot.slane %v10358_v11, 4  ;;  %v1408_v23 = vshrl.u32 %v16699_v59, 16  ;;  %v1388_v39 = vrot.slane %v1387_v0, 4  ;;  %19700 = vmatprep.subr.bf16.mxu1 %v22093_v3  ;;  %v22094_v0 = vld [vmem:[%s28058_s1 + $0x158] sm:$0xff]  }
  0xc1   : > { %20307 = vmatmul.mubr.msk.bf16.gmra.mrb[28].mxu0 %vm696_vm4, %v28236_v29  ;;  %v1383_v4 = vsel %vm23502_vm9, %v1378_v34, %v1382_v55  ;;  %v1397_v42 = vrot.slane %v1395_v61, 4  ;;  %v1400_v44 = vrot.slane %v1398_v46, 5  ;;  %v1406_v1 = vrot.slane %v1404_v40, 5  ;;  %v18002_v34 = vld [vmem:[%s22608_s28 + $0xc8] sm:$0xf] }
  0xc2   : > { %20314 = vmatprep.mubr.msk.bf16.mxu0 %vm696_vm4, %v18041_v52  ;;  %v23705_v50 = vsel %vm22634_vm5, %v10360_v16, %v10361_v20  ;;  %v1410_v26 = vrot.slane %v1408_v23, 4  ;;  %v1414_v32 = vshll.u32 %v16700_v24, 16  ;;  %v16701_v52 = vld [vmem:[%s22608_s28 + $0xf4] sm:$0xf]  ;;  %v1393_v51 = vsel %vm23502_vm9, %v1388_v39, %v1392_v56  ;;  %v18001_v56 = vld [vmem:[%s22608_s28 + $0xc4] sm:$0xc] }
  0xc3   : > { %v18047_v2 = vcombine.low %v23688_v18, %v23705_v50  ;;  %v1401_v47 = vor.u32 %v1400_v44, %v1397_v42  ;;  %v18032_v10 = vrot.slane %v17998_v9, 10  ;;  %v23716_v22 = vcombine.low %v1383_v4, %v1393_v51  ;;  %v18003_v16 = vld [vmem:[%s22608_s28 + $0xcc] sm:$0x3]  ;;  %19701 = vmatpush3.bf16.msra.mxu1 %v22093_v3  ;;  %v16704_v39 = vld [vmem:[%s22608_s28 + $0x104] sm:$0xf] }
  0xc4   : > { %v1411_v62 = vor.u32 %v1410_v26, %v1406_v1  ;;  %v1416_v55 = vrot.slane %v1414_v32, 5  ;;  %v10365_v60 = vrot.slane %v17999_v27, 6  ;;  %v10368_v33 = vrot.slane %v18000_v5, 6  ;;  %19734 = vmatprep.subr.bf16.mxu1 %v23722_v19  ;;  %v16705_v42 = vld [vmem:[%s22608_s28 + $0x108] sm:$0xf]  ;;  %v23761_v44 = vld [vmem:[%s28058_s1 + $0x160] sm:$0xff]  }
  0xc5   : > { %v1402_v6 = vrot.slane %v1401_v47, 4  ;;  %v1419_v48 = vshrl.u32 %v16701_v52, 16  ;;  %v1422_v59 = vshll.u32 %v16701_v52, 16  ;;  %v1428_v24 = vshll.u32 %v16702_v13, 16  ;;  %v16706_v5 = vld [vmem:[%s22608_s28 + $0x10c] sm:$0x1] }
  0xc6   : > { %v1412_v17 = vrot.slane %v1411_v62, 4  ;;  %v23727_v11 = vsel %vm22634_vm5, %v18032_v10, %v10365_v60  ;;  %v10367_v20 = vrot.slane %v10365_v60, 4  ;;  %v1432_v29 = vshrl.u32 %v16702_v13, 16  ;;  %19671 = vmatmul.mubr.msk.bf16.gmra.mrb[4].mxu1 %vm696_vm4, %v23615_v57  ;;  %v18004_v51 = vld [vmem:[%s22608_s28 + $0xd4] sm:$0xc] }
  0xc7   : > { %v1407_v61 = vsel %vm23502_vm9, %v1402_v6, %v1406_v1  ;;  %v1421_v46 = vrot.slane %v1419_v48, 4  ;;  %v1424_v9 = vrot.slane %v1422_v59, 5  ;;  %v1430_v27 = vrot.slane %v1428_v24, 5  ;;  %19674 = vmatprep.mubr.msk.bf16.mxu1 %vm696_vm4, %v23648_v43  ;;  %v18005_v62 = vld [vmem:[%s22608_s28 + $0xd8] sm:$0xf] }
  0xc8   : > { %v1417_v40 = vsel %vm23502_vm9, %v1412_v17, %v1416_v55  ;;  %v23744_v23 = vsel %vm22634_vm5, %v10367_v20, %v10368_v33  ;;  %v1438_v4 = vshll.u32 %v16703_v58, 16  ;;  %v1434_v3 = vrot.slane %v1432_v29, 4  ;;  %v18006_v6 = vld [vmem:[%s22608_s28 + $0xdc] sm:$0x3]  ;;  %v16707_v17 = vld [vmem:[%s22608_s28 + $0x114] sm:$0xf] }
  0xc9   : > { %20315 = vmatmul.mubr.msk.bf16.vlgmr.msra.gmra.mrb[0].mxu0 %vm696_vm4, %v18042_v25  ;;  %v23753_v45 = vcombine.low %v1407_v61, %v1417_v40  ;;  %v18048_v31 = vcombine.low %v23727_v11, %v23744_v23  ;;  %v1425_v25 = vor.u32 %v1424_v9, %v1421_v46  ;;  %v18033_v35 = vrot.slane %v18001_v56, 10  ;;  %v16708_v61 = vld [vmem:[%s22608_s28 + $0x118] sm:$0xf]  ;;  %v16709_v40 = vld [vmem:[%s22608_s28 + $0x11c] sm:$0x1] }
  0xca   : > { %20347 = vmatpush3.bf16.msra.mxu0 %v23359_v15  ;;  %20318 = vmatprep.mubr.msk.bf16.mxu0 %vm696_vm4, %v18043_v54  ;;  %v1440_v15 = vrot.slane %v1438_v4, 5  ;;  %v10372_v41 = vrot.slane %v18002_v34, 6  ;;  %v10375_v54 = vrot.slane %v18003_v16, 6  ;;  %v1435_v26 = vor.u32 %v1434_v3, %v1430_v27  ;;  %v18007_v3 = vld [vmem:[%s22608_s28 + $0xe4] sm:$0xc] }
  0xcb   : > { %20348 = vmatprep.subr.bf16.mxu0 %v22094_v0  ;;  %v1426_v1 = vrot.slane %v1425_v25, 4  ;;  %v1443_v32 = vshrl.u32 %v16704_v39, 16  ;;  %v1446_v52 = vshll.u32 %v16704_v39, 16  ;;  %v1452_v10 = vshll.u32 %v16705_v42, 16 }
  0xcc   : > { %v23771_v57 = vsel %vm22634_vm5, %v18033_v35, %v10372_v41  ;;  %v10374_v47 = vrot.slane %v10372_v41, 4  ;;  %v1456_v13 = vshrl.u32 %v16705_v42, 16  ;;  %v1436_v60 = vrot.slane %v1435_v26, 4  ;;  %v16710_v26 = vld [vmem:[%s22608_s28 + $0x124] sm:$0xf] }
  0xcd   : > { %v1431_v55 = vsel %vm23502_vm9, %v1426_v1, %v1430_v27  ;;  %v1445_v43 = vrot.slane %v1443_v32, 4  ;;  %v1448_v58 = vrot.slane %v1446_v52, 5  ;;  %v1454_v48 = vrot.slane %v1452_v10, 5 }
  0xce   : > { %20349 = vmatpush3.bf16.msra.mxu0 %v22094_v0  ;;  %v23779_v33 = vsel %vm22634_vm5, %v10374_v47, %v10375_v54  ;;  %v1458_v59 = vrot.slane %v1456_v13, 4  ;;  %v1462_v56 = vshll.u32 %v16706_v5, 16  ;;  %v1441_v20 = vsel %vm23502_vm9, %v1436_v60, %v1440_v15  ;;  %19675 = vmatmul.mubr.msk.bf16.gmra.mrb[8].mxu1 %vm696_vm4, %v23675_v21  ;;  %v18009_v21 = vld [vmem:[%s22608_s28 + $0xec] sm:$0x3]  ;;  %v16711_v47 = vld [vmem:[%s22608_s28 + $0x128] sm:$0xf] }
  0xcf   : > { %20382 = vmatprep.subr.bf16.mxu0 %v23761_v44  ;;  %v18049_v24 = vcombine.low %v23771_v57, %v23779_v33  ;;  %v1449_v34 = vor.u32 %v1448_v58, %v1445_v43  ;;  %v18034_v0 = vrot.slane %v18004_v51, 10  ;;  %v16733_v46 = vcombine.low %v1431_v55, %v1441_v20  ;;  %19678 = vmatprep.mubr.msk.bf16.mxu1 %vm696_vm4, %v23716_v22  ;;  %v16712_v60 = vld [vmem:[%s22608_s28 + $0x12c] sm:$0x1] }
  0xd0   : > { %v1459_v9 = vor.u32 %v1458_v59, %v1454_v48  ;;  %v1464_v29 = vrot.slane %v1462_v56, 5  ;;  %v10379_v16 = vrot.slane %v18005_v62, 6  ;;  %v10382_v4 = vrot.slane %v18006_v6, 6  ;;  %v18010_v59 = vld [vmem:[%s22608_s28 + $0xf4] sm:$0xc] }
  0xd1   : > { %20319 = vmatmul.mubr.msk.bf16.gmra.mrb[4].mxu0 %vm696_vm4, %v18044_v8  ;;  %v1450_v27 = vrot.slane %v1449_v34, 4  ;;  %v1467_v39 = vshrl.u32 %v16707_v17, 16  ;;  %v1470_v25 = vshll.u32 %v16707_v17, 16  ;;  %v1476_v42 = vshll.u32 %v16708_v61, 16 }
  0xd2   : > { %20322 = vmatprep.mubr.msk.bf16.mxu0 %vm696_vm4, %v18045_v36  ;;  %v1460_v7 = vrot.slane %v1459_v9, 4  ;;  %v23802_v49 = vsel %vm22634_vm5, %v18034_v0, %v10379_v16  ;;  %v10381_v8 = vrot.slane %v10379_v16, 4  ;;  %v1480_v35 = vshrl.u32 %v16708_v61, 16  ;;  %v18011_v0 = vld [vmem:[%s22608_s28 + $0xf8] sm:$0xf] }
  0xd3   : > { %v1455_v37 = vsel %vm23502_vm9, %v1450_v27, %v1454_v48  ;;  %v1469_v36 = vrot.slane %v1467_v39, 4  ;;  %v1472_v15 = vrot.slane %v1470_v25, 5  ;;  %v1478_v5 = vrot.slane %v1476_v42, 5  ;;  %v18012_v9 = vld [vmem:[%s22608_s28 + $0xfc] sm:$0x3] }
  0xd4   : > { %v1465_v41 = vsel %vm23502_vm9, %v1460_v7, %v1464_v29  ;;  %v23814_v54 = vsel %vm22634_vm5, %v10381_v8, %v10382_v4  ;;  %v1486_v1 = vshll.u32 %v16709_v40, 16  ;;  %v1482_v51 = vrot.slane %v1480_v35, 4  ;;  %v16714_v39 = vld [vmem:[%s22608_s28 + $0x138] sm:$0xf]  ;;  %v16715_v42 = vld [vmem:[%s22608_s28 + $0x13c] sm:$0x1] }
  0xd5   : > { %v23817_v22 = vcombine.low %v1455_v37, %v1465_v41  ;;  %v18050_v32 = vcombine.low %v23802_v49, %v23814_v54  ;;  %v1473_v52 = vor.u32 %v1472_v15, %v1469_v36  ;;  %v18035_v13 = vrot.slane %v18007_v3, 10  ;;  %v18013_v15 = vld [vmem:[%s22608_s28 + $0x104] sm:$0xc]  ;;  %v18014_v35 = vld [vmem:[%s22608_s28 + $0x108] sm:$0xf] }
  0xd6   : > { %v1488_v10 = vrot.slane %v1486_v1, 5  ;;  %v10386_v62 = vrot.slane %v18008_v28, 6  ;;  %v10389_v55 = vrot.slane %v18009_v21, 6  ;;  %v1483_v58 = vor.u32 %v1482_v51, %v1478_v5  ;;  %19679 = vmatmul.mubr.msk.bf16.gmra.mrb[12].mxu1 %vm696_vm4, %v23753_v45  ;;  %v18015_v21 = vld [vmem:[%s22608_s28 + $0x10c] sm:$0x3] }
  0xd7   : > { %v1474_v43 = vrot.slane %v1473_v52, 4  ;;  %v1491_v6 = vshrl.u32 %v16710_v26, 16  ;;  %v1494_v48 = vshll.u32 %v16710_v26, 16  ;;  %v1500_v20 = vshll.u32 %v16711_v47, 16  ;;  %19682 = vmatprep.mubr.msk.bf16.mxu1 %vm696_vm4, %v16733_v46 }
  0xd8   : > { %v23830_v56 = vsel %vm22634_vm5, %v18035_v13, %v10386_v62  ;;  %v10388_v17 = vrot.slane %v10386_v62, 4  ;;  %v1504_v34 = vshrl.u32 %v16711_v47, 16  ;;  %v1484_v14 = vrot.slane %v1483_v58, 4 }
  0xd9   : > { %20323 = vmatmul.mubr.msk.bf16.gmra.mrb[8].mxu0 %vm696_vm4, %v18046_v30  ;;  %v1479_v61 = vsel %vm23502_vm9, %v1474_v43, %v1478_v5  ;;  %v1493_v53 = vrot.slane %v1491_v6, 4  ;;  %v1496_v30 = vrot.slane %v1494_v48, 5  ;;  %v1502_v16 = vrot.slane %v1500_v20, 5  ;;  %v16716_v43 = vld [vmem:[%s22608_s28 + $0x144] sm:$0xf] }
  0xda   : > { %20326 = vmatprep.mubr.msk.bf16.mxu0 %vm696_vm4, %v18047_v2  ;;  %v23844_v29 = vsel %vm22634_vm5, %v10388_v17, %v10389_v55  ;;  %v1506_v18 = vrot.slane %v1504_v34, 4  ;;  %v1510_v50 = vshll.u32 %v16712_v60, 16  ;;  %v16713_v2 = vld [vmem:[%s22608_s28 + $0x134] sm:$0xf]  ;;  %v1489_v40 = vsel %vm23502_vm9, %v1484_v14, %v1488_v10  ;;  %v16717_v6 = vld [vmem:[%s22608_s28 + $0x148] sm:$0xf] }
  0xdb   : > { %v18051_v45 = vcombine.low %v23830_v56, %v23844_v29  ;;  %v1497_v27 = vor.u32 %v1496_v30, %v1493_v53  ;;  %v18036_v4 = vrot.slane %v18010_v59, 10  ;;  %v16735_v25 = vcombine.low %v1479_v61, %v1489_v40  ;;  %v16718_v34 = vld [vmem:[%s22608_s28 + $0x14c] sm:$0x1]  ;;  %v18016_v61 = vld [vmem:[%s22608_s28 + $0x114] sm:$0xc] }
  0xdc   : > { %v1507_v3 = vor.u32 %v1506_v18, %v1502_v16  ;;  %v1512_v7 = vrot.slane %v1510_v50, 5  ;;  %v10393_v8 = vrot.slane %v18011_v0, 6  ;;  %v10396_v37 = vrot.slane %v18012_v9, 6  ;;  %v18017_v9 = vld [vmem:[%s22608_s28 + $0x118] sm:$0xf] }
  0xdd   : > { %v1498_v28 = vrot.slane %v1497_v27, 4  ;;  %v1515_v36 = vshrl.u32 %v16713_v2, 16  ;;  %v1518_v46 = vshll.u32 %v16713_v2, 16  ;;  %v1524_v26 = vshll.u32 %v16714_v39, 16  ;;  %v18018_v40 = vld [vmem:[%s22608_s28 + $0x11c] sm:$0x3] }
  0xde   : > { %v1508_v41 = vrot.slane %v1507_v3, 4  ;;  %v23859_v5 = vsel %vm22634_vm5, %v18036_v4, %v10393_v8  ;;  %v10395_v1 = vrot.slane %v10393_v8, 4  ;;  %v1528_v10 = vshrl.u32 %v16714_v39, 16  ;;  %19683 = vmatmul.mubr.msk.bf16.gmra.mrb[16].mxu1 %vm696_vm4, %v23817_v22  ;;  %v16719_v3 = vld [vmem:[%s22608_s28 + $0x154] sm:$0xf] }
  0xdf   : > { %v1503_v52 = vsel %vm23502_vm9, %v1498_v28, %v1502_v16  ;;  %v1517_v51 = vrot.slane %v1515_v36, 4  ;;  %v1520_v47 = vrot.slane %v1518_v46, 5  ;;  %v1526_v55 = vrot.slane %v1524_v26, 5  ;;  %19686 = vmatprep.mubr.msk.bf16.mxu1 %vm696_vm4, %v16735_v25 }
  0xe0   : > { %v1513_v13 = vsel %vm23502_vm9, %v1508_v41, %v1512_v7  ;;  %v23871_v62 = vsel %vm22634_vm5, %v10395_v1, %v10396_v37  ;;  %v1534_v60 = vshll.u32 %v16715_v42, 16  ;;  %v18037_v59 = vrot.slane %v18013_v15, 10  ;;  %v16720_v37 = vld [vmem:[%s22608_s28 + $0x158] sm:$0xf] }
  0xe1   : > { %20327 = vmatmul.mubr.msk.bf16.gmra.mrb[12].mxu0 %vm696_vm4, %v18048_v31  ;;  %v16736_v58 = vcombine.low %v1503_v52, %v1513_v13  ;;  %v18052_v11 = vcombine.low %v23859_v5, %v23871_v62  ;;  %v1521_v23 = vor.u32 %v1520_v47, %v1517_v51  ;;  %v1530_v31 = vrot.slane %v1528_v10, 4  ;;  %v18019_v51 = vld [vmem:[%s22608_s28 + $0x124] sm:$0xc]  ;;  %v18020_v10 = vld [vmem:[%s22608_s28 + $0x128] sm:$0xf] }
  0xe2   : > { %20330 = vmatprep.mubr.msk.bf16.mxu0 %vm696_vm4, %v18049_v24  ;;  %v1536_v48 = vrot.slane %v1534_v60, 5  ;;  %v10400_v17 = vrot.slane %v18014_v35, 6  ;;  %v10403_v20 = vrot.slane %v18015_v21, 6  ;;  %v1539_v24 = vshrl.u32 %v16716_v43, 16  ;;  %v16721_v21 = vld [vmem:[%s22608_s28 + $0x15c] sm:$0x1] }
  0xe3   : > { %v1522_v57 = vrot.slane %v1521_v23, 4  ;;  %v1531_v33 = vor.u32 %v1530_v31, %v1526_v55  ;;  %v1542_v0 = vshll.u32 %v16716_v43, 16  ;;  %v1548_v53 = vshll.u32 %v16717_v6, 16  ;;  %v16722_v31 = vld [vmem:[%s22608_s28 + $0x164] sm:$0xf] }
  0xe4   : > { %v23888_v14 = vsel %vm22634_vm5, %v18037_v59, %v10400_v17  ;;  %v10402_v22 = vrot.slane %v10400_v17, 4  ;;  %v1552_v30 = vshrl.u32 %v16717_v6, 16  ;;  %v1541_v50 = vrot.slane %v1539_v24, 4  ;;  %v16759_v5 = vld [vmem:[%s22608_s28 + $0x80] sm:$0x8] }
  0xe5   : > { %v1527_v16 = vsel %vm23502_vm9, %v1522_v57, %v1526_v55  ;;  %v1532_v18 = vrot.slane %v1531_v33, 4  ;;  %v1544_v2 = vrot.slane %v1542_v0, 5  ;;  %v1550_v4 = vrot.slane %v1548_v53, 5  ;;  %v18021_v55 = vld [vmem:[%s22608_s28 + $0x12c] sm:$0x3] }
  0xe6   : > { %v10404_v27 = vsel %vm22634_vm5, %v10402_v22, %v10403_v20  ;;  %v1554_v39 = vrot.slane %v1552_v30, 4  ;;  %v1558_v25 = vshll.u32 %v16718_v34, 16  ;;  %v18038_v28 = vrot.slane %v18016_v61, 10  ;;  %19687 = vmatmul.mubr.msk.bf16.gmra.mrb[20].mxu1 %vm696_vm4, %v16736_v58  ;;  %v16723_v20 = vld [vmem:[%s22608_s28 + $0x168] sm:$0xf] }
  0xe7   : > { %v1537_v7 = vsel %vm23502_vm9, %v1532_v18, %v1536_v48  ;;  %v18053_v8 = vcombine.low %v23888_v14, %v10404_v27  ;;  %v1545_v42 = vor.u32 %v1544_v2, %v1541_v50  ;;  %v10407_v35 = vrot.slane %v18017_v9, 6  ;;  %v16724_v34 = vld [vmem:[%s22608_s28 + $0x16c] sm:$0x1]  ;;  %v18022_v61 = vld [vmem:[%s22608_s28 + $0x134] sm:$0xc] }
  0xe8   : > { %v16737_v36 = vcombine.low %v1527_v16, %v1537_v7  ;;  %v1555_v46 = vor.u32 %v1554_v39, %v1550_v4  ;;  %v1560_v15 = vrot.slane %v1558_v25, 5  ;;  %v10410_v1 = vrot.slane %v18018_v40, 6  ;;  %v18023_v9 = vld [vmem:[%s22608_s28 + $0x138] sm:$0xf]  ;;  %v18024_v40 = vld [vmem:[%s22608_s28 + $0x13c] sm:$0x3] }
  0xe9   : > { %20331 = vmatmul.mubr.msk.bf16.gmra.mrb[16].mxu0 %vm696_vm4, %v18050_v32  ;;  %v1546_v41 = vrot.slane %v1545_v42, 4  ;;  %v1563_v26 = vshrl.u32 %v16719_v3, 16  ;;  %v1566_v52 = vshll.u32 %v16719_v3, 16  ;;  %v23914_v54 = vsel %vm22634_vm5, %v18038_v28, %v10407_v35  ;;  %v23949_v42 = vld [vmem:[%s22608_s28 + $0x84] sm:$0xf] }
  0xea   : > { %20334 = vmatprep.mubr.msk.bf16.mxu0 %vm696_vm4, %v18051_v45  ;;  %v1556_v49 = vrot.slane %v1555_v46, 4  ;;  %v10409_v32 = vrot.slane %v10407_v35, 4  ;;  %v1572_v47 = vshll.u32 %v16720_v37, 16  ;;  %19690 = vmatprep.mubr.msk.bf16.mxu1 %vm696_vm4, %v16737_v36  ;;  %v1576_v13 = vshrl.u32 %v16720_v37, 16 }
  0xeb   : > { %v1551_v56 = vsel %vm23502_vm9, %v1546_v41, %v1550_v4  ;;  %v1565_v29 = vrot.slane %v1563_v26, 4  ;;  %v1568_v45 = vrot.slane %v1566_v52, 5  ;;  %v1582_v23 = vshll.u32 %v16721_v21, 16  ;;  %v23954_v41 = vld [vmem:[%s22608_s28 + $0x88] sm:$0xf] }
  0xec   : > { %v1561_v60 = vsel %vm23502_vm9, %v1556_v49, %v1560_v15  ;;  %v23925_v43 = vsel %vm22634_vm5, %v10409_v32, %v10410_v1  ;;  %v1574_v58 = vrot.slane %v1572_v47, 5  ;;  %v1578_v17 = vrot.slane %v1576_v13, 4  ;;  %v18075_v49 = vld [vmem:[%s22608_s28 + $0x80] sm:$0xc] }
  0xed   : > { %v16738_v6 = vcombine.low %v1551_v56, %v1561_v60  ;;  %v18054_v48 = vcombine.low %v23914_v54, %v23925_v43  ;;  %v1569_v59 = vor.u32 %v1568_v45, %v1565_v29  ;;  %v1584_v57 = vrot.slane %v1582_v23, 5  ;;  %v18076_v56 = vld [vmem:[%s22608_s28 + $0x88] sm:$0x3]  ;;  %v16762_v60 = vld [vmem:[%s22608_s28 + $0x90] sm:$0x8] }
  0xee   : > { %v18039_v33 = vrot.slane %v18019_v51, 10  ;;  %v10414_v24 = vrot.slane %v18020_v10, 6  ;;  %v10417_v0 = vrot.slane %v18021_v55, 6  ;;  %v1579_v22 = vor.u32 %v1578_v17, %v1574_v58 }
  0xef   : > { %v1570_v14 = vrot.slane %v1569_v59, 4  ;;  %v1587_v53 = vshrl.u32 %v16722_v31, 16  ;;  %v1590_v30 = vshll.u32 %v16722_v31, 16  ;;  %v1596_v50 = vshll.u32 %v16723_v20, 16  ;;  %19691 = vmatmul.mubr.msk.bf16.gmra.mrb[24].mxu1 %vm696_vm4, %v16738_v6  ;;  %v23974_v6 = vld [vmem:[%s22608_s28 + $0x94] sm:$0xf] }
  0xf0   : > { %v10415_v16 = vsel %vm22634_vm5, %v18039_v33, %v10414_v24  ;;  %v10416_v18 = vrot.slane %v10414_v24, 4  ;;  %v1600_v2 = vshrl.u32 %v16723_v20, 16  ;;  %v1580_v4 = vrot.slane %v1579_v22, 4  ;;  %v23977_v59 = vld [vmem:[%s22608_s28 + $0x98] sm:$0xf] }
  0xf1   : > { %20335 = vmatmul.mubr.msk.bf16.gmra.mrb[20].mxu0 %vm696_vm4, %v18052_v11  ;;  %v1575_v27 = vsel %vm23502_vm9, %v1570_v14, %v1574_v58  ;;  %v1589_v39 = vrot.slane %v1587_v53, 4  ;;  %v1592_v25 = vrot.slane %v1590_v30, 5  ;;  %v1598_v11 = vrot.slane %v1596_v50, 5  ;;  %v18078_v14 = vld [vmem:[%s22608_s28 + $0x98] sm:$0x3] }
  0xf2   : > { %20338 = vmatprep.mubr.msk.bf16.mxu0 %vm696_vm4, %v18053_v8  ;;  %v10418_v62 = vsel %vm22634_vm5, %v10416_v18, %v10417_v0  ;;  %v1602_v3 = vrot.slane %v1600_v2, 4  ;;  %v1606_v7 = vshll.u32 %v16724_v34, 16  ;;  %v1585_v8 = vsel %vm23502_vm9, %v1580_v4, %v1584_v57  ;;  %v18077_v57 = vld [vmem:[%s22608_s28 + $0x90] sm:$0xc] }
  0xf3   : > { %v18055_v28 = vcombine.low %v10415_v16, %v10418_v62  ;;  %v1593_v37 = vor.u32 %v1592_v25, %v1589_v39  ;;  %v18040_v36 = vrot.slane %v18022_v61, 10  ;;  %v16739_v46 = vcombine.low %v1575_v27, %v1585_v8  ;;  %v16765_v16 = vld [vmem:[%s22608_s28 + $0xa0] sm:$0x8]  ;;  %v24002_v8 = vld [vmem:[%s22608_s28 + $0xa8] sm:$0xf] }
  0xf4   : > { %v1603_v15 = vor.u32 %v1602_v3, %v1598_v11  ;;  %v1608_v35 = vrot.slane %v1606_v7, 5  ;;  %v10421_v21 = vrot.slane %v18023_v9, 6  ;;  %v10424_v26 = vrot.slane %v18024_v40, 6 }
  0xf5   : > { %v1594_v1 = vrot.slane %v1593_v37, 4  ;;  %v1965_v52 = vshrl.u32 %v16759_v5, 16  ;;  %v1970_v51 = vshrl.u32 %v23949_v42, 16  ;;  %19694 = vmatprep.mubr.msk.bf16.mxu1 %vm696_vm4, %v16739_v46  ;;  %v1973_v10 = vshll.u32 %v23949_v42, 16  ;;  %v23994_v5 = vld [vmem:[%s22608_s28 + $0xa4] sm:$0xf] }
  0xf6   : > { %v1604_v54 = vrot.slane %v1603_v15, 4  ;;  %v10422_v32 = vsel %vm22634_vm5, %v18040_v36, %v10421_v21  ;;  %v10423_v47 = vrot.slane %v10421_v21, 4  ;;  %v1979_v55 = vshrl.u32 %v23954_v41, 16 }
  0xf7   : > { %v1599_v29 = vsel %vm23502_vm9, %v1594_v1, %v1598_v11  ;;  %v16807_v45 = vrot.slane %v1965_v52, 11  ;;  %v1972_v13 = vrot.slane %v1970_v51, 7  ;;  %v1982_v23 = vshll.u32 %v23954_v41, 16  ;;  %v18080_v52 = vld [vmem:[%s22608_s28 + $0xa8] sm:$0x3] }
  0xf8   : > { %v1609_v43 = vsel %vm23502_vm9, %v1604_v54, %v1608_v35  ;;  %v10425_v58 = vsel %vm22634_vm5, %v10423_v47, %v10424_v26  ;;  %v18107_v31 = vrot.slane %v18075_v49, 10  ;;  %v1981_v33 = vrot.slane %v1979_v55, 7  ;;  %v18079_v26 = vld [vmem:[%s22608_s28 + $0xa0] sm:$0xc]  ;;  %v16768_v47 = vld [vmem:[%s22608_s28 + $0xb0] sm:$0x8] }
  0xf9   : > { %20339 = vmatmul.mubr.msk.bf16.gmra.mrb[24].mxu0 %vm696_vm4, %v18054_v48  ;;  %v16740_v17 = vcombine.low %v1599_v29, %v1609_v43  ;;  %v18056_v20 = vcombine.low %v10422_v32, %v10425_v58  ;;  %v1975_v48 = vor.u32 %v1973_v10, %v1972_v13  ;;  %v1977_v34 = vrot.slane %v1972_v13, 4  ;;  %v24023_v13 = vld [vmem:[%s22608_s28 + $0xb4] sm:$0xf] }
  0xfa   : > { %20342 = vmatprep.mubr.msk.bf16.mxu0 %vm696_vm4, %v18055_v28  ;;  %v10797_v24 = vrot.slane %v23949_v42, 6  ;;  %v10800_v0 = vrot.slane %v18076_v56, 6  ;;  %v1987_v61 = vshrl.u32 %v16762_v60, 16  ;;  %v1992_v53 = vshrl.u32 %v23974_v6, 16 }
  0xfb   : > { %19695 = vmatmul.mubr.msk.bf16.gmra.mrb[28].mxu1 %vm696_vm4, %v16740_v17  ;;  %v1976_v22 = vsel %vm22659_vm6, %v16807_v45, %v1975_v48  ;;  %v1995_v30 = vshll.u32 %v23974_v6, 16  ;;  %v2001_v9 = vshrl.u32 %v23977_v59, 16  ;;  %v1984_v18 = vor.u32 %v1982_v23, %v1981_v33  ;;  %v22097_v23 = vld [vmem:[%s28058_s1 + $0x48] sm:$0xff]   ;;  %v24030_v48 = vld [vmem:[%s22608_s28 + $0xb8] sm:$0xf] }
  0xfc   : > { %v10798_v50 = vsel %vm22634_vm5, %v18107_v31, %v10797_v24  ;;  %v10799_v2 = vrot.slane %v10797_v24, 4  ;;  %v16808_v40 = vrot.slane %v1987_v61, 11  ;;  %v1994_v27 = vrot.slane %v1992_v53, 7  ;;  %v18081_v61 = vld [vmem:[%s22608_s28 + $0xb0] sm:$0xc] }
  0xfd   : > { %v2003_v4 = vrot.slane %v2001_v9, 7  ;;  %v2004_v39 = vshll.u32 %v23977_v59, 16  ;;  %v18108_v25 = vrot.slane %v18077_v57, 10  ;;  %v1985_v62 = vsel %vm22659_vm6, %v1977_v34, %v1984_v18  ;;  %v18082_v9 = vld [vmem:[%s22608_s28 + $0xb8] sm:$0x3] }
  0xfe   : > { %v10801_v11 = vsel %vm22634_vm5, %v10799_v2, %v10800_v0  ;;  %v10804_v3 = vrot.slane %v23974_v6, 6  ;;  %v10807_v7 = vrot.slane %v18078_v14, 6  ;;  %v16823_v28 = vcombine.low %v1976_v22, %v1985_v62 }
  0xff   : > { %v18123_v37 = vcombine.low %v10798_v50, %v10801_v11  ;;  %v1997_v36 = vor.u32 %v1995_v30, %v1994_v27  ;;  %v1999_v46 = vrot.slane %v1994_v27, 4  ;;  %v2006_v15 = vor.u32 %v2004_v39, %v2003_v4  ;;  %v24050_v27 = vld [vmem:[%s22608_s28 + $0xc4] sm:$0xf]  ;;  %v24057_v11 = vld [vmem:[%s22608_s28 + $0xc8] sm:$0xf] }
 0x100   : > { %v10805_v35 = vsel %vm22634_vm5, %v18108_v25, %v10804_v3  ;;  %v10806_v21 = vrot.slane %v10804_v3, 4  ;;  %v2009_v1 = vshrl.u32 %v16765_v16, 16  ;;  %19702 = vmatprep.mubr.msk.bf16.mxu1 %vm696_vm4, %v16823_v28  ;;  %v2014_v49 = vshrl.u32 %v23994_v5, 16  ;;  %v22098_v16 = vld [vmem:[%s28058_s1 + $0x168] sm:$0xff]   ;;  %v24062_v3 = vld [vmem:[%s28058_s1 + $0x50] sm:$0xff]  }
 0x101   : > { %20343 = vmatmul.mubr.msk.bf16.gmra.mrb[28].mxu0 %vm696_vm4, %v18056_v20  ;;  %v1998_v51 = vsel %vm22659_vm6, %v16808_v40, %v1997_v36  ;;  %v2017_v54 = vshll.u32 %v23994_v5, 16  ;;  %v2023_v32 = vshrl.u32 %v24002_v8, 16  ;;  %v2007_v10 = vsel %vm22659_vm6, %v1999_v46, %v2006_v15  ;;  %v16771_v40 = vld [vmem:[%s22608_s28 + $0xc0] sm:$0x8]  ;;  %v24068_v46 = vld [vmem:[%s28058_s1 + $0x170] sm:$0xff]  }
 0x102   : > { %20350 = vmatprep.mubr.msk.bf16.mxu0 %vm696_vm4, %v18123_v37  ;;  %v10808_v56 = vsel %vm22634_vm5, %v10806_v21, %v10807_v7  ;;  %v16809_v29 = vrot.slane %v2009_v1, 11  ;;  %v2026_v45 = vshll.u32 %v24002_v8, 16  ;;  %v16824_v55 = vcombine.low %v1998_v51, %v2007_v10 }
 0x103   : > { %v18124_v60 = vcombine.low %v10805_v35, %v10808_v56  ;;  %v2016_v43 = vrot.slane %v2014_v49, 7  ;;  %v2025_v58 = vrot.slane %v2023_v32, 7  ;;  %v18109_v31 = vrot.slane %v18079_v26, 10 }
 0x104   : > { %v10811_v17 = vrot.slane %v23994_v5, 6  ;;  %v10814_v20 = vrot.slane %v18080_v52, 6  ;;  %v2031_v34 = vshrl.u32 %v16768_v47, 16  ;;  %19703 = vmatmul.mubr.msk.bf16.vlgmr.msra.gmra.mrb[0].mxu1 %vm696_vm4, %v16824_v55  ;;  %v2036_v0 = vshrl.u32 %v24023_v13, 16 }
 0x105   : > { %v2019_v57 = vor.u32 %v2017_v54, %v2016_v43  ;;  %v2021_v33 = vrot.slane %v2016_v43, 4  ;;  %v2028_v24 = vor.u32 %v2026_v45, %v2025_v58  ;;  %19735 = vmatpush3.bf16.msra.mxu1 %v23722_v19  ;;  %v2039_v30 = vshll.u32 %v24023_v13, 16  ;;  %v18084_v54 = vld [vmem:[%s22608_s28 + $0xc8] sm:$0x3]  ;;  %v24088_v58 = vld [vmem:[%s22608_s28 + $0xd4] sm:$0xf] }
 0x106   : > { %v10812_v14 = vsel %vm22634_vm5, %v18109_v31, %v10811_v17  ;;  %v10813_v22 = vrot.slane %v10811_v17, 4  ;;  %v16810_v53 = vrot.slane %v2031_v34, 11  ;;  %v2038_v19 = vrot.slane %v2036_v0, 7  ;;  %19736 = vmatprep.subr.bf16.mxu1 %v22097_v23  ;;  %v24093_v34 = vld [vmem:[%s22608_s28 + $0xd8] sm:$0xf] }
 0x107   : > { %v2020_v18 = vsel %vm22659_vm6, %v16809_v29, %v2019_v57  ;;  %v2029_v50 = vsel %vm22659_vm6, %v2021_v33, %v2028_v24  ;;  %v2045_v2 = vshrl.u32 %v24030_v48, 16  ;;  %v2048_v25 = vshll.u32 %v24030_v48, 16  ;;  %v16774_v29 = vld [vmem:[%s22608_s28 + $0xd0] sm:$0x8] }
 0x108   : > { %v16825_v4 = vcombine.low %v2020_v18, %v2029_v50  ;;  %v10815_v39 = vsel %vm22634_vm5, %v10813_v22, %v10814_v20  ;;  %v18110_v62 = vrot.slane %v18081_v61, 10  ;;  %v2041_v28 = vor.u32 %v2039_v30, %v2038_v19  ;;  %v18085_v61 = vld [vmem:[%s22608_s28 + $0xd0] sm:$0xc] }
 0x109   : > { %20351 = vmatmul.mubr.msk.bf16.vlgmr.msra.gmra.mrb[0].mxu0 %vm696_vm4, %v18124_v60  ;;  %v18125_v7 = vcombine.low %v10812_v14, %v10815_v39  ;;  %v2043_v37 = vrot.slane %v2038_v19, 4  ;;  %v2047_v36 = vrot.slane %v2045_v2, 7  ;;  %v10818_v15 = vrot.slane %v24023_v13, 6  ;;  %19737 = vmatpush3.bf16.msra.mxu1 %v22097_v23  ;;  %v18086_v14 = vld [vmem:[%s22608_s28 + $0xd8] sm:$0x3] }
 0x10a   : > { %20383 = vmatpush3.bf16.msra.mxu0 %v23761_v44  ;;  %19706 = vmatprep.mubr.msk.bf16.mxu1 %vm696_vm4, %v16825_v4  ;;  %v10821_v35 = vrot.slane %v18082_v9, 6  ;;  %v2053_v21 = vshrl.u32 %v16771_v40, 16  ;;  %v2058_v1 = vshrl.u32 %v24050_v27, 16  ;;  %v18083_v44 = vld [vmem:[%s22608_s28 + $0xc0] sm:$0xc]  ;;  %v2042_v26 = vsel %vm22659_vm6, %v16810_v53, %v2041_v28 }
 0x10b   : > { %20384 = vmatprep.subr.bf16.mxu0 %v22098_v16  ;;  %20354 = vmatprep.mubr.msk.bf16.mxu0 %vm696_vm4, %v18125_v7  ;;  %v2050_v52 = vor.u32 %v2048_v25, %v2047_v36  ;;  %v2061_v51 = vshll.u32 %v24050_v27, 16  ;;  %v2067_v49 = vshrl.u32 %v24057_v11, 16  ;;  %v10819_v32 = vsel %vm22634_vm5, %v18110_v62, %v10818_v15  ;;  %v24112_v40 = vld [vmem:[%s22608_s28 + $0xe4] sm:$0xf]  ;;  %v24115_v4 = vld [vmem:[%s22608_s28 + $0xe8] sm:$0xf] }
 0x10c   : > { %v10820_v47 = vrot.slane %v10818_v15, 4  ;;  %v16811_v10 = vrot.slane %v2053_v21, 11  ;;  %v2060_v56 = vrot.slane %v2058_v1, 7  ;;  %19770 = vmatprep.subr.bf16.mxu1 %v24062_v3  ;;  %v2070_v60 = vshll.u32 %v24057_v11, 16 }
 0x10d   : > { %v2051_v45 = vsel %vm22659_vm6, %v2043_v37, %v2050_v52  ;;  %v2069_v55 = vrot.slane %v2067_v49, 7  ;;  %v18111_v43 = vrot.slane %v18083_v44, 10  ;;  %v10825_v24 = vrot.slane %v24050_v27, 6  ;;  %v18088_v52 = vld [vmem:[%s22608_s28 + $0xe8] sm:$0x3] }
 0x10e   : > { %20385 = vmatpush3.bf16.msra.mxu0 %v22098_v16  ;;  %v16826_v23 = vcombine.low %v2042_v26, %v2051_v45  ;;  %v10822_v31 = vsel %vm22634_vm5, %v10820_v47, %v10821_v35  ;;  %v2063_v17 = vor.u32 %v2061_v51, %v2060_v56  ;;  %v2065_v20 = vrot.slane %v2060_v56, 4  ;;  %v16777_v16 = vld [vmem:[%s22608_s28 + $0xe0] sm:$0x8]  ;;  %v16780_v51 = vld [vmem:[%s22608_s28 + $0xf0] sm:$0x8] }
 0x10f   : > { %20418 = vmatprep.subr.bf16.mxu0 %v24068_v46  ;;  %v18126_v57 = vcombine.low %v10819_v32, %v10822_v31  ;;  %v2072_v33 = vor.u32 %v2070_v60, %v2069_v55  ;;  %v10828_v0 = vrot.slane %v18084_v54, 6  ;;  %v2075_v53 = vshrl.u32 %v16774_v29, 16  ;;  %v18087_v26 = vld [vmem:[%s22608_s28 + $0xe0] sm:$0xc]  ;;  %v24139_v31 = vld [vmem:[%s22608_s28 + $0xf4] sm:$0xf] }
 0x110   : > { %19707 = vmatmul.mubr.msk.bf16.gmra.mrb[4].mxu1 %vm696_vm4, %v16826_v23  ;;  %v2064_v22 = vsel %vm22659_vm6, %v16811_v10, %v2063_v17  ;;  %v2080_v30 = vshrl.u32 %v24088_v58, 16  ;;  %v2083_v9 = vshll.u32 %v24088_v58, 16  ;;  %v10826_v50 = vsel %vm22634_vm5, %v18111_v43, %v10825_v24 }
 0x111   : > { %20355 = vmatmul.mubr.msk.bf16.gmra.mrb[4].mxu0 %vm696_vm4, %v18126_v57  ;;  %v2073_v18 = vsel %vm22659_vm6, %v2065_v20, %v2072_v33  ;;  %v10827_v19 = vrot.slane %v10825_v24, 4  ;;  %v2089_v2 = vshrl.u32 %v24093_v34, 16  ;;  %v16812_v25 = vrot.slane %v2075_v53, 11 }
 0x112   : > { %v16827_v39 = vcombine.low %v2064_v22, %v2073_v18  ;;  %v2082_v62 = vrot.slane %v2080_v30, 7  ;;  %v2092_v7 = vshll.u32 %v24093_v34, 16  ;;  %v18112_v36 = vrot.slane %v18085_v61, 10  ;;  %v18089_v18 = vld [vmem:[%s22608_s28 + $0xf0] sm:$0xc] }
 0x113   : > { %v10829_v28 = vsel %vm22634_vm5, %v10827_v19, %v10828_v0  ;;  %v2091_v37 = vrot.slane %v2089_v2, 7  ;;  %v10832_v15 = vrot.slane %v24088_v58, 6  ;;  %v10835_v44 = vrot.slane %v18086_v14, 6  ;;  %v24143_v14 = vld [vmem:[%s22608_s28 + $0xf8] sm:$0xf] }
 0x114   : > { %19710 = vmatprep.mubr.msk.bf16.mxu1 %vm696_vm4, %v16827_v39  ;;  %v18127_v35 = vcombine.low %v10826_v50, %v10829_v28  ;;  %v2085_v21 = vor.u32 %v2083_v9, %v2082_v62  ;;  %v2087_v1 = vrot.slane %v2082_v62, 4  ;;  %v2097_v47 = vshrl.u32 %v16777_v16, 16  ;;  %v18090_v50 = vld [vmem:[%s22608_s28 + $0xf8] sm:$0x3]  ;;  %v16783_v62 = vld [vmem:[%s22608_s28 + $0x100] sm:$0x8] }
 0x115   : > { %v2094_v49 = vor.u32 %v2092_v7, %v2091_v37  ;;  %v10833_v54 = vsel %vm22634_vm5, %v18112_v36, %v10832_v15  ;;  %v10834_v32 = vrot.slane %v10832_v15, 4  ;;  %v2102_v56 = vshrl.u32 %v24112_v40, 16  ;;  %v24160_v15 = vld [vmem:[%s22608_s28 + $0x104] sm:$0xf] }
 0x116   : > { %20358 = vmatprep.mubr.msk.bf16.mxu0 %vm696_vm4, %v18127_v35  ;;  %v2086_v10 = vsel %vm22659_vm6, %v16812_v25, %v2085_v21  ;;  %v2105_v29 = vshll.u32 %v24112_v40, 16  ;;  %v2111_v45 = vshrl.u32 %v24115_v4, 16  ;;  %v16813_v43 = vrot.slane %v2097_v47, 11 }
 0x117   : > { %v2095_v55 = vsel %vm22659_vm6, %v2087_v1, %v2094_v49  ;;  %v10836_v60 = vsel %vm22634_vm5, %v10834_v32, %v10835_v44  ;;  %v2114_v23 = vshll.u32 %v24115_v4, 16  ;;  %v2104_v57 = vrot.slane %v2102_v56, 7  ;;  %v18091_v32 = vld [vmem:[%s22608_s28 + $0x100] sm:$0xc] }
 0x118   : > { %v16828_v17 = vcombine.low %v2086_v10, %v2095_v55  ;;  %v18128_v20 = vcombine.low %v10833_v54, %v10836_v60  ;;  %v2113_v33 = vrot.slane %v2111_v45, 7  ;;  %v18113_v24 = vrot.slane %v18087_v26, 10  ;;  %v24166_v26 = vld [vmem:[%s22608_s28 + $0x108] sm:$0xf] }
 0x119   : > { %v10839_v0 = vrot.slane %v24112_v40, 6  ;;  %v10842_v61 = vrot.slane %v18088_v52, 6  ;;  %v2119_v22 = vshrl.u32 %v16780_v51, 16  ;;  %v2107_v53 = vor.u32 %v2105_v29, %v2104_v57 }
 0x11a   : > { %19711 = vmatmul.mubr.msk.bf16.gmra.mrb[8].mxu1 %vm696_vm4, %v16828_v17  ;;  %20359 = vmatmul.mubr.msk.bf16.gmra.mrb[8].mxu0 %vm696_vm4, %v18128_v20  ;;  %v2109_v30 = vrot.slane %v2104_v57, 4  ;;  %v2116_v9 = vor.u32 %v2114_v23, %v2113_v33  ;;  %v2124_v16 = vshrl.u32 %v24139_v31, 16  ;;  %v2127_v25 = vshll.u32 %v24139_v31, 16  ;;  %v18092_v23 = vld [vmem:[%s22608_s28 + $0x108] sm:$0x3] }
 0x11b   : > { %v10840_v19 = vsel %vm22634_vm5, %v18113_v24, %v10839_v0  ;;  %v10841_v2 = vrot.slane %v10839_v0, 4  ;;  %v16814_v39 = vrot.slane %v2119_v22, 11  ;;  %v2108_v7 = vsel %vm22659_vm6, %v16813_v43, %v2107_v53  ;;  %v16786_v24 = vld [vmem:[%s22608_s28 + $0x110] sm:$0x8] }
 0x11c   : > { %v2117_v28 = vsel %vm22659_vm6, %v2109_v30, %v2116_v9  ;;  %v2126_v37 = vrot.slane %v2124_v16, 7  ;;  %v2133_v36 = vshrl.u32 %v24143_v14, 16  ;;  %v2136_v1 = vshll.u32 %v24143_v14, 16  ;;  %v24185_v30 = vld [vmem:[%s22608_s28 + $0x114] sm:$0xf] }
 0x11d   : > { %v16829_v35 = vcombine.low %v2108_v7, %v2117_v28  ;;  %v10843_v21 = vsel %vm22634_vm5, %v10841_v2, %v10842_v61  ;;  %v18114_v44 = vrot.slane %v18089_v18, 10  ;;  %v10846_v47 = vrot.slane %v24139_v31, 6 }
 0x11e   : > { %v18129_v52 = vcombine.low %v10840_v19, %v10843_v21  ;;  %v2129_v51 = vor.u32 %v2127_v25, %v2126_v37  ;;  %v2131_v49 = vrot.slane %v2126_v37, 4  ;;  %v2135_v54 = vrot.slane %v2133_v36, 7  ;;  %v24190_v19 = vld [vmem:[%s22608_s28 + $0x118] sm:$0xf] }
 0x11f   : > { %19714 = vmatprep.mubr.msk.bf16.mxu1 %vm696_vm4, %v16829_v35  ;;  %v10849_v10 = vrot.slane %v18090_v50, 6  ;;  %v2141_v56 = vshrl.u32 %v16783_v62, 16  ;;  %v2146_v29 = vshrl.u32 %v24160_v15, 16  ;;  %v2149_v60 = vshll.u32 %v24160_v15, 16  ;;  %v18093_v35 = vld [vmem:[%s22608_s28 + $0x110] sm:$0xc] }
 0x120   : > { %20362 = vmatprep.mubr.msk.bf16.mxu0 %vm696_vm4, %v18129_v52  ;;  %v2130_v45 = vsel %vm22659_vm6, %v16814_v39, %v2129_v51  ;;  %v2138_v55 = vor.u32 %v2136_v1, %v2135_v54  ;;  %v2155_v43 = vshrl.u32 %v24166_v26, 16  ;;  %v10847_v17 = vsel %vm22634_vm5, %v18114_v44, %v10846_v47  ;;  %v18094_v51 = vld [vmem:[%s22608_s28 + $0x118] sm:$0x3] }
 0x121   : > { %v10848_v20 = vrot.slane %v10846_v47, 4  ;;  %v16815_v57 = vrot.slane %v2141_v56, 11  ;;  %v2148_v33 = vrot.slane %v2146_v29, 7  ;;  %v2158_v22 = vshll.u32 %v24166_v26, 16  ;;  %v24209_v56 = vld [vmem:[%s22608_s28 + $0x124] sm:$0xf] }
 0x122   : > { %v2139_v0 = vsel %vm22659_vm6, %v2131_v49, %v2138_v55  ;;  %v2157_v61 = vrot.slane %v2155_v43, 7  ;;  %v18115_v53 = vrot.slane %v18091_v32, 10  ;;  %v10853_v25 = vrot.slane %v24160_v15, 6  ;;  %v16789_v49 = vld [vmem:[%s22608_s28 + $0x120] sm:$0x8] }
 0x123   : > { %v16830_v9 = vcombine.low %v2130_v45, %v2139_v0  ;;  %v10850_v16 = vsel %vm22634_vm5, %v10848_v20, %v10849_v10  ;;  %v2151_v18 = vor.u32 %v2149_v60, %v2148_v33  ;;  %v2153_v50 = vrot.slane %v2148_v33, 4  ;;  %v24215_v43 = vld [vmem:[%s22608_s28 + $0x128] sm:$0xf] }
 0x124   : > { %v18130_v2 = vcombine.low %v10847_v17, %v10850_v16  ;;  %v2160_v39 = vor.u32 %v2158_v22, %v2157_v61  ;;  %v10856_v62 = vrot.slane %v18092_v23, 6  ;;  %v2163_v28 = vshrl.u32 %v16786_v24, 16  ;;  %v18095_v22 = vld [vmem:[%s22608_s28 + $0x120] sm:$0xc] }
 0x125   : > { %19715 = vmatmul.mubr.msk.bf16.gmra.mrb[12].mxu1 %vm696_vm4, %v16830_v9  ;;  %v2152_v7 = vsel %vm22659_vm6, %v16815_v57, %v2151_v18  ;;  %v2168_v37 = vshrl.u32 %v24185_v30, 16  ;;  %v2171_v36 = vshll.u32 %v24185_v30, 16  ;;  %v10854_v1 = vsel %vm22634_vm5, %v18115_v53, %v10853_v25  ;;  %v18096_v53 = vld [vmem:[%s22608_s28 + $0x128] sm:$0x3] }
 0x126   : > { %20363 = vmatmul.mubr.msk.bf16.gmra.mrb[12].mxu0 %vm696_vm4, %v18130_v2  ;;  %v2161_v21 = vsel %vm22659_vm6, %v2153_v50, %v2160_v39  ;;  %v10855_v44 = vrot.slane %v10853_v25, 4  ;;  %v2177_v52 = vshrl.u32 %v24190_v19, 16  ;;  %v16816_v32 = vrot.slane %v2163_v28, 11  ;;  %v16792_v2 = vld [vmem:[%s22608_s28 + $0x130] sm:$0x8] }
 0x127   : > { %v16831_v54 = vcombine.low %v2152_v7, %v2161_v21  ;;  %v2170_v47 = vrot.slane %v2168_v37, 7  ;;  %v2180_v10 = vshll.u32 %v24190_v19, 16  ;;  %v18116_v55 = vrot.slane %v18093_v35, 10  ;;  %v24235_v28 = vld [vmem:[%s22608_s28 + $0x134] sm:$0xf] }
 0x128   : > { %v10857_v29 = vsel %vm22634_vm5, %v10855_v44, %v10856_v62  ;;  %v2179_v45 = vrot.slane %v2177_v52, 7  ;;  %v10860_v60 = vrot.slane %v24185_v30, 6  ;;  %v10863_v57 = vrot.slane %v18094_v51, 6  ;;  %v24239_v51 = vld [vmem:[%s22608_s28 + $0x138] sm:$0xf] }
 0x129   : > { %19718 = vmatprep.mubr.msk.bf16.mxu1 %vm696_vm4, %v16831_v54  ;;  %v18131_v23 = vcombine.low %v10854_v1, %v10857_v29  ;;  %v2173_v17 = vor.u32 %v2171_v36, %v2170_v47  ;;  %v2175_v20 = vrot.slane %v2170_v47, 4  ;;  %v2185_v61 = vshrl.u32 %v16789_v49, 16  ;;  %v18097_v29 = vld [vmem:[%s22608_s28 + $0x130] sm:$0xc] }
 0x12a   : > { %v2182_v33 = vor.u32 %v2180_v10, %v2179_v45  ;;  %v10861_v24 = vsel %vm22634_vm5, %v18116_v55, %v10860_v60  ;;  %v10862_v0 = vrot.slane %v10860_v60, 4  ;;  %v2190_v16 = vshrl.u32 %v24209_v56, 16 }
 0x12b   : > { %20366 = vmatprep.mubr.msk.bf16.mxu0 %vm696_vm4, %v18131_v23  ;;  %v2174_v9 = vsel %vm22659_vm6, %v16816_v32, %v2173_v17  ;;  %v2193_v18 = vshll.u32 %v24209_v56, 16  ;;  %v2199_v50 = vshrl.u32 %v24215_v43, 16  ;;  %v16817_v62 = vrot.slane %v2185_v61, 11  ;;  %v18098_v17 = vld [vmem:[%s22608_s28 + $0x138] sm:$0x3] }
 0x12c   : > { %v2183_v39 = vsel %vm22659_vm6, %v2175_v20, %v2182_v33  ;;  %v10864_v25 = vsel %vm22634_vm5, %v10862_v0, %v10863_v57  ;;  %v2202_v7 = vshll.u32 %v24215_v43, 16  ;;  %v2192_v35 = vrot.slane %v2190_v16, 7  ;;  %v16795_v0 = vld [vmem:[%s22608_s28 + $0x140] sm:$0x8]  ;;  %v24256_v61 = vld [vmem:[%s22608_s28 + $0x144] sm:$0xf] }
 0x12d   : > { %v16832_v37 = vcombine.low %v2174_v9, %v2183_v39  ;;  %v18132_v36 = vcombine.low %v10861_v24, %v10864_v25  ;;  %v2201_v21 = vrot.slane %v2199_v50, 7  ;;  %v18117_v1 = vrot.slane %v18095_v22, 10 }
 0x12e   : > { %v10867_v44 = vrot.slane %v24209_v56, 6  ;;  %v10870_v52 = vrot.slane %v18096_v53, 6  ;;  %v2207_v49 = vshrl.u32 %v16792_v2, 16  ;;  %v2195_v54 = vor.u32 %v2193_v18, %v2192_v35  ;;  %v24262_v18 = vld [vmem:[%s22608_s28 + $0x148] sm:$0xf] }
 0x12f   : > { %19719 = vmatmul.mubr.msk.bf16.gmra.mrb[16].mxu1 %vm696_vm4, %v16832_v37  ;;  %20367 = vmatmul.mubr.msk.bf16.gmra.mrb[16].mxu0 %vm696_vm4, %v18132_v36  ;;  %v2197_v32 = vrot.slane %v2192_v35, 4  ;;  %v2204_v47 = vor.u32 %v2202_v7, %v2201_v21  ;;  %v2212_v10 = vshrl.u32 %v24235_v28, 16  ;;  %v2215_v23 = vshll.u32 %v24235_v28, 16  ;;  %v18099_v35 = vld [vmem:[%s22608_s28 + $0x140] sm:$0xc] }
 0x130   : > { %v10868_v45 = vsel %vm22634_vm5, %v18117_v1, %v10867_v44  ;;  %v10869_v55 = vrot.slane %v10867_v44, 4  ;;  %v16818_v60 = vrot.slane %v2207_v49, 11  ;;  %v2196_v20 = vsel %vm22659_vm6, %v16817_v62, %v2195_v54  ;;  %v18100_v49 = vld [vmem:[%s22608_s28 + $0x148] sm:$0x3] }
 0x131   : > { %v2205_v57 = vsel %vm22659_vm6, %v2197_v32, %v2204_v47  ;;  %v2214_v33 = vrot.slane %v2212_v10, 7  ;;  %v2221_v24 = vshrl.u32 %v24239_v51, 16  ;;  %v2224_v9 = vshll.u32 %v24239_v51, 16 }
 0x132   : > { %v16833_v22 = vcombine.low %v2196_v20, %v2205_v57  ;;  %v10871_v53 = vsel %vm22634_vm5, %v10869_v55, %v10870_v52  ;;  %v18118_v16 = vrot.slane %v18097_v29, 10  ;;  %v10874_v62 = vrot.slane %v24235_v28, 6  ;;  %v16798_v29 = vld [vmem:[%s22608_s28 + $0x150] sm:$0x8] }
 0x133   : > { %v18133_v50 = vcombine.low %v10868_v45, %v10871_v53  ;;  %v2217_v2 = vor.u32 %v2215_v23, %v2214_v33  ;;  %v2219_v39 = vrot.slane %v2214_v33, 4  ;;  %v2223_v25 = vrot.slane %v2221_v24, 7 }
 0x134   : > { %19722 = vmatprep.mubr.msk.bf16.mxu1 %vm696_vm4, %v16833_v22  ;;  %v10877_v7 = vrot.slane %v18098_v17, 6  ;;  %v2229_v37 = vshrl.u32 %v16795_v0, 16  ;;  %v2234_v36 = vshrl.u32 %v24256_v61, 16  ;;  %v2237_v44 = vshll.u32 %v24256_v61, 16  ;;  %v24281_v17 = vld [vmem:[%s22608_s28 + $0x154] sm:$0xf] }
 0x135   : > { %20370 = vmatprep.mubr.msk.bf16.mxu0 %vm696_vm4, %v18133_v50  ;;  %v2218_v21 = vsel %vm22659_vm6, %v16818_v60, %v2217_v2  ;;  %v2226_v1 = vor.u32 %v2224_v9, %v2223_v25  ;;  %v2243_v52 = vshrl.u32 %v24262_v18, 16  ;;  %v10875_v54 = vsel %vm22634_vm5, %v18118_v16, %v10874_v62  ;;  %v24286_v0 = vld [vmem:[%s22608_s28 + $0x158] sm:$0xf]  ;;  %v18101_v22 = vld [vmem:[%s22608_s28 + $0x150] sm:$0xc] }
 0x136   : > { %v10876_v32 = vrot.slane %v10874_v62, 4  ;;  %v16819_v47 = vrot.slane %v2229_v37, 11  ;;  %v2236_v10 = vrot.slane %v2234_v36, 7  ;;  %v2246_v60 = vshll.u32 %v24262_v18, 16  ;;  %v18102_v2 = vld [vmem:[%s22608_s28 + $0x158] sm:$0x3] }
 0x137   : > { %v2227_v45 = vsel %vm22659_vm6, %v2219_v39, %v2226_v1  ;;  %v2245_v55 = vrot.slane %v2243_v52, 7  ;;  %v18119_v23 = vrot.slane %v18099_v35, 10  ;;  %v10881_v16 = vrot.slane %v24256_v61, 6  ;;  %v16801_v37 = vld [vmem:[%s22608_s28 + $0x160] sm:$0x8] }
 0x138   : > { %v16834_v20 = vcombine.low %v2218_v21, %v2227_v45  ;;  %v10878_v57 = vsel %vm22634_vm5, %v10876_v32, %v10877_v7  ;;  %v2239_v33 = vor.u32 %v2237_v44, %v2236_v10  ;;  %v2241_v24 = vrot.slane %v2236_v10, 4  ;;  %v24304_v44 = vld [vmem:[%s22608_s28 + $0x164] sm:$0xf] }
 0x139   : > { %v18134_v53 = vcombine.low %v10875_v54, %v10878_v57  ;;  %v2248_v9 = vor.u32 %v2246_v60, %v2245_v55  ;;  %v10884_v50 = vrot.slane %v18100_v49, 6  ;;  %v2251_v25 = vshrl.u32 %v16798_v29, 16  ;;  %v24311_v55 = vld [vmem:[%s22608_s28 + $0x168] sm:$0xf] }
 0x13a   : > { %19723 = vmatmul.mubr.msk.bf16.gmra.mrb[20].mxu1 %vm696_vm4, %v16834_v20  ;;  %v2240_v39 = vsel %vm22659_vm6, %v16819_v47, %v2239_v33  ;;  %v2256_v62 = vshrl.u32 %v24281_v17, 16  ;;  %v2259_v7 = vshll.u32 %v24281_v17, 16  ;;  %v10882_v35 = vsel %vm22634_vm5, %v18119_v23, %v10881_v16 }
 0x13b   : > { %20371 = vmatmul.mubr.msk.bf16.gmra.mrb[20].mxu0 %vm696_vm4, %v18134_v53  ;;  %v2249_v36 = vsel %vm22659_vm6, %v2241_v24, %v2248_v9  ;;  %v10883_v21 = vrot.slane %v10881_v16, 4  ;;  %v2265_v1 = vshrl.u32 %v24286_v0, 16  ;;  %v16820_v49 = vrot.slane %v2251_v25, 11  ;;  %v18103_v16 = vld [vmem:[%s22608_s28 + $0x160] sm:$0xc] }
 0x13c   : > { %v16835_v52 = vcombine.low %v2240_v39, %v2249_v36  ;;  %v2258_v54 = vrot.slane %v2256_v62, 7  ;;  %v2268_v32 = vshll.u32 %v24286_v0, 16  ;;  %v18120_v29 = vrot.slane %v18101_v22, 10  ;;  %v18104_v22 = vld [vmem:[%s22608_s28 + $0x168] sm:$0x3] }
 0x13d   : > { %v10885_v47 = vsel %vm22634_vm5, %v10883_v21, %v10884_v50  ;;  %v2267_v10 = vrot.slane %v2265_v1, 7  ;;  %v10888_v45 = vrot.slane %v24281_v17, 6  ;;  %v10891_v57 = vrot.slane %v18102_v2, 6  ;;  %v16804_v62 = vld [vmem:[%s22608_s28 + $0x170] sm:$0x8] }
 0x13e   : > { %19726 = vmatprep.mubr.msk.bf16.mxu1 %vm696_vm4, %v16835_v52  ;;  %v18135_v60 = vcombine.low %v10882_v35, %v10885_v47  ;;  %v2261_v23 = vor.u32 %v2259_v7, %v2258_v54  ;;  %v2263_v20 = vrot.slane %v2258_v54, 4  ;;  %v2273_v9 = vshrl.u32 %v16801_v37, 16  ;;  %v24331_v21 = vld [vmem:[%s22608_s28 + $0x174] sm:$0xf] }
 0x13f   : > { %v2270_v33 = vor.u32 %v2268_v32, %v2267_v10  ;;  %v10889_v24 = vsel %vm22634_vm5, %v18120_v29, %v10888_v45  ;;  %v10890_v53 = vrot.slane %v10888_v45, 4  ;;  %v2278_v39 = vshrl.u32 %v24304_v44, 16  ;;  %v24335_v29 = vld [vmem:[%s22608_s28 + $0x178] sm:$0xf] }
 0x140   : > { %20374 = vmatprep.mubr.msk.bf16.mxu0 %vm696_vm4, %v18135_v60  ;;  %v2262_v50 = vsel %vm22659_vm6, %v16820_v49, %v2261_v23  ;;  %v2281_v25 = vshll.u32 %v24304_v44, 16  ;;  %v2287_v2 = vshrl.u32 %v24311_v55, 16  ;;  %v16821_v36 = vrot.slane %v2273_v9, 11 }
 0x141   : > { %v2271_v7 = vsel %vm22659_vm6, %v2263_v20, %v2270_v33  ;;  %v10892_v37 = vsel %vm22634_vm5, %v10890_v53, %v10891_v57  ;;  %v2290_v35 = vshll.u32 %v24311_v55, 16  ;;  %v2280_v49 = vrot.slane %v2278_v39, 7  ;;  %v18105_v33 = vld [vmem:[%s22608_s28 + $0x170] sm:$0xc] }
 0x142   : > { %v16836_v1 = vcombine.low %v2262_v50, %v2271_v7  ;;  %v18136_v52 = vcombine.low %v10889_v24, %v10892_v37  ;;  %v2289_v54 = vrot.slane %v2287_v2, 7  ;;  %v18121_v32 = vrot.slane %v18103_v16, 10  ;;  %v18106_v2 = vld [vmem:[%s22608_s28 + $0x178] sm:$0x3] }
 0x143   : > { %v10895_v47 = vrot.slane %v24304_v44, 6  ;;  %v10898_v10 = vrot.slane %v18104_v22, 6  ;;  %v2295_v45 = vshrl.u32 %v16804_v62, 16  ;;  %v2283_v60 = vor.u32 %v2281_v25, %v2280_v49 }
 0x144   : > { %19727 = vmatmul.mubr.msk.bf16.gmra.mrb[24].mxu1 %vm696_vm4, %v16836_v1  ;;  %20375 = vmatmul.mubr.msk.bf16.gmra.mrb[24].mxu0 %vm696_vm4, %v18136_v52  ;;  %v2285_v23 = vrot.slane %v2280_v49, 4  ;;  %v2292_v20 = vor.u32 %v2290_v35, %v2289_v54  ;;  %v2300_v57 = vshrl.u32 %v24331_v21, 16  ;;  %v2303_v16 = vshll.u32 %v24331_v21, 16 }
 0x145   : > { %v10896_v24 = vsel %vm22634_vm5, %v18121_v32, %v10895_v47  ;;  %v10897_v53 = vrot.slane %v10895_v47, 4  ;;  %v16822_v9 = vrot.slane %v2295_v45, 11  ;;  %v2284_v22 = vsel %vm22659_vm6, %v16821_v36, %v2283_v60 }
 0x146   : > { %v2293_v50 = vsel %vm22659_vm6, %v2285_v23, %v2292_v20  ;;  %v2302_v39 = vrot.slane %v2300_v57, 7  ;;  %v2309_v25 = vshrl.u32 %v24335_v29, 16  ;;  %v2312_v37 = vshll.u32 %v24335_v29, 16  ;;  %v16891_v57 = vld [vmem:[%s22608_s28 + $0x84] sm:$0xf] }
 0x147   : > { %v16837_v62 = vcombine.low %v2284_v22, %v2293_v50  ;;  %v10899_v7 = vsel %vm22634_vm5, %v10897_v53, %v10898_v10  ;;  %v18122_v35 = vrot.slane %v18105_v33, 10  ;;  %v10902_v36 = vrot.slane %v24331_v21, 6 }
 0x148   : > { %v18137_v1 = vcombine.low %v10896_v24, %v10899_v7  ;;  %v2305_v52 = vor.u32 %v2303_v16, %v2302_v39  ;;  %v2307_v49 = vrot.slane %v2302_v39, 4  ;;  %v2311_v54 = vrot.slane %v2309_v25, 7  ;;  %v24378_v16 = vld [vmem:[%s22608_s28 + $0x88] sm:$0xf]  ;;  %v18176_v25 = vld [vmem:[%s22608_s28 + $0x8c] sm:$0x3] }
 0x149   : > { %19730 = vmatprep.mubr.msk.bf16.mxu1 %vm696_vm4, %v16837_v62  ;;  %v10905_v32 = vrot.slane %v18106_v2, 6  ;;  %v10903_v45 = vsel %vm22634_vm5, %v18122_v35, %v10902_v36  ;;  %v10904_v60 = vrot.slane %v10902_v36, 4  ;;  %v24364_v20 = vcombine.low %v23949_v42, %v23954_v41 }
 0x14a   : > { %20378 = vmatprep.mubr.msk.bf16.mxu0 %vm696_vm4, %v18137_v1  ;;  %v2306_v47 = vsel %vm22659_vm6, %v16822_v9, %v2305_v52  ;;  %v2314_v10 = vor.u32 %v2312_v37, %v2311_v54  ;;  %v24371_v53 = vcombine.low %v23974_v6, %v23977_v59  ;;  %v24375_v9 = vcombine.low %v23994_v5, %v24002_v8  ;;  %v16897_v54 = vld [vmem:[%s22608_s28 + $0xa4] sm:$0xf] }
 0x14b   : > { %28237 = vst [vmem:[#allocation11_spill] sm:$0xff] %v24364_v20  ;;  %v10906_v24 = vsel %vm22634_vm5, %v10904_v60, %v10905_v32  ;;  %v24382_v42 = vcombine.low %v24023_v13, %v24030_v48  ;;  %v24386_v41 = vcombine.low %v24050_v27, %v24057_v11  ;;  %v24390_v6 = vcombine.low %v24088_v58, %v24093_v34  ;;  %v16894_v48 = vld [vmem:[%s22608_s28 + $0x94] sm:$0xf]  ;;  %v16893_v58 = vld [vmem:[%s22608_s28 + $0x8c] sm:$0x1] }
 0x14c   : > { %v2315_v23 = vsel %vm22659_vm6, %v2307_v49, %v2314_v10  ;;  %28238 = vst [vmem:[#allocation8_spill] sm:$0xff] %v24371_v53  ;;  %28239 = vst [vmem:[#allocation5_spill] sm:$0xff] %v24375_v9  ;;  %v18138_v22 = vcombine.low %v10903_v45, %v10906_v24  ;;  %v24395_v59 = vcombine.low %v24112_v40, %v24115_v4  ;;  %v3007_v8 = vshrl.u32 %v16891_v57, 16  ;;  %v18175_v4 = vld [vmem:[%s22608_s28 + $0x84] sm:$0xc] }
 0x14d   : > { %v16838_v33 = vcombine.low %v2306_v47, %v2315_v23  ;;  %28240 = vst [vmem:[#allocation6_spill] sm:$0xff] %v24382_v42  ;;  %28241 = vst [vmem:[#allocation7_spill] sm:$0xff] %v24386_v41  ;;  %v24399_v5 = vcombine.low %v24139_v31, %v24143_v14  ;;  %v3010_v13 = vshll.u32 %v16891_v57, 16  ;;  %v24407_v27 = vcombine.low %v24160_v15, %v24166_v26  ;;  %v22111_v47 = vld [vmem:[%s28058_s1 + $0x58] sm:$0xff]   ;;  %v24473_v24 = vld [vmem:[%s22608_s28 + $0xa8] sm:$0xf] }
 0x14e   : > { %28242 = vst [vmem:[#allocation10_spill] sm:$0xff] %v24390_v6  ;;  %28243 = vst [vmem:[#allocation14_spill] sm:$0xff] %v24395_v59  ;;  %20379 = vmatmul.mubr.msk.bf16.gmra.mrb[28].mxu0 %vm696_vm4, %v18138_v22  ;;  %v24411_v11 = vcombine.low %v24185_v30, %v24190_v19  ;;  %v3016_v34 = vshll.u32 %v24378_v16, 16  ;;  %v3020_v40 = vshrl.u32 %v24378_v16, 16  ;;  %v24421_v31 = vcombine.low %v24209_v56, %v24215_v43  ;;  %v24425_v30 = vld [vmem:[%s22608_s28 + $0x98] sm:$0xf] }
 0x14f   : > { %19731 = vmatmul.mubr.msk.bf16.gmra.mrb[28].mxu1 %vm696_vm4, %v16838_v33  ;;  %28244 = vst [vmem:[#allocation12_spill] sm:$0xff] %v24399_v5  ;;  %28245 = vst [vmem:[#allocation20_spill] sm:$0xff] %v24407_v27  ;;  %20386 = vmatprep.mubr.msk.bf16.mxu0 %vm696_vm4, %v24364_v20  ;;  %v3009_v14 = vrot.slane %v3007_v8, 4  ;;  %v3012_v15 = vrot.slane %v3010_v13, 5  ;;  %v11487_v26 = vrot.slane %v24378_v16, 6  ;;  %v24429_v19 = vcombine.low %v24235_v28, %v24239_v51  ;;  %v24470_v33 = vld [vmem:[%s28058_s1 + $0x60] sm:$0xff]  }
 0x150   : > { %19738 = vmatprep.mubr.msk.bf16.mxu1 %vm696_vm4, %v24364_v20  ;;  %28246 = vst [vmem:[#allocation13_spill] sm:$0xff] %v24411_v11  ;;  %28247 = vst [vmem:[#allocation32_spill] sm:$0xff] %v24421_v31  ;;  %v24431_v50 = vrot.slane %v3016_v34, 5  ;;  %v3022_v39 = vrot.slane %v3020_v40, 4  ;;  %v3031_v2 = vshrl.u32 %v16894_v48, 16  ;;  %v3026_v7 = vshll.u32 %v16893_v58, 16 }
 0x151   : > { %28248 = vst [vmem:[#allocation17_spill] sm:$0xff] %v24429_v19  ;;  %v3013_v62 = vor.u32 %v3012_v15, %v3009_v14  ;;  %v18207_v56 = vrot.slane %v18175_v4, 10  ;;  %v16896_v43 = vld [vmem:[%s22608_s28 + $0x9c] sm:$0x1]  ;;  %v3034_v37 = vshll.u32 %v16894_v48, 16  ;;  %v3040_v52 = vshll.u32 %v24425_v30, 16 }
 0x152   : > { %v3023_v35 = vor.u32 %v3022_v39, %v24431_v50  ;;  %v3033_v1 = vrot.slane %v3031_v2, 4  ;;  %v3044_v49 = vshrl.u32 %v24425_v30, 16  ;;  %v24441_v28 = vcombine.low %v24256_v61, %v24262_v18  ;;  %v22112_v61 = vld [vmem:[%s28058_s1 + $0x178] sm:$0xff]   ;;  %v24486_v16 = vld [vmem:[%s22608_s28 + $0x94] sm:$0xc]  ;;  %v24502_v13 = vld [vmem:[%s28058_s1 + $0x180] sm:$0xff]  }
 0x153   : > { %v11489_v51 = vrot.slane %v11487_v26, 4  ;;  %v11490_v36 = vrot.slane %v18176_v25, 6  ;;  %v3036_v32 = vrot.slane %v3034_v37, 5  ;;  %v24448_v10 = vcombine.low %v24281_v17, %v24286_v0  ;;  %v24489_v22 = vld [vmem:[%s22608_s28 + $0x9c] sm:$0x3] }
 0x154   : > { %28249 = vst [vmem:[#allocation15_spill] sm:$0xff] %v24441_v28  ;;  %v24450_v45 = vrot.slane %v3040_v52, 5  ;;  %v3046_v60 = vrot.slane %v3044_v49, 4  ;;  %v3050_v23 = vshll.u32 %v16896_v43, 16  ;;  %v24459_v18 = vcombine.low %v24304_v44, %v24311_v55  ;;  %v16899_v48 = vld [vmem:[%s22608_s28 + $0xac] sm:$0x1] }
 0x155   : > { %28250 = vst [vmem:[#allocation16_spill] sm:$0xff] %v24448_v10  ;;  %v24463_v17 = vcombine.low %v24331_v21, %v24335_v29  ;;  %v24465_v0 = vrot.slane %v3013_v62, 4  ;;  %v3037_v57 = vor.u32 %v3036_v32, %v3033_v1  ;;  %v24478_v44 = vrot.slane %v3023_v35, 4  ;;  %v18179_v15 = vld [vmem:[%s22608_s28 + $0xa4] sm:$0xc] }
 0x156   : > { %28251 = vst [vmem:[#allocation22_spill] sm:$0xff] %v24459_v18  ;;  %20387 = vmatmul.mubr.msk.bf16.vlgmr.msra.gmra.mrb[0].mxu0 %vm696_vm4, %v24371_v53  ;;  %v3028_v55 = vrot.slane %v3026_v7, 5  ;;  %v24482_v21 = vsel %vm22634_vm5, %v18207_v56, %v11487_v26  ;;  %v3047_v29 = vor.u32 %v3046_v60, %v24450_v45  ;;  %v11494_v8 = vrot.slane %v24425_v30, 6  ;;  %v18180_v2 = vld [vmem:[%s22608_s28 + $0xac] sm:$0x3] }
 0x157   : > { %19739 = vmatmul.mubr.msk.bf16.vlgmr.msra.gmra.mrb[0].mxu1 %vm696_vm4, %v24371_v53  ;;  %28252 = vst [vmem:[#allocation18_spill] sm:$0xff] %v24463_v17  ;;  %20419 = vmatpush3.bf16.msra.mxu0 %v24068_v46  ;;  %v3055_v58 = vshrl.u32 %v16897_v54, 16  ;;  %v3058_v34 = vshll.u32 %v16897_v54, 16  ;;  %v3038_v46 = vrot.slane %v3037_v57, 4  ;;  %v3052_v4 = vrot.slane %v3050_v23, 5 }
 0x158   : > { %19771 = vmatpush3.bf16.msra.mxu1 %v24062_v3  ;;  %19742 = vmatprep.mubr.msk.bf16.mxu1 %vm696_vm4, %v24375_v9  ;;  %v24496_v3 = vsel %vm22634_vm5, %v11489_v51, %v11490_v36  ;;  %v3048_v40 = vrot.slane %v3047_v29, 4  ;;  %v3064_v14 = vshll.u32 %v24473_v24, 16  ;;  %v3019_v26 = vsel %vm23502_vm9, %v24465_v0, %v24431_v50  ;;  %v16900_v37 = vld [vmem:[%s22608_s28 + $0xb4] sm:$0xf]  ;;  %v24525_v49 = vld [vmem:[%s22608_s28 + $0xb8] sm:$0xf] }
 0x159   : > { %20390 = vmatprep.mubr.msk.bf16.mxu0 %vm696_vm4, %v24375_v9  ;;  %19772 = vmatprep.subr.bf16.mxu1 %v22111_v47  ;;  %v3057_v30 = vrot.slane %v3055_v58, 4  ;;  %v3060_v39 = vrot.slane %v3058_v34, 5  ;;  %v3068_v25 = vshrl.u32 %v24473_v24, 16  ;;  %v3029_v62 = vsel %vm23502_vm9, %v24478_v44, %v3028_v55  ;;  %v16902_v29 = vld [vmem:[%s22608_s28 + $0xbc] sm:$0x1] }
 0x15a   : > { %20420 = vmatprep.subr.bf16.mxu0 %v22112_v61  ;;  %v18208_v7 = vrot.slane %v24486_v16, 10  ;;  %v11497_v56 = vrot.slane %v24489_v22, 6  ;;  %v24520_v43 = vrot.slane %v3064_v14, 5  ;;  %v11496_v50 = vrot.slane %v11494_v8, 4  ;;  %v24831_v9 = vld [vmem:[%s22608_s28 + $0x138] sm:$0xf] }
 0x15b   : > { %20421 = vmatpush3.bf16.msra.mxu0 %v22112_v61  ;;  %v3061_v35 = vor.u32 %v3060_v39, %v3057_v30  ;;  %v3070_v1 = vrot.slane %v3068_v25, 4  ;;  %v3074_v52 = vshll.u32 %v16899_v48, 16  ;;  %v3043_v54 = vsel %vm23502_vm9, %v3038_v46, %v24450_v45  ;;  %v18181_v30 = vld [vmem:[%s22608_s28 + $0xb4] sm:$0xc]  ;;  %v24565_v39 = vld [vmem:[%s22608_s28 + $0xc8] sm:$0xf] }
 0x15c   : > { %19773 = vmatpush3.bf16.msra.mxu1 %v22111_v47  ;;  %v3053_v51 = vsel %vm23502_vm9, %v3048_v40, %v3052_v4  ;;  %20454 = vmatprep.subr.bf16.mxu0 %v24502_v13  ;;  %v18209_v36 = vrot.slane %v18179_v15, 10  ;;  %v11501_v32 = vrot.slane %v24473_v24, 6  ;;  %v11504_v60 = vrot.slane %v18180_v2, 6  ;;  %v16903_v40 = vld [vmem:[%s22608_s28 + $0xc4] sm:$0xf] }
 0x15d   : > { %19806 = vmatprep.subr.bf16.mxu1 %v24470_v33  ;;  %v3071_v47 = vor.u32 %v3070_v1, %v24520_v43  ;;  %v3079_v23 = vshrl.u32 %v16900_v37, 16  ;;  %v3082_v61 = vshll.u32 %v16900_v37, 16  ;;  %v3062_v45 = vrot.slane %v3061_v35, 4  ;;  %v18182_v1 = vld [vmem:[%s22608_s28 + $0xbc] sm:$0x3] }
 0x15e   : > { %20391 = vmatmul.mubr.msk.bf16.gmra.mrb[4].mxu0 %vm696_vm4, %v24382_v42  ;;  %v11503_v0 = vrot.slane %v11501_v32, 4  ;;  %v3088_v57 = vshll.u32 %v24525_v49, 16  ;;  %v3092_v24 = vshrl.u32 %v24525_v49, 16  ;;  %v3076_v55 = vrot.slane %v3074_v52, 5 }
 0x15f   : > { %19743 = vmatmul.mubr.msk.bf16.gmra.mrb[4].mxu1 %vm696_vm4, %v24382_v42  ;;  %20394 = vmatprep.mubr.msk.bf16.mxu0 %vm696_vm4, %v24386_v41  ;;  %v3072_v44 = vrot.slane %v3071_v47, 4  ;;  %v3081_v16 = vrot.slane %v3079_v23, 4  ;;  %v3084_v22 = vrot.slane %v3082_v61, 5  ;;  %v24546_v48 = vcombine.low %v3019_v26, %v3029_v62  ;;  %v24674_v23 = vld [vmem:[%s22608_s28 + $0xf8] sm:$0xf] }
 0x160   : > { %19746 = vmatprep.mubr.msk.bf16.mxu1 %vm696_vm4, %v24386_v41  ;;  %v24550_v34 = vrot.slane %v3088_v57, 5  ;;  %v3094_v46 = vrot.slane %v3092_v24, 4  ;;  %v24553_v4 = vcombine.low %v3043_v54, %v3053_v51  ;;  %v24557_v14 = vsel %vm22634_vm5, %v18208_v7, %v11494_v8  ;;  %v16906_v57 = vld [vmem:[%s22608_s28 + $0xd4] sm:$0xf] }
 0x161   : > { %v24561_v15 = vsel %vm22634_vm5, %v11496_v50, %v11497_v56  ;;  %v3085_v26 = vor.u32 %v3084_v22, %v3081_v16  ;;  %v3067_v25 = vsel %vm23502_vm9, %v3062_v45, %v24520_v43  ;;  %v24572_v2 = vsel %vm22634_vm5, %v18209_v36, %v11501_v32  ;;  %v16905_v36 = vld [vmem:[%s22608_s28 + $0xcc] sm:$0x1]  ;;  %v24607_v16 = vld [vmem:[%s22608_s28 + $0xd8] sm:$0xf] }
 0x162   : > { %v24576_v8 = vsel %vm22634_vm5, %v11503_v0, %v11504_v60  ;;  %v3098_v62 = vshll.u32 %v16902_v29, 16  ;;  %v3077_v7 = vsel %vm23502_vm9, %v3072_v44, %v3076_v55  ;;  %v3095_v56 = vor.u32 %v3094_v46, %v24550_v34  ;;  %v18183_v0 = vld [vmem:[%s22608_s28 + $0xc4] sm:$0xc] }
 0x163   : > { %v3103_v37 = vshrl.u32 %v16903_v40, 16  ;;  %v3106_v50 = vshll.u32 %v16903_v40, 16  ;;  %v24581_v35 = vrot.slane %v3085_v26, 4  ;;  %v18210_v43 = vrot.slane %v18181_v30, 10  ;;  %v18184_v26 = vld [vmem:[%s22608_s28 + $0xcc] sm:$0x3] }
 0x164   : > { %v11508_v52 = vrot.slane %v24525_v49, 6  ;;  %v3112_v54 = vshll.u32 %v24565_v39, 16  ;;  %v3116_v60 = vshrl.u32 %v24565_v39, 16  ;;  %v24596_v49 = vcombine.low %v3067_v25, %v3077_v7  ;;  %v16908_v7 = vld [vmem:[%s22608_s28 + $0xdc] sm:$0x1] }
 0x165   : > { %v3105_v32 = vrot.slane %v3103_v37, 4  ;;  %v3108_v47 = vrot.slane %v3106_v50, 5  ;;  %v3100_v61 = vrot.slane %v3098_v62, 5  ;;  %v3096_v24 = vrot.slane %v3095_v56, 4 }
 0x166   : > { %20395 = vmatmul.mubr.msk.bf16.gmra.mrb[8].mxu0 %vm696_vm4, %v24390_v6  ;;  %v24600_v45 = vrot.slane %v3112_v54, 5  ;;  %v11511_v44 = vrot.slane %v18182_v1, 6  ;;  %v3118_v29 = vrot.slane %v3116_v60, 4  ;;  %v3091_v22 = vsel %vm23502_vm9, %v24581_v35, %v24550_v34 }
 0x167   : > { %19747 = vmatmul.mubr.msk.bf16.gmra.mrb[8].mxu1 %vm696_vm4, %v24390_v6  ;;  %20398 = vmatprep.mubr.msk.bf16.mxu0 %vm696_vm4, %v24395_v59  ;;  %v3109_v55 = vor.u32 %v3108_v47, %v3105_v32  ;;  %v24615_v46 = vsel %vm22634_vm5, %v18210_v43, %v11508_v52  ;;  %v11510_v40 = vrot.slane %v11508_v52, 4  ;;  %v11515_v30 = vrot.slane %v24565_v39, 6 }
 0x168   : > { %19750 = vmatprep.mubr.msk.bf16.mxu1 %vm696_vm4, %v24395_v59  ;;  %v3119_v25 = vor.u32 %v3118_v29, %v24600_v45  ;;  %v3122_v62 = vshll.u32 %v16905_v36, 16  ;;  %v3127_v56 = vshrl.u32 %v16906_v57, 16  ;;  %v3130_v37 = vshll.u32 %v16906_v57, 16  ;;  %v16909_v57 = vld [vmem:[%s22608_s28 + $0xe4] sm:$0xf] }
 0x169   : > { %v3110_v50 = vrot.slane %v3109_v55, 4  ;;  %v18211_v1 = vrot.slane %v18183_v0, 10  ;;  %v3136_v54 = vshll.u32 %v24607_v16, 16  ;;  %v3140_v34 = vshrl.u32 %v24607_v16, 16 }
 0x16a   : > { %v11517_v35 = vrot.slane %v11515_v30, 4  ;;  %v11518_v43 = vrot.slane %v18184_v26, 6  ;;  %v3129_v52 = vrot.slane %v3127_v56, 4  ;;  %v3132_v32 = vrot.slane %v3130_v37, 5  ;;  %v24635_v56 = vld [vmem:[%s22608_s28 + $0xe8] sm:$0xf] }
 0x16b   : > { %v3101_v39 = vsel %vm23502_vm9, %v3096_v24, %v3100_v61  ;;  %v24625_v47 = vrot.slane %v3136_v54, 5  ;;  %v3142_v36 = vrot.slane %v3140_v34, 4  ;;  %v3146_v60 = vshll.u32 %v16908_v7, 16 }
 0x16c   : > { %v24632_v0 = vsel %vm22634_vm5, %v11510_v40, %v11511_v44  ;;  %v3120_v55 = vrot.slane %v3119_v25, 4  ;;  %v3124_v29 = vrot.slane %v3122_v62, 5  ;;  %v3133_v26 = vor.u32 %v3132_v32, %v3129_v52  ;;  %v18185_v25 = vld [vmem:[%s22608_s28 + $0xd4] sm:$0xc]  ;;  %v16911_v52 = vld [vmem:[%s22608_s28 + $0xec] sm:$0x1] }
 0x16d   : > { %v3115_v61 = vsel %vm23502_vm9, %v3110_v50, %v24600_v45  ;;  %v24646_v24 = vsel %vm22634_vm5, %v18211_v1, %v11515_v30  ;;  %v3143_v44 = vor.u32 %v3142_v36, %v24625_v47  ;;  %v24653_v40 = vsel %vm22634_vm5, %v11517_v35, %v11518_v43  ;;  %v18186_v1 = vld [vmem:[%s22608_s28 + $0xdc] sm:$0x3] }
 0x16e   : > { %20399 = vmatmul.mubr.msk.bf16.gmra.mrb[12].mxu0 %vm696_vm4, %v24399_v5  ;;  %v11522_v62 = vrot.slane %v24607_v16, 6  ;;  %v3151_v7 = vshrl.u32 %v16909_v57, 16  ;;  %v3154_v37 = vshll.u32 %v16909_v57, 16  ;;  %v3134_v45 = vrot.slane %v3133_v26, 4  ;;  %v18187_v26 = vld [vmem:[%s22608_s28 + $0xe4] sm:$0xc] }
 0x16f   : > { %19751 = vmatmul.mubr.msk.bf16.gmra.mrb[12].mxu1 %vm696_vm4, %v24399_v5  ;;  %20402 = vmatprep.mubr.msk.bf16.mxu0 %vm696_vm4, %v24407_v27  ;;  %v3144_v50 = vrot.slane %v3143_v44, 4  ;;  %v3148_v30 = vrot.slane %v3146_v60, 5  ;;  %v3160_v54 = vshll.u32 %v24635_v56, 16  ;;  %v3125_v34 = vsel %vm23502_vm9, %v3120_v55, %v3124_v29  ;;  %v16912_v44 = vld [vmem:[%s22608_s28 + $0xf4] sm:$0xf] }
 0x170   : > { %19754 = vmatprep.mubr.msk.bf16.mxu1 %vm696_vm4, %v24407_v27  ;;  %v3153_v35 = vrot.slane %v3151_v7, 4  ;;  %v3156_v43 = vrot.slane %v3154_v37, 5  ;;  %v3164_v32 = vshrl.u32 %v24635_v56, 16  ;;  %v24663_v16 = vcombine.low %v3091_v22, %v3101_v39  ;;  %v18188_v60 = vld [vmem:[%s22608_s28 + $0xec] sm:$0x3] }
 0x171   : > { %v24669_v57 = vrot.slane %v3160_v54, 5  ;;  %v18212_v55 = vrot.slane %v18185_v25, 10  ;;  %v11524_v29 = vrot.slane %v11522_v62, 4  ;;  %v11525_v7 = vrot.slane %v18186_v1, 6 }
 0x172   : > { %v3166_v37 = vrot.slane %v3164_v32, 4  ;;  %v24676_v51 = vcombine.low %v3115_v61, %v3125_v34  ;;  %v3139_v22 = vsel %vm23502_vm9, %v3134_v45, %v24625_v47  ;;  %v3149_v39 = vsel %vm23502_vm9, %v3144_v50, %v3148_v30  ;;  %v16914_v32 = vld [vmem:[%s22608_s28 + $0xfc] sm:$0x1] }
 0x173   : > { %v3170_v54 = vshll.u32 %v16911_v52, 16  ;;  %v3157_v25 = vor.u32 %v3156_v43, %v3153_v35  ;;  %v18213_v1 = vrot.slane %v18187_v26, 10  ;;  %v3175_v61 = vshrl.u32 %v16912_v44, 16  ;;  %v18189_v52 = vld [vmem:[%s22608_s28 + $0xf4] sm:$0xc] }
 0x174   : > { %v3178_v34 = vshll.u32 %v16912_v44, 16  ;;  %v3167_v47 = vor.u32 %v3166_v37, %v24669_v57  ;;  %v11529_v45 = vrot.slane %v24635_v56, 6  ;;  %v3184_v50 = vshll.u32 %v24674_v23, 16  ;;  %v16915_v56 = vld [vmem:[%s22608_s28 + $0x104] sm:$0xf] }
 0x175   : > { %v3188_v30 = vshrl.u32 %v24674_v23, 16  ;;  %v24700_v35 = vsel %vm22634_vm5, %v18212_v55, %v11522_v62  ;;  %v24704_v43 = vsel %vm22634_vm5, %v11524_v29, %v11525_v7  ;;  %v3177_v26 = vrot.slane %v3175_v61, 4  ;;  %v24708_v37 = vld [vmem:[%s22608_s28 + $0x108] sm:$0xf] }
 0x176   : > { %20403 = vmatmul.mubr.msk.bf16.gmra.mrb[16].mxu0 %vm696_vm4, %v24411_v11  ;;  %v3180_v44 = vrot.slane %v3178_v34, 5  ;;  %v24710_v36 = vcombine.low %v3139_v22, %v3149_v39  ;;  %v24712_v58 = vrot.slane %v3184_v50, 5  ;;  %v24714_v27 = vrot.slane %v3157_v25, 4  ;;  %v18190_v22 = vld [vmem:[%s22608_s28 + $0xfc] sm:$0x3] }
 0x177   : > { %19755 = vmatmul.mubr.msk.bf16.gmra.mrb[16].mxu1 %vm696_vm4, %v24411_v11  ;;  %20406 = vmatprep.mubr.msk.bf16.mxu0 %vm696_vm4, %v24421_v31  ;;  %v3190_v11 = vrot.slane %v3188_v30, 4  ;;  %v3172_v62 = vrot.slane %v3170_v54, 5  ;;  %v11532_v55 = vrot.slane %v18188_v60, 6  ;;  %v3168_v29 = vrot.slane %v3167_v47, 4 }
 0x178   : > { %19758 = vmatprep.mubr.msk.bf16.mxu1 %vm696_vm4, %v24421_v31  ;;  %v3194_v31 = vshll.u32 %v16914_v32, 16  ;;  %v3181_v5 = vor.u32 %v3180_v44, %v3177_v26  ;;  %v24718_v7 = vsel %vm22634_vm5, %v18213_v1, %v11529_v45  ;;  %v11531_v61 = vrot.slane %v11529_v45, 4  ;;  %v16917_v1 = vld [vmem:[%s22608_s28 + $0x10c] sm:$0x1]  ;;  %v18191_v26 = vld [vmem:[%s22608_s28 + $0x104] sm:$0xc] }
 0x179   : > { %v3191_v34 = vor.u32 %v3190_v11, %v24712_v58  ;;  %v18214_v39 = vrot.slane %v18189_v52, 10  ;;  %v11536_v50 = vrot.slane %v24674_v23, 6  ;;  %v3199_v30 = vshrl.u32 %v16915_v56, 16  ;;  %v16918_v44 = vld [vmem:[%s22608_s28 + $0x114] sm:$0xf] }
 0x17a   : > { %v3202_v32 = vshll.u32 %v16915_v56, 16  ;;  %v3182_v25 = vrot.slane %v3181_v5, 4  ;;  %v3196_v60 = vrot.slane %v3194_v31, 5  ;;  %v3208_v47 = vshll.u32 %v24708_v37, 16 }
 0x17b   : > { %v3192_v54 = vrot.slane %v3191_v34, 4  ;;  %v3163_v11 = vsel %vm23502_vm9, %v24714_v27, %v24669_v57  ;;  %v3201_v45 = vrot.slane %v3199_v30, 4  ;;  %v3212_v5 = vshrl.u32 %v24708_v37, 16 }
 0x17c   : > { %v3204_v23 = vrot.slane %v3202_v32, 5  ;;  %v3173_v31 = vsel %vm23502_vm9, %v3168_v29, %v3172_v62  ;;  %v24740_v52 = vsel %vm22634_vm5, %v11531_v61, %v11532_v55  ;;  %v11539_v27 = vrot.slane %v18190_v22, 6  ;;  %v18192_v62 = vld [vmem:[%s22608_s28 + $0x10c] sm:$0x3]  ;;  %v24754_v29 = vld [vmem:[%s22608_s28 + $0x118] sm:$0xf] }
 0x17d   : > { %v24742_v57 = vrot.slane %v3208_v47, 5  ;;  %v24750_v56 = vsel %vm22634_vm5, %v18214_v39, %v11536_v50  ;;  %v11538_v34 = vrot.slane %v11536_v50, 4  ;;  %v3214_v32 = vrot.slane %v3212_v5, 4 }
 0x17e   : > { %20407 = vmatmul.mubr.msk.bf16.gmra.mrb[20].mxu0 %vm696_vm4, %v24429_v19  ;;  %v3205_v30 = vor.u32 %v3204_v23, %v3201_v45  ;;  %v3187_v55 = vsel %vm23502_vm9, %v3182_v25, %v24712_v58  ;;  %v3197_v61 = vsel %vm23502_vm9, %v3192_v54, %v3196_v60  ;;  %v3218_v22 = vshll.u32 %v16917_v1, 16 }
 0x17f   : > { %19759 = vmatmul.mubr.msk.bf16.gmra.mrb[20].mxu1 %vm696_vm4, %v24429_v19  ;;  %20410 = vmatprep.mubr.msk.bf16.mxu0 %vm696_vm4, %v24441_v28  ;;  %v11543_v47 = vrot.slane %v24708_v37, 6  ;;  %v3215_v39 = vor.u32 %v3214_v32, %v24742_v57  ;;  %v3223_v50 = vshrl.u32 %v16918_v44, 16  ;;  %v3226_v45 = vshll.u32 %v16918_v44, 16  ;;  %v16920_v37 = vld [vmem:[%s22608_s28 + $0x11c] sm:$0x1] }
 0x180   : > { %19762 = vmatprep.mubr.msk.bf16.mxu1 %vm696_vm4, %v24441_v28  ;;  %v18215_v28 = vrot.slane %v18191_v26, 10  ;;  %v11546_v5 = vrot.slane %v18192_v62, 6  ;;  %v3232_v19 = vshll.u32 %v24754_v29, 16  ;;  %v3236_v59 = vshrl.u32 %v24754_v29, 16  ;;  %v16921_v62 = vld [vmem:[%s22608_s28 + $0x124] sm:$0xf] }
 0x181   : > { %v11545_v23 = vrot.slane %v11543_v47, 4  ;;  %v24767_v58 = vsel %vm22634_vm5, %v11538_v34, %v11539_v27  ;;  %v24769_v25 = vrot.slane %v3205_v30, 4  ;;  %v3225_v54 = vrot.slane %v3223_v50, 4  ;;  %v18196_v27 = vld [vmem:[%s22608_s28 + $0x12c] sm:$0x3] }
 0x182   : > { %v3228_v60 = vrot.slane %v3226_v45, 5  ;;  %v24772_v1 = vrot.slane %v3215_v39, 4  ;;  %v24774_v26 = vrot.slane %v3218_v22, 5  ;;  %v24776_v44 = vrot.slane %v3232_v19, 5  ;;  %v24790_v22 = vld [vmem:[%s22608_s28 + $0x128] sm:$0xf] }
 0x183   : > { %v3238_v32 = vrot.slane %v3236_v59, 4  ;;  %v24783_v34 = vcombine.low %v3163_v11, %v3173_v31  ;;  %v24787_v39 = vcombine.low %v3187_v55, %v3197_v61  ;;  %v24798_v59 = vsel %vm22634_vm5, %v18215_v28, %v11543_v47  ;;  %v18193_v61 = vld [vmem:[%s22608_s28 + $0x114] sm:$0xc]  ;;  %v18194_v47 = vld [vmem:[%s22608_s28 + $0x11c] sm:$0x3] }
 0x184   : > { %v24802_v19 = vsel %vm22634_vm5, %v11545_v23, %v11546_v5  ;;  %v3229_v11 = vor.u32 %v3228_v60, %v3225_v54  ;;  %v3242_v31 = vshll.u32 %v16920_v37, 16  ;;  %v3211_v28 = vsel %vm23502_vm9, %v24769_v25, %v24742_v57  ;;  %v16923_v54 = vld [vmem:[%s22608_s28 + $0x12c] sm:$0x1]  ;;  %v18195_v55 = vld [vmem:[%s22608_s28 + $0x124] sm:$0xc] }
 0x185   : > { %v3247_v50 = vshrl.u32 %v16921_v62, 16  ;;  %v3250_v45 = vshll.u32 %v16921_v62, 16  ;;  %v3221_v23 = vsel %vm23502_vm9, %v24772_v1, %v24774_v26  ;;  %v3239_v5 = vor.u32 %v3238_v32, %v24776_v44  ;;  %v16924_v32 = vld [vmem:[%s22608_s28 + $0x134] sm:$0xf] }
 0x186   : > { %20411 = vmatmul.mubr.msk.bf16.gmra.mrb[24].mxu0 %vm696_vm4, %v24448_v10  ;;  %v11550_v37 = vrot.slane %v24754_v29, 6  ;;  %v3256_v60 = vshll.u32 %v24790_v22, 16  ;;  %v3260_v30 = vshrl.u32 %v24790_v22, 16  ;;  %v18216_v1 = vrot.slane %v18193_v61, 10 }
 0x187   : > { %19763 = vmatmul.mubr.msk.bf16.gmra.mrb[24].mxu1 %vm696_vm4, %v24448_v10  ;;  %20414 = vmatprep.mubr.msk.bf16.mxu0 %vm696_vm4, %v24459_v18  ;;  %v3249_v25 = vrot.slane %v3247_v50, 4  ;;  %v3252_v62 = vrot.slane %v3250_v45, 5  ;;  %v3244_v10 = vrot.slane %v3242_v31, 5  ;;  %v11553_v29 = vrot.slane %v18194_v47, 6 }
 0x188   : > { %19766 = vmatprep.mubr.msk.bf16.mxu1 %vm696_vm4, %v24459_v18  ;;  %v3230_v18 = vrot.slane %v3229_v11, 4  ;;  %v24827_v26 = vrot.slane %v3256_v60, 5  ;;  %v3262_v41 = vrot.slane %v3260_v30, 4  ;;  %v3266_v42 = vshll.u32 %v16923_v54, 16  ;;  %v16926_v54 = vld [vmem:[%s22608_s28 + $0x13c] sm:$0x1] }
 0x189   : > { %v3253_v6 = vor.u32 %v3252_v62, %v3249_v25  ;;  %v3240_v53 = vrot.slane %v3239_v5, 4  ;;  %v11552_v20 = vrot.slane %v11550_v37, 4  ;;  %v18217_v57 = vrot.slane %v18195_v55, 10 }
 0x18a   : > { %v11557_v50 = vrot.slane %v24790_v22, 6  ;;  %v3263_v11 = vor.u32 %v3262_v41, %v24827_v26  ;;  %v11560_v31 = vrot.slane %v18196_v27, 6  ;;  %v3271_v61 = vshrl.u32 %v16924_v32, 16 }
 0x18b   : > { %v3274_v45 = vshll.u32 %v16924_v32, 16  ;;  %v3254_v30 = vrot.slane %v3253_v6, 4  ;;  %v3280_v47 = vshll.u32 %v24831_v9, 16  ;;  %v3284_v22 = vshrl.u32 %v24831_v9, 16 }
 0x18c   : > { %v11559_v55 = vrot.slane %v11557_v50, 4  ;;  %v28253_v5 = vcombine.low %v24482_v21, %v24496_v3  ;;  %v3264_v41 = vrot.slane %v3263_v11, 4  ;;  %v3268_v27 = vrot.slane %v3266_v42, 5  ;;  %v16927_v21 = vld [vmem:[%s22608_s28 + $0x144] sm:$0xf] }
 0x18d   : > { %v3273_v60 = vrot.slane %v3271_v61, 4  ;;  %v3276_v25 = vrot.slane %v3274_v45, 5  ;;  %v24848_v62 = vcombine.low %v3211_v28, %v3221_v23  ;;  %v24852_v6 = vsel %vm22634_vm5, %v18216_v1, %v11550_v37  ;;  %v18197_v37 = vld [vmem:[%s22608_s28 + $0x134] sm:$0xc]  ;;  %v24868_v1 = vld [vmem:[%s22608_s28 + $0x148] sm:$0xf] }
 0x18e   : > { %20415 = vmatmul.mubr.msk.bf16.gmra.mrb[28].mxu0 %vm696_vm4, %v24463_v17  ;;  %v3286_v32 = vrot.slane %v3284_v22, 4  ;;  %v3235_v3 = vsel %vm23502_vm9, %v3230_v18, %v24776_v44  ;;  %v3245_v42 = vsel %vm23502_vm9, %v3240_v53, %v3244_v10  ;;  %v24864_v28 = vsel %vm22634_vm5, %v11552_v20, %v11553_v29  ;;  %v22121_v20 = vld [vmem:[%s28058_s1 + $0x68] sm:$0xff]  }
 0x18f   : > { %19767 = vmatmul.mubr.msk.bf16.gmra.mrb[28].mxu1 %vm696_vm4, %v24463_v17  ;;  %20422 = vmatprep.mubr.msk.bf16.mxu0 %vm696_vm4, %v28253_v5  ;;  %v3277_v23 = vor.u32 %v3276_v25, %v3273_v60  ;;  %v3259_v11 = vsel %vm23502_vm9, %v3254_v30, %v24827_v26  ;;  %v24875_v61 = vsel %vm22634_vm5, %v18217_v57, %v11557_v50  ;;  %v3290_v10 = vshll.u32 %v16926_v54, 16  ;;  %v24888_v26 = vld [vmem:[%s22608_s28 + $0x13c] sm:$0x3]  ;;  %v16929_v30 = vld [vmem:[%s22608_s28 + $0x14c] sm:$0x1] }
 0x190   : > { %19774 = vmatprep.mubr.msk.bf16.mxu1 %vm696_vm4, %v24546_v48  ;;  %v24854_v48 = vrot.slane %v3280_v47, 5  ;;  %v24879_v53 = vsel %vm22634_vm5, %v11559_v55, %v11560_v31  ;;  %v3269_v18 = vsel %vm23502_vm9, %v3264_v41, %v3268_v27  ;;  %v3295_v29 = vshrl.u32 %v16927_v21, 16  ;;  %v22122_v22 = vld [vmem:[%s28058_s1 + $0x188] sm:$0xff]  }
 0x191   : > { %v3298_v57 = vshll.u32 %v16927_v21, 16  ;;  %v24890_v50 = vrot.slane %v3277_v23, 4  ;;  %v18218_v45 = vrot.slane %v18197_v37, 10  ;;  %v11564_v31 = vrot.slane %v24831_v9, 6  ;;  %v18199_v9 = vld [vmem:[%s22608_s28 + $0x144] sm:$0xc] }
 0x192   : > { %v3287_v44 = vor.u32 %v3286_v32, %v24854_v48  ;;  %v3304_v55 = vshll.u32 %v24868_v1, 16  ;;  %v24897_v47 = vcombine.low %v3235_v3, %v3245_v42  ;;  %v3297_v5 = vrot.slane %v3295_v29, 4  ;;  %v18200_v21 = vld [vmem:[%s22608_s28 + $0x14c] sm:$0x3]  ;;  %v16930_v3 = vld [vmem:[%s22608_s28 + $0x154] sm:$0xf] }
 0x193   : > { %v3300_v41 = vrot.slane %v3298_v57, 5  ;;  %v3308_v27 = vshrl.u32 %v24868_v1, 16  ;;  %v28254_v54 = vcombine.low %v24557_v14, %v24561_v15  ;;  %v24911_v60 = vcombine.low %v3259_v11, %v3269_v18  ;;  %v24920_v42 = vld [vmem:[%s22608_s28 + $0x158] sm:$0xf]  ;;  %v16932_v37 = vld [vmem:[%s22608_s28 + $0x15c] sm:$0x1] }
 0x194   : > { %v18233_v25 = vcombine.low %v24875_v61, %v24879_v53  ;;  %v24915_v32 = vrot.slane %v3304_v55, 5  ;;  %v24927_v14 = vrot.slane %v3290_v10, 5  ;;  %v11567_v15 = vrot.slane %v24888_v26, 6  ;;  %v24934_v11 = vld [vmem:[%s28058_s1 + $0x70] sm:$0xff]  }
 0x195   : > { %v3310_v23 = vrot.slane %v3308_v27, 4  ;;  %v28255_v18 = vcombine.low %v24572_v2, %v24576_v8  ;;  %v11566_v10 = vrot.slane %v11564_v31, 4  ;;  %v24952_v2 = vld [vmem:[%s28058_s1 + $0x190] sm:$0xff]   ;;  %v3301_v8 = vor.u32 %v3300_v41, %v3297_v5 }
 0x196   : > { %20423 = vmatmul.mubr.msk.bf16.vlgmr.msra.gmra.mrb[0].mxu0 %vm696_vm4, %v28254_v54  ;;  %v3314_v26 = vshll.u32 %v16929_v30, 16  ;;  %v3319_v29 = vshrl.u32 %v16930_v3, 16  ;;  %v3322_v57 = vshll.u32 %v16930_v3, 16  ;;  %v18201_v55 = vld [vmem:[%s22608_s28 + $0x154] sm:$0xc]  ;;  %v11574_v54 = vrot.slane %v18200_v21, 6 }
 0x197   : > { %19775 = vmatmul.mubr.msk.bf16.vlgmr.msra.gmra.mrb[0].mxu1 %vm696_vm4, %v24553_v4  ;;  %v18232_v4 = vcombine.low %v24852_v6, %v24864_v28  ;;  %20455 = vmatpush3.bf16.msra.mxu0 %v24502_v13  ;;  %v3283_v13 = vsel %vm23502_vm9, %v24890_v50, %v24854_v48  ;;  %v3311_v48 = vor.u32 %v3310_v23, %v24915_v32  ;;  %v18219_v50 = vrot.slane %v18199_v9, 10 }
 0x198   : > { %19807 = vmatpush3.bf16.msra.mxu1 %v24470_v33  ;;  %19778 = vmatprep.mubr.msk.bf16.mxu1 %vm696_vm4, %v24596_v49  ;;  %v24925_v33 = vrot.slane %v3287_v44, 4  ;;  %v24946_v49 = vsel %vm22634_vm5, %v18218_v45, %v11564_v31  ;;  %v11571_v44 = vrot.slane %v24868_v1, 6  ;;  %v3328_v45 = vshll.u32 %v24920_v42, 16  ;;  %v16933_v1 = vld [vmem:[%s22608_s28 + $0x164] sm:$0xf] }
 0x199   : > { %20426 = vmatprep.mubr.msk.bf16.mxu0 %vm696_vm4, %v28255_v18  ;;  %19808 = vmatprep.subr.bf16.mxu1 %v22121_v20  ;;  %v3332_v31 = vshrl.u32 %v24920_v42, 16  ;;  %v3321_v18 = vrot.slane %v3319_v29, 4  ;;  %v3324_v5 = vrot.slane %v3322_v57, 5  ;;  %v3338_v9 = vshll.u32 %v16932_v37, 16  ;;  %v18202_v29 = vld [vmem:[%s22608_s28 + $0x15c] sm:$0x3] }
 0x19a   : > { %20456 = vmatprep.subr.bf16.mxu0 %v22122_v22  ;;  %v11573_v27 = vrot.slane %v11571_v44, 4  ;;  %v24964_v30 = vrot.slane %v3328_v45, 5  ;;  %v24973_v21 = vrot.slane %v3301_v8, 4  ;;  %v24975_v3 = vrot.slane %v3314_v26, 5  ;;  %v16936_v45 = vld [vmem:[%s22608_s28 + $0x174] sm:$0xf] }
 0x19b   : > { %20457 = vmatpush3.bf16.msra.mxu0 %v22122_v22  ;;  %v3334_v41 = vrot.slane %v3332_v31, 4  ;;  %v24971_v22 = vsel %vm22634_vm5, %v11566_v10, %v11567_v15  ;;  %v3325_v23 = vor.u32 %v3324_v5, %v3321_v18  ;;  %v24989_v15 = vsel %vm22634_vm5, %v18219_v50, %v11571_v44  ;;  %v16935_v50 = vld [vmem:[%s22608_s28 + $0x16c] sm:$0x1]  ;;  %v18203_v5 = vld [vmem:[%s22608_s28 + $0x164] sm:$0xc] }
 0x19c   : > { %19809 = vmatpush3.bf16.msra.mxu1 %v22121_v20  ;;  %v3293_v20 = vsel %vm23502_vm9, %v24925_v33, %v24927_v14  ;;  %20490 = vmatprep.subr.bf16.mxu0 %v24952_v2  ;;  %v24979_v33 = vld [vmem:[%s22608_s28 + $0x168] sm:$0xf]  ;;  %v28256_v14 = vcombine.low %v24615_v46, %v24632_v0  ;;  %v11578_v10 = vrot.slane %v24920_v42, 6  ;;  %v28257_v8 = vcombine.low %v24646_v24, %v24653_v40 }
 0x19d   : > { %19842 = vmatprep.subr.bf16.mxu1 %v24934_v11  ;;  %v3335_v37 = vor.u32 %v3334_v41, %v24964_v30  ;;  %v24999_v46 = vsel %vm22634_vm5, %v11573_v27, %v11574_v54  ;;  %v18220_v0 = vrot.slane %v18201_v55, 10  ;;  %v3346_v26 = vshll.u32 %v16933_v1, 16 }
 0x19e   : > { %20427 = vmatmul.mubr.msk.bf16.gmra.mrb[4].mxu0 %vm696_vm4, %v28256_v14  ;;  %v3326_v57 = vrot.slane %v3325_v23, 4  ;;  %v3340_v44 = vrot.slane %v3338_v9, 5  ;;  %v3352_v42 = vshll.u32 %v24979_v33, 16  ;;  %v3356_v18 = vshrl.u32 %v24979_v33, 16  ;;  %v25022_v23 = vld [vmem:[%s22608_s28 + $0x178] sm:$0xf] }
 0x19f   : > { %19779 = vmatmul.mubr.msk.bf16.gmra.mrb[4].mxu1 %vm696_vm4, %v24663_v16  ;;  %v3312_v16 = vrot.slane %v3311_v48, 4  ;;  %20430 = vmatprep.mubr.msk.bf16.mxu0 %vm696_vm4, %v28257_v8  ;;  %v11581_v48 = vrot.slane %v18202_v29, 6  ;;  %v3336_v31 = vrot.slane %v3335_v37, 4  ;;  %v3348_v40 = vrot.slane %v3346_v26, 5  ;;  %v16938_v8 = vld [vmem:[%s22608_s28 + $0x17c] sm:$0x1] }
 0x1a0   : > { %19782 = vmatprep.mubr.msk.bf16.mxu1 %vm696_vm4, %v24676_v51  ;;  %v3343_v51 = vshrl.u32 %v16933_v1, 16  ;;  %v25005_v27 = vcombine.low %v3283_v13, %v3293_v20  ;;  %v18234_v55 = vcombine.low %v24946_v49, %v24971_v22  ;;  %v11580_v1 = vrot.slane %v11578_v10, 4 }
 0x1a1   : > { %v25009_v54 = vrot.slane %v3352_v42, 5  ;;  %v3307_v41 = vsel %vm23502_vm9, %v24973_v21, %v24915_v32  ;;  %v3317_v9 = vsel %vm23502_vm9, %v3312_v16, %v24975_v3  ;;  %v18235_v13 = vcombine.low %v24989_v15, %v24999_v46  ;;  %v18204_v21 = vld [vmem:[%s22608_s28 + $0x16c] sm:$0x3]  ;;  %v25230_v15 = vld [vmem:[%s22608_s28 + $0x104] sm:$0xf] }
 0x1a2   : > { %v3345_v24 = vrot.slane %v3343_v51, 4  ;;  %v3358_v20 = vrot.slane %v3356_v18, 4  ;;  %v3331_v29 = vsel %vm23502_vm9, %v3326_v57, %v24964_v30  ;;  %v25029_v14 = vsel %vm22634_vm5, %v18220_v0, %v11578_v10  ;;  %v16973_v57 = vld [vmem:[%s22608_s28 + $0x90] sm:$0x8]  ;;  %v16975_v18 = vld [vmem:[%s22608_s28 + $0x98] sm:$0xf] }
 0x1a3   : > { %v11585_v3 = vrot.slane %v24979_v33, 6  ;;  %v3362_v37 = vshll.u32 %v16935_v50, 16  ;;  %v3367_v51 = vshrl.u32 %v16936_v45, 16  ;;  %v3370_v26 = vshll.u32 %v16936_v45, 16  ;;  %28262 = vst [vmem:[#allocation23_spill] sm:$0xff] %v25230_v15 }
 0x1a4   : > { %v3349_v32 = vor.u32 %v3348_v40, %v3345_v24  ;;  %v3359_v16 = vor.u32 %v3358_v20, %v25009_v54  ;;  %v28258_v30 = vcombine.low %v24700_v35, %v24704_v43  ;;  %v3341_v33 = vsel %vm23502_vm9, %v3336_v31, %v3340_v44  ;;  %v16974_v35 = vld [vmem:[%s22608_s28 + $0x94] sm:$0xf] }
 0x1a5   : > { %v3376_v10 = vshll.u32 %v25022_v23, 16  ;;  %v3380_v0 = vshrl.u32 %v25022_v23, 16  ;;  %v28259_v43 = vcombine.low %v24718_v7, %v24740_v52  ;;  %v11588_v50 = vrot.slane %v18204_v21, 6  ;;  %v25060_v40 = vld [vmem:[%s22608_s28 + $0x174] sm:$0xc] }
 0x1a6   : > { %20431 = vmatmul.mubr.msk.bf16.gmra.mrb[8].mxu0 %vm696_vm4, %v28258_v30  ;;  %v3369_v44 = vrot.slane %v3367_v51, 4  ;;  %v3372_v42 = vrot.slane %v3370_v26, 5  ;;  %v3350_v45 = vrot.slane %v3349_v32, 4  ;;  %v11587_v31 = vrot.slane %v11585_v3, 4 }
 0x1a7   : > { %19783 = vmatmul.mubr.msk.bf16.gmra.mrb[8].mxu1 %vm696_vm4, %v24710_v36  ;;  %v25047_v36 = vsel %vm22634_vm5, %v11580_v1, %v11581_v48  ;;  %20434 = vmatprep.mubr.msk.bf16.mxu0 %vm696_vm4, %v28259_v43  ;;  %v25057_v48 = vrot.slane %v3376_v10, 5  ;;  %v3382_v24 = vrot.slane %v3380_v0, 4  ;;  %v25063_v1 = vcombine.low %v3307_v41, %v3317_v9  ;;  %v16976_v43 = vld [vmem:[%s22608_s28 + $0xa0] sm:$0x8] }
 0x1a8   : > { %19786 = vmatprep.mubr.msk.bf16.mxu1 %vm696_vm4, %v24783_v34  ;;  %v18221_v34 = vrot.slane %v18203_v5, 10  ;;  %v3360_v7 = vrot.slane %v3359_v16, 4  ;;  %v3364_v52 = vrot.slane %v3362_v37, 5  ;;  %v3373_v20 = vor.u32 %v3372_v42, %v3369_v44  ;;  %v18206_v5 = vld [vmem:[%s22608_s28 + $0x17c] sm:$0x3] }
 0x1a9   : > { %v25066_v21 = vcombine.low %v3331_v29, %v3341_v33  ;;  %v3383_v51 = vor.u32 %v3382_v24, %v25057_v48  ;;  %v3386_v26 = vshll.u32 %v16938_v8, 16  ;;  %v11592_v10 = vrot.slane %v25022_v23, 6  ;;  %v18257_v16 = vld [vmem:[%s22608_s28 + $0xc0] sm:$0xc]  ;;  %v18258_v37 = vld [vmem:[%s22608_s28 + $0xc4] sm:$0xf] }
 0x1aa   : > { %v3374_v30 = vrot.slane %v3373_v20, 4  ;;  %v3745_v41 = vshrl.u32 %v16973_v57, 16  ;;  %v3750_v9 = vshrl.u32 %v16974_v35, 16  ;;  %v3355_v29 = vsel %vm23502_vm9, %v3350_v45, %v25009_v54  ;;  %v16977_v23 = vld [vmem:[%s22608_s28 + $0xa4] sm:$0xf] }
 0x1ab   : > { %v25079_v33 = vsel %vm22634_vm5, %v18221_v34, %v11585_v3  ;;  %v25083_v0 = vsel %vm22634_vm5, %v11587_v31, %v11588_v50  ;;  %v3753_v8 = vshll.u32 %v16974_v35, 16  ;;  %v25088_v57 = vld [vmem:[%s22608_s28 + $0xa8] sm:$0xf]  ;;  %v3365_v44 = vsel %vm23502_vm9, %v3360_v7, %v3364_v52  ;;  %v18261_v7 = vld [vmem:[%s22608_s28 + $0xd4] sm:$0xf] }
 0x1ac   : > { %v18222_v54 = vrot.slane %v25060_v40, 10  ;;  %v3752_v3 = vrot.slane %v3750_v9, 7  ;;  %v3759_v34 = vshrl.u32 %v16975_v18, 16  ;;  %v18259_v42 = vld [vmem:[%s22608_s28 + $0xc8] sm:$0x3]  ;;  %v28260_v50 = vcombine.low %v24750_v56, %v24767_v58 }
 0x1ad   : > { %v3384_v35 = vrot.slane %v3383_v51, 4  ;;  %v3388_v45 = vrot.slane %v3386_v26, 5  ;;  %v3762_v31 = vshll.u32 %v16975_v18, 16  ;;  %v28261_v24 = vcombine.low %v24798_v59, %v24802_v19  ;;  %v18260_v9 = vld [vmem:[%s22608_s28 + $0xd0] sm:$0xc] }
 0x1ae   : > { %20435 = vmatmul.mubr.msk.bf16.gmra.mrb[12].mxu0 %vm696_vm4, %v28260_v50  ;;  %v3379_v56 = vsel %vm23502_vm9, %v3374_v30, %v25057_v48  ;;  %v11594_v58 = vrot.slane %v11592_v10, 4  ;;  %v3755_v52 = vor.u32 %v3753_v8, %v3752_v3  ;;  %v3761_v20 = vrot.slane %v3759_v34, 7  ;;  %v25115_v50 = vld [vmem:[%s22608_s28 + $0xd8] sm:$0x3]  ;;  %v16980_v8 = vld [vmem:[%s22608_s28 + $0xb4] sm:$0xf] }
 0x1af   : > { %19787 = vmatmul.mubr.msk.bf16.gmra.mrb[12].mxu1 %vm696_vm4, %v24787_v39  ;;  %v11595_v39 = vrot.slane %v18206_v5, 6  ;;  %20438 = vmatprep.mubr.msk.bf16.mxu0 %vm696_vm4, %v28261_v24  ;;  %v18305_v18 = vrot.slane %v18257_v16, 10  ;;  %v12001_v5 = vrot.slane %v18258_v37, 6  ;;  %v3757_v59 = vrot.slane %v3752_v3, 4  ;;  %v16981_v40 = vld [vmem:[%s22608_s28 + $0xb8] sm:$0xf] }
 0x1b0   : > { %19790 = vmatprep.mubr.msk.bf16.mxu1 %vm696_vm4, %v24848_v62  ;;  %v17021_v62 = vrot.slane %v3745_v41, 11  ;;  %v3767_v19 = vshrl.u32 %v16976_v43, 16  ;;  %v3772_v51 = vshrl.u32 %v16977_v23, 16  ;;  %v3781_v26 = vshrl.u32 %v25088_v57, 16  ;;  %v16979_v43 = vld [vmem:[%s22608_s28 + $0xb0] sm:$0x8] }
 0x1b1   : > { %v3389_v48 = vsel %vm23502_vm9, %v3384_v35, %v3388_v45  ;;  %v3764_v30 = vor.u32 %v3762_v31, %v3761_v20  ;;  %v12003_v41 = vrot.slane %v12001_v5, 4  ;;  %v12004_v24 = vrot.slane %v18259_v42, 6  ;;  %v18264_v45 = vld [vmem:[%s22608_s28 + $0xe4] sm:$0xf] }
 0x1b2   : > { %v25120_v16 = vcombine.low %v3355_v29, %v3365_v44  ;;  %v3774_v37 = vrot.slane %v3772_v51, 7  ;;  %v3775_v3 = vshll.u32 %v16977_v23, 16  ;;  %v3783_v34 = vrot.slane %v3781_v26, 7 }
 0x1b3   : > { %v25126_v32 = vsel %vm22634_vm5, %v18222_v54, %v11592_v10  ;;  %v25130_v35 = vsel %vm22634_vm5, %v11594_v58, %v11595_v39  ;;  %v3784_v42 = vshll.u32 %v25088_v57, 16  ;;  %v12008_v29 = vrot.slane %v18261_v7, 6  ;;  %v16982_v58 = vld [vmem:[%s22608_s28 + $0xc0] sm:$0x8]  ;;  %v18265_v7 = vld [vmem:[%s22608_s28 + $0xe8] sm:$0x3] }
 0x1b4   : > { %v25135_v23 = vcombine.low %v3379_v56, %v3389_v48  ;;  %v3756_v44 = vsel %vm22659_vm6, %v17021_v62, %v3755_v52  ;;  %v25141_v10 = vsel %vm22634_vm5, %v18305_v18, %v12001_v5  ;;  %v25143_v54 = vrot.slane %v3767_v19, 11  ;;  %v18263_v56 = vld [vmem:[%s22608_s28 + $0xe0] sm:$0xc]  ;;  %v16983_v62 = vld [vmem:[%s22608_s28 + $0xc4] sm:$0xf] }
 0x1b5   : > { %v25156_v57 = vsel %vm22634_vm5, %v12003_v41, %v12004_v24  ;;  %v18306_v39 = vrot.slane %v18260_v9, 10  ;;  %v12011_v31 = vrot.slane %v25115_v50, 6  ;;  %v25166_v6 = vor.u32 %v3775_v3, %v3774_v37  ;;  %v25191_v3 = vld [vmem:[%s22608_s28 + $0xd4] sm:$0xf] }
 0x1b6   : > { %20439 = vmatmul.mubr.msk.bf16.gmra.mrb[16].mxu0 %vm696_vm4, %v18232_v4  ;;  %v3779_v28 = vrot.slane %v3774_v37, 4  ;;  %v3794_v4 = vshrl.u32 %v16980_v8, 16  ;;  %v18238_v52 = vcombine.low %v25126_v32, %v25130_v35  ;;  %v3786_v20 = vor.u32 %v3784_v42, %v3783_v34  ;;  %v25187_v37 = vld [vmem:[%s22608_s28 + $0xf4] sm:$0xf] }
 0x1b7   : > { %19791 = vmatmul.mubr.msk.bf16.gmra.mrb[16].mxu1 %vm696_vm4, %v24897_v47  ;;  %v3765_v47 = vsel %vm22659_vm6, %v3757_v59, %v3764_v30  ;;  %20442 = vmatprep.mubr.msk.bf16.mxu0 %vm696_vm4, %v18233_v25  ;;  %v12010_v18 = vrot.slane %v12008_v29, 4  ;;  %v3789_v5 = vshrl.u32 %v16979_v43, 16  ;;  %v25172_v59 = vld [vmem:[%s22608_s28 + $0xc8] sm:$0xf]  ;;  %v18321_v53 = vcombine.low %v25141_v10, %v25156_v57 }
 0x1b8   : > { %19794 = vmatprep.mubr.msk.bf16.mxu1 %vm696_vm4, %v24911_v60  ;;  %v3803_v60 = vshrl.u32 %v16981_v40, 16  ;;  %v25174_v61 = vcombine.low %v3756_v44, %v3765_v47  ;;  %v3796_v25 = vrot.slane %v3794_v4, 7  ;;  %v3797_v19 = vshll.u32 %v16980_v8, 16  ;;  %v16985_v8 = vld [vmem:[%s22608_s28 + $0xd0] sm:$0x8] }
 0x1b9   : > { %v25180_v51 = vsel %vm22634_vm5, %v18306_v39, %v12008_v29  ;;  %v3806_v9 = vshll.u32 %v16981_v40, 16  ;;  %v12015_v50 = vrot.slane %v18264_v45, 6  ;;  %v3778_v48 = vsel %vm22659_vm6, %v25143_v54, %v25166_v6  ;;  %v25198_v29 = vld [vmem:[%s22608_s28 + $0xd8] sm:$0xf]  ;;  %v18269_v4 = vld [vmem:[%s22608_s28 + $0x100] sm:$0xc] }
 0x1ba   : > { %v3805_v26 = vrot.slane %v3803_v60, 7  ;;  %v18307_v30 = vrot.slane %v18263_v56, 10  ;;  %v3811_v41 = vshrl.u32 %v16982_v58, 16  ;;  %v3816_v24 = vshrl.u32 %v16983_v62, 16  ;;  %v25208_v56 = vld [vmem:[%s22608_s28 + $0xf0] sm:$0xc] }
 0x1bb   : > { %v3787_v34 = vsel %vm22659_vm6, %v3779_v28, %v3786_v20  ;;  %v25195_v43 = vrot.slane %v3789_v5, 11  ;;  %v12018_v40 = vrot.slane %v18265_v7, 6  ;;  %v3819_v42 = vshll.u32 %v16983_v62, 16  ;;  %v18268_v28 = vld [vmem:[%s22608_s28 + $0xf8] sm:$0x3] }
 0x1bc   : > { %v25204_v44 = vsel %vm22634_vm5, %v12010_v18, %v12011_v31  ;;  %v3799_v45 = vor.u32 %v3797_v19, %v3796_v25  ;;  %v3818_v47 = vrot.slane %v3816_v24, 7  ;;  %v3825_v39 = vshrl.u32 %v25172_v59, 16  ;;  %v18271_v19 = vld [vmem:[%s22608_s28 + $0x108] sm:$0x3]  ;;  %v25247_v24 = vld [vmem:[%s22608_s28 + $0xe4] sm:$0xf] }
 0x1bd   : > { %v3808_v58 = vor.u32 %v3806_v9, %v3805_v26  ;;  %v12017_v31 = vrot.slane %v12015_v50, 4  ;;  %v3828_v62 = vshll.u32 %v25172_v59, 16  ;;  %v25224_v49 = vsel %vm22634_vm5, %v18307_v30, %v12015_v50  ;;  %v16988_v26 = vld [vmem:[%s22608_s28 + $0xe0] sm:$0x8] }
 0x1be   : > { %20443 = vmatmul.mubr.msk.bf16.gmra.mrb[20].mxu0 %vm696_vm4, %v18234_v55  ;;  %v17024_v22 = vrot.slane %v3811_v41, 11  ;;  %v3821_v55 = vor.u32 %v3819_v42, %v3818_v47  ;;  %v3823_v60 = vrot.slane %v3818_v47, 4  ;;  %v12022_v7 = vrot.slane %v25187_v37, 6  ;;  %v25251_v47 = vld [vmem:[%s22608_s28 + $0xe8] sm:$0xf] }
 0x1bf   : > { %19795 = vmatmul.mubr.msk.bf16.gmra.mrb[20].mxu1 %vm696_vm4, %v25005_v27  ;;  %v3801_v27 = vrot.slane %v3796_v25, 4  ;;  %20446 = vmatprep.mubr.msk.bf16.mxu0 %vm696_vm4, %v18235_v13  ;;  %v3833_v20 = vshrl.u32 %v16985_v8, 16  ;;  %v3838_v18 = vshrl.u32 %v25191_v3, 16  ;;  %v3800_v46 = vsel %vm22659_vm6, %v25195_v43, %v3799_v45 }
 0x1c0   : > { %19798 = vmatprep.mubr.msk.bf16.mxu1 %vm696_vm4, %v25063_v1  ;;  %v3827_v1 = vrot.slane %v3825_v39, 7  ;;  %v3841_v5 = vshll.u32 %v25191_v3, 16  ;;  %v3847_v25 = vshrl.u32 %v25198_v29, 16  ;;  %v25243_v50 = vsel %vm22634_vm5, %v12017_v31, %v12018_v40 }
 0x1c1   : > { %v3809_v9 = vsel %vm22659_vm6, %v3801_v27, %v3808_v58  ;;  %v18308_v30 = vrot.slane %v25208_v56, 10  ;;  %v3840_v41 = vrot.slane %v3838_v18, 7  ;;  %v12024_v8 = vrot.slane %v12022_v7, 4 }
 0x1c2   : > { %v3830_v13 = vor.u32 %v3828_v62, %v3827_v1  ;;  %v12025_v43 = vrot.slane %v18268_v28, 6  ;;  %v3849_v42 = vrot.slane %v3847_v25, 7  ;;  %v3850_v45 = vshll.u32 %v25198_v29, 16  ;;  %v18272_v25 = vld [vmem:[%s22608_s28 + $0x110] sm:$0xc] }
 0x1c3   : > { %v3822_v39 = vsel %vm22659_vm6, %v17024_v22, %v3821_v55  ;;  %v17025_v27 = vrot.slane %v3833_v20, 11  ;;  %v18309_v58 = vrot.slane %v18269_v4, 10  ;;  %v3843_v56 = vor.u32 %v3841_v5, %v3840_v41 }
 0x1c4   : > { %v3831_v40 = vsel %vm22659_vm6, %v3823_v60, %v3830_v13  ;;  %v3845_v31 = vrot.slane %v3840_v41, 4  ;;  %v3852_v62 = vor.u32 %v3850_v45, %v3849_v42  ;;  %v12029_v28 = vrot.slane %v25230_v15, 6  ;;  %v25269_v60 = vld [vmem:[%s22608_s28 + $0x114] sm:$0xf]  ;;  %v16991_v42 = vld [vmem:[%s22608_s28 + $0xf0] sm:$0x8] }
 0x1c5   : > { %v28263_v1 = vcombine.low %v25029_v14, %v25047_v36  ;;  %v12032_v22 = vrot.slane %v18271_v19, 6  ;;  %v3855_v55 = vshrl.u32 %v16988_v26, 16  ;;  %v3860_v4 = vshrl.u32 %v25247_v24, 16  ;;  %28264 = vst [vmem:[#allocation19_spill] sm:$0xff] %v25269_v60  ;;  %v25302_v19 = vld [vmem:[%s22608_s28 + $0xf8] sm:$0xf] }
 0x1c6   : > { %v28265_v20 = vcombine.low %v25079_v33, %v25083_v0  ;;  %v25280_v14 = vcombine.low %v3778_v48, %v3787_v34  ;;  %v18322_v36 = vcombine.low %v25180_v51, %v25204_v44  ;;  %v3869_v18 = vshrl.u32 %v25251_v47, 16 }
 0x1c7   : > { %19799 = vmatmul.mubr.msk.bf16.gmra.mrb[24].mxu1 %vm696_vm4, %v25066_v21  ;;  %20447 = vmatmul.mubr.msk.bf16.gmra.mrb[24].mxu0 %vm696_vm4, %v28263_v1  ;;  %v3863_v21 = vshll.u32 %v25247_v24, 16  ;;  %v25285_v13 = vcombine.low %v3800_v46, %v3809_v9  ;;  %v3862_v0 = vrot.slane %v3860_v4, 7  ;;  %v3872_v5 = vshll.u32 %v25251_v47, 16  ;;  %v25299_v46 = vld [vmem:[%s22608_s28 + $0xf4] sm:$0xf] }
 0x1c8   : > { %19802 = vmatprep.mubr.msk.bf16.mxu1 %vm696_vm4, %v25120_v16  ;;  %20450 = vmatprep.mubr.msk.bf16.mxu0 %vm696_vm4, %v28265_v20  ;;  %v12031_v16 = vrot.slane %v12029_v28, 4  ;;  %v25291_v54 = vcombine.low %v3822_v39, %v3831_v40  ;;  %v25295_v6 = vsel %vm22634_vm5, %v18308_v30, %v12022_v7  ;;  %v3871_v48 = vrot.slane %v3869_v18, 7  ;;  %v18274_v30 = vld [vmem:[%s22608_s28 + $0x118] sm:$0x3]  ;;  %v25323_v40 = vld [vmem:[%s22608_s28 + $0x124] sm:$0xf] }
 0x1c9   : > { %v12036_v34 = vrot.slane %v25269_v60, 6  ;;  %v25306_v26 = vsel %vm22634_vm5, %v12024_v8, %v12025_v43  ;;  %v3844_v9 = vsel %vm22659_vm6, %v17025_v27, %v3843_v56  ;;  %v3853_v41 = vsel %vm22659_vm6, %v3845_v31, %v3852_v62  ;;  %28266 = vst [vmem:[#allocation21_spill] sm:$0xff] %v25323_v40  ;;  %v16994_v27 = vld [vmem:[%s22608_s28 + $0x100] sm:$0x8]  ;;  %v25333_v4 = vld [vmem:[%s22608_s28 + $0x104] sm:$0xf] }
 0x1ca   : > { %v25314_v7 = vsel %vm22634_vm5, %v18309_v58, %v12029_v28  ;;  %v25320_v45 = vsel %vm22634_vm5, %v12031_v16, %v12032_v22  ;;  %v17026_v39 = vrot.slane %v3855_v55, 11  ;;  %v3865_v8 = vor.u32 %v3863_v21, %v3862_v0  ;;  %v18275_v18 = vld [vmem:[%s22608_s28 + $0x120] sm:$0xc] }
 0x1cb   : > { %v18310_v43 = vrot.slane %v18272_v25, 10  ;;  %v3867_v56 = vrot.slane %v3862_v0, 4  ;;  %v3874_v31 = vor.u32 %v3872_v5, %v3871_v48  ;;  %v3882_v58 = vshrl.u32 %v25299_v46, 16  ;;  %v18277_v0 = vld [vmem:[%s22608_s28 + $0x128] sm:$0x3] }
 0x1cc   : > { %v3891_v62 = vshrl.u32 %v25302_v19, 16  ;;  %v12038_v1 = vrot.slane %v12036_v34, 4  ;;  %v12039_v22 = vrot.slane %v18274_v30, 6  ;;  %v3877_v55 = vshrl.u32 %v16991_v42, 16  ;;  %v25359_v5 = vld [vmem:[%s22608_s28 + $0x108] sm:$0xf] }
 0x1cd   : > { %v25341_v21 = vcombine.low %v3844_v9, %v3853_v41  ;;  %v3884_v20 = vrot.slane %v3882_v58, 7  ;;  %v3885_v16 = vshll.u32 %v25299_v46, 16  ;;  %v25354_v32 = vsel %vm22634_vm5, %v18310_v43, %v12036_v34  ;;  %v25367_v48 = vld [vmem:[%s22608_s28 + $0x134] sm:$0xf]  ;;  %v16997_v42 = vld [vmem:[%s22608_s28 + $0x110] sm:$0x8] }
 0x1ce   : > { %v3893_v35 = vrot.slane %v3891_v62, 7  ;;  %v3866_v25 = vsel %vm22659_vm6, %v17026_v39, %v3865_v8  ;;  %v3875_v10 = vsel %vm22659_vm6, %v3867_v56, %v3874_v31  ;;  %v3899_v57 = vshrl.u32 %v16994_v27, 16  ;;  %28267 = vst [vmem:[#allocation27_spill] sm:$0xff] %v25367_v48  ;;  %v25381_v56 = vld [vmem:[%s22608_s28 + $0x114] sm:$0xf] }
 0x1cf   : > { %19803 = vmatmul.mubr.msk.bf16.gmra.mrb[28].mxu1 %vm696_vm4, %v25135_v23  ;;  %20451 = vmatmul.mubr.msk.bf16.gmra.mrb[28].mxu0 %vm696_vm4, %v18238_v52  ;;  %v3894_v52 = vshll.u32 %v25302_v19, 16  ;;  %v25371_v34 = vsel %vm22634_vm5, %v12038_v1, %v12039_v22  ;;  %v25373_v9 = vrot.slane %v3877_v55, 11  ;;  %v18311_v41 = vrot.slane %v18275_v18, 10  ;;  %v25385_v22 = vld [vmem:[%s22608_s28 + $0x130] sm:$0xc] }
 0x1d0   : > { %19810 = vmatprep.mubr.msk.bf16.mxu1 %vm696_vm4, %v25174_v61  ;;  %20458 = vmatprep.mubr.msk.bf16.mxu0 %vm696_vm4, %v18321_v53  ;;  %v12043_v61 = vrot.slane %v25323_v40, 6  ;;  %v3904_v53 = vshrl.u32 %v25333_v4, 16  ;;  %v3907_v30 = vshll.u32 %v25333_v4, 16  ;;  %v25377_v39 = vor.u32 %v3885_v16, %v3884_v20  ;;  %v25388_v55 = vld [vmem:[%s22608_s28 + $0x118] sm:$0xf] }
 0x1d1   : > { %v12046_v8 = vrot.slane %v18277_v0, 6  ;;  %v3913_v27 = vshrl.u32 %v25359_v5, 16  ;;  %v3889_v31 = vrot.slane %v3884_v20, 4  ;;  %v3896_v58 = vor.u32 %v3894_v52, %v3893_v35  ;;  %v22125_v16 = vld [vmem:[%s28058_s1 + $0x78] sm:$0xff]  }
 0x1d2   : > { %v3906_v43 = vrot.slane %v3904_v53, 7  ;;  %v12045_v62 = vrot.slane %v12043_v61, 4  ;;  %v3916_v1 = vshll.u32 %v25359_v5, 16  ;;  %v25393_v18 = vcombine.low %v3866_v25, %v3875_v10  ;;  %v25400_v35 = vld [vmem:[%s22608_s28 + $0x138] sm:$0x3] }
 0x1d3   : > { %v25397_v53 = vrot.slane %v3899_v57, 11  ;;  %v3915_v20 = vrot.slane %v3913_v27, 7  ;;  %v12050_v23 = vrot.slane %v25367_v48, 6  ;;  %v3921_v28 = vshrl.u32 %v16997_v42, 16  ;;  %v25407_v25 = vld [vmem:[%s22608_s28 + $0x140] sm:$0xc] }
 0x1d4   : > { %v3909_v52 = vor.u32 %v3907_v30, %v3906_v43  ;;  %v3926_v33 = vshrl.u32 %v25381_v56, 16  ;;  %v22126_v10 = vld [vmem:[%s28058_s1 + $0x198] sm:$0xff]   ;;  %v3929_v30 = vshll.u32 %v25381_v56, 16  ;;  %v3935_v42 = vshrl.u32 %v25388_v55, 16  ;;  %v25420_v27 = vld [vmem:[%s22608_s28 + $0x144] sm:$0xf] }
 0x1d5   : > { %v3918_v57 = vor.u32 %v3916_v1, %v3915_v20  ;;  %28268 = vst [vmem:[#allocation24_spill] sm:$0xff] %v25420_v27  ;;  %v3888_v51 = vsel %vm22659_vm6, %v25373_v9, %v25377_v39  ;;  %v25433_v44 = vsel %vm22634_vm5, %v18311_v41, %v12043_v61  ;;  %v17000_v1 = vld [vmem:[%s22608_s28 + $0x120] sm:$0x8]  ;;  %v25448_v9 = vsel %vm22634_vm5, %v12045_v62, %v12046_v8  ;;  %v25453_v39 = vld [vmem:[%s22608_s28 + $0x124] sm:$0xf] }
 0x1d6   : > { %v18312_v61 = vrot.slane %v25385_v22, 10  ;;  %v3938_v41 = vshll.u32 %v25388_v55, 16  ;;  %v12053_v8 = vrot.slane %v25400_v35, 6  ;;  %v25465_v62 = vld [vmem:[%s22608_s28 + $0x128] sm:$0xf]  ;;  %v3943_v63 = vshrl.u32 %v17000_v1, 16 }
 0x1d7   : > { %19811 = vmatmul.mubr.msk.bf16.vlgmr.msra.gmra.mrb[0].mxu1 %vm696_vm4, %v25280_v14  ;;  %20459 = vmatmul.mubr.msk.bf16.vlgmr.msra.gmra.mrb[0].mxu0 %vm696_vm4, %v18322_v36  ;;  %v3911_v14 = vrot.slane %v3906_v43, 4  ;;  %v3928_v36 = vrot.slane %v3926_v33, 7  ;;  %v18283_v43 = vld [vmem:[%s22608_s28 + $0x148] sm:$0x3]  ;;  %v3937_v33 = vrot.slane %v3935_v42, 7  ;;  %v18313_v42 = vrot.slane %v25407_v25, 10 }
 0x1d8   : > { %19843 = vmatpush3.bf16.msra.mxu1 %v24934_v11  ;;  %20491 = vmatpush3.bf16.msra.mxu0 %v24952_v2  ;;  %v3897_v11 = vsel %vm22659_vm6, %v3889_v31, %v3896_v58  ;;  %v25440_v2 = vld [vmem:[%s28058_s1 + $0x80] sm:$0xff]   ;;  %v17029_v58 = vrot.slane %v3921_v28, 11  ;;  %v25473_v35 = vld [vmem:[%s22608_s28 + $0x154] sm:$0xf]  ;;  %v3957_v25 = vshrl.u32 %v25465_v62, 16  ;;  %vm6425_vm13 = vcmask 1042432  }
 0x1d9   : > { %19814 = vmatprep.mubr.msk.bf16.mxu1 %vm696_vm4, %v25285_v13  ;;  %v28269_v13 = vcombine.low %v25224_v49, %v25243_v50  ;;  %19844 = vmatprep.subr.bf16.mxu1 %v22125_v16  ;;  %v25458_v31 = vld [vmem:[%s28058_s1 + $0x1a0] sm:$0xff]   ;;  %v3910_v49 = vsel %vm22659_vm6, %v25397_v53, %v3909_v52  ;;  %v12052_v50 = vrot.slane %v12050_v23, 4  ;;  %v3919_v22 = vsel %vm22659_vm6, %v3911_v14, %v3918_v57 }
 0x1da   : > { %20492 = vmatprep.subr.bf16.mxu0 %v22126_v10  ;;  %v3931_v20 = vor.u32 %v3929_v30, %v3928_v36  ;;  %v3933_v0 = vrot.slane %v3928_v36, 4  ;;  %v3940_v17 = vor.u32 %v3938_v41, %v3937_v33  ;;  %v12060_v53 = vrot.slane %v18283_v43, 6  ;;  %28270 = vst [vmem:[#allocation29_spill] sm:$0xff] %v25473_v35  ;;  %v18284_v36 = vld [vmem:[%s22608_s28 + $0x150] sm:$0xc] }
 0x1db   : > { %20462 = vmatprep.mubr.msk.bf16.mxu0 %vm696_vm4, %v28269_v13  ;;  %v12057_v13 = vrot.slane %v25420_v27, 6  ;;  %v3948_v52 = vshrl.u32 %v25453_v39, 16  ;;  %v3951_v14 = vshll.u32 %v25453_v39, 16  ;;  %v18327_v57 = vcombine.low %v25433_v44, %v25448_v9  ;;  %v25499_v44 = vld [vmem:[%s22608_s28 + $0x134] sm:$0xf] }
 0x1dc   : > { %19845 = vmatpush3.bf16.msra.mxu1 %v22125_v16  ;;  %20493 = vmatpush3.bf16.msra.mxu0 %v22126_v10  ;;  %v17043_v16 = vcombine.low %v3888_v51, %v3897_v11  ;;  %v3960_v30 = vshll.u32 %v25465_v62, 16  ;;  %v28271_v43 = vcombine.low %v25295_v6, %v25306_v26  ;;  %v25491_v1 = vcombine.low %v3910_v49, %v3919_v22  ;;  %v25502_v9 = vld [vmem:[%s22608_s28 + $0x138] sm:$0xf] }
 0x1dd   : > { %19878 = vmatprep.subr.bf16.mxu1 %v25440_v2  ;;  %v12059_v28 = vrot.slane %v12057_v13, 4  ;;  %20526 = vmatprep.subr.bf16.mxu0 %v25458_v31  ;;  %v3950_v10 = vrot.slane %v3948_v52, 7  ;;  %v3959_v51 = vrot.slane %v3957_v25, 7  ;;  %v12064_v11 = vrot.slane %v25473_v35, 6  ;;  %v18286_v33 = vld [vmem:[%s22608_s28 + $0x158] sm:$0x3] }
 0x1de   : > { %v28272_v6 = vcombine.low %v25314_v7, %v25320_v45  ;;  %v25510_v26 = vsel %vm22634_vm5, %v12052_v50, %v12053_v8  ;;  %v17003_v7 = vld [vmem:[%s22608_s28 + $0x130] sm:$0x8]  ;;  %v25526_v41 = vrot.slane %v3943_v63, 11  ;;  %v18314_v50 = vrot.slane %v18284_v36, 10  ;;  %v25531_v8 = vld [vmem:[%s22608_s28 + $0x164] sm:$0xf] }
 0x1df   : > { %19815 = vmatmul.mubr.msk.bf16.gmra.mrb[4].mxu1 %vm696_vm4, %v25291_v54  ;;  %20463 = vmatmul.mubr.msk.bf16.gmra.mrb[4].mxu0 %vm696_vm4, %v28271_v43  ;;  %v25495_v54 = vsel %vm22634_vm5, %v18312_v61, %v12050_v23  ;;  %v3941_v23 = vsel %vm22659_vm6, %v3933_v0, %v3940_v17  ;;  %v25518_v61 = vsel %vm22634_vm5, %v18313_v42, %v12057_v13  ;;  %v3955_v17 = vrot.slane %v3950_v10, 4  ;;  %v17006_v42 = vld [vmem:[%s22608_s28 + $0x140] sm:$0x8]  ;;  %v18289_v36 = vld [vmem:[%s22608_s28 + $0x168] sm:$0x3] }
 0x1e0   : > { %19818 = vmatprep.mubr.msk.bf16.mxu1 %vm696_vm4, %v25341_v21  ;;  %20466 = vmatprep.mubr.msk.bf16.mxu0 %vm696_vm4, %v28272_v6  ;;  %v3932_v21 = vsel %vm22659_vm6, %v17029_v58, %v3931_v20  ;;  %v25524_v45 = vsel %vm22634_vm5, %v12059_v28, %v12060_v53  ;;  %v25528_v49 = vor.u32 %v3951_v14, %v3950_v10  ;;  %v3970_v58 = vshrl.u32 %v25499_v44, 16  ;;  %v18287_v20 = vld [vmem:[%s22608_s28 + $0x160] sm:$0xc]  ;;  %v25540_v28 = vld [vmem:[%s22608_s28 + $0x144] sm:$0xf] }
 0x1e1   : > { %28273 = vst [vmem:[#allocation25_spill] sm:$0xff] %v25531_v8  ;;  %v3962_v0 = vor.u32 %v3960_v30, %v3959_v51  ;;  %v3979_v22 = vshrl.u32 %v25502_v9, 16  ;;  %v12066_v13 = vrot.slane %v12064_v11, 4  ;;  %v12067_v53 = vrot.slane %v18286_v33, 6  ;;  %v25547_v43 = vld [vmem:[%s22608_s28 + $0x148] sm:$0xf] }
 0x1e2   : > { %v3965_v52 = vshrl.u32 %v17003_v7, 16  ;;  %v17045_v14 = vcombine.low %v3932_v21, %v3941_v23  ;;  %v3972_v10 = vrot.slane %v3970_v58, 7  ;;  %v3973_v30 = vshll.u32 %v25499_v44, 16  ;;  %v18290_v23 = vld [vmem:[%s22608_s28 + $0x170] sm:$0xc] }
 0x1e3   : > { %v25551_v51 = vsel %vm22634_vm5, %v18314_v50, %v12064_v11  ;;  %v3981_v6 = vrot.slane %v3979_v22, 7  ;;  %v3982_v33 = vshll.u32 %v25502_v9, 16  ;;  %v12071_v21 = vrot.slane %v25531_v8, 6  ;;  %v25566_v22 = vld [vmem:[%s22608_s28 + $0x174] sm:$0xf] }
 0x1e4   : > { %v3954_v7 = vsel %vm22659_vm6, %v25526_v41, %v25528_v49  ;;  %v3963_v58 = vsel %vm22659_vm6, %v3955_v17, %v3962_v0  ;;  %v3987_v11 = vshrl.u32 %v17006_v42, 16  ;;  %v3992_v50 = vshrl.u32 %v25540_v28, 16  ;;  %28274 = vst [vmem:[#allocation26_spill] sm:$0xff] %v25566_v22  ;;  %v18292_v25 = vld [vmem:[%s22608_s28 + $0x178] sm:$0x3] }
 0x1e5   : > { %v28275_v63 = vcombine.low %v25354_v32, %v25371_v34  ;;  %v17031_v41 = vrot.slane %v3965_v52, 11  ;;  %v18315_v49 = vrot.slane %v18287_v20, 10  ;;  %v3995_v17 = vshll.u32 %v25540_v28, 16  ;;  %v17009_v0 = vld [vmem:[%s22608_s28 + $0x150] sm:$0x8] }
 0x1e6   : > { %v3975_v42 = vor.u32 %v3973_v30, %v3972_v10  ;;  %v12074_v8 = vrot.slane %v18289_v36, 6  ;;  %v3994_v35 = vrot.slane %v3992_v50, 7  ;;  %v4001_v32 = vshrl.u32 %v25547_v43, 16  ;;  %v25583_v34 = vld [vmem:[%s22608_s28 + $0x154] sm:$0xf] }
 0x1e7   : > { %19819 = vmatmul.mubr.msk.bf16.gmra.mrb[8].mxu1 %vm696_vm4, %v25393_v18  ;;  %20467 = vmatmul.mubr.msk.bf16.gmra.mrb[8].mxu0 %vm696_vm4, %v28275_v63  ;;  %v25576_v18 = vsel %vm22634_vm5, %v12066_v13, %v12067_v53  ;;  %v3984_v63 = vor.u32 %v3982_v33, %v3981_v6  ;;  %v12073_v27 = vrot.slane %v12071_v21, 4  ;;  %v4004_v13 = vshll.u32 %v25547_v43, 16  ;;  %v25587_v53 = vld [vmem:[%s22608_s28 + $0x158] sm:$0xf] }
 0x1e8   : > { %19822 = vmatprep.mubr.msk.bf16.mxu1 %vm696_vm4, %v17043_v16  ;;  %20470 = vmatprep.mubr.msk.bf16.mxu0 %vm696_vm4, %v18327_v57  ;;  %v3977_v16 = vrot.slane %v3972_v10, 4  ;;  %v17032_v20 = vrot.slane %v3987_v11, 11  ;;  %v3997_v52 = vor.u32 %v3995_v17, %v3994_v35  ;;  %v4003_v48 = vrot.slane %v4001_v32, 7  ;;  %v17012_v32 = vld [vmem:[%s22608_s28 + $0x160] sm:$0x8] }
 0x1e9   : > { %v18316_v40 = vrot.slane %v18290_v23, 10  ;;  %v3999_v60 = vrot.slane %v3994_v35, 4  ;;  %v12078_v57 = vrot.slane %v25566_v22, 6  ;;  %v12081_v30 = vrot.slane %v18292_v25, 6  ;;  %v17018_v22 = vld [vmem:[%s22608_s28 + $0x180] sm:$0x8] }
 0x1ea   : > { %v4014_v36 = vshrl.u32 %v25583_v34, 16  ;;  %v4006_v50 = vor.u32 %v4004_v13, %v4003_v48  ;;  %v4009_v10 = vshrl.u32 %v17009_v0, 16  ;;  %v4017_v6 = vshll.u32 %v25583_v34, 16  ;;  %v18295_v13 = vld [vmem:[%s22608_s28 + $0x188] sm:$0x3] }
 0x1eb   : > { %v4023_v33 = vshrl.u32 %v25587_v53, 16  ;;  %v17046_v15 = vcombine.low %v3954_v7, %v3963_v58  ;;  %v25595_v11 = vsel %vm22634_vm5, %v18315_v49, %v12071_v21  ;;  %v12080_v35 = vrot.slane %v12078_v57, 4  ;;  %v25605_v58 = vld [vmem:[%s22608_s28 + $0x184] sm:$0xf] }
 0x1ec   : > { %v4016_v23 = vrot.slane %v4014_v36, 7  ;;  %v3976_v48 = vsel %vm22659_vm6, %v17031_v41, %v3975_v42  ;;  %v3985_v25 = vsel %vm22659_vm6, %v3977_v16, %v3984_v63  ;;  %v4026_v7 = vshll.u32 %v25587_v53, 16  ;;  %28276 = vst [vmem:[#allocation31_spill] sm:$0xff] %v25605_v58  ;;  %v25608_v21 = vld [vmem:[%s22608_s28 + $0x164] sm:$0xf] }
 0x1ed   : > { %v4025_v17 = vrot.slane %v4023_v33, 7  ;;  %v28277_v49 = vcombine.low %v25495_v54, %v25510_v26  ;;  %v3998_v41 = vsel %vm22659_vm6, %v17032_v20, %v3997_v52  ;;  %v25621_v0 = vsel %vm22634_vm5, %v18316_v40, %v12078_v57  ;;  %v18293_v42 = vld [vmem:[%s22608_s28 + $0x180] sm:$0xc]  ;;  %v25626_v16 = vld [vmem:[%s22608_s28 + $0x168] sm:$0xf] }
 0x1ee   : > { %v28278_v54 = vcombine.low %v25518_v61, %v25524_v45  ;;  %v25636_v26 = vsel %vm22634_vm5, %v12080_v35, %v12081_v30  ;;  %v4019_v40 = vor.u32 %v4017_v6, %v4016_v23  ;;  %v12085_v20 = vrot.slane %v25605_v58, 6  ;;  %v18296_v30 = vld [vmem:[%s22608_s28 + $0x190] sm:$0xc]  ;;  %v25649_v33 = vld [vmem:[%s22608_s28 + $0x194] sm:$0xf] }
 0x1ef   : > { %19823 = vmatmul.mubr.msk.bf16.gmra.mrb[12].mxu1 %vm696_vm4, %v25491_v1  ;;  %20471 = vmatmul.mubr.msk.bf16.gmra.mrb[12].mxu0 %vm696_vm4, %v28277_v49  ;;  %v12075_v1 = vsel %vm22634_vm5, %v12073_v27, %v12074_v8  ;;  %v4007_v27 = vsel %vm22659_vm6, %v3999_v60, %v4006_v50  ;;  %v17033_v8 = vrot.slane %v4009_v10, 11  ;;  %v4028_v63 = vor.u32 %v4026_v7, %v4025_v17  ;;  %v17015_v35 = vld [vmem:[%s22608_s28 + $0x170] sm:$0x8]  ;;  %v25658_v49 = vld [vmem:[%s22608_s28 + $0x178] sm:$0xf] }
 0x1f0   : > { %19826 = vmatprep.mubr.msk.bf16.mxu1 %vm696_vm4, %v17045_v14  ;;  %20474 = vmatprep.mubr.msk.bf16.mxu0 %vm696_vm4, %v28278_v54  ;;  %v4021_v14 = vrot.slane %v4016_v23, 4  ;;  %v4036_v61 = vshrl.u32 %v25608_v21, 16  ;;  %v18330_v45 = vcombine.low %v25551_v51, %v25576_v18  ;;  %v18317_v60 = vrot.slane %v18293_v42, 10  ;;  %28279 = vst [vmem:[#allocation28_spill] sm:$0xff] %v25649_v33  ;;  %v25653_v23 = vld [vmem:[%s22608_s28 + $0x174] sm:$0xf] }
 0x1f1   : > { %v4031_v52 = vshrl.u32 %v17012_v32, 16  ;;  %v4045_v57 = vshrl.u32 %v25626_v16, 16  ;;  %v17047_v36 = vcombine.low %v3976_v48, %v3985_v25  ;;  %v18331_v50 = vcombine.low %v25595_v11, %v12075_v1  ;;  %28280 = vst [vmem:[#allocation30_spill] sm:$0xff] %v25653_v23  ;;  %28281 = vst [vmem:[#allocation33_spill] sm:$0xff] %v25658_v49  ;;  %v18298_v42 = vld [vmem:[%s22608_s28 + $0x198] sm:$0x3] }
 0x1f2   : > { %v17048_v10 = vcombine.low %v3998_v41, %v4007_v27  ;;  %v18332_v6 = vcombine.low %v25621_v0, %v25636_v26  ;;  %v4038_v51 = vrot.slane %v4036_v61, 7  ;;  %v4039_v18 = vshll.u32 %v25608_v21, 16  ;;  %v25680_v61 = vld [vmem:[%s22608_s28 + $0x184] sm:$0xf] }
 0x1f3   : > { %v4047_v17 = vrot.slane %v4045_v57, 7  ;;  %v4048_v7 = vshll.u32 %v25626_v16, 16  ;;  %v4020_v11 = vsel %vm22659_vm6, %v17033_v8, %v4019_v40  ;;  %v4029_v48 = vsel %vm22659_vm6, %v4021_v14, %v4028_v63  ;;  %v25675_v40 = vld [vmem:[%s22608_s28 + $0x1a4] sm:$0xf]  ;;  %28282 = vst [vmem:[#allocation34_spill] sm:$0xff] %v25680_v61  ;;  %v28295_v38 = vld [vmem:[#allocation31_spill] sm:$0xff] }
 0x1f4   : > { %v12087_v25 = vrot.slane %v12085_v20, 4  ;;  %v12088_v1 = vrot.slane %v18295_v13, 6  ;;  %v12086_v41 = vsel %vm22634_vm5, %v18317_v60, %v12085_v20  ;;  %v17034_v0 = vrot.slane %v4031_v52, 11 }
 0x1f5   : > { %v12092_v32 = vrot.slane %v25649_v33, 6  ;;  %v4053_v54 = vshrl.u32 %v17015_v35, 16  ;;  %v18318_v27 = vrot.slane %v18296_v30, 10  ;;  %v4058_v26 = vshrl.u32 %v25653_v23, 16  ;;  %v18299_v30 = vld [vmem:[%s22608_s28 + $0x1a0] sm:$0xc] }
 0x1f6   : > { %v4067_v8 = vshrl.u32 %v25658_v49, 16  ;;  %v4041_v14 = vor.u32 %v4039_v18, %v4038_v51  ;;  %v4043_v63 = vrot.slane %v4038_v51, 4  ;;  %v4050_v13 = vor.u32 %v4048_v7, %v4047_v17  ;;  %v25688_v18 = vld [vmem:[%s22608_s28 + $0x188] sm:$0xf] }
 0x1f7   : > { %19827 = vmatmul.mubr.msk.bf16.gmra.mrb[16].mxu1 %vm696_vm4, %v17046_v15  ;;  %20475 = vmatmul.mubr.msk.bf16.gmra.mrb[16].mxu0 %vm696_vm4, %v18330_v45  ;;  %v4061_v15 = vshll.u32 %v25653_v23, 16  ;;  %v4070_v20 = vshll.u32 %v25658_v49, 16  ;;  %v17049_v45 = vcombine.low %v4020_v11, %v4029_v48  ;;  %v12089_v60 = vsel %vm22634_vm5, %v12087_v25, %v12088_v1  ;;  %28283 = vst [vmem:[#allocation35_spill] sm:$0xff] %v25688_v18 }
 0x1f8   : > { %19830 = vmatprep.mubr.msk.bf16.mxu1 %vm696_vm4, %v17047_v36  ;;  %20478 = vmatprep.mubr.msk.bf16.mxu0 %vm696_vm4, %v18331_v50  ;;  %v4060_v52 = vrot.slane %v4058_v26, 7  ;;  %v4069_v57 = vrot.slane %v4067_v8, 7  ;;  %v18301_v36 = vld [vmem:[%s22608_s28 + $0x1a8] sm:$0x3]  ;;  %v12094_v35 = vrot.slane %v12092_v32, 4  ;;  %v12095_v33 = vrot.slane %v18298_v42, 6 }
 0x1f9   : > { %v17035_v50 = vrot.slane %v4053_v54, 11  ;;  %v12099_v51 = vrot.slane %v25675_v40, 6  ;;  %v4080_v11 = vshrl.u32 %v25680_v61, 16  ;;  %v18333_v48 = vcombine.low %v12086_v41, %v12089_v60  ;;  %v18302_v60 = vld [vmem:[%s22608_s28 + $0x1b0] sm:$0xc] }
 0x1fa   : > { %v4063_v17 = vor.u32 %v4061_v15, %v4060_v52  ;;  %v4065_v7 = vrot.slane %v4060_v52, 4  ;;  %v4072_v58 = vor.u32 %v4070_v20, %v4069_v57  ;;  %v4042_v25 = vsel %vm22659_vm6, %v17034_v0, %v4041_v14  ;;  %v25700_v20 = vld [vmem:[%s22608_s28 + $0x1b4] sm:$0xf] }
 0x1fb   : > { %v4051_v1 = vsel %vm22659_vm6, %v4043_v63, %v4050_v13  ;;  %v12093_v42 = vsel %vm22634_vm5, %v18318_v27, %v12092_v32  ;;  %v18319_v54 = vrot.slane %v18299_v30, 10  ;;  %v12101_v26 = vrot.slane %v12099_v51, 4 }
 0x1fc   : > { %v12102_v8 = vrot.slane %v18301_v36, 6  ;;  %v4089_v15 = vshrl.u32 %v25688_v18, 16  ;;  %v12096_v41 = vsel %vm22634_vm5, %v12094_v35, %v12095_v33  ;;  %v4075_v0 = vshrl.u32 %v17018_v22, 16  ;;  %v18304_v22 = vld [vmem:[%s22608_s28 + $0x1b8] sm:$0x3] }
 0x1fd   : > { %v4082_v14 = vrot.slane %v4080_v11, 7  ;;  %v4083_v63 = vshll.u32 %v25680_v61, 16  ;;  %v4064_v32 = vsel %vm22659_vm6, %v17035_v50, %v4063_v17  ;;  %v4073_v27 = vsel %vm22659_vm6, %v4065_v7, %v4072_v58 }
 0x1fe   : > { %v4091_v13 = vrot.slane %v4089_v15, 7  ;;  %v12106_v33 = vrot.slane %v25700_v20, 6  ;;  %v17050_v52 = vcombine.low %v4042_v25, %v4051_v1  ;;  %v18334_v57 = vcombine.low %v12093_v42, %v12096_v41  ;;  %v18409_v25 = vld [vmem:[%s22608_s28 + $0xd8] sm:$0xf] }
 0x1ff   : > { %19831 = vmatmul.mubr.msk.bf16.gmra.mrb[20].mxu1 %vm696_vm4, %v17048_v10  ;;  %20479 = vmatmul.mubr.msk.bf16.gmra.mrb[20].mxu0 %vm696_vm4, %v18332_v6  ;;  %v4092_v10 = vshll.u32 %v25688_v18, 16  ;;  %v12100_v6 = vsel %vm22634_vm5, %v18319_v54, %v12099_v51  ;;  %v17051_v30 = vcombine.low %v4064_v32, %v4073_v27  ;;  %v17036_v36 = vrot.slane %v4075_v0, 11 }
 0x200   : > { %19834 = vmatprep.mubr.msk.bf16.mxu1 %vm696_vm4, %v17049_v45  ;;  %20482 = vmatprep.mubr.msk.bf16.mxu0 %vm696_vm4, %v18333_v48  ;;  %v12103_v45 = vsel %vm22634_vm5, %v12101_v26, %v12102_v8  ;;  %v4085_v58 = vor.u32 %v4083_v63, %v4082_v14  ;;  %v18320_v35 = vrot.slane %v18302_v60, 10  ;;  %v4087_v50 = vrot.slane %v4082_v14, 4  ;;  %v18355_v63 = vld [vmem:[%s22608_s28 + $0xc8] sm:$0xf]  ;;  %v28290_v14 = vld [vmem:[#allocation27_spill] sm:$0xff] }
 0x201   : > { %v4094_v17 = vor.u32 %v4092_v10, %v4091_v13  ;;  %v12108_v7 = vrot.slane %v12106_v33, 4  ;;  %v12109_v11 = vrot.slane %v18304_v22, 6  ;;  %v18335_v48 = vcombine.low %v12100_v6, %v12103_v45  ;;  %v22359_v22 = vld [vmem:[%s22608_s28 + $0x94] sm:$0xf]  ;;  %v18356_v45 = vld [vmem:[%s22608_s28 + $0xd8] sm:$0xf] }
 0x202   : > { %v4086_v51 = vsel %vm22659_vm6, %v17036_v36, %v4085_v58  ;;  %v12107_v41 = vsel %vm22634_vm5, %v18320_v35, %v12106_v33  ;;  %v22360_v33 = vld [vmem:[%s22608_s28 + $0x98] sm:$0xf]  ;;  %v22363_v36 = vld [vmem:[%s22608_s28 + $0xa8] sm:$0xf]  ;;  %v18405_v10 = vld [vmem:[%s22608_s28 + $0xc4] sm:$0xc]  ;;  %v28298_v8 = vcombine.low %v25247_v24, %v25251_v47 }
 0x203   : > { %v4095_v54 = vsel %vm22659_vm6, %v4087_v50, %v4094_v17  ;;  %v12110_v0 = vsel %vm22634_vm5, %v12108_v7, %v12109_v11  ;;  %v18357_v35 = vld [vmem:[%s22608_s28 + $0xe8] sm:$0xf]  ;;  %v22364_v50 = vld [vmem:[%s22608_s28 + $0xd4] sm:$0xf]  ;;  %v22366_v11 = vld [vmem:[%s22608_s28 + $0xb8] sm:$0xf] }
 0x204   : > { %v17052_v13 = vcombine.low %v4086_v51, %v4095_v54  ;;  %v18336_v60 = vcombine.low %v12107_v41, %v12110_v0  ;;  %v18372_v17 = vcombine.low %v22364_v50, %v18356_v45  ;;  %v22365_v7 = vld [vmem:[%s22608_s28 + $0xb4] sm:$0xf]  ;;  %v22367_v51 = vld [vmem:[%s22608_s28 + $0xe4] sm:$0xf]  ;;  %v22148_v41 = vld [vmem:[%s28058_s1 + $0x88] sm:$0xff]   ;;  %v12858_v15 = vrot.slane %v18409_v25, 6 }
 0x205   : > { %v18373_v54 = vcombine.low %v22367_v51, %v18357_v35  ;;  %v22150_v0 = vld [vmem:[%s28058_s1 + $0x1a8] sm:$0xff]   ;;  %v28286_v45 = vld [vmem:[#allocation23_spill] sm:$0xff]  ;;  %vm6426_vm14 = vcmask 1046532   ;;  %vm16435_vm0 = vcmask 130048  }
 0x206   : > { %v25828_v51 = vld [vmem:[%s22608_s28 + $0x188] sm:$0xf]  ;;  %vm26819_vm15 = vmor %vm6425_vm13, %vm6426_vm14 }
 0x207   : > { %19835 = vmatmul.mubr.msk.bf16.gmra.mrb[24].mxu1 %vm696_vm4, %v17050_v52  ;;  %20483 = vmatmul.mubr.msk.bf16.gmra.mrb[24].mxu0 %vm696_vm4, %v18334_v57  ;;  %v17071_v52 = vcombine.low %v22359_v22, %v22360_v33  ;;  %v22361_v57 = vld [vmem:[%s22608_s28 + $0xc4] sm:$0xf]  ;;  %v17105_v33 = vld [vmem:[%s22608_s28 + $0x94] sm:$0xf] }
 0x208   : > { %19838 = vmatprep.mubr.msk.bf16.mxu1 %vm696_vm4, %v17051_v30  ;;  %20486 = vmatprep.mubr.msk.bf16.mxu0 %vm696_vm4, %v18335_v48  ;;  %v18371_v6 = vcombine.low %v22361_v57, %v18355_v63  ;;  %v22362_v30 = vld [vmem:[%s22608_s28 + $0xa4] sm:$0xf]  ;;  %v17073_v48 = vcombine.low %v22365_v7, %v22366_v11  ;;  %v18358_v63 = vld [vmem:[%s22608_s28 + $0xf8] sm:$0xf]  ;;  %v17075_v57 = vcombine.low %v25191_v3, %v25198_v29  ;;  %v4790_v35 = vshll.u32 %v17105_v33, 16 }
 0x209   : > { %v17072_v58 = vcombine.low %v22362_v30, %v22363_v36  ;;  %v18360_v36 = vld [vmem:[%s22608_s28 + $0x118] sm:$0xf]  ;;  %v25812_v3 = vld [vmem:[%s22608_s28 + $0x148] sm:$0xf] }
 0x20a   : > { %v25815_v29 = vld [vmem:[%s22608_s28 + $0x158] sm:$0xf]  ;;  %v25820_v7 = vld [vmem:[%s22608_s28 + $0x168] sm:$0xf] }
 0x20b   : > { %v25823_v11 = vld [vmem:[%s22608_s28 + $0x178] sm:$0xf] }
 0x20f   : > { %19839 = vmatmul.mubr.msk.bf16.gmra.mrb[28].mxu1 %vm696_vm4, %v17052_v13  ;;  %20487 = vmatmul.mubr.msk.bf16.gmra.mrb[28].mxu0 %vm696_vm4, %v18336_v60  ;;  %v25786_v13 = vld [vmem:[%s28058_s1 + $0x90] sm:$0xff]   ;;  %v18359_v60 = vld [vmem:[%s22608_s28 + $0x108] sm:$0xf] }
 0x210   : > { %19846 = vmatprep.mubr.msk.bf16.mxu1 %vm696_vm4, %v17071_v52  ;;  %20494 = vmatprep.mubr.msk.bf16.mxu0 %vm696_vm4, %v18371_v6  ;;  %28284 = vst [vmem:[#allocation36_spill] sm:$0xff] %v25786_v13  ;;  %v18374_v52 = vcombine.low %v25187_v37, %v18358_v63  ;;  %v17106_v6 = vld [vmem:[%s22608_s28 + $0x98] sm:$0xf]  ;;  %v18375_v30 = vcombine.low %v28286_v45, %v18359_v60  ;;  %v28289_v60 = vld [vmem:[#allocation21_spill] sm:$0xff] }
 0x211   : > { %v25809_v37 = vld [vmem:[%s22608_s28 + $0x138] sm:$0xf]  ;;  %v4796_v50 = vshll.u32 %v17106_v6, 16 }
 0x217   : > { %19847 = vmatmul.mubr.msk.bf16.vlgmr.msra.gmra.mrb[0].mxu1 %vm696_vm4, %v17072_v58  ;;  %20495 = vmatmul.mubr.msk.bf16.vlgmr.msra.gmra.mrb[0].mxu0 %vm696_vm4, %v18372_v17  ;;  %v4787_v58 = vshrl.u32 %v17105_v33, 16  ;;  %v4800_v17 = vshrl.u32 %v17106_v6, 16  ;;  %v25838_v6 = vrot.slane %v4796_v50, 5 }
 0x218   : > { %19879 = vmatpush3.bf16.msra.mxu1 %v25440_v2  ;;  %20527 = vmatpush3.bf16.msra.mxu0 %v25458_v31  ;;  %v25793_v2 = vld [vmem:[%s28058_s1 + $0x1b0] sm:$0xff]   ;;  %v22368_v31 = vld [vmem:[%s22608_s28 + $0xc4] sm:$0xf] }
 0x219   : > { %19850 = vmatprep.mubr.msk.bf16.mxu1 %vm696_vm4, %v17073_v48  ;;  %20498 = vmatprep.mubr.msk.bf16.mxu0 %vm696_vm4, %v18373_v54  ;;  %28285 = vst [vmem:[#allocation37_spill] sm:$0xff] %v25793_v2  ;;  %v17074_v22 = vcombine.low %v22368_v31, %v25172_v59  ;;  %v18361_v59 = vld [vmem:[%s22608_s28 + $0x128] sm:$0xf]  ;;  %v17108_v48 = vld [vmem:[%s22608_s28 + $0xa4] sm:$0xf]  ;;  %v4789_v33 = vrot.slane %v4787_v58, 4 }
 0x21a   : > { %19880 = vmatprep.subr.bf16.mxu1 %v22148_v41  ;;  %20528 = vmatprep.subr.bf16.mxu0 %v22150_v0  ;;  %v25831_v54 = vld [vmem:[%s22608_s28 + $0x198] sm:$0xf]  ;;  %v18377_v31 = vcombine.low %v28289_v60, %v18361_v59  ;;  %v4802_v45 = vrot.slane %v4800_v17, 4  ;;  %v4811_v27 = vshrl.u32 %v17108_v48, 16  ;;  %v4814_v32 = vshll.u32 %v17108_v48, 16  ;;  %v28293_v60 = vld [vmem:[#allocation25_spill] sm:$0xff] }
 0x21b   : > { %28287 = vst [vmem:[#allocation23_spill] sm:$0xff] %v25831_v54  ;;  %v17111_v17 = vld [vmem:[%s22608_s28 + $0xb4] sm:$0xf]  ;;  %v28294_v48 = vld [vmem:[#allocation26_spill] sm:$0xff]  ;;  %v25861_v58 = vld [vmem:[%s22608_s28 + $0x1b8] sm:$0xf] }
 0x21c   : > { %19881 = vmatpush3.bf16.msra.mxu1 %v22148_v41  ;;  %20529 = vmatpush3.bf16.msra.mxu0 %v22150_v0  ;;  %v18406_v41 = vld [vmem:[%s22608_s28 + $0xc8] sm:$0xf]  ;;  %v28288_v0 = vld [vmem:[#allocation19_spill] sm:$0xff]  ;;  %v4803_v26 = vor.u32 %v4802_v45, %v25838_v6  ;;  %v4816_v18 = vrot.slane %v4814_v32, 5  ;;  %v4835_v61 = vshrl.u32 %v17111_v17, 16 }
 0x21d   : > { %19914 = vmatprep.subr.bf16.mxu1 %v25786_v13  ;;  %20562 = vmatprep.subr.bf16.mxu0 %v25793_v2  ;;  %v18376_v63 = vcombine.low %v28288_v0, %v18360_v36  ;;  %v28291_v36 = vld [vmem:[#allocation24_spill] sm:$0xff]  ;;  %v28292_v0 = vld [vmem:[#allocation29_spill] sm:$0xff]  ;;  %v12851_v50 = vrot.slane %v18406_v41, 6  ;;  %28297 = vst [vmem:[#allocation19_spill] sm:$0xff] %v25861_v58  ;;  %v17110_v13 = vld [vmem:[%s22608_s28 + $0xac] sm:$0x1] }
 0x21e   : > { %v4804_v49 = vrot.slane %v4803_v26, 4  ;;  %v4837_v23 = vrot.slane %v4835_v61, 4  ;;  %v17115_v59 = vld [vmem:[%s22608_s28 + $0xc8] sm:$0xf]  ;;  %v12860_v61 = vrot.slane %v12858_v15, 4 }
 0x21f   : > { %19851 = vmatmul.mubr.msk.bf16.gmra.mrb[4].mxu1 %vm696_vm4, %v17074_v22  ;;  %20499 = vmatmul.mubr.msk.bf16.gmra.mrb[4].mxu0 %vm696_vm4, %v18374_v52  ;;  %v17107_v22 = vld [vmem:[%s22608_s28 + $0x9c] sm:$0x1]  ;;  %v4792_v52 = vrot.slane %v4790_v35, 5  ;;  %v25849_v35 = vld [vmem:[%s22608_s28 + $0x1a8] sm:$0xf]  ;;  %v12853_v24 = vrot.slane %v12851_v50, 4 }
 0x220   : > { %19854 = vmatprep.mubr.msk.bf16.mxu1 %vm696_vm4, %v17075_v57  ;;  %20502 = vmatprep.mubr.msk.bf16.mxu0 %vm696_vm4, %v18375_v30  ;;  %v17109_v57 = vld [vmem:[%s22608_s28 + $0xa8] sm:$0xf]  ;;  %v18407_v30 = vld [vmem:[%s22608_s28 + $0xcc] sm:$0x3]  ;;  %v4806_v2 = vshll.u32 %v17107_v22, 16  ;;  %v18453_v22 = vrot.slane %v18405_v10, 10 }
 0x221   : > { %v4820_v42 = vshll.u32 %v17109_v57, 16  ;;  %v4824_v1 = vshrl.u32 %v17109_v57, 16  ;;  %v4793_v41 = vor.u32 %v4792_v52, %v4789_v33  ;;  %v4813_v57 = vrot.slane %v4811_v27, 4  ;;  %v18410_v10 = vld [vmem:[%s22608_s28 + $0xdc] sm:$0x3] }
 0x222   : > { %v28299_v33 = vcombine.low %v25299_v46, %v25302_v19  ;;  %v12854_v47 = vrot.slane %v18407_v30, 6  ;;  %v4838_v52 = vshll.u32 %v17111_v17, 16  ;;  %v18408_v19 = vld [vmem:[%s22608_s28 + $0xd4] sm:$0xc]  ;;  %v4830_v30 = vshll.u32 %v17110_v13, 16 }
 0x223   : > { %v4826_v46 = vrot.slane %v4824_v1, 4  ;;  %v4794_v45 = vrot.slane %v4793_v41, 4  ;;  %v17114_v17 = vld [vmem:[%s22608_s28 + $0xc4] sm:$0xf]  ;;  %v25889_v32 = vsel %vm22634_vm5, %v18453_v22, %v12851_v50  ;;  %v17113_v1 = vld [vmem:[%s22608_s28 + $0xbc] sm:$0x1]  ;;  %v28300_v50 = vcombine.low %v25333_v4, %v25359_v5 }
 0x224   : > { %v4840_v27 = vrot.slane %v4838_v52, 5  ;;  %v18454_v25 = vrot.slane %v18408_v19, 10  ;;  %v4862_v26 = vshll.u32 %v17114_v17, 16  ;;  %v4872_v58 = vshrl.u32 %v17115_v59, 16 }
 0x225   : > { %v25908_v52 = vrot.slane %v4830_v30, 5  ;;  %v28303_v4 = vcombine.low %v25381_v56, %v25388_v55  ;;  %v4854_v56 = vshll.u32 %v17113_v1, 16  ;;  %v18413_v55 = vld [vmem:[%s22608_s28 + $0xec] sm:$0x3] }
 0x227   : > { %19855 = vmatmul.mubr.msk.bf16.gmra.mrb[8].mxu1 %vm696_vm4, %v28298_v8  ;;  %20503 = vmatmul.mubr.msk.bf16.gmra.mrb[8].mxu0 %vm696_vm4, %v18376_v63  ;;  %v17112_v8 = vld [vmem:[%s22608_s28 + $0xb8] sm:$0xf]  ;;  %v25881_v63 = vrot.slane %v4820_v42, 5  ;;  %v25893_v42 = vsel %vm22634_vm5, %v12853_v24, %v12854_v47  ;;  %v4799_v24 = vsel %vm23502_vm9, %v4794_v45, %v25838_v6  ;;  %v4841_v6 = vor.u32 %v4840_v27, %v4837_v23  ;;  %v18412_v45 = vld [vmem:[%s22608_s28 + $0xe8] sm:$0xf] }
 0x228   : > { %19858 = vmatprep.mubr.msk.bf16.mxu1 %vm696_vm4, %v28299_v33  ;;  %20506 = vmatprep.mubr.msk.bf16.mxu0 %vm696_vm4, %v18377_v31  ;;  %v4808_v33 = vrot.slane %v4806_v2, 5  ;;  %v4817_v31 = vor.u32 %v4816_v18, %v4813_v57  ;;  %v4844_v54 = vshll.u32 %v17112_v8, 16  ;;  %v4848_v41 = vshrl.u32 %v17112_v8, 16  ;;  %v17117_v23 = vld [vmem:[%s22608_s28 + $0xd4] sm:$0xf] }
 0x229   : > { %v4827_v13 = vor.u32 %v4826_v46, %v25881_v63  ;;  %v4859_v2 = vshrl.u32 %v17114_v17, 16  ;;  %v12861_v18 = vrot.slane %v18410_v10, 6  ;;  %v4868_v57 = vshll.u32 %v17115_v59, 16  ;;  %v18411_v10 = vld [vmem:[%s22608_s28 + $0xe4] sm:$0xc] }
 0x22a   : > { %v18469_v47 = vcombine.low %v25889_v32, %v25893_v42  ;;  %v25906_v8 = vrot.slane %v4817_v31, 4  ;;  %v28302_v59 = vcombine.low %v28290_v14, %v25809_v37  ;;  %v4809_v5 = vsel %vm23502_vm9, %v4804_v49, %v4808_v33  ;;  %v18415_v17 = vld [vmem:[%s22608_s28 + $0xf8] sm:$0xf] }
 0x22b   : > { %v25920_v46 = vrot.slane %v4844_v54, 5  ;;  %v4850_v19 = vrot.slane %v4848_v41, 4  ;;  %v28304_v14 = vcombine.low %v28291_v36, %v25812_v3  ;;  %v25928_v37 = vrot.slane %v4827_v13, 4  ;;  %v17116_v3 = vld [vmem:[%s22608_s28 + $0xcc] sm:$0x1] }
 0x22c   : > { %v4861_v30 = vrot.slane %v4859_v2, 4  ;;  %v4864_v49 = vrot.slane %v4862_v26, 5  ;;  %v25934_v54 = vsel %vm22634_vm5, %v18454_v25, %v12858_v15  ;;  %v25938_v27 = vsel %vm22634_vm5, %v12860_v61, %v12861_v18  ;;  %v17118_v13 = vld [vmem:[%s22608_s28 + $0xd8] sm:$0xf]  ;;  %v18414_v26 = vld [vmem:[%s22608_s28 + $0xf4] sm:$0xc] }
 0x22d   : > { %v25941_v36 = vrot.slane %v4868_v57, 5  ;;  %v4874_v33 = vrot.slane %v4872_v58, 4  ;;  %v25944_v31 = vcombine.low %v4799_v24, %v4809_v5  ;;  %v4823_v1 = vsel %vm23502_vm9, %v25906_v8, %v25881_v63  ;;  %v18422_v63 = vld [vmem:[%s22608_s28 + $0x11c] sm:$0x3]  ;;  %v17124_v8 = vld [vmem:[%s22608_s28 + $0xf8] sm:$0xf] }
 0x22e   : > { %v18455_v15 = vrot.slane %v18411_v10, 10  ;;  %v12865_v41 = vrot.slane %v18412_v45, 6  ;;  %v25951_v25 = vrot.slane %v4841_v6, 4  ;;  %v4851_v2 = vor.u32 %v4850_v19, %v25920_v46 }
 0x22f   : > { %19859 = vmatmul.mubr.msk.bf16.gmra.mrb[12].mxu1 %vm696_vm4, %v28300_v50  ;;  %20507 = vmatmul.mubr.msk.bf16.gmra.mrb[12].mxu0 %vm696_vm4, %v28302_v59  ;;  %v4883_v61 = vshrl.u32 %v17117_v23, 16  ;;  %v4886_v58 = vshll.u32 %v17117_v23, 16  ;;  %v4833_v18 = vsel %vm23502_vm9, %v25928_v37, %v25908_v52  ;;  %v25961_v50 = vrot.slane %v4854_v56, 5  ;;  %v18416_v59 = vld [vmem:[%s22608_s28 + $0xfc] sm:$0x3] }
 0x230   : > { %19862 = vmatprep.mubr.msk.bf16.mxu1 %vm696_vm4, %v28303_v4  ;;  %20510 = vmatprep.mubr.msk.bf16.mxu0 %vm696_vm4, %v28304_v14  ;;  %v4865_v24 = vor.u32 %v4864_v49, %v4861_v30  ;;  %v17120_v4 = vld [vmem:[%s22608_s28 + $0xe4] sm:$0xf]  ;;  %v12868_v5 = vrot.slane %v18413_v55, 6  ;;  %v4875_v6 = vor.u32 %v4874_v33, %v25941_v36  ;;  %v4878_v19 = vshll.u32 %v17116_v3, 16 }
 0x231   : > { %v12872_v10 = vrot.slane %v18415_v17, 6  ;;  %v28305_v45 = vcombine.low %v25453_v39, %v25465_v62  ;;  %v25972_v14 = vsel %vm22634_vm5, %v18455_v15, %v12865_v41  ;;  %v12867_v56 = vrot.slane %v12865_v41, 4  ;;  %v17121_v17 = vld [vmem:[%s22608_s28 + $0xe8] sm:$0xf] }
 0x232   : > { %v4892_v30 = vshll.u32 %v17118_v13, 16  ;;  %v4896_v49 = vshrl.u32 %v17118_v13, 16  ;;  %v28306_v55 = vcombine.low %v28292_v0, %v25815_v29  ;;  %v28307_v23 = vcombine.low %v25499_v44, %v25502_v9  ;;  %v17119_v9 = vld [vmem:[%s22608_s28 + $0xdc] sm:$0x1]  ;;  %v18418_v15 = vld [vmem:[%s22608_s28 + $0x108] sm:$0xf] }
 0x233   : > { %v4847_v39 = vsel %vm23502_vm9, %v25951_v25, %v25920_v46  ;;  %v4852_v62 = vrot.slane %v4851_v2, 4  ;;  %v4885_v3 = vrot.slane %v4883_v61, 4  ;;  %v4888_v33 = vrot.slane %v4886_v58, 5  ;;  %v18417_v61 = vld [vmem:[%s22608_s28 + $0x104] sm:$0xc] }
 0x234   : > { %v28308_v29 = vcombine.low %v28293_v60, %v25820_v7  ;;  %v4866_v0 = vrot.slane %v4865_v24, 4  ;;  %v18456_v44 = vrot.slane %v18414_v26, 10  ;;  %v4907_v41 = vshrl.u32 %v17120_v4, 16 }
 0x235   : > { %v4910_v13 = vshll.u32 %v17120_v4, 16  ;;  %v4880_v46 = vrot.slane %v4878_v19, 5  ;;  %v12874_v25 = vrot.slane %v12872_v10, 4  ;;  %v12875_v2 = vrot.slane %v18416_v59, 6 }
 0x236   : > { %v25994_v58 = vrot.slane %v4892_v30, 5  ;;  %v4916_v57 = vshll.u32 %v17121_v17, 16  ;;  %v4920_v7 = vshrl.u32 %v17121_v17, 16  ;;  %v4857_v60 = vsel %vm23502_vm9, %v4852_v62, %v25961_v50 }
 0x237   : > { %19863 = vmatmul.mubr.msk.bf16.gmra.mrb[16].mxu1 %vm696_vm4, %v28305_v45  ;;  %20511 = vmatmul.mubr.msk.bf16.gmra.mrb[16].mxu0 %vm696_vm4, %v28306_v55  ;;  %v4876_v45 = vrot.slane %v4875_v6, 4  ;;  %v4898_v55 = vrot.slane %v4896_v49, 4  ;;  %v26002_v26 = vsel %vm22634_vm5, %v12867_v56, %v12868_v5  ;;  %v4889_v24 = vor.u32 %v4888_v33, %v4885_v3  ;;  %v17123_v6 = vld [vmem:[%s22608_s28 + $0xf4] sm:$0xf]  ;;  %v17122_v33 = vld [vmem:[%s22608_s28 + $0xec] sm:$0x1] }
 0x238   : > { %19866 = vmatprep.mubr.msk.bf16.mxu1 %vm696_vm4, %v28307_v23  ;;  %20514 = vmatprep.mubr.msk.bf16.mxu0 %vm696_vm4, %v28308_v29  ;;  %v18419_v23 = vld [vmem:[%s22608_s28 + $0x10c] sm:$0x3]  ;;  %v12879_v4 = vrot.slane %v18418_v15, 6  ;;  %v4871_v59 = vsel %vm23502_vm9, %v4866_v0, %v25941_v36  ;;  %v26010_v19 = vsel %vm22634_vm5, %v18456_v44, %v12872_v10  ;;  %v4909_v30 = vrot.slane %v4907_v41, 4 }
 0x239   : > { %v4912_v49 = vrot.slane %v4910_v13, 5  ;;  %v4881_v50 = vsel %vm23502_vm9, %v4876_v45, %v4880_v46  ;;  %v26016_v5 = vsel %vm22634_vm5, %v12874_v25, %v12875_v2  ;;  %v4902_v56 = vshll.u32 %v17119_v9, 16  ;;  %v18421_v9 = vld [vmem:[%s22608_s28 + $0x118] sm:$0xf]  ;;  %v17127_v25 = vld [vmem:[%s22608_s28 + $0x108] sm:$0xf] }
 0x23a   : > { %v18457_v62 = vrot.slane %v18417_v61, 10  ;;  %v28309_v3 = vcombine.low %v25540_v28, %v25547_v43  ;;  %v4899_v36 = vor.u32 %v4898_v55, %v25994_v58  ;;  %v12882_v10 = vrot.slane %v18419_v23, 6 }
 0x23b   : > { %v26024_v17 = vrot.slane %v4916_v57, 5  ;;  %v4922_v29 = vrot.slane %v4920_v7, 4  ;;  %v28310_v0 = vcombine.low %v28294_v48, %v25823_v11  ;;  %v28311_v44 = vcombine.low %v25583_v34, %v25587_v53 }
 0x23c   : > { %v26034_v28 = vrot.slane %v4889_v24, 4  ;;  %v12881_v43 = vrot.slane %v12879_v4, 4  ;;  %v4931_v57 = vshrl.u32 %v17123_v6, 16  ;;  %v4934_v15 = vshll.u32 %v17123_v6, 16 }
 0x23d   : > { %v28312_v41 = vcombine.low %v28295_v38, %v25828_v51  ;;  %v26051_v34 = vcombine.low %v4823_v1, %v4833_v18  ;;  %v26053_v53 = vcombine.low %v4847_v39, %v4857_v60  ;;  %v18471_v38 = vcombine.low %v25972_v14, %v26002_v26  ;;  %v18420_v51 = vld [vmem:[%s22608_s28 + $0x114] sm:$0xc]  ;;  %v17126_v1 = vld [vmem:[%s22608_s28 + $0x104] sm:$0xf] }
 0x23e   : > { %v4913_v11 = vor.u32 %v4912_v49, %v4909_v30  ;;  %v26058_v48 = vcombine.low %v4871_v59, %v4881_v50  ;;  %v18472_v52 = vcombine.low %v26010_v19, %v26016_v5  ;;  %v4904_v37 = vrot.slane %v4902_v56, 5  ;;  %v26246_v14 = vld [vmem:[%s28058_s1 + $0x1c0] sm:$0xff]  }
 0x23f   : > { %19867 = vmatmul.mubr.msk.bf16.gmra.mrb[20].mxu1 %vm696_vm4, %v28309_v3  ;;  %20515 = vmatmul.mubr.msk.bf16.gmra.mrb[20].mxu0 %vm696_vm4, %v28310_v0  ;;  %v26064_v13 = vsel %vm22634_vm5, %v18457_v62, %v12879_v4  ;;  %v4900_v18 = vrot.slane %v4899_v36, 4  ;;  %v4923_v39 = vor.u32 %v4922_v29, %v26024_v17  ;;  %v4926_v45 = vshll.u32 %v17122_v33, 16  ;;  %v28314_v36 = vld [vmem:[#allocation28_spill] sm:$0xff]  ;;  %v28317_v29 = vld [vmem:[#allocation30_spill] sm:$0xff]  ;;  %v28318_v0 = vld [vmem:[#allocation33_spill] sm:$0xff] }
 0x240   : > { %19870 = vmatprep.mubr.msk.bf16.mxu1 %vm696_vm4, %v28311_v44  ;;  %20518 = vmatprep.mubr.msk.bf16.mxu0 %vm696_vm4, %v28312_v41  ;;  %v12886_v46 = vrot.slane %v18421_v9, 6  ;;  %v4895_v2 = vsel %vm23502_vm9, %v26034_v28, %v25994_v58  ;;  %v26077_v61 = vsel %vm22634_vm5, %v12881_v43, %v12882_v10  ;;  %v4933_v55 = vrot.slane %v4931_v57, 4  ;;  %v28315_v10 = vld [vmem:[#allocation23_spill] sm:$0xff]  ;;  %v17125_v28 = vld [vmem:[%s22608_s28 + $0xfc] sm:$0x1] }
 0x241   : > { %v4936_v23 = vrot.slane %v4934_v15, 5  ;;  %v4914_v7 = vrot.slane %v4913_v11, 4  ;;  %v18458_v60 = vrot.slane %v18420_v51, 10  ;;  %v4940_v24 = vshll.u32 %v17124_v8, 16  ;;  %v18423_v9 = vld [vmem:[%s22608_s28 + $0x124] sm:$0xc] }
 0x242   : > { %v4944_v4 = vshrl.u32 %v17124_v8, 16  ;;  %v4955_v6 = vshrl.u32 %v17126_v1, 16  ;;  %v4958_v59 = vshll.u32 %v17126_v1, 16  ;;  %v4964_v30 = vshll.u32 %v17127_v25, 16  ;;  %v18425_v8 = vld [vmem:[%s22608_s28 + $0x12c] sm:$0x3] }
 0x243   : > { %v4968_v49 = vshrl.u32 %v17127_v25, 16  ;;  %v28313_v50 = vcombine.low %v25608_v21, %v25626_v16  ;;  %v4924_v58 = vrot.slane %v4923_v39, 4  ;;  %v4928_v56 = vrot.slane %v4926_v45, 5  ;;  %v17130_v39 = vld [vmem:[%s22608_s28 + $0x118] sm:$0xf] }
 0x244   : > { %v12888_v62 = vrot.slane %v12886_v46, 4  ;;  %v12889_v3 = vrot.slane %v18422_v63, 6  ;;  %v28316_v33 = vcombine.low %v28314_v36, %v28315_v10  ;;  %v28319_v44 = vcombine.low %v28317_v29, %v28318_v0  ;;  %v17129_v63 = vld [vmem:[%s22608_s28 + $0x114] sm:$0xf]  ;;  %v17132_v36 = vld [vmem:[%s22608_s28 + $0x124] sm:$0xf] }
 0x245   : > { %v4905_v21 = vsel %vm23502_vm9, %v4900_v18, %v4904_v37  ;;  %v18473_v16 = vcombine.low %v26064_v13, %v26077_v61  ;;  %v4937_v43 = vor.u32 %v4936_v23, %v4933_v55  ;;  %v28320_v57 = vcombine.low %v25675_v40, %v25849_v35  ;;  %v18424_v37 = vld [vmem:[%s22608_s28 + $0x128] sm:$0xf]  ;;  %v17128_v55 = vld [vmem:[%s22608_s28 + $0x10c] sm:$0x1] }
 0x246   : > { %v4919_v15 = vsel %vm23502_vm9, %v4914_v7, %v26024_v17  ;;  %v26106_v41 = vsel %vm22634_vm5, %v18458_v60, %v12886_v46  ;;  %v26108_v11 = vrot.slane %v4940_v24, 5  ;;  %v4946_v51 = vrot.slane %v4944_v4, 4  ;;  %v28321_v10 = vld [vmem:[#allocation34_spill] sm:$0xff] }
 0x247   : > { %19871 = vmatmul.mubr.msk.bf16.gmra.mrb[24].mxu1 %vm696_vm4, %v28313_v50  ;;  %20519 = vmatmul.mubr.msk.bf16.gmra.mrb[24].mxu0 %vm696_vm4, %v28316_v33  ;;  %v4957_v1 = vrot.slane %v4955_v6, 4  ;;  %v4960_v40 = vrot.slane %v4958_v59, 5  ;;  %v26113_v35 = vrot.slane %v4964_v30, 5  ;;  %v4970_v18 = vrot.slane %v4968_v49, 4  ;;  %v26129_v59 = vld [vmem:[%s22608_s28 + $0x138] sm:$0xf] }
 0x248   : > { %19874 = vmatprep.mubr.msk.bf16.mxu1 %vm696_vm4, %v28319_v44  ;;  %20522 = vmatprep.mubr.msk.bf16.mxu0 %vm696_vm4, %v28320_v57  ;;  %v4929_v17 = vsel %vm23502_vm9, %v4924_v58, %v4928_v56  ;;  %v26120_v45 = vsel %vm22634_vm5, %v12888_v62, %v12889_v3  ;;  %v4950_v46 = vshll.u32 %v17125_v28, 16  ;;  %v18459_v25 = vrot.slane %v18423_v9, 10  ;;  %v17131_v3 = vld [vmem:[%s22608_s28 + $0x11c] sm:$0x1]  ;;  %v26149_v28 = vld [vmem:[%s22608_s28 + $0x134] sm:$0xc] }
 0x249   : > { %v26123_v23 = vrot.slane %v4937_v43, 4  ;;  %v12893_v7 = vrot.slane %v18424_v37, 6  ;;  %v4979_v60 = vshrl.u32 %v17129_v63, 16  ;;  %v4982_v24 = vshll.u32 %v17129_v63, 16  ;;  %v26152_v43 = vld [vmem:[%s22608_s28 + $0x13c] sm:$0x3] }
 0x24a   : > { %v26125_v4 = vcombine.low %v4895_v2, %v4905_v21  ;;  %v4947_v6 = vor.u32 %v4946_v51, %v26108_v11  ;;  %v4988_v30 = vshll.u32 %v17130_v39, 16  ;;  %v4992_v49 = vshrl.u32 %v17130_v39, 16  ;;  %v28322_v2 = vld [vmem:[#allocation35_spill] sm:$0xff] }
 0x24b   : > { %v26131_v50 = vcombine.low %v4919_v15, %v4929_v17  ;;  %v4961_v58 = vor.u32 %v4960_v40, %v4957_v1  ;;  %v4971_v56 = vor.u32 %v4970_v18, %v26113_v35  ;;  %v4974_v62 = vshll.u32 %v17128_v55, 16  ;;  %v28324_v9 = vld [vmem:[#allocation19_spill] sm:$0xff]  ;;  %v26173_v18 = vld [vmem:[%s22608_s28 + $0x144] sm:$0xc]  ;;  %v26179_v55 = vld [vmem:[%s22608_s28 + $0x14c] sm:$0x3] }
 0x24c   : > { %v28323_v33 = vcombine.low %v28321_v10, %v28322_v2  ;;  %v18474_v29 = vcombine.low %v26106_v41, %v26120_v45  ;;  %v26142_v0 = vrot.slane %v4950_v46, 5  ;;  %v26146_v44 = vsel %vm22634_vm5, %v18459_v25, %v12893_v7  ;;  %v17144_v41 = vld [vmem:[%s22608_s28 + $0x164] sm:$0xf]  ;;  %v17145_v45 = vld [vmem:[%s22608_s28 + $0x168] sm:$0xf] }
 0x24d   : > { %v12896_v21 = vrot.slane %v18425_v8, 6  ;;  %v28325_v57 = vcombine.low %v25700_v20, %v28324_v9  ;;  %v4943_v15 = vsel %vm23502_vm9, %v26123_v23, %v26108_v11  ;;  %v12895_v51 = vrot.slane %v12893_v7, 4  ;;  %v17133_v8 = vld [vmem:[%s22608_s28 + $0x128] sm:$0xf]  ;;  %v17135_v7 = vld [vmem:[%s22608_s28 + $0x134] sm:$0xf] }
 0x24e   : > { %v4981_v37 = vrot.slane %v4979_v60, 4  ;;  %v4984_v63 = vrot.slane %v4982_v24, 5  ;;  %v4948_v20 = vrot.slane %v4947_v6, 4  ;;  %v12900_v1 = vrot.slane %v26129_v59, 6  ;;  %v26176_v11 = vld [vmem:[%s22608_s28 + $0x148] sm:$0xf] }
 0x24f   : > { %19875 = vmatmul.mubr.msk.bf16.gmra.mrb[28].mxu1 %vm696_vm4, %v28323_v33  ;;  %20523 = vmatmul.mubr.msk.bf16.gmra.mrb[28].mxu0 %vm696_vm4, %v28325_v57  ;;  %v4994_v40 = vrot.slane %v4992_v49, 4  ;;  %v4962_v39 = vrot.slane %v4961_v58, 4  ;;  %v4972_v17 = vrot.slane %v4971_v56, 4  ;;  %v4976_v46 = vrot.slane %v4974_v62, 5  ;;  %v17134_v62 = vld [vmem:[%s22608_s28 + $0x12c] sm:$0x1] }
 0x250   : > { %19882 = vmatprep.mubr.msk.bf16.mxu1 %vm696_vm4, %v25944_v31  ;;  %20530 = vmatprep.mubr.msk.bf16.mxu0 %vm696_vm4, %v18469_v47  ;;  %v26170_v31 = vrot.slane %v4988_v30, 5  ;;  %v4998_v25 = vshll.u32 %v17131_v3, 16  ;;  %v5003_v32 = vshrl.u32 %v17132_v36, 16  ;;  %v5006_v42 = vshll.u32 %v17132_v36, 16  ;;  %v22165_v33 = vld [vmem:[%s28058_s1 + $0x98] sm:$0xff]  }
 0x251   : > { %v5012_v47 = vshll.u32 %v17133_v8, 16  ;;  %v5016_v23 = vshrl.u32 %v17133_v8, 16  ;;  %v26184_v60 = vsel %vm22634_vm5, %v12895_v51, %v12896_v21  ;;  %v18460_v24 = vrot.slane %v26149_v28, 10  ;;  %v17136_v21 = vld [vmem:[%s22608_s28 + $0x138] sm:$0xf] }
 0x252   : > { %v12903_v6 = vrot.slane %v26152_v43, 6  ;;  %v4985_v59 = vor.u32 %v4984_v63, %v4981_v37  ;;  %v4953_v30 = vsel %vm23502_vm9, %v4948_v20, %v26142_v0  ;;  %v12902_v49 = vrot.slane %v12900_v1, 4  ;;  %v22166_v0 = vld [vmem:[%s28058_s1 + $0x1b8] sm:$0xff]  }
 0x253   : > { %v4995_v58 = vor.u32 %v4994_v40, %v26170_v31  ;;  %v12907_v56 = vrot.slane %v26176_v11, 6  ;;  %v4967_v3 = vsel %vm23502_vm9, %v4962_v39, %v26113_v35  ;;  %v4977_v36 = vsel %vm23502_vm9, %v4972_v17, %v4976_v46  ;;  %v28327_v51 = vld [vmem:[#allocation36_spill] sm:$0xff] }
 0x254   : > { %v26199_v10 = vrot.slane %v4998_v25, 5  ;;  %v18461_v2 = vrot.slane %v26173_v18, 10  ;;  %v5005_v35 = vrot.slane %v5003_v32, 4  ;;  %v5008_v28 = vrot.slane %v5006_v42, 5  ;;  %v26240_v25 = vld [vmem:[%s22608_s28 + $0x158] sm:$0xf] }
 0x255   : > { %v26211_v43 = vrot.slane %v5012_v47, 5  ;;  %v5018_v9 = vrot.slane %v5016_v23, 4  ;;  %v28326_v57 = vcombine.low %v25934_v54, %v25938_v27  ;;  %v4986_v37 = vrot.slane %v4985_v59, 4  ;;  %v26225_v27 = vld [vmem:[%s28058_s1 + $0xa0] sm:$0xff]   ;;  %v17139_v32 = vld [vmem:[%s22608_s28 + $0x148] sm:$0xf] }
 0x256   : > { %v12910_v63 = vrot.slane %v26179_v55, 6  ;;  %v5027_v8 = vshrl.u32 %v17135_v7, 16  ;;  %v5030_v20 = vshll.u32 %v17135_v7, 16  ;;  %v4996_v40 = vrot.slane %v4995_v58, 4  ;;  %v17138_v55 = vld [vmem:[%s22608_s28 + $0x144] sm:$0xf] }
 0x257   : > { %19883 = vmatmul.mubr.msk.bf16.vlgmr.msra.gmra.mrb[0].mxu1 %vm696_vm4, %v26051_v34  ;;  %20531 = vmatmul.mubr.msk.bf16.vlgmr.msra.gmra.mrb[0].mxu0 %vm696_vm4, %v28326_v57  ;;  %v28328_v34 = vld [vmem:[#allocation37_spill] sm:$0xff]  ;;  %v12909_v18 = vrot.slane %v12907_v56, 4  ;;  %v5036_v11 = vshll.u32 %v17136_v21, 16  ;;  %v5040_v54 = vshrl.u32 %v17136_v21, 16  ;;  %v26231_v39 = vcombine.low %v4943_v15, %v4953_v30  ;;  %v18432_v23 = vld [vmem:[%s22608_s28 + $0x154] sm:$0xc] }
 0x258   : > { %19915 = vmatpush3.bf16.msra.mxu1 %v28327_v51  ;;  %20563 = vmatpush3.bf16.msra.mxu0 %v28328_v34  ;;  %v26237_v17 = vsel %vm22634_vm5, %v18460_v24, %v12900_v1  ;;  %v5022_v46 = vshll.u32 %v17134_v62, 16  ;;  %v26248_v26 = vcombine.low %v4967_v3, %v4977_v36  ;;  %v5009_v15 = vor.u32 %v5008_v28, %v5005_v35  ;;  %v17137_v7 = vld [vmem:[%s22608_s28 + $0x13c] sm:$0x1]  ;;  %v18437_v57 = vld [vmem:[%s22608_s28 + $0x16c] sm:$0x3] }
 0x259   : > { %19886 = vmatprep.mubr.msk.bf16.mxu1 %vm696_vm4, %v26053_v53  ;;  %20534 = vmatprep.mubr.msk.bf16.mxu0 %vm696_vm4, %v18471_v38  ;;  %v18475_v53 = vcombine.low %v26146_v44, %v26184_v60  ;;  %v26252_v38 = vsel %vm22634_vm5, %v12902_v49, %v12903_v6  ;;  %v5019_v1 = vor.u32 %v5018_v9, %v26211_v43  ;;  %v5029_v24 = vrot.slane %v5027_v8, 4  ;;  %v18434_v49 = vld [vmem:[%s22608_s28 + $0x15c] sm:$0x3]  ;;  %v18435_v9 = vld [vmem:[%s22608_s28 + $0x164] sm:$0xc] }
 0x25a   : > { %19916 = vmatprep.subr.bf16.mxu1 %v22165_v33  ;;  %20564 = vmatprep.subr.bf16.mxu0 %v22166_v0  ;;  %v4991_v42 = vsel %vm23502_vm9, %v4986_v37, %v26170_v31  ;;  %v26261_v47 = vsel %vm22634_vm5, %v18461_v2, %v12907_v56  ;;  %v5032_v6 = vrot.slane %v5030_v20, 5  ;;  %v5001_v59 = vsel %vm23502_vm9, %v4996_v40, %v26199_v10  ;;  %v18436_v56 = vld [vmem:[%s22608_s28 + $0x168] sm:$0xf]  ;;  %v17140_v37 = vld [vmem:[%s22608_s28 + $0x14c] sm:$0x1] }
 0x25b   : > { %v26270_v30 = vsel %vm22634_vm5, %v12909_v18, %v12910_v63  ;;  %v26273_v31 = vrot.slane %v5036_v11, 5  ;;  %v5042_v58 = vrot.slane %v5040_v54, 4  ;;  %v5024_v62 = vrot.slane %v5022_v46, 5  ;;  %v17141_v63 = vld [vmem:[%s22608_s28 + $0x154] sm:$0xf] }
 0x25c   : > { %19917 = vmatpush3.bf16.msra.mxu1 %v22165_v33  ;;  %20565 = vmatpush3.bf16.msra.mxu0 %v22166_v0  ;;  %v12914_v3 = vrot.slane %v26240_v25, 6  ;;  %v5051_v36 = vshrl.u32 %v17138_v55, 16  ;;  %v5054_v2 = vshll.u32 %v17138_v55, 16  ;;  %v5010_v10 = vrot.slane %v5009_v15, 4  ;;  %v17142_v11 = vld [vmem:[%s22608_s28 + $0x158] sm:$0xf] }
 0x25d   : > { %19950 = vmatprep.subr.bf16.mxu1 %v26225_v27  ;;  %20598 = vmatprep.subr.bf16.mxu0 %v26246_v14  ;;  %v5020_v33 = vrot.slane %v5019_v1, 4  ;;  %v5060_v0 = vshll.u32 %v17139_v32, 16  ;;  %v5064_v21 = vshrl.u32 %v17139_v32, 16  ;;  %v18476_v35 = vcombine.low %v26237_v17, %v26252_v38  ;;  %v26311_v15 = vld [vmem:[%s22608_s28 + $0x174] sm:$0xc] }
 0x25e   : > { %v5033_v28 = vor.u32 %v5032_v6, %v5029_v24  ;;  %v12921_v51 = vrot.slane %v18436_v56, 6  ;;  %v26297_v19 = vcombine.low %v4991_v42, %v5001_v59  ;;  %v18462_v5 = vrot.slane %v18432_v23, 10  ;;  %v26314_v42 = vld [vmem:[%s22608_s28 + $0x178] sm:$0xf] }
 0x25f   : > { %19887 = vmatmul.mubr.msk.bf16.gmra.mrb[4].mxu1 %vm696_vm4, %v26058_v48  ;;  %20535 = vmatmul.mubr.msk.bf16.gmra.mrb[4].mxu0 %vm696_vm4, %v18472_v52  ;;  %v18477_v48 = vcombine.low %v26261_v47, %v26270_v30  ;;  %v5043_v52 = vor.u32 %v5042_v58, %v26273_v31  ;;  %v12916_v8 = vrot.slane %v12914_v3, 4  ;;  %v12917_v20 = vrot.slane %v18434_v49, 6  ;;  %v26325_v49 = vld [vmem:[%s22608_s28 + $0x17c] sm:$0x3] }
 0x260   : > { %19890 = vmatprep.mubr.msk.bf16.mxu1 %vm696_vm4, %v26125_v4  ;;  %20538 = vmatprep.mubr.msk.bf16.mxu0 %vm696_vm4, %v18473_v16  ;;  %v5046_v4 = vshll.u32 %v17137_v7, 16  ;;  %v5053_v34 = vrot.slane %v5051_v36, 4  ;;  %v5056_v40 = vrot.slane %v5054_v2, 5  ;;  %v5015_v13 = vsel %vm23502_vm9, %v5010_v10, %v26211_v43  ;;  %v17143_v10 = vld [vmem:[%s22608_s28 + $0x15c] sm:$0x1] }
 0x261   : > { %v5025_v61 = vsel %vm23502_vm9, %v5020_v33, %v5024_v62  ;;  %v26307_v16 = vrot.slane %v5060_v0, 5  ;;  %v5066_v18 = vrot.slane %v5064_v21, 4  ;;  %v5034_v54 = vrot.slane %v5033_v28, 4  ;;  %v17147_v0 = vld [vmem:[%s22608_s28 + $0x174] sm:$0xf] }
 0x262   : > { %v18463_v46 = vrot.slane %v18435_v9, 10  ;;  %v12923_v25 = vrot.slane %v12921_v51, 4  ;;  %v12924_v55 = vrot.slane %v18437_v57, 6  ;;  %v5044_v1 = vrot.slane %v5043_v52, 4  ;;  %v17148_v21 = vld [vmem:[%s22608_s28 + $0x178] sm:$0xf] }
 0x263   : > { %v5048_v32 = vrot.slane %v5046_v4, 5  ;;  %v5075_v23 = vshrl.u32 %v17141_v63, 16  ;;  %v5078_v43 = vshll.u32 %v17141_v63, 16  ;;  %v26318_v7 = vsel %vm22634_vm5, %v18462_v5, %v12914_v3  ;;  %v18441_v4 = vld [vmem:[%s22608_s28 + $0x184] sm:$0xc] }
 0x264   : > { %v26322_v24 = vsel %vm22634_vm5, %v12916_v8, %v12917_v20  ;;  %v5057_v6 = vor.u32 %v5056_v40, %v5053_v34  ;;  %v5070_v59 = vshll.u32 %v17140_v37, 16  ;;  %v26329_v58 = vcombine.low %v5015_v13, %v5025_v61  ;;  %v18443_v37 = vld [vmem:[%s22608_s28 + $0x18c] sm:$0x3] }
 0x265   : > { %v5067_v56 = vor.u32 %v5066_v18, %v26307_v16  ;;  %v5084_v62 = vshll.u32 %v17142_v11, 16  ;;  %v5088_v3 = vshrl.u32 %v17142_v11, 16  ;;  %v26343_v36 = vsel %vm22634_vm5, %v18463_v46, %v12921_v51  ;;  %v17146_v20 = vld [vmem:[%s22608_s28 + $0x16c] sm:$0x1] }
 0x266   : > { %v26347_v2 = vsel %vm22634_vm5, %v12923_v25, %v12924_v55  ;;  %v5080_v33 = vrot.slane %v5078_v43, 5  ;;  %v26361_v28 = vrot.slane %v5057_v6, 4  ;;  %v26363_v9 = vrot.slane %v5070_v59, 5  ;;  %v17149_v6 = vld [vmem:[%s22608_s28 + $0x17c] sm:$0x1] }
 0x267   : > { %19891 = vmatmul.mubr.msk.bf16.gmra.mrb[8].mxu1 %vm696_vm4, %v26131_v50  ;;  %20539 = vmatmul.mubr.msk.bf16.gmra.mrb[8].mxu0 %vm696_vm4, %v18474_v29  ;;  %v5039_v50 = vsel %vm23502_vm9, %v5034_v54, %v26273_v31  ;;  %v5049_v29 = vsel %vm23502_vm9, %v5044_v1, %v5048_v32  ;;  %v5077_v31 = vrot.slane %v5075_v23, 4  ;;  %v12928_v44 = vrot.slane %v26314_v42, 6 }
 0x268   : > { %19894 = vmatprep.mubr.msk.bf16.mxu1 %vm696_vm4, %v26231_v39  ;;  %20542 = vmatprep.mubr.msk.bf16.mxu0 %vm696_vm4, %v18475_v53  ;;  %v18464_v39 = vrot.slane %v26311_v15, 10  ;;  %v12931_v60 = vrot.slane %v26325_v49, 6  ;;  %v18442_v53 = vld [vmem:[%s22608_s28 + $0x188] sm:$0xf]  ;;  %v26368_v57 = vrot.slane %v5067_v56, 4  ;;  %v26370_v51 = vrot.slane %v5084_v62, 5 }
 0x269   : > { %v5090_v5 = vrot.slane %v5088_v3, 4  ;;  %v5094_v52 = vshll.u32 %v17143_v10, 16  ;;  %v18478_v63 = vcombine.low %v26318_v7, %v26322_v24  ;;  %v18479_v8 = vcombine.low %v26343_v36, %v26347_v2  ;;  %v18446_v10 = vld [vmem:[%s22608_s28 + $0x19c] sm:$0x3] }
 0x26a   : > { %v5099_v34 = vshrl.u32 %v17144_v41, 16  ;;  %v5102_v40 = vshll.u32 %v17144_v41, 16  ;;  %v17163_v13 = vcombine.low %v5039_v50, %v5049_v29  ;;  %v5081_v61 = vor.u32 %v5080_v33, %v5077_v31  ;;  %v17150_v31 = vld [vmem:[%s22608_s28 + $0x184] sm:$0xf] }
 0x26b   : > { %v5108_v18 = vshll.u32 %v17145_v45, 16  ;;  %v5112_v11 = vshrl.u32 %v17145_v45, 16  ;;  %v5123_v54 = vshrl.u32 %v17147_v0, 16  ;;  %v5126_v46 = vshll.u32 %v17147_v0, 16 }
 0x26c   : > { %v5132_v25 = vshll.u32 %v17148_v21, 16  ;;  %v5136_v55 = vshrl.u32 %v17148_v21, 16  ;;  %v12930_v15 = vrot.slane %v12928_v44, 4  ;;  %v5091_v1 = vor.u32 %v5090_v5, %v26370_v51 }
 0x26d   : > { %v26382_v32 = vrot.slane %v5094_v52, 5  ;;  %v12935_v42 = vrot.slane %v18442_v53, 6  ;;  %v18465_v23 = vrot.slane %v18441_v4, 10  ;;  %v12938_v43 = vrot.slane %v18443_v37, 6 }
 0x26e   : > { %v5101_v7 = vrot.slane %v5099_v34, 4  ;;  %v5104_v24 = vrot.slane %v5102_v40, 5  ;;  %v5082_v59 = vrot.slane %v5081_v61, 4  ;;  %v26398_v17 = vrot.slane %v5108_v18, 5  ;;  %v18447_v34 = vld [vmem:[%s22608_s28 + $0x1a4] sm:$0xc] }
 0x26f   : > { %19895 = vmatmul.mubr.msk.bf16.gmra.mrb[12].mxu1 %vm696_vm4, %v26248_v26  ;;  %20543 = vmatmul.mubr.msk.bf16.gmra.mrb[12].mxu0 %vm696_vm4, %v18476_v35  ;;  %v26391_v26 = vld [vmem:[%s22608_s28 + $0x198] sm:$0xf]  ;;  %v5114_v38 = vrot.slane %v5112_v11, 4  ;;  %v5118_v35 = vshll.u32 %v17146_v20, 16  ;;  %v5125_v49 = vrot.slane %v5123_v54, 4  ;;  %v5128_v56 = vrot.slane %v5126_v46, 5 }
 0x270   : > { %19898 = vmatprep.mubr.msk.bf16.mxu1 %vm696_vm4, %v26297_v19  ;;  %20546 = vmatprep.mubr.msk.bf16.mxu0 %vm696_vm4, %v18477_v48  ;;  %v18444_v19 = vld [vmem:[%s22608_s28 + $0x194] sm:$0xc]  ;;  %v26401_v62 = vrot.slane %v5132_v25, 5  ;;  %v5138_v3 = vrot.slane %v5136_v55, 4  ;;  %v5063_v47 = vsel %vm23502_vm9, %v26361_v28, %v26307_v16  ;;  %v26409_v30 = vsel %vm22634_vm5, %v18464_v39, %v12928_v44  ;;  %v17151_v28 = vld [vmem:[%s22608_s28 + $0x188] sm:$0xf] }
 0x271   : > { %v5092_v48 = vrot.slane %v5091_v1, 4  ;;  %v12937_v50 = vrot.slane %v12935_v42, 4  ;;  %v5073_v41 = vsel %vm23502_vm9, %v26368_v57, %v26363_v9  ;;  %v12932_v45 = vsel %vm22634_vm5, %v12930_v15, %v12931_v60  ;;  %v18448_v57 = vld [vmem:[%s22608_s28 + $0x1a8] sm:$0xf]  ;;  %v18449_v40 = vld [vmem:[%s22608_s28 + $0x1ac] sm:$0x3] }
 0x272   : > { %v26420_v29 = vsel %vm22634_vm5, %v18465_v23, %v12935_v42  ;;  %v5105_v16 = vor.u32 %v5104_v24, %v5101_v7  ;;  %v5087_v39 = vsel %vm23502_vm9, %v5082_v59, %v26370_v51  ;;  %v5115_v33 = vor.u32 %v5114_v38, %v26398_v17  ;;  %v17152_v25 = vld [vmem:[%s22608_s28 + $0x18c] sm:$0x1]  ;;  %v18451_v23 = vld [vmem:[%s22608_s28 + $0x1b8] sm:$0xf]  ;;  %v26459_v59 = vld [vmem:[%s22608_s28 + $0x64] sm:$0xf] }
 0x273   : > { %v12942_v0 = vrot.slane %v26391_v26, 6  ;;  %v5142_v21 = vshll.u32 %v17149_v6, 16  ;;  %v5120_v9 = vrot.slane %v5118_v35, 5  ;;  %v18466_v44 = vrot.slane %v18444_v19, 10  ;;  %v18450_v6 = vld [vmem:[%s22608_s28 + $0x1b4] sm:$0xc] }
 0x274   : > { %v5129_v60 = vor.u32 %v5128_v56, %v5125_v49  ;;  %v5139_v53 = vor.u32 %v5138_v3, %v26401_v62  ;;  %v5097_v51 = vsel %vm23502_vm9, %v5092_v48, %v26382_v32  ;;  %v12939_v5 = vsel %vm22634_vm5, %v12937_v50, %v12938_v43  ;;  %v17187_v50 = vld [vmem:[%s22608_s28 + $0x60] sm:$0x8] }
 0x275   : > { %v5147_v52 = vshrl.u32 %v17150_v31, 16  ;;  %v5150_v4 = vshll.u32 %v17150_v31, 16  ;;  %v5106_v37 = vrot.slane %v5105_v16, 4  ;;  %v12945_v20 = vrot.slane %v18446_v10, 6  ;;  %v17189_v10 = vld [vmem:[%s22608_s28 + $0x68] sm:$0x7] }
 0x276   : > { %v5156_v61 = vshll.u32 %v17151_v28, 16  ;;  %v5116_v18 = vrot.slane %v5115_v33, 4  ;;  %v12944_v11 = vrot.slane %v12942_v0, 4  ;;  %v5144_v54 = vrot.slane %v5142_v21, 5  ;;  %v17190_v16 = vld [vmem:[%s22608_s28 + $0x70] sm:$0x8] }
 0x277   : > { %19899 = vmatmul.mubr.msk.bf16.gmra.mrb[16].mxu1 %vm696_vm4, %v26329_v58  ;;  %20547 = vmatmul.mubr.msk.bf16.gmra.mrb[16].mxu0 %vm696_vm4, %v18478_v63  ;;  %v5160_v58 = vshrl.u32 %v17151_v28, 16  ;;  %v12949_v46 = vrot.slane %v18448_v57, 6  ;;  %v5130_v63 = vrot.slane %v5129_v60, 4  ;;  %v17164_v55 = vcombine.low %v5063_v47, %v5073_v41  ;;  %v18452_v47 = vld [vmem:[%s22608_s28 + $0x1bc] sm:$0x3] }
 0x278   : > { %19902 = vmatprep.mubr.msk.bf16.mxu1 %vm696_vm4, %v17163_v13  ;;  %20550 = vmatprep.mubr.msk.bf16.mxu0 %vm696_vm4, %v18479_v8  ;;  %v5140_v13 = vrot.slane %v5139_v53, 4  ;;  %v18480_v15 = vcombine.low %v26409_v30, %v12932_v45  ;;  %v5149_v1 = vrot.slane %v5147_v52, 4  ;;  %v5152_v32 = vrot.slane %v5150_v4, 5  ;;  %v26483_v31 = vld [vmem:[%s22608_s28 + $0x74] sm:$0xf] }
 0x279   : > { %v17165_v42 = vcombine.low %v5087_v39, %v5097_v51  ;;  %v18481_v36 = vcombine.low %v26420_v29, %v12939_v5  ;;  %v26449_v2 = vrot.slane %v5156_v61, 5  ;;  %v5162_v8 = vrot.slane %v5160_v58, 4  ;;  %v26490_v5 = vld [vmem:[%s22608_s28 + $0x84] sm:$0xf] }
 0x27a   : > { %v5111_v43 = vsel %vm23502_vm9, %v5106_v37, %v26398_v17  ;;  %v12943_v7 = vsel %vm22634_vm5, %v18466_v44, %v12942_v0  ;;  %v18467_v24 = vrot.slane %v18447_v34, 10  ;;  %v12952_v26 = vrot.slane %v18449_v40, 6  ;;  %v17192_v44 = vld [vmem:[%s22608_s28 + $0x78] sm:$0x7]  ;;  %v17193_v40 = vld [vmem:[%s22608_s28 + $0x80] sm:$0x8] }
 0x27b   : > { %v5121_v38 = vsel %vm23502_vm9, %v5116_v18, %v5120_v9  ;;  %v12946_v35 = vsel %vm22634_vm5, %v12944_v11, %v12945_v20  ;;  %v12951_v19 = vrot.slane %v12949_v46, 4  ;;  %v5166_v49 = vshll.u32 %v17152_v25, 16  ;;  %v17683_v20 = vld [vmem:[%s22608_s28 + $0xc8] sm:$0xf] }
 0x27c   : > { %v5135_v17 = vsel %vm23502_vm9, %v5130_v63, %v26401_v62  ;;  %v5145_v56 = vsel %vm23502_vm9, %v5140_v13, %v5144_v54  ;;  %v5153_v3 = vor.u32 %v5152_v32, %v5149_v1  ;;  %v5163_v30 = vor.u32 %v5162_v8, %v26449_v2  ;;  %v17195_v13 = vld [vmem:[%s22608_s28 + $0x88] sm:$0x7]  ;;  %v22167_v1 = vld [vmem:[%s22608_s28] sm:$0xff]  }
 0x27d   : > { %v12956_v48 = vrot.slane %v18451_v23, 6  ;;  %v17166_v41 = vcombine.low %v5111_v43, %v5121_v38  ;;  %v18482_v62 = vcombine.low %v12943_v7, %v12946_v35  ;;  %v12950_v45 = vsel %vm22634_vm5, %v18467_v24, %v12949_v46 }
 0x27e   : > { %v5577_v29 = vrot.slane %v26459_v59, 7  ;;  %v17167_v39 = vcombine.low %v5135_v17, %v5145_v56  ;;  %v12953_v33 = vsel %vm22634_vm5, %v12951_v19, %v12952_v26  ;;  %v5168_v0 = vrot.slane %v5166_v49, 5  ;;  %v17198_v26 = vld [vmem:[%s22608_s28 + $0x98] sm:$0x7]  ;;  %v17201_v17 = vld [vmem:[%s22608_s28 + $0xa8] sm:$0x7] }
 0x27f   : > { %19903 = vmatmul.mubr.msk.bf16.gmra.mrb[20].mxu1 %vm696_vm4, %v17164_v55  ;;  %20551 = vmatmul.mubr.msk.bf16.gmra.mrb[20].mxu0 %vm696_vm4, %v18480_v15  ;;  %v18468_v21 = vrot.slane %v18450_v6, 10  ;;  %v5154_v28 = vrot.slane %v5153_v3, 4  ;;  %v12959_v9 = vrot.slane %v18452_v47, 6  ;;  %v5164_v60 = vrot.slane %v5163_v30, 4  ;;  %v26517_v15 = vld [vmem:[%s22608_s28 + $0x94] sm:$0xf] }
 0x280   : > { %19906 = vmatprep.mubr.msk.bf16.mxu1 %vm696_vm4, %v17165_v42  ;;  %20554 = vmatprep.mubr.msk.bf16.mxu0 %vm696_vm4, %v18481_v36  ;;  %v12958_v53 = vrot.slane %v12956_v48, 4  ;;  %v17235_v57 = vrot.slane %v17187_v50, 11  ;;  %v5584_v51 = vrot.slane %v26483_v31, 7  ;;  %v18483_v52 = vcombine.low %v12950_v45, %v12953_v33  ;;  %v26521_v36 = vld [vmem:[%s22608_s28 + $0xa4] sm:$0xf]  ;;  %v22169_v47 = vld [vmem:[%s22608_s28 + $0x10] sm:$0xff]  }
 0x281   : > { %v5579_v4 = vrot.slane %v5577_v29, 4  ;;  %v5580_v37 = vrot.slane %v17189_v10, 7  ;;  %v17236_v34 = vrot.slane %v17190_v16, 11  ;;  %v5159_v61 = vsel %vm23502_vm9, %v5154_v28, %v26449_v2  ;;  %v17196_v2 = vld [vmem:[%s22608_s28 + $0x90] sm:$0x8] }
 0x282   : > { %v12957_v58 = vsel %vm22634_vm5, %v18468_v21, %v12956_v48  ;;  %v5169_v18 = vsel %vm23502_vm9, %v5164_v60, %v5168_v0  ;;  %v12960_v11 = vsel %vm22634_vm5, %v12958_v53, %v12959_v9  ;;  %v5586_v54 = vrot.slane %v5584_v51, 4  ;;  %v17199_v6 = vld [vmem:[%s22608_s28 + $0xa0] sm:$0x8]  ;;  %v26542_v56 = vld [vmem:[%s22608_s28 + $0xb4] sm:$0xf]  ;;  %v22180_v21 = vld [vmem:[%s28058_s1 + $0x1c8] sm:$0xff]  }
 0x283   : > { %v5587_v46 = vrot.slane %v17192_v44, 7  ;;  %v5578_v25 = vsel %vm26492_vm12, %v17235_v57, %v5577_v29  ;;  %v5581_v63 = vsel %vm26492_vm12, %v5579_v4, %v5580_v37  ;;  %v17237_v55 = vrot.slane %v17193_v40, 11  ;;  %v26546_v10 = vld [vmem:[%s22608_s28 + $0xc4] sm:$0xf]  ;;  %v17202_v16 = vld [vmem:[%s22608_s28 + $0xb0] sm:$0x8] }
 0x284   : > { %v5591_v22 = vrot.slane %v26490_v5, 7  ;;  %v17168_v12 = vcombine.low %v5159_v61, %v5169_v18  ;;  %v18484_v32 = vcombine.low %v12957_v58, %v12960_v11  ;;  %v17251_v42 = vcombine.low %v5578_v25, %v5581_v63  ;;  %v17204_v33 = vld [vmem:[%s22608_s28 + $0xb8] sm:$0x7]  ;;  %v17205_v44 = vld [vmem:[%s22608_s28 + $0xc0] sm:$0x8]  ;;  %v26587_v37 = vld [vmem:[%s28058_s1 + $0x1d0] sm:$0xff]  }
 0x285   : > { %v5594_v23 = vrot.slane %v17195_v13, 7  ;;  %v5598_v43 = vrot.slane %v26517_v15, 7  ;;  %v5585_v7 = vsel %vm26492_vm12, %v17236_v34, %v5584_v51  ;;  %v5588_v24 = vsel %vm26492_vm12, %v5586_v54, %v5587_v46  ;;  %v17207_v57 = vld [vmem:[%s22608_s28 + $0xc8] sm:$0x7]  ;;  %v26577_v51 = vld [vmem:[%s28058_s1 + $0xb0] sm:$0xff]   ;;  %v22173_v40 = vld [vmem:[%s22608_s28 + $0x40] sm:$0xff]  }
 0x286   : > { %v5593_v8 = vrot.slane %v5591_v22, 4  ;;  %v5605_v38 = vrot.slane %v26521_v36, 7  ;;  %v5592_v35 = vsel %vm26492_vm12, %v17237_v55, %v5591_v22  ;;  %v17238_v49 = vrot.slane %v17196_v2, 11  ;;  %v26591_v11 = vld [vmem:[%s22608_s28 + $0xe4] sm:$0xf] }
 0x287   : > { %19907 = vmatmul.mubr.msk.bf16.gmra.mrb[24].mxu1 %vm696_vm4, %v17166_v41  ;;  %20555 = vmatmul.mubr.msk.bf16.gmra.mrb[24].mxu0 %vm696_vm4, %v18482_v62  ;;  %v17252_v3 = vcombine.low %v5585_v7, %v5588_v24  ;;  %v5600_v30 = vrot.slane %v5598_v43, 4  ;;  %v5601_v48 = vrot.slane %v17198_v26, 7  ;;  %v17239_v50 = vrot.slane %v17199_v6, 11  ;;  %v22171_v41 = vld [vmem:[%s22608_s28 + $0x20] sm:$0xff]   ;;  %v17208_v13 = vld [vmem:[%s22608_s28 + $0xd0] sm:$0x8] }
 0x288   : > { %19910 = vmatprep.mubr.msk.bf16.mxu1 %vm696_vm4, %v17167_v39  ;;  %20558 = vmatprep.mubr.msk.bf16.mxu0 %vm696_vm4, %v18483_v52  ;;  %v5595_v19 = vsel %vm26492_vm12, %v5593_v8, %v5594_v23  ;;  %v5607_v45 = vrot.slane %v5605_v38, 4  ;;  %v5608_v29 = vrot.slane %v17201_v17, 7  ;;  %v22178_v39 = vld [vmem:[%s28058_s1 + $0xa8] sm:$0xff]   ;;  %v5612_v0 = vrot.slane %v26542_v56, 7  ;;  %v22172_v52 = vld [vmem:[%s22608_s28 + $0x30] sm:$0xff]   ;;  %v22175_v6 = vld [vmem:[%s22608_s28 + $0x60] sm:$0xff]  }
 0x289   : > { %v17253_v62 = vcombine.low %v5592_v35, %v5595_v19  ;;  %v5599_v28 = vsel %vm26492_vm12, %v17238_v49, %v5598_v43  ;;  %v5602_v9 = vsel %vm26492_vm12, %v5600_v30, %v5601_v48  ;;  %v5619_v60 = vrot.slane %v26546_v10, 7  ;;  %v17213_v8 = vld [vmem:[%s22608_s28 + $0xe8] sm:$0x7]  ;;  %v22174_v23 = vld [vmem:[%s22608_s28 + $0x50] sm:$0xff]   ;;  %v26619_v19 = vld [vmem:[%s22608_s28 + $0x104] sm:$0xf] }
 0x28a   : > { %v5606_v53 = vsel %vm26492_vm12, %v17239_v50, %v5605_v38  ;;  %v17240_v4 = vrot.slane %v17202_v16, 11  ;;  %v17254_v34 = vcombine.low %v5599_v28, %v5602_v9  ;;  %v5614_v61 = vrot.slane %v5612_v0, 4  ;;  %v26615_v24 = vld [vmem:[%s22608_s28 + $0xf4] sm:$0xf]  ;;  %v17216_v30 = vld [vmem:[%s22608_s28 + $0xf8] sm:$0x7] }
 0x28b   : > { %v5615_v58 = vrot.slane %v17204_v33, 7  ;;  %v17241_v18 = vrot.slane %v17205_v44, 11  ;;  %v5621_v46 = vrot.slane %v5619_v60, 4  ;;  %v5622_v25 = vrot.slane %v17207_v57, 7  ;;  %v22176_v33 = vld [vmem:[%s22608_s28 + $0x70] sm:$0xff]   ;;  %v22177_v44 = vld [vmem:[%s22608_s28 + $0x80] sm:$0xff]  }
 0x28c   : > { %v5613_v55 = vsel %vm26492_vm12, %v17240_v4, %v5612_v0  ;;  %v17242_v43 = vrot.slane %v17208_v13, 11  ;;  %v5640_v48 = vrot.slane %v26615_v24, 7  ;;  %v26641_v28 = vld [vmem:[%s22608_s28 + $0x114] sm:$0xf]  ;;  %v17225_v13 = vld [vmem:[%s22608_s28 + $0x128] sm:$0x7] }
 0x28d   : > { %v5616_v22 = vsel %vm26492_vm12, %v5614_v61, %v5615_v58  ;;  %v5623_v2 = vsel %vm26492_vm12, %v5621_v46, %v5622_v25 }
 0x28e   : > { %v17256_v26 = vcombine.low %v5613_v55, %v5616_v22  ;;  %v22179_v55 = vld [vmem:[%s22608_s28 + $0x90] sm:$0xff]  }
 0x28f   : > { %19911 = vmatmul.mubr.msk.bf16.gmra.mrb[28].mxu1 %vm696_vm4, %v17168_v12  ;;  %20559 = vmatmul.mubr.msk.bf16.gmra.mrb[28].mxu0 %vm696_vm4, %v18484_v32  ;;  %v17210_v12 = vld [vmem:[%s22608_s28 + $0xd8] sm:$0x7]  ;;  %v5633_v32 = vrot.slane %v26591_v11, 7 }
 0x290   : > { %19918 = vmatprep.mubr.msk.bf16.mxu1 %vm696_vm4, %v17251_v42  ;;  %20566 = vmatprep.mubr.msk.bf16.mxu0 %vm696_vm4, %v22167_v1  ;;  %v17211_v1 = vld [vmem:[%s22608_s28 + $0xe0] sm:$0x8]  ;;  %v5620_v42 = vsel %vm26492_vm12, %v17241_v18, %v5619_v60  ;;  %v5629_v38 = vrot.slane %v17210_v12, 7  ;;  %v5642_v60 = vrot.slane %v5640_v48, 4  ;;  %v17222_v18 = vld [vmem:[%s22608_s28 + $0x118] sm:$0x7] }
 0x291   : > { %v17243_v35 = vrot.slane %v17211_v1, 11  ;;  %v17257_v49 = vcombine.low %v5620_v42, %v5623_v2  ;;  %v5635_v17 = vrot.slane %v5633_v32, 4  ;;  %v26667_v1 = vld [vmem:[%s22608_s28 + $0x134] sm:$0xf]  ;;  %v22181_v42 = vld [vmem:[%s22608_s28 + $0xa0] sm:$0xff]   ;;  %v5657_v2 = vrot.slane %v17222_v18, 7 }
 0x292   : > { %v22185_v18 = vld [vmem:[%s22608_s28 + $0xe0] sm:$0xff]  }
 0x297   : > { %19919 = vmatmul.mubr.msk.bf16.vlgmr.msra.gmra.mrb[0].mxu1 %vm696_vm4, %v17252_v3  ;;  %20567 = vmatmul.mubr.msk.bf16.vlgmr.msra.gmra.mrb[0].mxu0 %vm696_vm4, %v22169_v47  ;;  %v5636_v3 = vrot.slane %v17213_v8, 7  ;;  %v17214_v47 = vld [vmem:[%s22608_s28 + $0xf0] sm:$0x8] }
 0x298   : > { %19951 = vmatpush3.bf16.msra.mxu1 %v26225_v27  ;;  %20599 = vmatpush3.bf16.msra.mxu0 %v26246_v14  ;;  %v5609_v27 = vsel %vm26492_vm12, %v5607_v45, %v5608_v29  ;;  %v26582_v14 = vld [vmem:[%s22608_s28 + $0xd4] sm:$0xf]  ;;  %v5647_v45 = vrot.slane %v26619_v19, 7  ;;  %v5634_v29 = vsel %vm26492_vm12, %v17243_v35, %v5633_v32  ;;  %v17244_v0 = vrot.slane %v17214_v47, 11 }
 0x299   : > { %19922 = vmatprep.mubr.msk.bf16.mxu1 %vm696_vm4, %v17253_v62  ;;  %20570 = vmatprep.mubr.msk.bf16.mxu0 %vm696_vm4, %v22171_v41  ;;  %v17255_v54 = vcombine.low %v5606_v53, %v5609_v27  ;;  %v5626_v63 = vrot.slane %v26582_v14, 7  ;;  %v17217_v62 = vld [vmem:[%s22608_s28 + $0x100] sm:$0x8]  ;;  %v5637_v16 = vsel %vm26492_vm12, %v5635_v17, %v5636_v3  ;;  %v26645_v27 = vld [vmem:[%s22608_s28 + $0x124] sm:$0xf]  ;;  %v5668_v35 = vrot.slane %v26667_v1, 7 }
 0x29a   : > { %19952 = vmatprep.subr.bf16.mxu1 %v22178_v39  ;;  %20600 = vmatprep.subr.bf16.mxu0 %v22180_v21  ;;  %v17245_v53 = vrot.slane %v17217_v62, 11  ;;  %v17259_v57 = vcombine.low %v5634_v29, %v5637_v16  ;;  %v5641_v61 = vsel %vm26492_vm12, %v17244_v0, %v5640_v48  ;;  %v5661_v46 = vrot.slane %v26645_v27, 7  ;;  %v17229_v3 = vld [vmem:[%s22608_s28 + $0x140] sm:$0x8]  ;;  %v26694_v0 = vld [vmem:[%s22608_s28 + $0x154] sm:$0xf] }
 0x29b   : > { %v5628_v7 = vrot.slane %v5626_v63, 4  ;;  %v5627_v50 = vsel %vm26492_vm12, %v17242_v43, %v5626_v63  ;;  %v22183_v16 = vld [vmem:[%s22608_s28 + $0xc0] sm:$0xff]  }
 0x29c   : > { %19953 = vmatpush3.bf16.msra.mxu1 %v22178_v39  ;;  %20601 = vmatpush3.bf16.msra.mxu0 %v22180_v21  ;;  %v17219_v39 = vld [vmem:[%s22608_s28 + $0x108] sm:$0x7]  ;;  %v5643_v21 = vrot.slane %v17216_v30, 7  ;;  %v5648_v25 = vsel %vm26492_vm12, %v17245_v53, %v5647_v45  ;;  %v5663_v43 = vrot.slane %v5661_v46, 4 }
 0x29d   : > { %19986 = vmatprep.subr.bf16.mxu1 %v26577_v51  ;;  %20634 = vmatprep.subr.bf16.mxu0 %v26587_v37  ;;  %v5630_v41 = vsel %vm26492_vm12, %v5628_v7, %v5629_v38  ;;  %v5650_v4 = vrot.slane %v17219_v39, 7  ;;  %v5664_v7 = vrot.slane %v17225_v13, 7  ;;  %v17228_v38 = vld [vmem:[%s22608_s28 + $0x138] sm:$0x7]  ;;  %v5670_v39 = vrot.slane %v5668_v35, 4 }
 0x29e   : > { %v17258_v9 = vcombine.low %v5627_v50, %v5630_v41  ;;  %v5644_v58 = vsel %vm26492_vm12, %v5642_v60, %v5643_v21  ;;  %v22182_v50 = vld [vmem:[%s22608_s28 + $0xb0] sm:$0xff]   ;;  %v5671_v62 = vrot.slane %v17228_v38, 7  ;;  %v22208_v38 = vld [vmem:[%s28058_s1 + $0xb8] sm:$0xff]  }
 0x29f   : > { %19923 = vmatmul.mubr.msk.bf16.gmra.mrb[4].mxu1 %vm696_vm4, %v17254_v34  ;;  %20571 = vmatmul.mubr.msk.bf16.gmra.mrb[4].mxu0 %vm696_vm4, %v22172_v52  ;;  %v5649_v52 = vrot.slane %v5647_v45, 4  ;;  %v5654_v34 = vrot.slane %v26641_v28, 7  ;;  %v17260_v32 = vcombine.low %v5641_v61, %v5644_v58  ;;  %v5665_v30 = vsel %vm26492_vm12, %v5663_v43, %v5664_v7  ;;  %v17231_v45 = vld [vmem:[%s22608_s28 + $0x148] sm:$0x7]  ;;  %v22184_v61 = vld [vmem:[%s22608_s28 + $0xd0] sm:$0xff]  }
 0x2a0   : > { %19926 = vmatprep.mubr.msk.bf16.mxu1 %vm696_vm4, %v17255_v54  ;;  %20574 = vmatprep.mubr.msk.bf16.mxu0 %vm696_vm4, %v22173_v40  ;;  %v17220_v40 = vld [vmem:[%s22608_s28 + $0x110] sm:$0x8]  ;;  %v17223_v54 = vld [vmem:[%s22608_s28 + $0x120] sm:$0x8]  ;;  %v5672_v53 = vsel %vm26492_vm12, %v5670_v39, %v5671_v62  ;;  %v22191_v7 = vld [vmem:[%s22608_s28 + $0x14] sm:$0xff]  }
 0x2a1   : > { %v5651_v63 = vsel %vm26492_vm12, %v5649_v52, %v5650_v4  ;;  %v17246_v22 = vrot.slane %v17220_v40, 11  ;;  %v5656_v12 = vrot.slane %v5654_v34, 4  ;;  %v17247_v8 = vrot.slane %v17223_v54, 11  ;;  %v17234_v40 = vld [vmem:[%s22608_s28 + $0x158] sm:$0x7] }
 0x2a2   : > { %v5682_v52 = vrot.slane %v26694_v0, 7  ;;  %v17292_v62 = vld [vmem:[%s22608_s28 + $0xd8] sm:$0xf] }
 0x2a3   : > { %v5658_v17 = vsel %vm26492_vm12, %v5656_v12, %v5657_v2  ;;  %v5662_v47 = vsel %vm26492_vm12, %v17247_v8, %v5661_v46  ;;  %v22188_v2 = vld [vmem:[%s22608_s28 + $0x4] sm:$0xff]   ;;  %v17286_v8 = vld [vmem:[%s22608_s28 + $0x78] sm:$0xf] }
 0x2a4   : > { %v17263_v21 = vcombine.low %v5662_v47, %v5665_v30  ;;  %v17302_v43 = vcombine.low %v26483_v31, %v17286_v8  ;;  %v17288_v31 = vld [vmem:[%s22608_s28 + $0x98] sm:$0xf] }
 0x2a5   : > { %v17294_v39 = vld [vmem:[%s22608_s28 + $0xf8] sm:$0xf] }
 0x2a7   : > { %19927 = vmatmul.mubr.msk.bf16.gmra.mrb[8].mxu1 %vm696_vm4, %v17256_v26  ;;  %20575 = vmatmul.mubr.msk.bf16.gmra.mrb[8].mxu0 %vm696_vm4, %v22174_v23  ;;  %v17261_v23 = vcombine.low %v5648_v25, %v5651_v63  ;;  %v17226_v26 = vld [vmem:[%s22608_s28 + $0x130] sm:$0x8]  ;;  %v5684_v25 = vrot.slane %v5682_v52, 4  ;;  %v5685_v63 = vrot.slane %v17234_v40, 7  ;;  %v17335_v40 = vld [vmem:[%s22608_s28 + $0x64] sm:$0xe] }
 0x2a8   : > { %19930 = vmatprep.mubr.msk.bf16.mxu1 %vm696_vm4, %v17257_v49  ;;  %20578 = vmatprep.mubr.msk.bf16.mxu0 %vm696_vm4, %v22175_v6  ;;  %v26672_v6 = vld [vmem:[%s22608_s28 + $0x144] sm:$0xf]  ;;  %v5655_v49 = vsel %vm26492_vm12, %v17246_v22, %v5654_v34  ;;  %v17248_v41 = vrot.slane %v17226_v26, 11  ;;  %v17285_v22 = vld [vmem:[%s22608_s28 + $0x68] sm:$0xf] }
 0x2a9   : > { %v5675_v48 = vrot.slane %v26672_v6, 7  ;;  %v17262_v29 = vcombine.low %v5655_v49, %v5658_v17  ;;  %v22194_v26 = vld [vmem:[%s22608_s28 + $0x24] sm:$0xff]   ;;  %v22196_v17 = vld [vmem:[%s22608_s28 + $0x34] sm:$0xff]  }
 0x2aa   : > { %v5669_v60 = vsel %vm26492_vm12, %v17248_v41, %v5668_v35  ;;  %v22210_v35 = vld [vmem:[%s28058_s1 + $0x1d8] sm:$0xff]   ;;  %v26751_v49 = vld [vmem:[%s28058_s1 + $0xc0] sm:$0xff]  }
 0x2ab   : > { %v17264_v58 = vcombine.low %v5669_v60, %v5672_v53  ;;  %v22202_v41 = vld [vmem:[%s22608_s28 + $0x64] sm:$0xff]   ;;  %v22214_v53 = vld [vmem:[%s22608_s28 + $0xb4] sm:$0xff]  }
 0x2ac   : > { %v17297_v60 = vld [vmem:[%s22608_s28 + $0x128] sm:$0xf] }
 0x2af   : > { %19931 = vmatmul.mubr.msk.bf16.gmra.mrb[12].mxu1 %vm696_vm4, %v17258_v9  ;;  %20579 = vmatmul.mubr.msk.bf16.gmra.mrb[12].mxu0 %vm696_vm4, %v22176_v33  ;;  %v17249_v33 = vrot.slane %v17229_v3, 11  ;;  %v5677_v9 = vrot.slane %v5675_v48, 4  ;;  %v22198_v3 = vld [vmem:[%s22608_s28 + $0x44] sm:$0xff]  }
 0x2b0   : > { %19934 = vmatprep.mubr.msk.bf16.mxu1 %vm696_vm4, %v17259_v57  ;;  %20582 = vmatprep.mubr.msk.bf16.mxu0 %vm696_vm4, %v22177_v44  ;;  %v5678_v44 = vrot.slane %v17231_v45, 7  ;;  %v17232_v57 = vld [vmem:[%s22608_s28 + $0x150] sm:$0x8]  ;;  %v17293_v45 = vld [vmem:[%s22608_s28 + $0xe8] sm:$0xf] }
 0x2b1   : > { %v5676_v4 = vsel %vm26492_vm12, %v17249_v33, %v5675_v48  ;;  %v17250_v54 = vrot.slane %v17232_v57, 11  ;;  %v22200_v48 = vld [vmem:[%s22608_s28 + $0x54] sm:$0xff]   ;;  %v17295_v33 = vld [vmem:[%s22608_s28 + $0x108] sm:$0xf] }
 0x2b2   : > { %v5679_v34 = vsel %vm26492_vm12, %v5677_v9, %v5678_v44  ;;  %v22212_v9 = vld [vmem:[%s22608_s28 + $0xa4] sm:$0xff]   ;;  %v17296_v44 = vld [vmem:[%s22608_s28 + $0x118] sm:$0xf] }
 0x2b3   : > { %v17265_v46 = vcombine.low %v5676_v4, %v5679_v34  ;;  %v5683_v13 = vsel %vm26492_vm12, %v17250_v54, %v5682_v52  ;;  %v22216_v57 = vld [vmem:[%s22608_s28 + $0xc4] sm:$0xff]   ;;  %v17298_v4 = vld [vmem:[%s22608_s28 + $0x138] sm:$0xf] }
 0x2b4   : > { %v17336_v52 = vld [vmem:[%s22608_s28 + $0x68] sm:$0xf] }
 0x2b5   : > { %v17299_v34 = vld [vmem:[%s22608_s28 + $0x148] sm:$0xf] }
 0x2b6   : > { %v22220_v54 = vld [vmem:[%s22608_s28 + $0xe4] sm:$0xff]  }
 0x2b7   : > { %19935 = vmatmul.mubr.msk.bf16.gmra.mrb[16].mxu1 %vm696_vm4, %v17260_v32  ;;  %20583 = vmatmul.mubr.msk.bf16.gmra.mrb[16].mxu0 %vm696_vm4, %v22179_v55  ;;  %v5686_v55 = vsel %vm26492_vm12, %v5684_v25, %v5685_v63  ;;  %v22186_v32 = vld [vmem:[%s22608_s28 + $0xf0] sm:$0xff]  }
 0x2b8   : > { %19938 = vmatprep.mubr.msk.bf16.mxu1 %vm696_vm4, %v17261_v23  ;;  %20586 = vmatprep.mubr.msk.bf16.mxu0 %vm696_vm4, %v22181_v42  ;;  %v17266_v12 = vcombine.low %v5683_v13, %v5686_v55  ;;  %v17301_v42 = vcombine.low %v26459_v59, %v17285_v22  ;;  %v17287_v23 = vld [vmem:[%s22608_s28 + $0x88] sm:$0xf]  ;;  %v17339_v13 = vld [vmem:[%s22608_s28 + $0x78] sm:$0xf] }
 0x2b9   : > { %v17303_v59 = vcombine.low %v26490_v5, %v17287_v23  ;;  %v17289_v5 = vld [vmem:[%s22608_s28 + $0xa8] sm:$0xf]  ;;  %v6437_v22 = vrot.slane %v17339_v13, 5 }
 0x2ba   : > { %v17305_v47 = vcombine.low %v26521_v36, %v17289_v5  ;;  %v17291_v36 = vld [vmem:[%s22608_s28 + $0xc8] sm:$0xf] }
 0x2bb   : > { %v22223_v5 = vld [vmem:[%s22608_s28 + $0x8] sm:$0xff]  }
 0x2bf   : > { %19939 = vmatmul.mubr.msk.bf16.gmra.mrb[20].mxu1 %vm696_vm4, %v17262_v29  ;;  %20587 = vmatmul.mubr.msk.bf16.gmra.mrb[20].mxu0 %vm696_vm4, %v22182_v50  ;;  %v17307_v50 = vcombine.low %v26546_v10, %v17291_v36  ;;  %v22204_v29 = vld [vmem:[%s22608_s28 + $0x74] sm:$0xff]   ;;  %v17309_v10 = vcombine.low %v26591_v11, %v17293_v45  ;;  %v17311_v11 = vcombine.low %v26619_v19, %v17295_v33 }
 0x2c0   : > { %19942 = vmatprep.mubr.msk.bf16.mxu1 %vm696_vm4, %v17263_v21  ;;  %20590 = vmatprep.mubr.msk.bf16.mxu0 %vm696_vm4, %v22183_v16  ;;  %v22206_v16 = vld [vmem:[%s22608_s28 + $0x84] sm:$0xff]   ;;  %v22209_v21 = vld [vmem:[%s22608_s28 + $0x94] sm:$0xff]   ;;  %v17313_v19 = vcombine.low %v26645_v27, %v17297_v60  ;;  %v17314_v27 = vcombine.low %v26667_v1, %v17298_v4 }
 0x2c1   : > { %v17342_v1 = vld [vmem:[%s22608_s28 + $0x88] sm:$0xf]  ;;  %v17351_v60 = vld [vmem:[%s22608_s28 + $0xb8] sm:$0xf] }
 0x2c2   : > { %v6444_v8 = vrot.slane %v17342_v1, 5 }
 0x2c7   : > { %19943 = vmatmul.mubr.msk.bf16.gmra.mrb[24].mxu1 %vm696_vm4, %v17264_v58  ;;  %20591 = vmatmul.mubr.msk.bf16.gmra.mrb[24].mxu0 %vm696_vm4, %v22184_v61  ;;  %v17337_v61 = vld [vmem:[%s22608_s28 + $0x6c] sm:$0x1]  ;;  %v22218_v58 = vld [vmem:[%s22608_s28 + $0xd4] sm:$0xff]  }
 0x2c8   : > { %19946 = vmatprep.mubr.msk.bf16.mxu1 %vm696_vm4, %v17265_v46  ;;  %20594 = vmatprep.mubr.msk.bf16.mxu0 %vm696_vm4, %v22185_v18  ;;  %v17315_v18 = vcombine.low %v26672_v6, %v17299_v34  ;;  %v17383_v46 = vrot.slane %v17335_v40, 9  ;;  %v6433_v63 = vrot.slane %v17337_v61, 5  ;;  %v17300_v6 = vld [vmem:[%s22608_s28 + $0x158] sm:$0xf]  ;;  %v6465_v34 = vrot.slane %v17351_v60, 5 }
 0x2c9   : > { %v17316_v23 = vcombine.low %v26694_v0, %v17300_v6  ;;  %v17350_v61 = vld [vmem:[%s22608_s28 + $0xb4] sm:$0xe]  ;;  %v22232_v60 = vld [vmem:[%s22608_s28 + $0x78] sm:$0xff]  }
 0x2ca   : > { %v17388_v13 = vrot.slane %v17350_v61, 9  ;;  %v6467_v1 = vrot.slane %v6465_v34, 4  ;;  %v17372_v61 = vld [vmem:[%s22608_s28 + $0x128] sm:$0xf] }
 0x2cf   : > { %19947 = vmatmul.mubr.msk.bf16.gmra.mrb[28].mxu1 %vm696_vm4, %v17266_v12  ;;  %20595 = vmatmul.mubr.msk.bf16.gmra.mrb[28].mxu0 %vm696_vm4, %v22186_v32 }
 0x2d0   : > { %19954 = vmatprep.mubr.msk.bf16.mxu1 %vm696_vm4, %v17301_v42  ;;  %20602 = vmatprep.mubr.msk.bf16.mxu0 %vm696_vm4, %v22188_v2  ;;  %v17338_v42 = vld [vmem:[%s22608_s28 + $0x74] sm:$0xe]  ;;  %v17340_v2 = vld [vmem:[%s22608_s28 + $0x7c] sm:$0x1] }
 0x2d7   : > { %19955 = vmatmul.mubr.msk.bf16.vlgmr.msra.gmra.mrb[0].mxu1 %vm696_vm4, %v17302_v43  ;;  %20603 = vmatmul.mubr.msk.bf16.vlgmr.msra.gmra.mrb[0].mxu0 %vm696_vm4, %v22191_v7  ;;  %v17341_v43 = vld [vmem:[%s22608_s28 + $0x84] sm:$0xe]  ;;  %v17343_v7 = vld [vmem:[%s22608_s28 + $0x8c] sm:$0x1] }
 0x2d8   : > { %19987 = vmatpush3.bf16.msra.mxu1 %v26577_v51  ;;  %20635 = vmatpush3.bf16.msra.mxu0 %v26587_v37  ;;  %v26758_v51 = vld [vmem:[%s28058_s1 + $0x1e0] sm:$0xff]   ;;  %v17304_v37 = vcombine.low %v26517_v15, %v17288_v31  ;;  %v17290_v15 = vld [vmem:[%s22608_s28 + $0xb8] sm:$0xf]  ;;  %v6440_v31 = vrot.slane %v17340_v2, 5 }
 0x2d9   : > { %19958 = vmatprep.mubr.msk.bf16.mxu1 %vm696_vm4, %v17303_v59  ;;  %20606 = vmatprep.mubr.msk.bf16.mxu0 %vm696_vm4, %v22194_v26  ;;  %v17306_v30 = vcombine.low %v26542_v56, %v17290_v15  ;;  %v17308_v56 = vcombine.low %v26582_v14, %v17292_v62  ;;  %v17310_v14 = vcombine.low %v26615_v24, %v17294_v39  ;;  %v22222_v26 = vld [vmem:[%s22608_s28 + $0xf4] sm:$0xff]   ;;  %v17348_v15 = vld [vmem:[%s22608_s28 + $0xa8] sm:$0xf] }
 0x2da   : > { %19988 = vmatprep.subr.bf16.mxu1 %v22208_v38  ;;  %20636 = vmatprep.subr.bf16.mxu0 %v22210_v35  ;;  %v17312_v24 = vcombine.low %v26641_v28, %v17296_v44  ;;  %v6430_v28 = vrot.slane %v17336_v52, 5  ;;  %v17357_v2 = vld [vmem:[%s22608_s28 + $0xd8] sm:$0xf] }
 0x2dc   : > { %19989 = vmatpush3.bf16.msra.mxu1 %v22208_v38  ;;  %20637 = vmatpush3.bf16.msra.mxu0 %v22210_v35  ;;  %v6432_v25 = vrot.slane %v6430_v28, 4  ;;  %v6431_v12 = vsel %vm26819_vm15, %v17383_v46, %v6430_v28  ;;  %v17384_v38 = vrot.slane %v17338_v42, 9  ;;  %v6439_v35 = vrot.slane %v6437_v22, 4 }
 0x2dd   : > { %20022 = vmatprep.subr.bf16.mxu1 %v26751_v49  ;;  %20670 = vmatprep.subr.bf16.mxu0 %v26758_v51 }
 0x2de   : > { %v6434_v32 = vsel %vm26819_vm15, %v6432_v25, %v6433_v63  ;;  %v6438_v0 = vsel %vm26819_vm15, %v17384_v38, %v6437_v22  ;;  %v6441_v36 = vsel %vm26819_vm15, %v6439_v35, %v6440_v31  ;;  %v22228_v25 = vld [vmem:[%s22608_s28 + $0x38] sm:$0xff]   ;;  %v22229_v22 = vld [vmem:[%s22608_s28 + $0x48] sm:$0xff]   ;;  %v17356_v38 = vld [vmem:[%s22608_s28 + $0xd4] sm:$0xe] }
 0x2df   : > { %19959 = vmatmul.mubr.msk.bf16.gmra.mrb[4].mxu1 %vm696_vm4, %v17304_v37  ;;  %20607 = vmatmul.mubr.msk.bf16.gmra.mrb[4].mxu0 %vm696_vm4, %v22196_v17  ;;  %v17399_v59 = vcombine.low %v6431_v12, %v6434_v32  ;;  %v17345_v17 = vld [vmem:[%s22608_s28 + $0x98] sm:$0xf]  ;;  %v17385_v37 = vrot.slane %v17341_v43, 9  ;;  %v17358_v35 = vld [vmem:[%s22608_s28 + $0xdc] sm:$0x1] }
 0x2e0   : > { %19962 = vmatprep.mubr.msk.bf16.mxu1 %vm696_vm4, %v17305_v47  ;;  %20610 = vmatprep.mubr.msk.bf16.mxu0 %vm696_vm4, %v22198_v3  ;;  %v6446_v3 = vrot.slane %v6444_v8, 4  ;;  %v6447_v47 = vrot.slane %v17343_v7, 5  ;;  %v6479_v7 = vrot.slane %v17357_v2, 5 }
 0x2e1   : > { %v6445_v62 = vsel %vm26819_vm15, %v17385_v37, %v6444_v8  ;;  %v17360_v8 = vld [vmem:[%s22608_s28 + $0xe8] sm:$0xf] }
 0x2e2   : > { %v6448_v45 = vsel %vm26819_vm15, %v6446_v3, %v6447_v47  ;;  %v6486_v31 = vrot.slane %v17360_v8, 5  ;;  %v22230_v3 = vld [vmem:[%s22608_s28 + $0x58] sm:$0xff]  }
 0x2e7   : > { %19963 = vmatmul.mubr.msk.bf16.gmra.mrb[8].mxu1 %vm696_vm4, %v17306_v30  ;;  %20611 = vmatmul.mubr.msk.bf16.gmra.mrb[8].mxu0 %vm696_vm4, %v22200_v48  ;;  %v6451_v30 = vrot.slane %v17345_v17, 5  ;;  %v17344_v48 = vld [vmem:[%s22608_s28 + $0x94] sm:$0xe]  ;;  %v17361_v17 = vld [vmem:[%s22608_s28 + $0xec] sm:$0x1] }
 0x2e8   : > { %19966 = vmatprep.mubr.msk.bf16.mxu1 %vm696_vm4, %v17307_v50  ;;  %20614 = vmatprep.mubr.msk.bf16.mxu0 %vm696_vm4, %v22202_v41  ;;  %v17346_v50 = vld [vmem:[%s22608_s28 + $0x9c] sm:$0x1]  ;;  %v6458_v41 = vrot.slane %v17348_v15, 5  ;;  %v17386_v39 = vrot.slane %v17344_v48, 9  ;;  %v17390_v15 = vrot.slane %v17356_v38, 9 }
 0x2e9   : > { %v6453_v33 = vrot.slane %v6451_v30, 4  ;;  %v17378_v38 = vld [vmem:[%s22608_s28 + $0x148] sm:$0xf] }
 0x2ea   : > { %v6452_v52 = vsel %vm26819_vm15, %v17386_v39, %v6451_v30  ;;  %v22231_v30 = vld [vmem:[%s22608_s28 + $0x68] sm:$0xff]  }
 0x2ef   : > { %19967 = vmatmul.mubr.msk.bf16.gmra.mrb[12].mxu1 %vm696_vm4, %v17308_v56  ;;  %20615 = vmatmul.mubr.msk.bf16.gmra.mrb[12].mxu0 %vm696_vm4, %v22204_v29  ;;  %v17347_v56 = vld [vmem:[%s22608_s28 + $0xa4] sm:$0xe]  ;;  %v17349_v29 = vld [vmem:[%s22608_s28 + $0xac] sm:$0x1] }
 0x2f0   : > { %19970 = vmatprep.mubr.msk.bf16.mxu1 %vm696_vm4, %v17309_v10  ;;  %20618 = vmatprep.mubr.msk.bf16.mxu0 %vm696_vm4, %v22206_v16  ;;  %v17400_v10 = vcombine.low %v6438_v0, %v6441_v36  ;;  %v22225_v16 = vld [vmem:[%s22608_s28 + $0x18] sm:$0xff]   ;;  %v6461_v44 = vrot.slane %v17349_v29, 5  ;;  %v6481_v0 = vrot.slane %v6479_v7, 4  ;;  %v6482_v36 = vrot.slane %v17358_v35, 5 }
 0x2f2   : > { %v6483_v29 = vsel %vm26819_vm15, %v6481_v0, %v6482_v36  ;;  %v17377_v0 = vld [vmem:[%s22608_s28 + $0x144] sm:$0xe]  ;;  %v17379_v36 = vld [vmem:[%s22608_s28 + $0x14c] sm:$0x1] }
 0x2f7   : > { %19971 = vmatmul.mubr.msk.bf16.gmra.mrb[16].mxu1 %vm696_vm4, %v17310_v14  ;;  %20619 = vmatmul.mubr.msk.bf16.gmra.mrb[16].mxu0 %vm696_vm4, %v22209_v21  ;;  %v6454_v14 = vrot.slane %v17346_v50, 5  ;;  %v17401_v21 = vcombine.low %v6445_v62, %v6448_v45  ;;  %v6488_v50 = vrot.slane %v6486_v31, 4  ;;  %v17363_v62 = vld [vmem:[%s22608_s28 + $0xf8] sm:$0xf]  ;;  %v17366_v45 = vld [vmem:[%s22608_s28 + $0x108] sm:$0xf] }
 0x2f8   : > { %19974 = vmatprep.mubr.msk.bf16.mxu1 %vm696_vm4, %v17311_v11  ;;  %20622 = vmatprep.mubr.msk.bf16.mxu0 %vm696_vm4, %v22212_v9  ;;  %v17387_v11 = vrot.slane %v17347_v56, 9  ;;  %v6460_v9 = vrot.slane %v6458_v41, 4  ;;  %v6480_v56 = vsel %vm26819_vm15, %v17390_v15, %v6479_v7  ;;  %v6528_v15 = vrot.slane %v17378_v38, 5  ;;  %v22243_v38 = vld [vmem:[%s22608_s28 + $0x80] sm:$0xff]  }
 0x2f9   : > { %v6455_v4 = vsel %vm26819_vm15, %v6453_v33, %v6454_v14  ;;  %v17362_v33 = vld [vmem:[%s22608_s28 + $0xf4] sm:$0xe]  ;;  %v17364_v14 = vld [vmem:[%s22608_s28 + $0xfc] sm:$0x1] }
 0x2fa   : > { %v6459_v28 = vsel %vm26819_vm15, %v17387_v11, %v6458_v41  ;;  %v6462_v40 = vsel %vm26819_vm15, %v6460_v9, %v6461_v44  ;;  %v17402_v46 = vcombine.low %v6452_v52, %v6455_v4  ;;  %v6489_v41 = vrot.slane %v17361_v17, 5  ;;  %v17365_v11 = vld [vmem:[%s22608_s28 + $0x104] sm:$0xe]  ;;  %v17367_v9 = vld [vmem:[%s22608_s28 + $0x10c] sm:$0x1] }
 0x2fb   : > { %v17403_v63 = vcombine.low %v6459_v28, %v6462_v40  ;;  %v17406_v44 = vcombine.low %v6480_v56, %v6483_v29  ;;  %v22233_v52 = vld [vmem:[%s22608_s28 + $0x88] sm:$0xff]   ;;  %v17393_v4 = vrot.slane %v17365_v11, 9  ;;  %v6503_v28 = vrot.slane %v17367_v9, 5  ;;  %v17369_v40 = vld [vmem:[%s22608_s28 + $0x118] sm:$0xf] }
 0x2fc   : > { %v6490_v39 = vsel %vm26819_vm15, %v6488_v50, %v6489_v41  ;;  %v22239_v56 = vld [vmem:[%s22608_s28 + $0xc8] sm:$0xff]   ;;  %v17397_v29 = vrot.slane %v17377_v0, 9  ;;  %v17436_v0 = vld [vmem:[%s22608_s28 + $0xb8] sm:$0x7] }
 0x2fe   : > { %v6529_v11 = vsel %vm26819_vm15, %v17397_v29, %v6528_v15 }
 0x2ff   : > { %19975 = vmatmul.mubr.msk.bf16.gmra.mrb[20].mxu1 %vm696_vm4, %v17312_v24  ;;  %20623 = vmatmul.mubr.msk.bf16.gmra.mrb[20].mxu0 %vm696_vm4, %v22214_v53  ;;  %v22227_v24 = vld [vmem:[%s22608_s28 + $0x28] sm:$0xff]  }
 0x300   : > { %19978 = vmatprep.mubr.msk.bf16.mxu1 %vm696_vm4, %v17313_v19  ;;  %20626 = vmatprep.mubr.msk.bf16.mxu0 %vm696_vm4, %v22216_v57  ;;  %v17354_v53 = vld [vmem:[%s22608_s28 + $0xc8] sm:$0xf] }
 0x301   : > { %v22234_v19 = vld [vmem:[%s28058_s1 + $0xc8] sm:$0xff]  }
 0x302   : > { %v22236_v57 = vld [vmem:[%s28058_s1 + $0x1e8] sm:$0xff]  }
 0x307   : > { %19979 = vmatmul.mubr.msk.bf16.gmra.mrb[24].mxu1 %vm696_vm4, %v17314_v27  ;;  %20627 = vmatmul.mubr.msk.bf16.gmra.mrb[24].mxu0 %vm696_vm4, %v22218_v58  ;;  %v6472_v27 = vrot.slane %v17354_v53, 5  ;;  %v26886_v58 = vld [vmem:[%s28058_s1 + $0xd0] sm:$0xff]   ;;  %v17392_v53 = vrot.slane %v17362_v33, 9 }
 0x308   : > { %19982 = vmatprep.mubr.msk.bf16.mxu1 %vm696_vm4, %v17315_v18  ;;  %20630 = vmatprep.mubr.msk.bf16.mxu0 %vm696_vm4, %v22220_v54  ;;  %v17355_v18 = vld [vmem:[%s22608_s28 + $0xcc] sm:$0x1]  ;;  %v26894_v54 = vld [vmem:[%s28058_s1 + $0x1f0] sm:$0xff]  }
 0x309   : > { %v6474_v32 = vrot.slane %v6472_v27, 4  ;;  %v6475_v42 = vrot.slane %v17355_v18, 5 }
 0x30f   : > { %19983 = vmatmul.mubr.msk.bf16.gmra.mrb[28].mxu1 %vm696_vm4, %v17316_v23  ;;  %20631 = vmatmul.mubr.msk.bf16.gmra.mrb[28].mxu0 %vm696_vm4, %v22222_v26  ;;  %v6466_v23 = vsel %vm26819_vm15, %v17388_v13, %v6465_v34  ;;  %v6514_v13 = vrot.slane %v17372_v61, 5  ;;  %v22241_v61 = vld [vmem:[%s22608_s28 + $0xe8] sm:$0xff]  }
 0x310   : > { %19990 = vmatprep.mubr.msk.bf16.mxu1 %vm696_vm4, %v17399_v59  ;;  %20638 = vmatprep.mubr.msk.bf16.mxu0 %vm696_vm4, %v22223_v5  ;;  %v6476_v59 = vsel %vm26819_vm15, %v6474_v32, %v6475_v42  ;;  %v17359_v5 = vld [vmem:[%s22608_s28 + $0xe4] sm:$0xe] }
 0x311   : > { %v17391_v48 = vrot.slane %v17359_v5, 9  ;;  %v6516_v7 = vrot.slane %v6514_v13, 4 }
 0x317   : > { %19991 = vmatmul.mubr.msk.bf16.vlgmr.msra.gmra.mrb[0].mxu1 %vm696_vm4, %v17400_v10  ;;  %20639 = vmatmul.mubr.msk.bf16.vlgmr.msra.gmra.mrb[0].mxu0 %vm696_vm4, %v22225_v16  ;;  %v6493_v10 = vrot.slane %v17363_v62, 5  ;;  %v6487_v16 = vsel %vm26819_vm15, %v17391_v48, %v6486_v31  ;;  %v22238_v48 = vld [vmem:[%s22608_s28 + $0xb8] sm:$0xff]  }
 0x318   : > { %20023 = vmatpush3.bf16.msra.mxu1 %v26751_v49  ;;  %20671 = vmatpush3.bf16.msra.mxu0 %v26758_v51  ;;  %v17352_v49 = vld [vmem:[%s22608_s28 + $0xbc] sm:$0x1]  ;;  %v17353_v51 = vld [vmem:[%s22608_s28 + $0xc4] sm:$0xe] }
 0x319   : > { %19994 = vmatprep.mubr.msk.bf16.mxu1 %vm696_vm4, %v17401_v21  ;;  %20642 = vmatprep.mubr.msk.bf16.mxu0 %vm696_vm4, %v22227_v24  ;;  %v6468_v6 = vrot.slane %v17352_v49, 5  ;;  %v17389_v12 = vrot.slane %v17353_v51, 9  ;;  %v6500_v21 = vrot.slane %v17366_v45, 5  ;;  %v17407_v24 = vcombine.low %v6487_v16, %v6490_v39  ;;  %v17381_v39 = vld [vmem:[%s22608_s28 + $0x158] sm:$0xf] }
 0x31a   : > { %20024 = vmatprep.subr.bf16.mxu1 %v22234_v19  ;;  %20672 = vmatprep.subr.bf16.mxu0 %v22236_v57  ;;  %v6494_v49 = vsel %vm26819_vm15, %v17392_v53, %v6493_v10  ;;  %v6507_v51 = vrot.slane %v17369_v40, 5  ;;  %v6531_v16 = vrot.slane %v17379_v36, 5  ;;  %v22376_v36 = vld [vmem:[%s22608_s28 + $0xc4] sm:$0xf] }
 0x31b   : > { %v6469_v43 = vsel %vm26819_vm15, %v6467_v1, %v6468_v6  ;;  %v6473_v26 = vsel %vm26819_vm15, %v17389_v12, %v6472_v27  ;;  %v6502_v34 = vrot.slane %v6500_v21, 4  ;;  %v6501_v18 = vsel %vm26819_vm15, %v17393_v4, %v6500_v21  ;;  %v17371_v1 = vld [vmem:[%s22608_s28 + $0x124] sm:$0xe]  ;;  %v17373_v6 = vld [vmem:[%s22608_s28 + $0x12c] sm:$0x1]  ;;  %v22235_v12 = vld [vmem:[%s22608_s28 + $0x98] sm:$0xff]  }
 0x31c   : > { %20025 = vmatpush3.bf16.msra.mxu1 %v22234_v19  ;;  %20673 = vmatpush3.bf16.msra.mxu0 %v22236_v57  ;;  %v17404_v37 = vcombine.low %v6466_v23, %v6469_v43  ;;  %v17405_v47 = vcombine.low %v6473_v26, %v6476_v59  ;;  %v6495_v19 = vrot.slane %v6493_v10, 4  ;;  %v6496_v57 = vrot.slane %v17364_v14, 5  ;;  %v22237_v23 = vld [vmem:[%s22608_s28 + $0xa8] sm:$0xff]   ;;  %v17375_v59 = vld [vmem:[%s22608_s28 + $0x138] sm:$0xf] }
 0x31d   : > { %20058 = vmatprep.subr.bf16.mxu1 %v26886_v58  ;;  %20706 = vmatprep.subr.bf16.mxu0 %v26894_v54  ;;  %v6509_v2 = vrot.slane %v6507_v51, 4  ;;  %v17395_v43 = vrot.slane %v17371_v1, 9  ;;  %v6517_v26 = vrot.slane %v17373_v6, 5  ;;  %v6521_v5 = vrot.slane %v17375_v59, 5 }
 0x31e   : > { %v6497_v27 = vsel %vm26819_vm15, %v6495_v19, %v6496_v57  ;;  %v6530_v10 = vrot.slane %v6528_v15, 4  ;;  %v6535_v21 = vrot.slane %v17381_v39, 5  ;;  %v17433_v19 = vld [vmem:[%s22608_s28 + $0x88] sm:$0x7] }
 0x31f   : > { %19995 = vmatmul.mubr.msk.bf16.gmra.mrb[4].mxu1 %vm696_vm4, %v17402_v46  ;;  %20643 = vmatmul.mubr.msk.bf16.gmra.mrb[4].mxu0 %vm696_vm4, %v22228_v25  ;;  %v6504_v46 = vsel %vm26819_vm15, %v6502_v34, %v6503_v28  ;;  %v17368_v25 = vld [vmem:[%s22608_s28 + $0x114] sm:$0xe]  ;;  %v6515_v17 = vsel %vm26819_vm15, %v17395_v43, %v6514_v13  ;;  %v6523_v62 = vrot.slane %v6521_v5, 4  ;;  %v22373_v43 = vld [vmem:[%s22608_s28 + $0x90] sm:$0x8] }
 0x320   : > { %19998 = vmatprep.mubr.msk.bf16.mxu1 %vm696_vm4, %v17403_v63  ;;  %20646 = vmatprep.mubr.msk.bf16.mxu0 %vm696_vm4, %v22229_v22  ;;  %v17370_v63 = vld [vmem:[%s22608_s28 + $0x11c] sm:$0x1]  ;;  %v17408_v22 = vcombine.low %v6494_v49, %v6497_v27  ;;  %v17409_v32 = vcombine.low %v6501_v18, %v6504_v46  ;;  %v17394_v42 = vrot.slane %v17368_v25, 9  ;;  %v6532_v9 = vsel %vm26819_vm15, %v6530_v10, %v6531_v16  ;;  %v22370_v49 = vld [vmem:[%s22608_s28 + $0x80] sm:$0x8] }
 0x321   : > { %v6510_v8 = vrot.slane %v17370_v63, 5  ;;  %v17413_v4 = vcombine.low %v6529_v11, %v6532_v9  ;;  %v6537_v28 = vrot.slane %v6535_v21, 4  ;;  %v17449_v27 = vrot.slane %v22370_v49, 11  ;;  %v22371_v63 = vld [vmem:[%s22608_s28 + $0x94] sm:$0xf]  ;;  %v22247_v9 = vld [vmem:[%s22608_s28 + $0xa0] sm:$0xff]  }
 0x322   : > { %v6508_v35 = vsel %vm26819_vm15, %v17394_v42, %v6507_v51  ;;  %v6898_v18 = vrot.slane %v17433_v19, 7  ;;  %v6902_v13 = vrot.slane %v22371_v63, 7  ;;  %v6919_v16 = vrot.slane %v17436_v0, 7  ;;  %v22379_v19 = vld [vmem:[%s22608_s28 + $0xd4] sm:$0xf] }
 0x323   : > { %v6511_v31 = vsel %vm26819_vm15, %v6509_v2, %v6510_v8  ;;  %v17435_v2 = vld [vmem:[%s22608_s28 + $0xa8] sm:$0x7]  ;;  %v22242_v8 = vld [vmem:[%s22608_s28 + $0xf8] sm:$0xff]   ;;  %v22386_v0 = vld [vmem:[%s22608_s28 + $0x100] sm:$0x8] }
 0x327   : > { %19999 = vmatmul.mubr.msk.bf16.gmra.mrb[8].mxu1 %vm696_vm4, %v17404_v37  ;;  %20647 = vmatmul.mubr.msk.bf16.gmra.mrb[8].mxu0 %vm696_vm4, %v22230_v3  ;;  %v6518_v37 = vsel %vm26819_vm15, %v6516_v7, %v6517_v26  ;;  %v17374_v3 = vld [vmem:[%s22608_s28 + $0x134] sm:$0xe]  ;;  %v17450_v7 = vrot.slane %v22373_v43, 11  ;;  %v6904_v26 = vrot.slane %v6902_v13, 4 }
 0x328   : > { %20002 = vmatprep.mubr.msk.bf16.mxu1 %vm696_vm4, %v17405_v47  ;;  %20650 = vmatprep.mubr.msk.bf16.mxu0 %vm696_vm4, %v22231_v30  ;;  %v17376_v47 = vld [vmem:[%s22608_s28 + $0x13c] sm:$0x1]  ;;  %v17410_v30 = vcombine.low %v6508_v35, %v6511_v31  ;;  %v17411_v50 = vcombine.low %v6515_v17, %v6518_v37  ;;  %v17396_v41 = vrot.slane %v17374_v3, 9  ;;  %v22374_v35 = vld [vmem:[%s22608_s28 + $0xa0] sm:$0x8]  ;;  %v6912_v17 = vrot.slane %v17435_v2, 7 }
 0x329   : > { %v6524_v45 = vrot.slane %v17376_v47, 5  ;;  %v17451_v31 = vrot.slane %v22374_v35, 11  ;;  %v6903_v37 = vsel %vm26492_vm12, %v17450_v7, %v6902_v13  ;;  %v22375_v47 = vld [vmem:[%s22608_s28 + $0xb4] sm:$0xf]  ;;  %v22249_v13 = vld [vmem:[%s22608_s28 + $0xc0] sm:$0xff]  }
 0x32a   : > { %v6522_v33 = vsel %vm26819_vm15, %v17396_v41, %v6521_v5  ;;  %v6916_v15 = vrot.slane %v22375_v47, 7  ;;  %v17437_v41 = vld [vmem:[%s22608_s28 + $0xc8] sm:$0x7]  ;;  %v22383_v2 = vld [vmem:[%s22608_s28 + $0xf4] sm:$0xf] }
 0x32b   : > { %v6525_v14 = vsel %vm26819_vm15, %v6523_v62, %v6524_v45  ;;  %v22245_v45 = vld [vmem:[%s22608_s28 + $0x90] sm:$0xff]   ;;  %v6926_v11 = vrot.slane %v17437_v41, 7  ;;  %v17440_v7 = vld [vmem:[%s22608_s28 + $0xf8] sm:$0x7] }
 0x32c   : > { %v17412_v57 = vcombine.low %v6522_v33, %v6525_v14  ;;  %v6918_v10 = vrot.slane %v6916_v15, 4  ;;  %v22378_v33 = vld [vmem:[%s22608_s28 + $0xc0] sm:$0x8]  ;;  %v6947_v47 = vrot.slane %v17440_v7, 7 }
 0x32d   : > { %v17453_v14 = vrot.slane %v22378_v33, 11  ;;  %v17443_v33 = vld [vmem:[%s22608_s28 + $0x128] sm:$0x7] }
 0x32f   : > { %20003 = vmatmul.mubr.msk.bf16.gmra.mrb[12].mxu1 %vm696_vm4, %v17406_v44  ;;  %20651 = vmatmul.mubr.msk.bf16.gmra.mrb[12].mxu0 %vm696_vm4, %v22232_v60  ;;  %v17380_v44 = vld [vmem:[%s22608_s28 + $0x154] sm:$0xe]  ;;  %v17382_v60 = vld [vmem:[%s22608_s28 + $0x15c] sm:$0x1] }
 0x330   : > { %20006 = vmatprep.mubr.msk.bf16.mxu1 %vm696_vm4, %v17407_v24  ;;  %20654 = vmatprep.mubr.msk.bf16.mxu0 %vm696_vm4, %v22233_v52  ;;  %v22369_v24 = vld [vmem:[%s22608_s28 + $0x84] sm:$0xf]  ;;  %v22240_v52 = vld [vmem:[%s22608_s28 + $0xd8] sm:$0xff]   ;;  %v17398_v34 = vrot.slane %v17380_v44, 9  ;;  %v6538_v40 = vrot.slane %v17382_v60, 5 }
 0x331   : > { %v6895_v53 = vrot.slane %v22369_v24, 7  ;;  %v22254_v44 = vld [vmem:[%s28058_s1 + $0xd8] sm:$0xff]  }
 0x332   : > { %v6536_v46 = vsel %vm26819_vm15, %v17398_v34, %v6535_v21  ;;  %v6539_v25 = vsel %vm26819_vm15, %v6537_v28, %v6538_v40  ;;  %v22256_v60 = vld [vmem:[%s28058_s1 + $0x1f8] sm:$0xff]   ;;  %v22380_v34 = vld [vmem:[%s22608_s28 + $0xe4] sm:$0xf] }
 0x333   : > { %v6897_v51 = vrot.slane %v6895_v53, 4  ;;  %v6896_v1 = vsel %vm26492_vm12, %v17449_v27, %v6895_v53  ;;  %v17414_v42 = vcombine.low %v6536_v46, %v6539_v25  ;;  %v6920_v53 = vsel %vm26492_vm12, %v6918_v10, %v6919_v16  ;;  %v27065_v40 = vld [vmem:[%s28058_s1 + $0xe0] sm:$0xff]   ;;  %v22248_v27 = vld [vmem:[%s22608_s28 + $0xb0] sm:$0xff]   ;;  %v17442_v10 = vld [vmem:[%s22608_s28 + $0x118] sm:$0x7] }
 0x334   : > { %v6937_v28 = vrot.slane %v22380_v34, 7  ;;  %v22388_v16 = vld [vmem:[%s22608_s28 + $0x124] sm:$0xf] }
 0x335   : > { %v6899_v6 = vsel %vm26492_vm12, %v6897_v51, %v6898_v18  ;;  %v22381_v18 = vld [vmem:[%s22608_s28 + $0xd0] sm:$0x8] }
 0x336   : > { %v17454_v46 = vrot.slane %v22381_v18, 11  ;;  %v22392_v18 = vld [vmem:[%s22608_s28 + $0x144] sm:$0xf] }
 0x337   : > { %20007 = vmatmul.mubr.msk.bf16.gmra.mrb[16].mxu1 %vm696_vm4, %v17408_v22  ;;  %20655 = vmatmul.mubr.msk.bf16.gmra.mrb[16].mxu0 %vm696_vm4, %v22235_v12  ;;  %v17434_v22 = vld [vmem:[%s22608_s28 + $0x98] sm:$0x7]  ;;  %v22372_v12 = vld [vmem:[%s22608_s28 + $0xa4] sm:$0xf] }
 0x338   : > { %20010 = vmatprep.mubr.msk.bf16.mxu1 %vm696_vm4, %v17409_v32  ;;  %20658 = vmatprep.mubr.msk.bf16.mxu0 %vm696_vm4, %v22237_v23  ;;  %v6909_v32 = vrot.slane %v22372_v12, 7  ;;  %v17465_v23 = vcombine.low %v6896_v1, %v6899_v6  ;;  %v6905_v59 = vrot.slane %v17434_v22, 7  ;;  %v22382_v1 = vld [vmem:[%s22608_s28 + $0xe0] sm:$0x8]  ;;  %v6939_v22 = vrot.slane %v6937_v28, 4 }
 0x339   : > { %v17455_v6 = vrot.slane %v22382_v1, 11 }
 0x33a   : > { %v6911_v5 = vrot.slane %v6909_v32, 4  ;;  %v6906_v3 = vsel %vm26492_vm12, %v6904_v26, %v6905_v59  ;;  %v22384_v26 = vld [vmem:[%s22608_s28 + $0x104] sm:$0xf] }
 0x33b   : > { %v17466_v62 = vcombine.low %v6903_v37, %v6906_v3  ;;  %v6951_v59 = vrot.slane %v22384_v26, 7 }
 0x33f   : > { %20011 = vmatmul.mubr.msk.bf16.gmra.mrb[20].mxu1 %vm696_vm4, %v17410_v30  ;;  %20659 = vmatmul.mubr.msk.bf16.gmra.mrb[20].mxu0 %vm696_vm4, %v22238_v48  ;;  %v6923_v30 = vrot.slane %v22376_v36, 7  ;;  %v6910_v48 = vsel %vm26492_vm12, %v17451_v31, %v6909_v32  ;;  %v22250_v31 = vld [vmem:[%s22608_s28 + $0xd0] sm:$0xff]   ;;  %v17457_v36 = vrot.slane %v22386_v0, 11 }
 0x340   : > { %20014 = vmatprep.mubr.msk.bf16.mxu1 %vm696_vm4, %v17411_v50  ;;  %20662 = vmatprep.mubr.msk.bf16.mxu0 %vm696_vm4, %v22239_v56  ;;  %v6913_v50 = vsel %vm26492_vm12, %v6911_v5, %v6912_v17  ;;  %v22377_v56 = vld [vmem:[%s22608_s28 + $0xb0] sm:$0x8] }
 0x341   : > { %v17452_v29 = vrot.slane %v22377_v56, 11  ;;  %v17467_v39 = vcombine.low %v6910_v48, %v6913_v50  ;;  %v6925_v21 = vrot.slane %v6923_v30, 4  ;;  %v22385_v17 = vld [vmem:[%s22608_s28 + $0xf0] sm:$0x8]  ;;  %v6952_v56 = vsel %vm26492_vm12, %v17457_v36, %v6951_v59 }
 0x342   : > { %v17456_v37 = vrot.slane %v22385_v17, 11  ;;  %v22396_v17 = vld [vmem:[%s22608_s28 + $0x164] sm:$0xf]  ;;  %v22397_v36 = vld [vmem:[%s22608_s28 + $0x150] sm:$0x8] }
 0x343   : > { %v6917_v24 = vsel %vm26492_vm12, %v17452_v29, %v6916_v15  ;;  %v22251_v15 = vld [vmem:[%s22608_s28 + $0xe0] sm:$0xff]  }
 0x344   : > { %v17468_v49 = vcombine.low %v6917_v24, %v6920_v53  ;;  %v6961_v24 = vrot.slane %v17442_v10, 7  ;;  %v22253_v53 = vld [vmem:[%s22608_s28 + $0x100] sm:$0xff]  }
 0x347   : > { %20015 = vmatmul.mubr.msk.bf16.gmra.mrb[24].mxu1 %vm696_vm4, %v17412_v57  ;;  %20663 = vmatmul.mubr.msk.bf16.gmra.mrb[24].mxu0 %vm696_vm4, %v22240_v52  ;;  %v6930_v57 = vrot.slane %v22379_v19, 7  ;;  %v6924_v52 = vsel %vm26492_vm12, %v17453_v14, %v6923_v30  ;;  %v6953_v30 = vrot.slane %v6951_v59, 4  ;;  %v22390_v19 = vld [vmem:[%s22608_s28 + $0x120] sm:$0x8]  ;;  %v22395_v59 = vld [vmem:[%s22608_s28 + $0x154] sm:$0xf] }
 0x348   : > { %20018 = vmatprep.mubr.msk.bf16.mxu1 %vm696_vm4, %v17413_v4  ;;  %20666 = vmatprep.mubr.msk.bf16.mxu0 %vm696_vm4, %v22241_v61  ;;  %v17438_v4 = vld [vmem:[%s22608_s28 + $0xd8] sm:$0x7]  ;;  %v27072_v61 = vld [vmem:[%s28058_s1 + $0x200] sm:$0xff]  }
 0x349   : > { %v6932_v25 = vrot.slane %v6930_v57, 4  ;;  %v6933_v63 = vrot.slane %v17438_v4, 7  ;;  %v6931_v32 = vsel %vm26492_vm12, %v17454_v46, %v6930_v57  ;;  %v17459_v57 = vrot.slane %v22390_v19, 11 }
 0x34a   : > { %v6979_v46 = vrot.slane %v22392_v18, 7  ;;  %v28335_v18 = vld [vmem:[#allocation5_spill] sm:$0xff] }
 0x34f   : > { %20019 = vmatmul.mubr.msk.bf16.gmra.mrb[28].mxu1 %vm696_vm4, %v17414_v42  ;;  %20667 = vmatmul.mubr.msk.bf16.gmra.mrb[28].mxu0 %vm696_vm4, %v22242_v8  ;;  %v6934_v42 = vsel %vm26492_vm12, %v6932_v25, %v6933_v63  ;;  %v6944_v8 = vrot.slane %v22383_v2, 7  ;;  %v17445_v25 = vld [vmem:[%s22608_s28 + $0x148] sm:$0x7]  ;;  %v22394_v2 = vld [vmem:[%s22608_s28 + $0x140] sm:$0x8] }
 0x350   : > { %20026 = vmatprep.mubr.msk.bf16.mxu1 %vm696_vm4, %v17465_v23  ;;  %20674 = vmatprep.mubr.msk.bf16.mxu0 %vm696_vm4, %v22243_v38  ;;  %v6938_v23 = vsel %vm26492_vm12, %v17455_v6, %v6937_v28  ;;  %v17441_v38 = vld [vmem:[%s22608_s28 + $0x108] sm:$0x7]  ;;  %v17470_v35 = vcombine.low %v6931_v32, %v6934_v42  ;;  %v22391_v28 = vld [vmem:[%s22608_s28 + $0x134] sm:$0xf]  ;;  %v22393_v6 = vld [vmem:[%s22608_s28 + $0x130] sm:$0x8] }
 0x351   : > { %v6946_v3 = vrot.slane %v6944_v8, 4  ;;  %v6954_v48 = vrot.slane %v17441_v38, 7  ;;  %v6945_v50 = vsel %vm26492_vm12, %v17456_v37, %v6944_v8  ;;  %v22257_v42 = vld [vmem:[%s22608_s28 + $0x120] sm:$0xff]   ;;  %v17461_v8 = vrot.slane %v22394_v2, 11  ;;  %v22401_v2 = vld [vmem:[%s22608_s28 + $0x88] sm:$0xf] }
 0x352   : > { %v6986_v38 = vrot.slane %v22395_v59, 7  ;;  %v6993_v37 = vrot.slane %v22396_v17, 7 }
 0x353   : > { %v6948_v41 = vsel %vm26492_vm12, %v6946_v3, %v6947_v47  ;;  %v6955_v29 = vsel %vm26492_vm12, %v6953_v30, %v6954_v48  ;;  %v17447_v3 = vld [vmem:[%s22608_s28 + $0x168] sm:$0x7]  ;;  %v17462_v30 = vrot.slane %v22397_v36, 11  ;;  %v17519_v36 = vld [vmem:[%s22608_s28 + $0xa4] sm:$0xe] }
 0x354   : > { %v17472_v14 = vcombine.low %v6945_v50, %v6948_v41  ;;  %v6988_v48 = vrot.slane %v6986_v38, 4  ;;  %v22259_v41 = vld [vmem:[%s22608_s28 + $0x140] sm:$0xff]  }
 0x355   : > { %v6987_v10 = vsel %vm26492_vm12, %v17462_v30, %v6986_v38  ;;  %v28346_v38 = vld [vmem:[#allocation16_spill] sm:$0xff] }
 0x357   : > { %20027 = vmatmul.mubr.msk.bf16.vlgmr.msra.gmra.mrb[0].mxu1 %vm696_vm4, %v17466_v62  ;;  %20675 = vmatmul.mubr.msk.bf16.vlgmr.msra.gmra.mrb[0].mxu0 %vm696_vm4, %v22245_v45  ;;  %v22387_v62 = vld [vmem:[%s22608_s28 + $0x114] sm:$0xf] }
 0x358   : > { %20059 = vmatpush3.bf16.msra.mxu1 %v26886_v58  ;;  %20707 = vmatpush3.bf16.msra.mxu0 %v26894_v54  ;;  %v6927_v58 = vsel %vm26492_vm12, %v6925_v21, %v6926_v11  ;;  %v17439_v54 = vld [vmem:[%s22608_s28 + $0xe8] sm:$0x7]  ;;  %v6958_v45 = vrot.slane %v22387_v62, 7  ;;  %v22252_v21 = vld [vmem:[%s22608_s28 + $0xf0] sm:$0xff]   ;;  %v17473_v11 = vcombine.low %v6952_v56, %v6955_v29  ;;  %v22398_v62 = vld [vmem:[%s22608_s28 + $0x160] sm:$0x8] }
 0x359   : > { %20030 = vmatprep.mubr.msk.bf16.mxu1 %vm696_vm4, %v17467_v39  ;;  %20678 = vmatprep.mubr.msk.bf16.mxu0 %vm696_vm4, %v22247_v9  ;;  %v17469_v51 = vcombine.low %v6924_v52, %v6927_v58  ;;  %v6940_v12 = vrot.slane %v17439_v54, 7  ;;  %v6965_v39 = vrot.slane %v22388_v16, 7  ;;  %v22389_v9 = vld [vmem:[%s22608_s28 + $0x110] sm:$0x8]  ;;  %v6968_v58 = vrot.slane %v17443_v33, 7 }
 0x35a   : > { %20060 = vmatprep.subr.bf16.mxu1 %v22254_v44  ;;  %20708 = vmatprep.subr.bf16.mxu0 %v22256_v60  ;;  %v6972_v54 = vrot.slane %v22391_v28, 7  ;;  %v6995_v56 = vrot.slane %v6993_v37, 4  ;;  %v6996_v29 = vrot.slane %v17447_v3, 7  ;;  %v22262_v28 = vld [vmem:[%s22608_s28 + $0x170] sm:$0xff]  }
 0x35b   : > { %v6941_v43 = vsel %vm26492_vm12, %v6939_v22, %v6940_v12  ;;  %v6967_v52 = vrot.slane %v6965_v39, 4  ;;  %v17460_v22 = vrot.slane %v22393_v6, 11  ;;  %v28341_v6 = vld [vmem:[#allocation20_spill] sm:$0xff]  ;;  %v17518_v3 = vld [vmem:[%s22608_s28 + $0x94] sm:$0xe] }
 0x35c   : > { %20061 = vmatpush3.bf16.msra.mxu1 %v22254_v44  ;;  %20709 = vmatpush3.bf16.msra.mxu0 %v22256_v60  ;;  %v17471_v5 = vcombine.low %v6938_v23, %v6941_v43  ;;  %v17458_v44 = vrot.slane %v22389_v9, 11  ;;  %v6960_v60 = vrot.slane %v6958_v45, 4  ;;  %v6974_v12 = vrot.slane %v6972_v54, 4 }
 0x35d   : > { %20094 = vmatprep.subr.bf16.mxu1 %v27065_v40  ;;  %20742 = vmatprep.subr.bf16.mxu0 %v27072_v61  ;;  %v6981_v23 = vrot.slane %v6979_v46, 4  ;;  %v6982_v43 = vrot.slane %v17445_v25, 7  ;;  %v6973_v7 = vsel %vm26492_vm12, %v17460_v22, %v6972_v54  ;;  %v28333_v54 = vld [vmem:[#allocation11_spill] sm:$0xff]  ;;  %v28342_v22 = vld [vmem:[#allocation13_spill] sm:$0xff] }
 0x35e   : > { %v6959_v4 = vsel %vm26492_vm12, %v17458_v44, %v6958_v45  ;;  %v6962_v34 = vsel %vm26492_vm12, %v6960_v60, %v6961_v24  ;;  %v17463_v45 = vrot.slane %v22398_v62, 11  ;;  %v22260_v44 = vld [vmem:[%s22608_s28 + $0x150] sm:$0xff]  }
 0x35f   : > { %20031 = vmatmul.mubr.msk.bf16.gmra.mrb[4].mxu1 %vm696_vm4, %v17468_v49  ;;  %20679 = vmatmul.mubr.msk.bf16.gmra.mrb[4].mxu0 %vm696_vm4, %v22248_v27  ;;  %v6966_v49 = vsel %vm26492_vm12, %v17459_v57, %v6965_v39  ;;  %v6969_v27 = vsel %vm26492_vm12, %v6967_v52, %v6968_v58  ;;  %v17474_v63 = vcombine.low %v6959_v4, %v6962_v34  ;;  %v22399_v39 = vld [vmem:[%s22608_s28 + $0x174] sm:$0xf]  ;;  %v22400_v24 = vld [vmem:[%s22608_s28 + $0x170] sm:$0x8]  ;;  %v22261_v52 = vld [vmem:[%s22608_s28 + $0x160] sm:$0xff]  }
 0x360   : > { %20034 = vmatprep.mubr.msk.bf16.mxu1 %vm696_vm4, %v17469_v51  ;;  %20682 = vmatprep.mubr.msk.bf16.mxu0 %vm696_vm4, %v22249_v13  ;;  %v17444_v51 = vld [vmem:[%s22608_s28 + $0x138] sm:$0x7]  ;;  %v22255_v13 = vld [vmem:[%s22608_s28 + $0x110] sm:$0xff]   ;;  %v17475_v1 = vcombine.low %v6966_v49, %v6969_v27  ;;  %v7000_v33 = vrot.slane %v22399_v39, 7  ;;  %v22265_v49 = vld [vmem:[%s28058_s1 + $0xe8] sm:$0xff]  }
 0x361   : > { %v6975_v32 = vrot.slane %v17444_v51, 7  ;;  %v28334_v27 = vld [vmem:[#allocation8_spill] sm:$0xff]  ;;  %v22266_v51 = vld [vmem:[%s28058_s1 + $0x208] sm:$0xff]   ;;  %v27216_v25 = vld [vmem:[%s28058_s1 + $0x210] sm:$0xff]  }
 0x362   : > { %v7002_v19 = vrot.slane %v7000_v33, 4  ;;  %v28348_v39 = vld [vmem:[#allocation18_spill] sm:$0xff] }
 0x363   : > { %v6976_v26 = vsel %vm26492_vm12, %v6974_v12, %v6975_v32  ;;  %v28343_v12 = vld [vmem:[#allocation32_spill] sm:$0xff]  ;;  %v28344_v32 = vld [vmem:[#allocation17_spill] sm:$0xff] }
 0x364   : > { %v17476_v47 = vcombine.low %v6973_v7, %v6976_v26  ;;  %v22402_v26 = vld [vmem:[%s22608_s28 + $0x8c] sm:$0x1] }
 0x365   : > { %v7588_v59 = vrot.slane %v22402_v26, 5  ;;  %v17523_v26 = vld [vmem:[%s22608_s28 + $0xe4] sm:$0xe] }
 0x367   : > { %20035 = vmatmul.mubr.msk.bf16.gmra.mrb[8].mxu1 %vm696_vm4, %v17470_v35  ;;  %20683 = vmatmul.mubr.msk.bf16.gmra.mrb[8].mxu0 %vm696_vm4, %v22250_v31  ;;  %v6980_v35 = vsel %vm26492_vm12, %v17461_v8, %v6979_v46  ;;  %v6983_v31 = vsel %vm26492_vm12, %v6981_v23, %v6982_v43  ;;  %v27209_v46 = vld [vmem:[%s28058_s1 + $0xf0] sm:$0xff]   ;;  %v7585_v8 = vrot.slane %v22401_v2, 5  ;;  %v17517_v23 = vld [vmem:[%s22608_s28 + $0x84] sm:$0xe] }
 0x368   : > { %20038 = vmatprep.mubr.msk.bf16.mxu1 %vm696_vm4, %v17471_v5  ;;  %20686 = vmatprep.mubr.msk.bf16.mxu0 %vm696_vm4, %v22251_v15  ;;  %v17446_v5 = vld [vmem:[%s22608_s28 + $0x158] sm:$0x7]  ;;  %v22258_v15 = vld [vmem:[%s22608_s28 + $0x130] sm:$0xff]   ;;  %v17477_v0 = vcombine.low %v6980_v35, %v6983_v31  ;;  %v17533_v43 = vrot.slane %v17517_v23, 9  ;;  %v28347_v35 = vld [vmem:[#allocation22_spill] sm:$0xff] }
 0x369   : > { %v6989_v50 = vrot.slane %v17446_v5, 7  ;;  %v7587_v7 = vrot.slane %v7585_v8, 4  ;;  %v22403_v31 = vld [vmem:[%s22608_s28 + $0x98] sm:$0xf]  ;;  %v22412_v23 = vld [vmem:[%s22608_s28 + $0xe8] sm:$0xf] }
 0x36a   : > { %v7592_v5 = vrot.slane %v22403_v31, 5  ;;  %v7586_v17 = vsel %vm26819_vm15, %v17533_v43, %v7585_v8  ;;  %v17522_v8 = vld [vmem:[%s22608_s28 + $0xd4] sm:$0xe]  ;;  %v7627_v43 = vrot.slane %v22412_v23, 5 }
 0x36b   : > { %v6990_v16 = vsel %vm26492_vm12, %v6988_v48, %v6989_v50  ;;  %v17534_v48 = vrot.slane %v17518_v3, 9 }
 0x36c   : > { %v17478_v9 = vcombine.low %v6987_v10, %v6990_v16  ;;  %v7594_v50 = vrot.slane %v7592_v5, 4  ;;  %v22406_v10 = vld [vmem:[%s22608_s28 + $0xac] sm:$0x1] }
 0x36d   : > { %v7602_v16 = vrot.slane %v22406_v10, 5  ;;  %v17524_v10 = vld [vmem:[%s22608_s28 + $0xf4] sm:$0xe] }
 0x36f   : > { %20039 = vmatmul.mubr.msk.bf16.gmra.mrb[12].mxu1 %vm696_vm4, %v17472_v14  ;;  %20687 = vmatmul.mubr.msk.bf16.gmra.mrb[12].mxu0 %vm696_vm4, %v22252_v21  ;;  %v6994_v14 = vsel %vm26492_vm12, %v17463_v45, %v6993_v37  ;;  %v6997_v21 = vsel %vm26492_vm12, %v6995_v56, %v6996_v29  ;;  %v7589_v37 = vsel %vm26819_vm15, %v7587_v7, %v7588_v59  ;;  %v17535_v56 = vrot.slane %v17519_v36, 9  ;;  %v27336_v7 = vld [vmem:[%s28058_s1 + $0x100] sm:$0xff]   ;;  %v22414_v36 = vld [vmem:[%s22608_s28 + $0xec] sm:$0x1] }
 0x370   : > { %20042 = vmatprep.mubr.msk.bf16.mxu1 %vm696_vm4, %v17473_v11  ;;  %20690 = vmatprep.mubr.msk.bf16.mxu0 %vm696_vm4, %v22253_v53  ;;  %v17448_v11 = vld [vmem:[%s22608_s28 + $0x178] sm:$0x7]  ;;  %v17479_v60 = vcombine.low %v6994_v14, %v6997_v21  ;;  %v17464_v53 = vrot.slane %v22400_v24, 11  ;;  %v17549_v30 = vcombine.low %v7586_v17, %v7589_v37  ;;  %v27344_v59 = vld [vmem:[%s28058_s1 + $0x220] sm:$0xff]   ;;  %v22413_v37 = vld [vmem:[%s22608_s28 + $0xdc] sm:$0x1] }
 0x371   : > { %v7003_v57 = vrot.slane %v17448_v11, 7  ;;  %v27292_v21 = vld [vmem:[%s22608_s28 + $0xb8] sm:$0xf]  ;;  %v7623_v3 = vrot.slane %v22413_v37, 5 }
 0x372   : > { %v7001_v58 = vsel %vm26492_vm12, %v17464_v53, %v7000_v33  ;;  %v7593_v33 = vsel %vm26819_vm15, %v17534_v48, %v7592_v5  ;;  %v7606_v11 = vrot.slane %v27292_v21, 5  ;;  %v17538_v5 = vrot.slane %v17522_v8, 9 }
 0x373   : > { %v7004_v4 = vsel %vm26492_vm12, %v7002_v19, %v7003_v57  ;;  %v17521_v57 = vld [vmem:[%s22608_s28 + $0xc4] sm:$0xe] }
 0x374   : > { %v17480_v34 = vcombine.low %v7001_v58, %v7004_v4  ;;  %v18691_v58 = vld [vmem:[%s22608_s28 + $0xac] sm:$0xf] }
 0x377   : > { %20043 = vmatmul.mubr.msk.bf16.gmra.mrb[16].mxu1 %vm696_vm4, %v17474_v63  ;;  %20691 = vmatmul.mubr.msk.bf16.gmra.mrb[16].mxu0 %vm696_vm4, %v22255_v13  ;;  %v28338_v63 = vld [vmem:[#allocation10_spill] sm:$0xff] }
 0x378   : > { %20046 = vmatprep.mubr.msk.bf16.mxu1 %vm696_vm4, %v17475_v1  ;;  %20694 = vmatprep.mubr.msk.bf16.mxu0 %vm696_vm4, %v22257_v42  ;;  %v28339_v13 = vld [vmem:[#allocation14_spill] sm:$0xff]  ;;  %v28340_v1 = vld [vmem:[#allocation12_spill] sm:$0xff]  ;;  %v28345_v42 = vld [vmem:[#allocation15_spill] sm:$0xff] }
 0x37f   : > { %20047 = vmatmul.mubr.msk.bf16.gmra.mrb[20].mxu1 %vm696_vm4, %v17476_v47  ;;  %20695 = vmatmul.mubr.msk.bf16.gmra.mrb[20].mxu0 %vm696_vm4, %v22258_v15  ;;  %v18689_v47 = vld [vmem:[%s22608_s28 + $0x8c] sm:$0xf]  ;;  %v22404_v15 = vld [vmem:[%s22608_s28 + $0xa8] sm:$0xf] }
 0x380   : > { %20050 = vmatprep.mubr.msk.bf16.mxu1 %vm696_vm4, %v17477_v0  ;;  %20698 = vmatprep.mubr.msk.bf16.mxu0 %vm696_vm4, %v22259_v41  ;;  %v7599_v0 = vrot.slane %v22404_v15, 5  ;;  %v22405_v41 = vld [vmem:[%s22608_s28 + $0x9c] sm:$0x1]  ;;  %v18705_v45 = vcombine.low %v22401_v2, %v18689_v47 }
 0x381   : > { %v7595_v62 = vrot.slane %v22405_v41, 5  ;;  %v18694_v41 = vld [vmem:[%s22608_s28 + $0xdc] sm:$0xf] }
 0x382   : > { %v7601_v29 = vrot.slane %v7599_v0, 4  ;;  %v7600_v53 = vsel %vm26819_vm15, %v17535_v56, %v7599_v0  ;;  %v7629_v0 = vrot.slane %v7627_v43, 4 }
 0x383   : > { %v7596_v14 = vsel %vm26819_vm15, %v7594_v50, %v7595_v62  ;;  %v22415_v62 = vld [vmem:[%s22608_s28 + $0xf8] sm:$0xf] }
 0x384   : > { %v7603_v19 = vsel %vm26819_vm15, %v7601_v29, %v7602_v16  ;;  %v22416_v16 = vld [vmem:[%s22608_s28 + $0x108] sm:$0xf] }
 0x387   : > { %20051 = vmatmul.mubr.msk.bf16.gmra.mrb[24].mxu1 %vm696_vm4, %v17478_v9  ;;  %20699 = vmatmul.mubr.msk.bf16.gmra.mrb[24].mxu0 %vm696_vm4, %v22260_v44  ;;  %v18690_v9 = vld [vmem:[%s22608_s28 + $0x9c] sm:$0xf]  ;;  %v17520_v44 = vld [vmem:[%s22608_s28 + $0xb4] sm:$0xe] }
 0x388   : > { %20054 = vmatprep.mubr.msk.bf16.mxu1 %vm696_vm4, %v17479_v60  ;;  %20702 = vmatprep.mubr.msk.bf16.mxu0 %vm696_vm4, %v22261_v52  ;;  %v27299_v60 = vld [vmem:[%s22608_s28 + $0xc8] sm:$0xf]  ;;  %v17550_v52 = vcombine.low %v7593_v33, %v7596_v14  ;;  %v18706_v4 = vcombine.low %v22403_v31, %v18690_v9  ;;  %v18695_v33 = vld [vmem:[%s22608_s28 + $0xec] sm:$0xf]  ;;  %v17525_v14 = vld [vmem:[%s22608_s28 + $0x104] sm:$0xe] }
 0x389   : > { %v7613_v24 = vrot.slane %v27299_v60, 5 }
 0x38f   : > { %20055 = vmatmul.mubr.msk.bf16.gmra.mrb[28].mxu1 %vm696_vm4, %v17480_v34  ;;  %20703 = vmatmul.mubr.msk.bf16.gmra.mrb[28].mxu0 %vm696_vm4, %v22262_v28  ;;  %v17536_v34 = vrot.slane %v17520_v44, 9  ;;  %v7608_v28 = vrot.slane %v7606_v11, 4  ;;  %v17540_v44 = vrot.slane %v17524_v10, 9 }
 0x390   : > { %20062 = vmatprep.mubr.msk.bf16.mxu1 %vm696_vm4, %v28333_v54  ;;  %20710 = vmatprep.mubr.msk.bf16.mxu0 %vm696_vm4, %v28333_v54  ;;  %v22409_v54 = vld [vmem:[%s22608_s28 + $0xbc] sm:$0x1] }
 0x397   : > { %20063 = vmatmul.mubr.msk.bf16.vlgmr.msra.gmra.mrb[0].mxu1 %vm696_vm4, %v28334_v27  ;;  %20711 = vmatmul.mubr.msk.bf16.vlgmr.msra.gmra.mrb[0].mxu0 %vm696_vm4, %v28334_v27  ;;  %v17551_v27 = vcombine.low %v7600_v53, %v7603_v19  ;;  %v18711_v19 = vcombine.low %v22412_v23, %v18695_v33  ;;  %v22426_v33 = vld [vmem:[%s22608_s28 + $0x14c] sm:$0x1] }
 0x398   : > { %20095 = vmatpush3.bf16.msra.mxu1 %v27065_v40  ;;  %20743 = vmatpush3.bf16.msra.mxu0 %v27072_v61  ;;  %v28336_v40 = vld [vmem:[#allocation6_spill] sm:$0xff]  ;;  %v28337_v61 = vld [vmem:[#allocation7_spill] sm:$0xff] }
 0x399   : > { %20066 = vmatprep.mubr.msk.bf16.mxu1 %vm696_vm4, %v28335_v18  ;;  %20714 = vmatprep.mubr.msk.bf16.mxu0 %vm696_vm4, %v28335_v18  ;;  %v7615_v18 = vrot.slane %v7613_v24, 4 }
 0x39a   : > { %20096 = vmatprep.subr.bf16.mxu1 %v22265_v49  ;;  %20744 = vmatprep.subr.bf16.mxu0 %v22266_v51 }
 0x39c   : > { %20097 = vmatpush3.bf16.msra.mxu1 %v22265_v49  ;;  %20745 = vmatpush3.bf16.msra.mxu0 %v22266_v51  ;;  %v7609_v49 = vrot.slane %v22409_v54, 5  ;;  %v17537_v51 = vrot.slane %v17521_v57, 9  ;;  %v17541_v57 = vrot.slane %v17525_v14, 9  ;;  %v18696_v54 = vld [vmem:[%s22608_s28 + $0xfc] sm:$0xf]  ;;  %v7672_v14 = vrot.slane %v22426_v33, 5 }
 0x39d   : > { %20130 = vmatprep.subr.bf16.mxu1 %v27209_v46  ;;  %20778 = vmatprep.subr.bf16.mxu0 %v27216_v25 }
 0x39e   : > { %v7614_v2 = vsel %vm26819_vm15, %v17537_v51, %v7613_v24  ;;  %v22417_v24 = vld [vmem:[%s22608_s28 + $0xfc] sm:$0x1] }
 0x39f   : > { %20067 = vmatmul.mubr.msk.bf16.gmra.mrb[4].mxu1 %vm696_vm4, %v28336_v40  ;;  %20715 = vmatmul.mubr.msk.bf16.gmra.mrb[4].mxu0 %vm696_vm4, %v28336_v40  ;;  %v22410_v40 = vld [vmem:[%s22608_s28 + $0xcc] sm:$0x1]  ;;  %v7637_v53 = vrot.slane %v22417_v24, 5 }
 0x3a0   : > { %20070 = vmatprep.mubr.msk.bf16.mxu1 %vm696_vm4, %v28337_v61  ;;  %20718 = vmatprep.mubr.msk.bf16.mxu0 %vm696_vm4, %v28337_v61  ;;  %v7616_v61 = vrot.slane %v22410_v40, 5  ;;  %v17526_v40 = vld [vmem:[%s22608_s28 + $0x114] sm:$0xe] }
 0x3a7   : > { %20071 = vmatmul.mubr.msk.bf16.gmra.mrb[8].mxu1 %vm696_vm4, %v28338_v63  ;;  %20719 = vmatmul.mubr.msk.bf16.gmra.mrb[8].mxu0 %vm696_vm4, %v28338_v63  ;;  %v18707_v63 = vcombine.low %v22404_v15, %v18691_v58  ;;  %v17539_v15 = vrot.slane %v17523_v26, 9  ;;  %v22418_v58 = vld [vmem:[%s22608_s28 + $0x10c] sm:$0x1] }
 0x3a8   : > { %20074 = vmatprep.mubr.msk.bf16.mxu1 %vm696_vm4, %v28339_v13  ;;  %20722 = vmatprep.mubr.msk.bf16.mxu0 %vm696_vm4, %v28339_v13  ;;  %v22278_v13 = vld [vmem:[%s28058_s1 + $0xf8] sm:$0xff]  }
 0x3a9   : > { %v7628_v56 = vsel %vm26819_vm15, %v17539_v15, %v7627_v43  ;;  %v22424_v15 = vld [vmem:[%s22608_s28 + $0x148] sm:$0xf] }
 0x3af   : > { %20075 = vmatmul.mubr.msk.bf16.gmra.mrb[12].mxu1 %vm696_vm4, %v28340_v1  ;;  %20723 = vmatmul.mubr.msk.bf16.gmra.mrb[12].mxu0 %vm696_vm4, %v28340_v1  ;;  %v22280_v1 = vld [vmem:[%s28058_s1 + $0x218] sm:$0xff]  }
 0x3b0   : > { %20078 = vmatprep.mubr.msk.bf16.mxu1 %vm696_vm4, %v28341_v6  ;;  %20726 = vmatprep.mubr.msk.bf16.mxu0 %vm696_vm4, %v28341_v6  ;;  %v7607_v6 = vsel %vm26819_vm15, %v17536_v34, %v7606_v11 }
 0x3b7   : > { %20079 = vmatmul.mubr.msk.bf16.gmra.mrb[16].mxu1 %vm696_vm4, %v28342_v22  ;;  %20727 = vmatmul.mubr.msk.bf16.gmra.mrb[16].mxu0 %vm696_vm4, %v28342_v22  ;;  %v7610_v22 = vsel %vm26819_vm15, %v7608_v28, %v7609_v49  ;;  %v22419_v49 = vld [vmem:[%s22608_s28 + $0x118] sm:$0xf] }
 0x3b8   : > { %20082 = vmatprep.mubr.msk.bf16.mxu1 %vm696_vm4, %v28343_v12  ;;  %20730 = vmatprep.mubr.msk.bf16.mxu0 %vm696_vm4, %v28343_v12  ;;  %v18692_v12 = vld [vmem:[%s22608_s28 + $0xbc] sm:$0xf] }
 0x3bf   : > { %20083 = vmatmul.mubr.msk.bf16.gmra.mrb[20].mxu1 %vm696_vm4, %v28344_v32  ;;  %20731 = vmatmul.mubr.msk.bf16.gmra.mrb[20].mxu0 %vm696_vm4, %v28344_v32  ;;  %v22411_v32 = vld [vmem:[%s22608_s28 + $0xd8] sm:$0xf] }
 0x3c0   : > { %20086 = vmatprep.mubr.msk.bf16.mxu1 %vm696_vm4, %v28345_v42  ;;  %20734 = vmatprep.mubr.msk.bf16.mxu0 %vm696_vm4, %v28345_v42  ;;  %v7620_v42 = vrot.slane %v22411_v32, 5  ;;  %v18710_v11 = vcombine.low %v22411_v32, %v18694_v41  ;;  %v17542_v32 = vrot.slane %v17526_v40, 9 }
 0x3c2   : > { %v7622_v17 = vrot.slane %v7620_v42, 4  ;;  %v7621_v48 = vsel %vm26819_vm15, %v17538_v5, %v7620_v42  ;;  %v22423_v5 = vld [vmem:[%s22608_s28 + $0x138] sm:$0xf] }
 0x3c4   : > { %v7624_v50 = vsel %vm26819_vm15, %v7622_v17, %v7623_v3  ;;  %v7662_v17 = vrot.slane %v22423_v5, 5 }
 0x3c7   : > { %20087 = vmatmul.mubr.msk.bf16.gmra.mrb[24].mxu1 %vm696_vm4, %v28346_v38  ;;  %20735 = vmatmul.mubr.msk.bf16.gmra.mrb[24].mxu0 %vm696_vm4, %v28346_v38  ;;  %v17552_v38 = vcombine.low %v7607_v6, %v7610_v22  ;;  %v18712_v22 = vcombine.low %v22415_v62, %v18696_v54 }
 0x3c8   : > { %20090 = vmatprep.mubr.msk.bf16.mxu1 %vm696_vm4, %v28347_v35  ;;  %20738 = vmatprep.mubr.msk.bf16.mxu0 %vm696_vm4, %v28347_v35  ;;  %v18708_v35 = vcombine.low %v27292_v21, %v18692_v12  ;;  %v17554_v21 = vcombine.low %v7621_v48, %v7624_v50 }
 0x3cf   : > { %20091 = vmatmul.mubr.msk.bf16.gmra.mrb[28].mxu1 %vm696_vm4, %v28348_v39  ;;  %20739 = vmatmul.mubr.msk.bf16.gmra.mrb[28].mxu0 %vm696_vm4, %v28348_v39  ;;  %v7641_v39 = vrot.slane %v22416_v16, 5 }
 0x3d0   : > { %20098 = vmatprep.mubr.msk.bf16.mxu1 %vm696_vm4, %v17549_v30  ;;  %20746 = vmatprep.mubr.msk.bf16.mxu0 %vm696_vm4, %v18705_v45  ;;  %v7630_v30 = vrot.slane %v22414_v36, 5  ;;  %v7634_v45 = vrot.slane %v22415_v62, 5  ;;  %v18699_v36 = vld [vmem:[%s22608_s28 + $0x12c] sm:$0xf] }
 0x3d1   : > { %v7642_v51 = vsel %vm26819_vm15, %v17541_v57, %v7641_v39  ;;  %v22428_v57 = vld [vmem:[%s22608_s28 + $0x168] sm:$0xf] }
 0x3d2   : > { %v7631_v29 = vsel %vm26819_vm15, %v7629_v0, %v7630_v30  ;;  %v7635_v34 = vsel %vm26819_vm15, %v17540_v44, %v7634_v45  ;;  %v7669_v0 = vrot.slane %v22424_v15, 5  ;;  %v17529_v30 = vld [vmem:[%s22608_s28 + $0x144] sm:$0xe]  ;;  %v22427_v44 = vld [vmem:[%s22608_s28 + $0x158] sm:$0xf] }
 0x3d3   : > { %v17555_v9 = vcombine.low %v7628_v56, %v7631_v29  ;;  %v22425_v56 = vld [vmem:[%s22608_s28 + $0x13c] sm:$0x1] }
 0x3d4   : > { %v7665_v29 = vrot.slane %v22425_v56, 5 }
 0x3d7   : > { %20099 = vmatmul.mubr.msk.bf16.vlgmr.msra.gmra.mrb[0].mxu1 %vm696_vm4, %v17550_v52  ;;  %20747 = vmatmul.mubr.msk.bf16.vlgmr.msra.gmra.mrb[0].mxu0 %vm696_vm4, %v18706_v4  ;;  %v7643_v52 = vrot.slane %v7641_v39, 4  ;;  %v7644_v4 = vrot.slane %v22418_v58, 5  ;;  %v7671_v39 = vrot.slane %v7669_v0, 4  ;;  %v18701_v58 = vld [vmem:[%s22608_s28 + $0x14c] sm:$0xf] }
 0x3d8   : > { %20131 = vmatpush3.bf16.msra.mxu1 %v27209_v46  ;;  %20779 = vmatpush3.bf16.msra.mxu0 %v27216_v25  ;;  %v7617_v46 = vsel %vm26819_vm15, %v7615_v18, %v7616_v61  ;;  %v18693_v25 = vld [vmem:[%s22608_s28 + $0xcc] sm:$0xf]  ;;  %v22420_v61 = vld [vmem:[%s22608_s28 + $0x128] sm:$0xf]  ;;  %v18717_v40 = vcombine.low %v22424_v15, %v18701_v58 }
 0x3d9   : > { %20102 = vmatprep.mubr.msk.bf16.mxu1 %vm696_vm4, %v17551_v27  ;;  %20750 = vmatprep.mubr.msk.bf16.mxu0 %vm696_vm4, %v18707_v63  ;;  %v17553_v31 = vcombine.low %v7614_v2, %v7617_v46  ;;  %v18709_v47 = vcombine.low %v27299_v60, %v18693_v25  ;;  %v7636_v60 = vrot.slane %v7634_v45, 4  ;;  %v7648_v27 = vrot.slane %v22419_v49, 5  ;;  %v22421_v2 = vld [vmem:[%s22608_s28 + $0x11c] sm:$0x1]  ;;  %v22422_v25 = vld [vmem:[%s22608_s28 + $0x12c] sm:$0x1] }
 0x3da   : > { %20132 = vmatprep.subr.bf16.mxu1 %v22278_v13  ;;  %20780 = vmatprep.subr.bf16.mxu0 %v22280_v1  ;;  %v7645_v18 = vsel %vm26819_vm15, %v7643_v52, %v7644_v4  ;;  %v7655_v63 = vrot.slane %v22420_v61, 5  ;;  %v7651_v46 = vrot.slane %v22421_v2, 5  ;;  %v7658_v26 = vrot.slane %v22422_v25, 5  ;;  %v17531_v4 = vld [vmem:[%s22608_s28 + $0x164] sm:$0xe] }
 0x3db   : > { %v7638_v28 = vsel %vm26819_vm15, %v7636_v60, %v7637_v53  ;;  %v17557_v12 = vcombine.low %v7642_v51, %v7645_v18  ;;  %v7650_v42 = vrot.slane %v7648_v27, 4  ;;  %v7664_v45 = vrot.slane %v7662_v17, 4  ;;  %v22429_v51 = vld [vmem:[%s22608_s28 + $0x15c] sm:$0x1]  ;;  %v18703_v25 = vld [vmem:[%s22608_s28 + $0x16c] sm:$0xf] }
 0x3dc   : > { %20133 = vmatpush3.bf16.msra.mxu1 %v22278_v13  ;;  %20781 = vmatpush3.bf16.msra.mxu0 %v22280_v1  ;;  %v18697_v13 = vld [vmem:[%s22608_s28 + $0x10c] sm:$0xf]  ;;  %v17527_v1 = vld [vmem:[%s22608_s28 + $0x124] sm:$0xe]  ;;  %v17556_v6 = vcombine.low %v7635_v34, %v7638_v28  ;;  %v7657_v43 = vrot.slane %v7655_v63, 4  ;;  %v18715_v10 = vcombine.low %v22420_v61, %v18699_v36  ;;  %v7676_v60 = vrot.slane %v22427_v44, 5 }
 0x3dd   : > { %20166 = vmatprep.subr.bf16.mxu1 %v27336_v7  ;;  %20814 = vmatprep.subr.bf16.mxu0 %v27344_v59  ;;  %v18713_v8 = vcombine.low %v22416_v16, %v18697_v13  ;;  %v17543_v23 = vrot.slane %v17527_v1, 9  ;;  %v17545_v16 = vrot.slane %v17529_v30, 9  ;;  %v7673_v53 = vsel %vm26819_vm15, %v7671_v39, %v7672_v14  ;;  %v22430_v13 = vld [vmem:[%s22608_s28 + $0x16c] sm:$0x1]  ;;  %v17588_v39 = vld [vmem:[%s22608_s28 + $0xb8] sm:$0x7] }
 0x3de   : > { %v7659_v3 = vsel %vm26819_vm15, %v7657_v43, %v7658_v26  ;;  %v7683_v52 = vrot.slane %v22428_v57, 5  ;;  %v7679_v18 = vrot.slane %v22429_v51, 5  ;;  %v17547_v61 = vrot.slane %v17531_v4, 9  ;;  %v17583_v26 = vld [vmem:[%s22608_s28 + $0xa0] sm:$0x8] }
 0x3df   : > { %20103 = vmatmul.mubr.msk.bf16.gmra.mrb[4].mxu1 %vm696_vm4, %v17552_v38  ;;  %20751 = vmatmul.mubr.msk.bf16.gmra.mrb[4].mxu0 %vm696_vm4, %v18708_v35  ;;  %v7649_v38 = vsel %vm26819_vm15, %v17542_v32, %v7648_v27  ;;  %v7652_v35 = vsel %vm26819_vm15, %v7650_v42, %v7651_v46  ;;  %v7656_v37 = vsel %vm26819_vm15, %v17543_v23, %v7655_v63  ;;  %v7678_v27 = vrot.slane %v7676_v60, 4  ;;  %v18702_v32 = vld [vmem:[%s22608_s28 + $0x15c] sm:$0xf]  ;;  %v22431_v42 = vld [vmem:[%s22608_s28 + $0x178] sm:$0xf] }
 0x3e0   : > { %20106 = vmatprep.mubr.msk.bf16.mxu1 %vm696_vm4, %v17553_v31  ;;  %20754 = vmatprep.mubr.msk.bf16.mxu0 %vm696_vm4, %v18709_v47  ;;  %v18698_v31 = vld [vmem:[%s22608_s28 + $0x11c] sm:$0xf]  ;;  %v17528_v47 = vld [vmem:[%s22608_s28 + $0x134] sm:$0xe]  ;;  %v17558_v48 = vcombine.low %v7649_v38, %v7652_v35  ;;  %v17559_v41 = vcombine.low %v7656_v37, %v7659_v3  ;;  %v7670_v24 = vsel %vm26819_vm15, %v17545_v16, %v7669_v0  ;;  %v7685_v63 = vrot.slane %v7683_v52, 4 }
 0x3e1   : > { %v18714_v50 = vcombine.low %v22419_v49, %v18698_v31  ;;  %v17544_v62 = vrot.slane %v17528_v47, 9  ;;  %v17561_v54 = vcombine.low %v7670_v24, %v7673_v53  ;;  %v7686_v1 = vrot.slane %v22430_v13, 5  ;;  %v17532_v23 = vld [vmem:[%s22608_s28 + $0x174] sm:$0xe]  ;;  %v17585_v38 = vld [vmem:[%s22608_s28 + $0xa8] sm:$0x7] }
 0x3e2   : > { %v7690_v2 = vrot.slane %v22431_v42, 5  ;;  %v7684_v46 = vsel %vm26819_vm15, %v17547_v61, %v7683_v52  ;;  %v18718_v31 = vcombine.low %v22427_v44, %v18702_v32  ;;  %v22432_v3 = vld [vmem:[%s22608_s28 + $0x17c] sm:$0x1]  ;;  %v18719_v15 = vcombine.low %v22428_v57, %v18703_v25  ;;  %v17586_v16 = vld [vmem:[%s22608_s28 + $0xb0] sm:$0x8]  ;;  %v22291_v25 = vld [vmem:[%s22608_s28 + $0x120] sm:$0xff]  }
 0x3e3   : > { %v7693_v47 = vrot.slane %v22432_v3, 5  ;;  %v17631_v0 = vrot.slane %v17583_v26, 11  ;;  %v8102_v30 = vrot.slane %v17585_v38, 7  ;;  %v8109_v53 = vrot.slane %v17588_v39, 7  ;;  %v27482_v57 = vld [vmem:[%s22608_s28 + $0xd4] sm:$0xf] }
 0x3e4   : > { %v7692_v37 = vrot.slane %v7690_v2, 4  ;;  %v17594_v51 = vld [vmem:[%s22608_s28 + $0xd8] sm:$0x7]  ;;  %v17597_v13 = vld [vmem:[%s22608_s28 + $0xe8] sm:$0x7] }
 0x3e5   : > { %v27511_v26 = vld [vmem:[%s22608_s28 + $0x104] sm:$0xf]  ;;  %v22298_v38 = vld [vmem:[%s28058_s1 + $0x108] sm:$0xff]  }
 0x3e7   : > { %20107 = vmatmul.mubr.msk.bf16.gmra.mrb[8].mxu1 %vm696_vm4, %v17554_v21  ;;  %20755 = vmatmul.mubr.msk.bf16.gmra.mrb[8].mxu0 %vm696_vm4, %v18710_v11  ;;  %v7663_v21 = vsel %vm26819_vm15, %v17544_v62, %v7662_v17  ;;  %v7666_v11 = vsel %vm26819_vm15, %v7664_v45, %v7665_v29  ;;  %v17548_v17 = vrot.slane %v17532_v23, 9  ;;  %v7694_v62 = vsel %vm26819_vm15, %v7692_v37, %v7693_v47  ;;  %v18704_v45 = vld [vmem:[%s22608_s28 + $0x17c] sm:$0xf]  ;;  %v17600_v47 = vld [vmem:[%s22608_s28 + $0xf8] sm:$0x7] }
 0x3e8   : > { %20110 = vmatprep.mubr.msk.bf16.mxu1 %vm696_vm4, %v17555_v9  ;;  %20758 = vmatprep.mubr.msk.bf16.mxu0 %vm696_vm4, %v18711_v19  ;;  %v18700_v9 = vld [vmem:[%s22608_s28 + $0x13c] sm:$0xf]  ;;  %v17530_v19 = vld [vmem:[%s22608_s28 + $0x154] sm:$0xe]  ;;  %v17560_v34 = vcombine.low %v7663_v21, %v7666_v11  ;;  %v18720_v21 = vcombine.low %v22431_v42, %v18704_v45  ;;  %v17589_v11 = vld [vmem:[%s22608_s28 + $0xc0] sm:$0x8] }
 0x3e9   : > { %v18716_v28 = vcombine.low %v22423_v5, %v18700_v9  ;;  %v17546_v49 = vrot.slane %v17530_v19, 9  ;;  %v17591_v9 = vld [vmem:[%s22608_s28 + $0xc8] sm:$0x7]  ;;  %v22287_v19 = vld [vmem:[%s22608_s28 + $0x100] sm:$0xff]   ;;  %v17633_v52 = vrot.slane %v17589_v11, 11  ;;  %v8123_v42 = vrot.slane %v17594_v51, 7 }
 0x3ea   : > { %v8116_v4 = vrot.slane %v17591_v9, 7  ;;  %v8130_v23 = vrot.slane %v17597_v13, 7  ;;  %v27556_v11 = vld [vmem:[%s22608_s28 + $0x124] sm:$0xf] }
 0x3ef   : > { %20111 = vmatmul.mubr.msk.bf16.gmra.mrb[12].mxu1 %vm696_vm4, %v17556_v6  ;;  %20759 = vmatmul.mubr.msk.bf16.gmra.mrb[12].mxu0 %vm696_vm4, %v18712_v22  ;;  %v27433_v6 = vld [vmem:[%s22608_s28 + $0xa4] sm:$0xf]  ;;  %v7677_v22 = vsel %vm26819_vm15, %v17546_v49, %v7676_v60  ;;  %v17632_v60 = vrot.slane %v17586_v16, 11  ;;  %v8120_v49 = vrot.slane %v27482_v57, 7 }
 0x3f0   : > { %20114 = vmatprep.mubr.msk.bf16.mxu1 %vm696_vm4, %v17557_v12  ;;  %20762 = vmatprep.mubr.msk.bf16.mxu0 %vm696_vm4, %v18713_v8  ;;  %v7680_v12 = vsel %vm26819_vm15, %v7678_v27, %v7679_v18  ;;  %v7687_v8 = vsel %vm26819_vm15, %v7685_v63, %v7686_v1  ;;  %v8099_v43 = vrot.slane %v27433_v6, 7  ;;  %v17592_v27 = vld [vmem:[%s22608_s28 + $0xd0] sm:$0x8]  ;;  %v17595_v63 = vld [vmem:[%s22608_s28 + $0xe0] sm:$0x8] }
 0x3f1   : > { %v17562_v35 = vcombine.low %v7677_v22, %v7680_v12  ;;  %v17563_v5 = vcombine.low %v7684_v46, %v7687_v8  ;;  %v22289_v22 = vld [vmem:[%s22608_s28 + $0x110] sm:$0xff]   ;;  %v17634_v12 = vrot.slane %v17592_v27, 11  ;;  %v8122_v32 = vrot.slane %v8120_v49, 4  ;;  %v22293_v16 = vld [vmem:[%s22608_s28 + $0x140] sm:$0xff]  }
 0x3f2   : > { %v8101_v36 = vrot.slane %v8099_v43, 4  ;;  %v8100_v29 = vsel %vm26492_vm12, %v17631_v0, %v8099_v43  ;;  %v17635_v46 = vrot.slane %v17595_v63, 11  ;;  %v27507_v43 = vld [vmem:[%s22608_s28 + $0xf4] sm:$0xf] }
 0x3f3   : > { %v27539_v0 = vld [vmem:[%s28058_s1 + $0x110] sm:$0xff]  }
 0x3f7   : > { %20115 = vmatmul.mubr.msk.bf16.gmra.mrb[16].mxu1 %vm696_vm4, %v17558_v48  ;;  %20763 = vmatmul.mubr.msk.bf16.gmra.mrb[16].mxu0 %vm696_vm4, %v18714_v50  ;;  %v27456_v48 = vld [vmem:[%s22608_s28 + $0xb4] sm:$0xf]  ;;  %v27460_v50 = vld [vmem:[%s22608_s28 + $0xc4] sm:$0xf] }
 0x3f8   : > { %20118 = vmatprep.mubr.msk.bf16.mxu1 %vm696_vm4, %v17559_v41  ;;  %20766 = vmatprep.mubr.msk.bf16.mxu0 %vm696_vm4, %v18715_v10  ;;  %v7691_v41 = vsel %vm26819_vm15, %v17548_v17, %v7690_v2  ;;  %v8106_v56 = vrot.slane %v27456_v48, 7  ;;  %v8103_v10 = vsel %vm26492_vm12, %v8101_v36, %v8102_v30  ;;  %v8113_v33 = vrot.slane %v27460_v50, 7  ;;  %v17603_v36 = vld [vmem:[%s22608_s28 + $0x108] sm:$0x7]  ;;  %v27547_v30 = vld [vmem:[%s28058_s1 + $0x230] sm:$0xff]  }
 0x3f9   : > { %v17564_v14 = vcombine.low %v7691_v41, %v7694_v62  ;;  %v17647_v44 = vcombine.low %v8100_v29, %v8103_v10  ;;  %v8134_v17 = vrot.slane %v27507_v43, 7  ;;  %v22292_v62 = vld [vmem:[%s22608_s28 + $0x130] sm:$0xff]   ;;  %v8137_v10 = vrot.slane %v17600_v47, 7 }
 0x3fa   : > { %v8108_v24 = vrot.slane %v8106_v56, 4  ;;  %v8115_v58 = vrot.slane %v8113_v33, 4 }
 0x3fb   : > { %v8136_v29 = vrot.slane %v8134_v17, 4 }
 0x3fc   : > { %v8117_v61 = vsel %vm26492_vm12, %v8115_v58, %v8116_v4  ;;  %v8155_v58 = vrot.slane %v27556_v11, 7  ;;  %v17607_v4 = vld [vmem:[%s22608_s28 + $0x120] sm:$0x8] }
 0x3fd   : > { %v17639_v63 = vrot.slane %v17607_v4, 11 }
 0x3fe   : > { %v8157_v13 = vrot.slane %v8155_v58, 4 }
 0x3ff   : > { %20119 = vmatmul.mubr.msk.bf16.gmra.mrb[20].mxu1 %vm696_vm4, %v17560_v34  ;;  %20767 = vmatmul.mubr.msk.bf16.gmra.mrb[20].mxu0 %vm696_vm4, %v18716_v28  ;;  %v27485_v34 = vld [vmem:[%s22608_s28 + $0xe4] sm:$0xf]  ;;  %v8107_v28 = vsel %vm26492_vm12, %v17632_v60, %v8106_v56 }
 0x400   : > { %20122 = vmatprep.mubr.msk.bf16.mxu1 %vm696_vm4, %v17561_v54  ;;  %20770 = vmatprep.mubr.msk.bf16.mxu0 %vm696_vm4, %v18717_v40  ;;  %v8110_v54 = vsel %vm26492_vm12, %v8108_v24, %v8109_v53  ;;  %v8127_v18 = vrot.slane %v27485_v34, 7  ;;  %v8114_v40 = vsel %vm26492_vm12, %v17633_v52, %v8113_v33  ;;  %v17606_v52 = vld [vmem:[%s22608_s28 + $0x118] sm:$0x7] }
 0x401   : > { %v17648_v1 = vcombine.low %v8107_v28, %v8110_v54  ;;  %v17649_v2 = vcombine.low %v8114_v40, %v8117_v61  ;;  %v17609_v28 = vld [vmem:[%s22608_s28 + $0x128] sm:$0x7]  ;;  %v8151_v40 = vrot.slane %v17606_v52, 7  ;;  %v22295_v61 = vld [vmem:[%s22608_s28 + $0x160] sm:$0xff]  }
 0x402   : > { %v8129_v8 = vrot.slane %v8127_v18, 4  ;;  %v8128_v37 = vsel %vm26492_vm12, %v17635_v46, %v8127_v18  ;;  %v8156_v46 = vsel %vm26492_vm12, %v17639_v63, %v8155_v58 }
 0x404   : > { %v8131_v3 = vsel %vm26492_vm12, %v8129_v8, %v8130_v23  ;;  %v17610_v23 = vld [vmem:[%s22608_s28 + $0x130] sm:$0x8] }
 0x405   : > { %v17651_v45 = vcombine.low %v8128_v37, %v8131_v3  ;;  %v17640_v3 = vrot.slane %v17610_v23, 11 }
 0x407   : > { %20123 = vmatmul.mubr.msk.bf16.gmra.mrb[24].mxu1 %vm696_vm4, %v17562_v35  ;;  %20771 = vmatmul.mubr.msk.bf16.gmra.mrb[24].mxu0 %vm696_vm4, %v18718_v31  ;;  %v22300_v35 = vld [vmem:[%s28058_s1 + $0x228] sm:$0xff]   ;;  %v8121_v31 = vsel %vm26492_vm12, %v17634_v12, %v8120_v49  ;;  %v22294_v49 = vld [vmem:[%s22608_s28 + $0x150] sm:$0xff]   ;;  %v27583_v12 = vld [vmem:[%s22608_s28 + $0x144] sm:$0xf] }
 0x408   : > { %20126 = vmatprep.mubr.msk.bf16.mxu1 %vm696_vm4, %v17563_v5  ;;  %20774 = vmatprep.mubr.msk.bf16.mxu0 %vm696_vm4, %v18719_v15  ;;  %v8124_v5 = vsel %vm26492_vm12, %v8122_v32, %v8123_v42  ;;  %v8141_v15 = vrot.slane %v27511_v26, 7 }
 0x409   : > { %v17650_v41 = vcombine.low %v8121_v31, %v8124_v5  ;;  %v17615_v31 = vld [vmem:[%s22608_s28 + $0x148] sm:$0x7] }
 0x40a   : > { %v8143_v33 = vrot.slane %v8141_v15, 4 }
 0x40f   : > { %20127 = vmatmul.mubr.msk.bf16.gmra.mrb[28].mxu1 %vm696_vm4, %v17564_v14  ;;  %20775 = vmatmul.mubr.msk.bf16.gmra.mrb[28].mxu0 %vm696_vm4, %v18720_v21  ;;  %v8144_v14 = vrot.slane %v17603_v36, 7  ;;  %v27552_v21 = vld [vmem:[%s22608_s28 + $0x114] sm:$0xf] }
 0x410   : > { %20134 = vmatprep.mubr.msk.bf16.mxu1 %vm696_vm4, %v17647_v44  ;;  %20782 = vmatprep.mubr.msk.bf16.mxu0 %vm696_vm4, %v22287_v19  ;;  %v8138_v44 = vsel %vm26492_vm12, %v8136_v29, %v8137_v10  ;;  %v8148_v60 = vrot.slane %v27552_v21, 7  ;;  %v17604_v19 = vld [vmem:[%s22608_s28 + $0x110] sm:$0x8] }
 0x411   : > { %v8145_v53 = vsel %vm26492_vm12, %v8143_v33, %v8144_v14  ;;  %v17638_v51 = vrot.slane %v17604_v19, 11  ;;  %v17616_v33 = vld [vmem:[%s22608_s28 + $0x150] sm:$0x8]  ;;  %v17618_v14 = vld [vmem:[%s22608_s28 + $0x158] sm:$0x7] }
 0x412   : > { %v8150_v18 = vrot.slane %v8148_v60, 4  ;;  %v17642_v52 = vrot.slane %v17616_v33, 11  ;;  %v8179_v4 = vrot.slane %v17618_v14, 7 }
 0x413   : > { %v8149_v32 = vsel %vm26492_vm12, %v17638_v51, %v8148_v60  ;;  %v17621_v60 = vld [vmem:[%s22608_s28 + $0x168] sm:$0x7]  ;;  %v27632_v51 = vld [vmem:[%s22608_s28 + $0x174] sm:$0xf] }
 0x414   : > { %v8152_v42 = vsel %vm26492_vm12, %v8150_v18, %v8151_v40  ;;  %v27635_v18 = vld [vmem:[%s22608_s28 + $0x184] sm:$0xf]  ;;  %v8190_v63 = vrot.slane %v27632_v51, 7 }
 0x415   : > { %v17654_v5 = vcombine.low %v8149_v32, %v8152_v42  ;;  %v17622_v32 = vld [vmem:[%s22608_s28 + $0x170] sm:$0x8]  ;;  %v17624_v42 = vld [vmem:[%s22608_s28 + $0x178] sm:$0x7] }
 0x417   : > { %20135 = vmatmul.mubr.msk.bf16.vlgmr.msra.gmra.mrb[0].mxu1 %vm696_vm4, %v17648_v1  ;;  %20783 = vmatmul.mubr.msk.bf16.vlgmr.msra.gmra.mrb[0].mxu0 %vm696_vm4, %v22289_v22  ;;  %v8158_v1 = vrot.slane %v17609_v28, 7  ;;  %v27580_v22 = vld [vmem:[%s22608_s28 + $0x134] sm:$0xf]  ;;  %v22301_v28 = vld [vmem:[%s22608_s28 + $0x1a0] sm:$0xff]  }
 0x418   : > { %20167 = vmatpush3.bf16.msra.mxu1 %v27336_v7  ;;  %20815 = vmatpush3.bf16.msra.mxu0 %v27344_v59  ;;  %v17598_v7 = vld [vmem:[%s22608_s28 + $0xf0] sm:$0x8]  ;;  %v17601_v59 = vld [vmem:[%s22608_s28 + $0x100] sm:$0x8] }
 0x419   : > { %20138 = vmatprep.mubr.msk.bf16.mxu1 %vm696_vm4, %v17649_v2  ;;  %20786 = vmatprep.mubr.msk.bf16.mxu0 %vm696_vm4, %v22291_v25  ;;  %v17636_v56 = vrot.slane %v17598_v7, 11  ;;  %v17637_v39 = vrot.slane %v17601_v59, 11  ;;  %v8162_v2 = vrot.slane %v27580_v22, 7  ;;  %v8159_v8 = vsel %vm26492_vm12, %v8157_v13, %v8158_v1  ;;  %v17612_v25 = vld [vmem:[%s22608_s28 + $0x138] sm:$0x7] }
 0x41a   : > { %20168 = vmatprep.subr.bf16.mxu1 %v22298_v38  ;;  %20816 = vmatprep.subr.bf16.mxu0 %v22300_v35  ;;  %v17655_v37 = vcombine.low %v8156_v46, %v8159_v8  ;;  %v8165_v47 = vrot.slane %v17612_v25, 7  ;;  %v17625_v46 = vld [vmem:[%s22608_s28 + $0x180] sm:$0x8]  ;;  %v17627_v8 = vld [vmem:[%s22608_s28 + $0x188] sm:$0x7]  ;;  %v22302_v25 = vld [vmem:[%s22608_s28 + $0x1b0] sm:$0xff]  }
 0x41b   : > { %v8135_v9 = vsel %vm26492_vm12, %v17636_v56, %v8134_v17  ;;  %v8142_v24 = vsel %vm26492_vm12, %v17637_v39, %v8141_v15  ;;  %v22296_v17 = vld [vmem:[%s22608_s28 + $0x170] sm:$0xff]   ;;  %v8164_v7 = vrot.slane %v8162_v2, 4  ;;  %v22297_v15 = vld [vmem:[%s22608_s28 + $0x180] sm:$0xff]   ;;  %v8163_v56 = vsel %vm26492_vm12, %v17640_v3, %v8162_v2 }
 0x41c   : > { %20169 = vmatpush3.bf16.msra.mxu1 %v22298_v38  ;;  %20817 = vmatpush3.bf16.msra.mxu0 %v22300_v35  ;;  %v17652_v54 = vcombine.low %v8135_v9, %v8138_v44  ;;  %v17653_v27 = vcombine.low %v8142_v24, %v8145_v53  ;;  %v8169_v38 = vrot.slane %v27583_v12, 7  ;;  %v17613_v35 = vld [vmem:[%s22608_s28 + $0x140] sm:$0x8]  ;;  %v22299_v53 = vld [vmem:[%s22608_s28 + $0x190] sm:$0xff]   ;;  %v8197_v2 = vrot.slane %v27635_v18, 7 }
 0x41d   : > { %20202 = vmatprep.subr.bf16.mxu1 %v27539_v0  ;;  %20850 = vmatprep.subr.bf16.mxu0 %v27547_v30  ;;  %v17641_v59 = vrot.slane %v17613_v35, 11  ;;  %v8166_v29 = vsel %vm26492_vm12, %v8164_v7, %v8165_v47  ;;  %v17619_v44 = vld [vmem:[%s22608_s28 + $0x160] sm:$0x8]  ;;  %v17644_v35 = vrot.slane %v17622_v32, 11  ;;  %v8200_v7 = vrot.slane %v17627_v8, 7 }
 0x41e   : > { %v8171_v36 = vrot.slane %v8169_v38, 4  ;;  %v17656_v24 = vcombine.low %v8163_v56, %v8166_v29  ;;  %v8199_v3 = vrot.slane %v8197_v2, 4  ;;  %v27658_v47 = vld [vmem:[%s22608_s28 + $0x194] sm:$0xf]  ;;  %v17628_v29 = vld [vmem:[%s22608_s28 + $0x190] sm:$0x8] }
 0x41f   : > { %20139 = vmatmul.mubr.msk.bf16.gmra.mrb[4].mxu1 %vm696_vm4, %v17650_v41  ;;  %20787 = vmatmul.mubr.msk.bf16.gmra.mrb[4].mxu0 %vm696_vm4, %v22292_v62  ;;  %v8172_v41 = vrot.slane %v17615_v31, 7  ;;  %v27606_v62 = vld [vmem:[%s22608_s28 + $0x154] sm:$0xf]  ;;  %v8192_v31 = vrot.slane %v8190_v63, 4  ;;  %v17646_v14 = vrot.slane %v17628_v29, 11 }
 0x420   : > { %20142 = vmatprep.mubr.msk.bf16.mxu1 %vm696_vm4, %v17651_v45  ;;  %20790 = vmatprep.mubr.msk.bf16.mxu0 %vm696_vm4, %v22293_v16  ;;  %v27609_v45 = vld [vmem:[%s22608_s28 + $0x164] sm:$0xf]  ;;  %v8176_v10 = vrot.slane %v27606_v62, 7  ;;  %v8170_v16 = vsel %vm26492_vm12, %v17641_v59, %v8169_v38  ;;  %v8201_v56 = vsel %vm26492_vm12, %v8199_v3, %v8200_v7  ;;  %v17688_v8 = vld [vmem:[%s22608_s28 + $0x118] sm:$0xf] }
 0x421   : > { %v8173_v39 = vsel %vm26492_vm12, %v8171_v36, %v8172_v41  ;;  %v8183_v9 = vrot.slane %v27609_v45, 7  ;;  %v8204_v36 = vrot.slane %v27658_v47, 7  ;;  %v17693_v3 = vld [vmem:[%s22608_s28 + $0x168] sm:$0xf]  ;;  %v22334_v7 = vld [vmem:[%s22608_s28 + $0x1b4] sm:$0xff]  }
 0x422   : > { %v17657_v19 = vcombine.low %v8170_v16, %v8173_v39  ;;  %v8178_v58 = vrot.slane %v8176_v10, 4  ;;  %v8177_v40 = vsel %vm26492_vm12, %v17642_v52, %v8176_v10  ;;  %v17630_v10 = vld [vmem:[%s22608_s28 + $0x198] sm:$0x7]  ;;  %v22304_v39 = vld [vmem:[%s22608_s28 + $0x1d0] sm:$0xff]   ;;  %v17733_v29 = vld [vmem:[%s22608_s28 + $0xac] sm:$0x1] }
 0x427   : > { %20143 = vmatmul.mubr.msk.bf16.gmra.mrb[8].mxu1 %vm696_vm4, %v17652_v54  ;;  %20791 = vmatmul.mubr.msk.bf16.gmra.mrb[8].mxu0 %vm696_vm4, %v22294_v49  ;;  %v17643_v54 = vrot.slane %v17619_v44, 11  ;;  %v8185_v49 = vrot.slane %v8183_v9, 4  ;;  %v8207_v44 = vrot.slane %v17630_v10, 7  ;;  %v22338_v10 = vld [vmem:[%s22608_s28 + $0x1d4] sm:$0xff]  }
 0x428   : > { %20146 = vmatprep.mubr.msk.bf16.mxu1 %vm696_vm4, %v17653_v27  ;;  %20794 = vmatprep.mubr.msk.bf16.mxu0 %vm696_vm4, %v22295_v61  ;;  %v8186_v27 = vrot.slane %v17621_v60, 7  ;;  %v8180_v61 = vsel %vm26492_vm12, %v8178_v58, %v8179_v4  ;;  %v22305_v60 = vld [vmem:[%s22608_s28 + $0x1e0] sm:$0xff]   ;;  %v22306_v58 = vld [vmem:[%s22608_s28 + $0x1f0] sm:$0xff]  }
 0x429   : > { %v8184_v13 = vsel %vm26492_vm12, %v17643_v54, %v8183_v9  ;;  %v17658_v23 = vcombine.low %v8177_v40, %v8180_v61  ;;  %v8206_v9 = vrot.slane %v8204_v36, 4  ;;  %v17682_v54 = vld [vmem:[%s22608_s28 + $0xb8] sm:$0xf]  ;;  %v17699_v40 = vcombine.low %v27460_v50, %v17683_v20  ;;  %v17685_v50 = vld [vmem:[%s22608_s28 + $0xe8] sm:$0xf] }
 0x42a   : > { %v8187_v1 = vsel %vm26492_vm12, %v8185_v49, %v8186_v27  ;;  %v17698_v49 = vcombine.low %v27456_v48, %v17682_v54  ;;  %v22311_v27 = vld [vmem:[%s22608_s28 + $0x114] sm:$0xff]   ;;  %v17701_v32 = vcombine.low %v27485_v34, %v17685_v50 }
 0x42b   : > { %v17659_v38 = vcombine.low %v8184_v13, %v8187_v1  ;;  %v22328_v61 = vld [vmem:[%s28058_s1 + $0x118] sm:$0xff]  }
 0x42c   : > { %v17684_v48 = vld [vmem:[%s22608_s28 + $0xd8] sm:$0xf] }
 0x42d   : > { %v17700_v13 = vcombine.low %v27482_v57, %v17684_v48  ;;  %v22316_v1 = vld [vmem:[%s22608_s28 + $0x134] sm:$0xff]   ;;  %v17687_v57 = vld [vmem:[%s22608_s28 + $0x108] sm:$0xf] }
 0x42e   : > { %v22320_v34 = vld [vmem:[%s22608_s28 + $0x154] sm:$0xff]  }
 0x42f   : > { %20147 = vmatmul.mubr.msk.bf16.gmra.mrb[12].mxu1 %vm696_vm4, %v17654_v5  ;;  %20795 = vmatmul.mubr.msk.bf16.gmra.mrb[12].mxu0 %vm696_vm4, %v22296_v17  ;;  %v8193_v5 = vrot.slane %v17624_v42, 7  ;;  %v22303_v17 = vld [vmem:[%s22608_s28 + $0x1c0] sm:$0xff]   ;;  %v22342_v20 = vld [vmem:[%s22608_s28 + $0x1f4] sm:$0xff]  }
 0x430   : > { %20150 = vmatprep.mubr.msk.bf16.mxu1 %vm696_vm4, %v17655_v37  ;;  %20798 = vmatprep.mubr.msk.bf16.mxu0 %vm696_vm4, %v22297_v15  ;;  %v17645_v37 = vrot.slane %v17625_v46, 11  ;;  %v8191_v15 = vsel %vm26492_vm12, %v17644_v35, %v8190_v63  ;;  %v22330_v63 = vld [vmem:[%s28058_s1 + $0x238] sm:$0xff]   ;;  %v22322_v46 = vld [vmem:[%s22608_s28 + $0x164] sm:$0xff]  }
 0x431   : > { %v8194_v59 = vsel %vm26492_vm12, %v8192_v31, %v8193_v5  ;;  %v17690_v35 = vld [vmem:[%s22608_s28 + $0x138] sm:$0xf]  ;;  %v17691_v31 = vld [vmem:[%s22608_s28 + $0x148] sm:$0xf] }
 0x432   : > { %v8198_v41 = vsel %vm26492_vm12, %v17645_v37, %v8197_v2  ;;  %v17660_v16 = vcombine.low %v8191_v15, %v8194_v59  ;;  %v17703_v2 = vcombine.low %v27511_v26, %v17687_v57  ;;  %v22329_v5 = vld [vmem:[%s22608_s28 + $0x194] sm:$0xff]   ;;  %v22336_v15 = vld [vmem:[%s22608_s28 + $0x1c4] sm:$0xff]  }
 0x433   : > { %v17661_v33 = vcombine.low %v8198_v41, %v8201_v56  ;;  %v17692_v37 = vld [vmem:[%s22608_s28 + $0x158] sm:$0xf]  ;;  %v17732_v59 = vld [vmem:[%s22608_s28 + $0xa8] sm:$0xf]  ;;  %v17731_v56 = vld [vmem:[%s22608_s28 + $0xa4] sm:$0xe] }
 0x434   : > { %v17695_v41 = vld [vmem:[%s22608_s28 + $0x188] sm:$0xf] }
 0x437   : > { %20151 = vmatmul.mubr.msk.bf16.gmra.mrb[16].mxu1 %vm696_vm4, %v17656_v24  ;;  %20799 = vmatmul.mubr.msk.bf16.gmra.mrb[16].mxu0 %vm696_vm4, %v22299_v53  ;;  %v8205_v24 = vsel %vm26492_vm12, %v17646_v14, %v8204_v36  ;;  %v8208_v53 = vsel %vm26492_vm12, %v8206_v9, %v8207_v44  ;;  %v17694_v36 = vld [vmem:[%s22608_s28 + $0x178] sm:$0xf]  ;;  %v8952_v9 = vrot.slane %v17733_v29, 5 }
 0x438   : > { %20154 = vmatprep.mubr.msk.bf16.mxu1 %vm696_vm4, %v17657_v19  ;;  %20802 = vmatprep.mubr.msk.bf16.mxu0 %vm696_vm4, %v22301_v28  ;;  %v17681_v19 = vld [vmem:[%s22608_s28 + $0xa8] sm:$0xf]  ;;  %v17662_v52 = vcombine.low %v8205_v24, %v8208_v53  ;;  %v17735_v44 = vld [vmem:[%s22608_s28 + $0xb8] sm:$0xf] }
 0x439   : > { %v17697_v4 = vcombine.low %v27433_v6, %v17681_v19  ;;  %v22308_v28 = vld [vmem:[%s22608_s28 + $0x104] sm:$0xff]   ;;  %v8956_v24 = vrot.slane %v17735_v44, 5  ;;  %v17734_v19 = vld [vmem:[%s22608_s28 + $0xb4] sm:$0xe] }
 0x43a   : > { %v22314_v6 = vld [vmem:[%s22608_s28 + $0x124] sm:$0xff]  }
 0x43f   : > { %20155 = vmatmul.mubr.msk.bf16.gmra.mrb[20].mxu1 %vm696_vm4, %v17658_v23  ;;  %20803 = vmatmul.mubr.msk.bf16.gmra.mrb[20].mxu0 %vm696_vm4, %v22302_v25  ;;  %v17689_v23 = vld [vmem:[%s22608_s28 + $0x128] sm:$0xf]  ;;  %v22324_v25 = vld [vmem:[%s22608_s28 + $0x174] sm:$0xff]  }
 0x440   : > { %20158 = vmatprep.mubr.msk.bf16.mxu1 %vm696_vm4, %v17659_v38  ;;  %20806 = vmatprep.mubr.msk.bf16.mxu0 %vm696_vm4, %v22303_v17  ;;  %v17705_v26 = vcombine.low %v27556_v11, %v17689_v23  ;;  %v22326_v38 = vld [vmem:[%s22608_s28 + $0x184] sm:$0xff]   ;;  %v17707_v11 = vcombine.low %v27583_v12, %v17691_v31  ;;  %v17709_v12 = vcombine.low %v27609_v45, %v17693_v3 }
 0x441   : > { %v22332_v17 = vld [vmem:[%s22608_s28 + $0x1a4] sm:$0xff]   ;;  %v17710_v45 = vcombine.low %v27632_v51, %v17694_v36  ;;  %v17696_v51 = vld [vmem:[%s22608_s28 + $0x198] sm:$0xf]  ;;  %v17748_v36 = vld [vmem:[%s22608_s28 + $0xfc] sm:$0x1] }
 0x442   : > { %v17712_v54 = vcombine.low %v27658_v47, %v17696_v51  ;;  %v22345_v31 = vld [vmem:[%s22608_s28 + $0x128] sm:$0xff]   ;;  %v17753_v51 = vld [vmem:[%s22608_s28 + $0x118] sm:$0xf] }
 0x447   : > { %20159 = vmatmul.mubr.msk.bf16.gmra.mrb[24].mxu1 %vm696_vm4, %v17660_v16  ;;  %20807 = vmatmul.mubr.msk.bf16.gmra.mrb[24].mxu0 %vm696_vm4, %v22304_v39  ;;  %v17711_v16 = vcombine.low %v27635_v18, %v17695_v41  ;;  %v22340_v39 = vld [vmem:[%s22608_s28 + $0x1e4] sm:$0xff]  }
 0x448   : > { %20162 = vmatprep.mubr.msk.bf16.mxu1 %vm696_vm4, %v17661_v33  ;;  %20810 = vmatprep.mubr.msk.bf16.mxu0 %vm696_vm4, %v22305_v60  ;;  %v17779_v33 = vrot.slane %v17731_v56, 9  ;;  %v17738_v60 = vld [vmem:[%s22608_s28 + $0xc8] sm:$0xf]  ;;  %v17751_v56 = vld [vmem:[%s22608_s28 + $0x10c] sm:$0x1] }
 0x44f   : > { %20163 = vmatmul.mubr.msk.bf16.gmra.mrb[28].mxu1 %vm696_vm4, %v17662_v52  ;;  %20811 = vmatmul.mubr.msk.bf16.gmra.mrb[28].mxu0 %vm696_vm4, %v22306_v58  ;;  %v17736_v52 = vld [vmem:[%s22608_s28 + $0xbc] sm:$0x1]  ;;  %v8963_v58 = vrot.slane %v17738_v60, 5  ;;  %v8994_v60 = vrot.slane %v17751_v56, 5 }
 0x450   : > { %20170 = vmatprep.mubr.msk.bf16.mxu1 %vm696_vm4, %v17697_v4  ;;  %20818 = vmatprep.mubr.msk.bf16.mxu0 %vm696_vm4, %v22308_v28  ;;  %v17737_v4 = vld [vmem:[%s22608_s28 + $0xc4] sm:$0xe]  ;;  %v17739_v28 = vld [vmem:[%s22608_s28 + $0xcc] sm:$0x1]  ;;  %v17766_v56 = vld [vmem:[%s22608_s28 + $0x15c] sm:$0x1] }
 0x451   : > { %v8965_v48 = vrot.slane %v8963_v58, 4  ;;  %v8966_v50 = vrot.slane %v17739_v28, 5  ;;  %v17754_v28 = vld [vmem:[%s22608_s28 + $0x11c] sm:$0x1] }
 0x453   : > { %v8967_v57 = vsel %vm26819_vm15, %v8965_v48, %v8966_v50  ;;  %v9001_v48 = vrot.slane %v17754_v28, 5  ;;  %v22349_v50 = vld [vmem:[%s22608_s28 + $0x168] sm:$0xff]  }
 0x457   : > { %20171 = vmatmul.mubr.msk.bf16.vlgmr.msra.gmra.mrb[0].mxu1 %vm696_vm4, %v17698_v49  ;;  %20819 = vmatmul.mubr.msk.bf16.vlgmr.msra.gmra.mrb[0].mxu0 %vm696_vm4, %v22311_v27  ;;  %v17780_v27 = vrot.slane %v17734_v19, 9  ;;  %v8998_v19 = vrot.slane %v17753_v51, 5 }
 0x458   : > { %20203 = vmatpush3.bf16.msra.mxu1 %v27539_v0  ;;  %20851 = vmatpush3.bf16.msra.mxu0 %v27547_v30  ;;  %v22318_v0 = vld [vmem:[%s22608_s28 + $0x144] sm:$0xff]   ;;  %v17686_v30 = vld [vmem:[%s22608_s28 + $0xf8] sm:$0xf] }
 0x459   : > { %20174 = vmatprep.mubr.msk.bf16.mxu1 %vm696_vm4, %v17699_v40  ;;  %20822 = vmatprep.mubr.msk.bf16.mxu0 %vm696_vm4, %v22314_v6  ;;  %v17702_v42 = vcombine.low %v27507_v43, %v17686_v30  ;;  %v17704_v43 = vcombine.low %v27552_v21, %v17688_v8  ;;  %v17706_v21 = vcombine.low %v27580_v22, %v17690_v35  ;;  %v8958_v40 = vrot.slane %v8956_v24, 4  ;;  %v17745_v8 = vld [vmem:[%s22608_s28 + $0xec] sm:$0x1] }
 0x45a   : > { %20204 = vmatprep.subr.bf16.mxu1 %v22328_v61  ;;  %20852 = vmatprep.subr.bf16.mxu0 %v22330_v63  ;;  %v17708_v22 = vcombine.low %v27606_v62, %v17692_v37  ;;  %v8949_v62 = vrot.slane %v17732_v59, 5  ;;  %v8959_v6 = vrot.slane %v17736_v52, 5  ;;  %v8957_v47 = vsel %vm26819_vm15, %v17780_v27, %v8956_v24  ;;  %v17750_v37 = vld [vmem:[%s22608_s28 + $0x108] sm:$0xf]  ;;  %v17746_v59 = vld [vmem:[%s22608_s28 + $0xf4] sm:$0xe] }
 0x45b   : > { %v8991_v41 = vrot.slane %v17750_v37, 5  ;;  %v17756_v24 = vld [vmem:[%s22608_s28 + $0x128] sm:$0xf] }
 0x45c   : > { %20205 = vmatpush3.bf16.msra.mxu1 %v22328_v61  ;;  %20853 = vmatpush3.bf16.msra.mxu0 %v22330_v63  ;;  %v8951_v14 = vrot.slane %v8949_v62, 4  ;;  %v8950_v18 = vsel %vm26819_vm15, %v17779_v33, %v8949_v62  ;;  %v22343_v61 = vld [vmem:[%s22608_s28 + $0x108] sm:$0xff]   ;;  %v17781_v63 = vrot.slane %v17737_v4, 9  ;;  %v17749_v62 = vld [vmem:[%s22608_s28 + $0x104] sm:$0xe]  ;;  %v8987_v33 = vrot.slane %v17748_v36, 5 }
 0x45d   : > { %v8993_v44 = vrot.slane %v8991_v41, 4  ;;  %v17752_v4 = vld [vmem:[%s22608_s28 + $0x114] sm:$0xe] }
 0x45e   : > { %v8953_v53 = vsel %vm26819_vm15, %v8951_v14, %v8952_v9  ;;  %v8964_v30 = vsel %vm26819_vm15, %v17781_v63, %v8963_v58  ;;  %v22347_v14 = vld [vmem:[%s22608_s28 + $0x148] sm:$0xff]   ;;  %v17785_v9 = vrot.slane %v17749_v62, 9  ;;  %v9000_v63 = vrot.slane %v8998_v19, 4  ;;  %v17764_v62 = vld [vmem:[%s22608_s28 + $0x154] sm:$0xe] }
 0x45f   : > { %20175 = vmatmul.mubr.msk.bf16.gmra.mrb[4].mxu1 %vm696_vm4, %v17700_v13  ;;  %20823 = vmatmul.mubr.msk.bf16.gmra.mrb[4].mxu0 %vm696_vm4, %v22316_v1  ;;  %v17795_v49 = vcombine.low %v8950_v18, %v8953_v53  ;;  %v17741_v13 = vld [vmem:[%s22608_s28 + $0xd8] sm:$0xf]  ;;  %v17744_v1 = vld [vmem:[%s22608_s28 + $0xe8] sm:$0xf]  ;;  %v8995_v58 = vsel %vm26819_vm15, %v8993_v44, %v8994_v60  ;;  %v9029_v44 = vrot.slane %v17766_v56, 5 }
 0x460   : > { %20178 = vmatprep.mubr.msk.bf16.mxu1 %vm696_vm4, %v17701_v32  ;;  %20826 = vmatprep.mubr.msk.bf16.mxu0 %vm696_vm4, %v22318_v0  ;;  %v8960_v32 = vsel %vm26819_vm15, %v8958_v40, %v8959_v6  ;;  %v8970_v0 = vrot.slane %v17741_v13, 5  ;;  %v8992_v52 = vsel %vm26819_vm15, %v17785_v9, %v8991_v41  ;;  %v22348_v40 = vld [vmem:[%s22608_s28 + $0x158] sm:$0xff]   ;;  %v22353_v60 = vld [vmem:[%s22608_s28 + $0x1a8] sm:$0xff]  }
 0x461   : > { %v17796_v23 = vcombine.low %v8957_v47, %v8960_v32  ;;  %v17801_v6 = vcombine.low %v8992_v52, %v8995_v58  ;;  %v17759_v32 = vld [vmem:[%s22608_s28 + $0x138] sm:$0xf] }
 0x467   : > { %20179 = vmatmul.mubr.msk.bf16.gmra.mrb[8].mxu1 %vm696_vm4, %v17702_v42  ;;  %20827 = vmatmul.mubr.msk.bf16.gmra.mrb[8].mxu0 %vm696_vm4, %v22320_v34  ;;  %v17740_v42 = vld [vmem:[%s22608_s28 + $0xd4] sm:$0xe]  ;;  %v17742_v34 = vld [vmem:[%s22608_s28 + $0xdc] sm:$0x1] }
 0x468   : > { %20182 = vmatprep.mubr.msk.bf16.mxu1 %vm696_vm4, %v17703_v2  ;;  %20830 = vmatprep.mubr.msk.bf16.mxu0 %vm696_vm4, %v22322_v46  ;;  %v8977_v2 = vrot.slane %v17744_v1, 5  ;;  %v17743_v46 = vld [vmem:[%s22608_s28 + $0xe4] sm:$0xe]  ;;  %v8973_v35 = vrot.slane %v17742_v34, 5 }
 0x46f   : > { %20183 = vmatmul.mubr.msk.bf16.gmra.mrb[12].mxu1 %vm696_vm4, %v17704_v43  ;;  %20831 = vmatmul.mubr.msk.bf16.gmra.mrb[12].mxu0 %vm696_vm4, %v22324_v25  ;;  %v22344_v43 = vld [vmem:[%s22608_s28 + $0x118] sm:$0xff]   ;;  %v17797_v25 = vcombine.low %v8964_v30, %v8967_v57  ;;  %v9002_v57 = vsel %vm26819_vm15, %v9000_v63, %v9001_v48 }
 0x470   : > { %20186 = vmatprep.mubr.msk.bf16.mxu1 %vm696_vm4, %v17705_v26  ;;  %20834 = vmatprep.mubr.msk.bf16.mxu0 %vm696_vm4, %v22326_v38  ;;  %v17782_v26 = vrot.slane %v17740_v42, 9  ;;  %v8972_v38 = vrot.slane %v8970_v0, 4  ;;  %v9012_v42 = vrot.slane %v17759_v32, 5  ;;  %v22354_v63 = vld [vmem:[%s22608_s28 + $0x1b8] sm:$0xff]  }
 0x472   : > { %v8971_v3 = vsel %vm26819_vm15, %v17782_v26, %v8970_v0  ;;  %v17762_v0 = vld [vmem:[%s22608_s28 + $0x148] sm:$0xf] }
 0x477   : > { %20187 = vmatmul.mubr.msk.bf16.gmra.mrb[16].mxu1 %vm696_vm4, %v17706_v21  ;;  %20835 = vmatmul.mubr.msk.bf16.gmra.mrb[16].mxu0 %vm696_vm4, %v22329_v5  ;;  %v17783_v21 = vrot.slane %v17743_v46, 9  ;;  %v8979_v5 = vrot.slane %v8977_v2, 4  ;;  %v17758_v46 = vld [vmem:[%s22608_s28 + $0x134] sm:$0xe] }
 0x478   : > { %20190 = vmatprep.mubr.msk.bf16.mxu1 %vm696_vm4, %v17707_v11  ;;  %20838 = vmatprep.mubr.msk.bf16.mxu0 %vm696_vm4, %v22332_v17  ;;  %v8980_v11 = vrot.slane %v17745_v8, 5  ;;  %v17747_v17 = vld [vmem:[%s22608_s28 + $0xf8] sm:$0xf]  ;;  %v17760_v8 = vld [vmem:[%s22608_s28 + $0x13c] sm:$0x1] }
 0x47f   : > { %20191 = vmatmul.mubr.msk.bf16.gmra.mrb[20].mxu1 %vm696_vm4, %v17708_v22  ;;  %20839 = vmatmul.mubr.msk.bf16.gmra.mrb[20].mxu0 %vm696_vm4, %v22334_v7  ;;  %v8974_v22 = vsel %vm26819_vm15, %v8972_v38, %v8973_v35  ;;  %v8984_v7 = vrot.slane %v17747_v17, 5  ;;  %v22350_v38 = vld [vmem:[%s22608_s28 + $0x178] sm:$0xff]  }
 0x480   : > { %20194 = vmatprep.mubr.msk.bf16.mxu1 %vm696_vm4, %v17709_v12  ;;  %20842 = vmatprep.mubr.msk.bf16.mxu0 %vm696_vm4, %v22336_v15  ;;  %v8978_v12 = vsel %vm26819_vm15, %v17783_v21, %v8977_v2  ;;  %v8981_v15 = vsel %vm26819_vm15, %v8979_v5, %v8980_v11  ;;  %v17798_v29 = vcombine.low %v8971_v3, %v8974_v22  ;;  %v9014_v21 = vrot.slane %v9012_v42, 4  ;;  %v22351_v11 = vld [vmem:[%s22608_s28 + $0x188] sm:$0xff]   ;;  %v17765_v22 = vld [vmem:[%s22608_s28 + $0x158] sm:$0xf] }
 0x481   : > { %v9015_v5 = vrot.slane %v17760_v8, 5 }
 0x487   : > { %20195 = vmatmul.mubr.msk.bf16.gmra.mrb[24].mxu1 %vm696_vm4, %v17710_v45  ;;  %20843 = vmatmul.mubr.msk.bf16.gmra.mrb[24].mxu0 %vm696_vm4, %v22338_v10  ;;  %v22346_v45 = vld [vmem:[%s22608_s28 + $0x138] sm:$0xff]   ;;  %v17799_v10 = vcombine.low %v8978_v12, %v8981_v15  ;;  %v9016_v15 = vsel %vm26819_vm15, %v9014_v21, %v9015_v5  ;;  %v22357_v5 = vld [vmem:[%s22608_s28 + $0x1e8] sm:$0xff]  }
 0x488   : > { %20198 = vmatprep.mubr.msk.bf16.mxu1 %vm696_vm4, %v17711_v16  ;;  %20846 = vmatprep.mubr.msk.bf16.mxu0 %vm696_vm4, %v22340_v39  ;;  %v17784_v16 = vrot.slane %v17746_v59, 9  ;;  %v8986_v39 = vrot.slane %v8984_v7, 4  ;;  %v9026_v59 = vrot.slane %v17765_v22, 5 }
 0x48a   : > { %v8985_v18 = vsel %vm26819_vm15, %v17784_v16, %v8984_v7  ;;  %v8988_v53 = vsel %vm26819_vm15, %v8986_v39, %v8987_v33  ;;  %v17768_v7 = vld [vmem:[%s22608_s28 + $0x168] sm:$0xf]  ;;  %v22352_v39 = vld [vmem:[%s22608_s28 + $0x198] sm:$0xff]   ;;  %v9028_v9 = vrot.slane %v9026_v59, 4 }
 0x48b   : > { %v17800_v27 = vcombine.low %v8985_v18, %v8988_v53  ;;  %v17771_v53 = vld [vmem:[%s22608_s28 + $0x178] sm:$0xf] }
 0x48c   : > { %v9030_v58 = vsel %vm26819_vm15, %v9028_v9, %v9029_v44 }
 0x48f   : > { %20199 = vmatmul.mubr.msk.bf16.gmra.mrb[28].mxu1 %vm696_vm4, %v17712_v54  ;;  %20847 = vmatmul.mubr.msk.bf16.gmra.mrb[28].mxu0 %vm696_vm4, %v22342_v20  ;;  %v9005_v54 = vrot.slane %v17756_v24, 5  ;;  %v17755_v20 = vld [vmem:[%s22608_s28 + $0x124] sm:$0xe] }
 0x490   : > { %20206 = vmatprep.mubr.msk.bf16.mxu1 %vm696_vm4, %v17795_v49  ;;  %20854 = vmatprep.mubr.msk.bf16.mxu0 %vm696_vm4, %v22343_v61  ;;  %v17757_v49 = vld [vmem:[%s22608_s28 + $0x12c] sm:$0x1]  ;;  %v17786_v61 = vrot.slane %v17752_v4, 9  ;;  %v17787_v13 = vrot.slane %v17755_v20, 9  ;;  %v9040_v4 = vrot.slane %v17771_v53, 5 }
 0x491   : > { %v9007_v1 = vrot.slane %v9005_v54, 4  ;;  %v9008_v47 = vrot.slane %v17757_v49, 5  ;;  %v17770_v20 = vld [vmem:[%s22608_s28 + $0x174] sm:$0xe]  ;;  %v17772_v49 = vld [vmem:[%s22608_s28 + $0x17c] sm:$0x1] }
 0x492   : > { %v8999_v30 = vsel %vm26819_vm15, %v17786_v61, %v8998_v19  ;;  %v9006_v34 = vsel %vm26819_vm15, %v17787_v13, %v9005_v54  ;;  %v17774_v19 = vld [vmem:[%s22608_s28 + $0x188] sm:$0xf]  ;;  %v9042_v13 = vrot.slane %v9040_v4, 4 }
 0x493   : > { %v9009_v2 = vsel %vm26819_vm15, %v9007_v1, %v9008_v47  ;;  %v17802_v26 = vcombine.low %v8999_v30, %v9002_v57  ;;  %v9043_v1 = vrot.slane %v17772_v49, 5  ;;  %v22355_v47 = vld [vmem:[%s22608_s28 + $0x1c8] sm:$0xff]   ;;  %v17777_v57 = vld [vmem:[%s22608_s28 + $0x198] sm:$0xf] }
 0x494   : > { %v17803_v35 = vcombine.low %v9006_v34, %v9009_v2  ;;  %v9054_v2 = vrot.slane %v17777_v57, 5 }
 0x495   : > { %v9044_v34 = vsel %vm26819_vm15, %v9042_v13, %v9043_v1 }
 0x497   : > { %20207 = vmatmul.mubr.msk.bf16.vlgmr.msra.gmra.mrb[0].mxu1 %vm696_vm4, %v17796_v23  ;;  %20855 = vmatmul.mubr.msk.bf16.vlgmr.msra.gmra.mrb[0].mxu0 %vm696_vm4, %v22344_v43  ;;  %v9019_v23 = vrot.slane %v17762_v0, 5  ;;  %v17761_v43 = vld [vmem:[%s22608_s28 + $0x144] sm:$0xe] }
 0x498   : > { %20210 = vmatprep.mubr.msk.bf16.mxu1 %vm696_vm4, %v17797_v25  ;;  %20858 = vmatprep.mubr.msk.bf16.mxu0 %vm696_vm4, %v22345_v31  ;;  %v17763_v25 = vld [vmem:[%s22608_s28 + $0x14c] sm:$0x1]  ;;  %v17788_v31 = vrot.slane %v17758_v46, 9  ;;  %v17789_v17 = vrot.slane %v17761_v43, 9  ;;  %v17778_v43 = vld [vmem:[%s22608_s28 + $0x19c] sm:$0x1] }
 0x499   : > { %v9021_v37 = vrot.slane %v9019_v23, 4  ;;  %v9022_v3 = vrot.slane %v17763_v25, 5  ;;  %v9057_v21 = vrot.slane %v17778_v43, 5 }
 0x49a   : > { %v9013_v12 = vsel %vm26819_vm15, %v17788_v31, %v9012_v42  ;;  %v9020_v36 = vsel %vm26819_vm15, %v17789_v17, %v9019_v23  ;;  %v17776_v23 = vld [vmem:[%s22608_s28 + $0x194] sm:$0xe]  ;;  %v9056_v31 = vrot.slane %v9054_v2, 4 }
 0x49b   : > { %v9023_v41 = vsel %vm26819_vm15, %v9021_v37, %v9022_v3  ;;  %v17804_v16 = vcombine.low %v9013_v12, %v9016_v15  ;;  %v22358_v3 = vld [vmem:[%s22608_s28 + $0x1f8] sm:$0xff]   ;;  %v27941_v12 = vld [vmem:[%s28059_s2] ss:$0 sm:$0xff] }
 0x49c   : > { %v17805_v33 = vcombine.low %v9020_v36, %v9023_v41  ;;  %v9058_v17 = vsel %vm26819_vm15, %v9056_v31, %v9057_v21 }
 0x49f   : > { %20211 = vmatmul.mubr.msk.bf16.gmra.mrb[4].mxu1 %vm696_vm4, %v17798_v29  ;;  %20859 = vmatmul.mubr.msk.bf16.gmra.mrb[4].mxu0 %vm696_vm4, %v22346_v45  ;;  %v9033_v29 = vrot.slane %v17768_v7, 5  ;;  %v17767_v45 = vld [vmem:[%s22608_s28 + $0x164] sm:$0xe] }
 0x4a0   : > { %20214 = vmatprep.mubr.msk.bf16.mxu1 %vm696_vm4, %v17799_v10  ;;  %20862 = vmatprep.mubr.msk.bf16.mxu0 %vm696_vm4, %v22347_v14  ;;  %v17769_v10 = vld [vmem:[%s22608_s28 + $0x16c] sm:$0x1]  ;;  %v17790_v14 = vrot.slane %v17764_v62, 9  ;;  %v17791_v51 = vrot.slane %v17767_v45, 9 }
 0x4a1   : > { %v9035_v24 = vrot.slane %v9033_v29, 4  ;;  %v9036_v18 = vrot.slane %v17769_v10, 5 }
 0x4a2   : > { %v9027_v52 = vsel %vm26819_vm15, %v17790_v14, %v9026_v59  ;;  %v9034_v28 = vsel %vm26819_vm15, %v17791_v51, %v9033_v29 }
 0x4a3   : > { %v9037_v54 = vsel %vm26819_vm15, %v9035_v24, %v9036_v18  ;;  %v17806_v61 = vcombine.low %v9027_v52, %v9030_v58 }
 0x4a4   : > { %v17807_v48 = vcombine.low %v9034_v28, %v9037_v54 }
 0x4a7   : > { %20215 = vmatmul.mubr.msk.bf16.gmra.mrb[8].mxu1 %vm696_vm4, %v17800_v27  ;;  %20863 = vmatmul.mubr.msk.bf16.gmra.mrb[8].mxu0 %vm696_vm4, %v22348_v40  ;;  %v9047_v27 = vrot.slane %v17774_v19, 5  ;;  %v17773_v40 = vld [vmem:[%s22608_s28 + $0x184] sm:$0xe] }
 0x4a8   : > { %20218 = vmatprep.mubr.msk.bf16.mxu1 %vm696_vm4, %v17801_v6  ;;  %20866 = vmatprep.mubr.msk.bf16.mxu0 %vm696_vm4, %v22349_v50  ;;  %v17775_v6 = vld [vmem:[%s22608_s28 + $0x18c] sm:$0x1]  ;;  %v17792_v50 = vrot.slane %v17770_v20, 9  ;;  %v17793_v32 = vrot.slane %v17773_v40, 9 }
 0x4a9   : > { %v9049_v0 = vrot.slane %v9047_v27, 4  ;;  %v9050_v30 = vrot.slane %v17775_v6, 5 }
 0x4aa   : > { %v9041_v42 = vsel %vm26819_vm15, %v17792_v50, %v9040_v4  ;;  %v9048_v46 = vsel %vm26819_vm15, %v17793_v32, %v9047_v27 }
 0x4ab   : > { %v9051_v8 = vsel %vm26819_vm15, %v9049_v0, %v9050_v30  ;;  %v17808_v25 = vcombine.low %v9041_v42, %v9044_v34 }
 0x4af   : > { %20219 = vmatmul.mubr.msk.bf16.gmra.mrb[12].mxu1 %vm696_vm4, %v17802_v26  ;;  %20867 = vmatmul.mubr.msk.bf16.gmra.mrb[12].mxu0 %vm696_vm4, %v22350_v38  ;;  %v22356_v26 = vld [vmem:[%s22608_s28 + $0x1d8] sm:$0xff]   ;;  %v17809_v38 = vcombine.low %v9048_v46, %v9051_v8 }
 0x4b0   : > { %20222 = vmatprep.mubr.msk.bf16.mxu1 %vm696_vm4, %v17803_v35  ;;  %20870 = vmatprep.mubr.msk.bf16.mxu0 %vm696_vm4, %v22351_v11  ;;  %v17794_v35 = vrot.slane %v17776_v23, 9 }
 0x4b2   : > { %v9055_v11 = vsel %vm26819_vm15, %v17794_v35, %v9054_v2 }
 0x4b3   : > { %v17810_v37 = vcombine.low %v9055_v11, %v9058_v17 }
 0x4b7   : > { %20223 = vmatmul.mubr.msk.bf16.gmra.mrb[16].mxu1 %vm696_vm4, %v17804_v16  ;;  %20871 = vmatmul.mubr.msk.bf16.gmra.mrb[16].mxu0 %vm696_vm4, %v22352_v39 }
 0x4b8   : > { %20226 = vmatprep.mubr.msk.bf16.mxu1 %vm696_vm4, %v17805_v33  ;;  %20874 = vmatprep.mubr.msk.bf16.mxu0 %vm696_vm4, %v22353_v60 }
 0x4bf   : > { %20227 = vmatmul.mubr.msk.bf16.gmra.mrb[20].mxu1 %vm696_vm4, %v17806_v61  ;;  %20875 = vmatmul.mubr.msk.bf16.gmra.mrb[20].mxu0 %vm696_vm4, %v22354_v63 }
 0x4c0   : > { %20230 = vmatprep.mubr.msk.bf16.mxu1 %vm696_vm4, %v17807_v48  ;;  %20878 = vmatprep.mubr.msk.bf16.mxu0 %vm696_vm4, %v22355_v47 }
 0x4c7   : > { %20231 = vmatmul.mubr.msk.bf16.gmra.mrb[24].mxu1 %vm696_vm4, %v17808_v25  ;;  %20879 = vmatmul.mubr.msk.bf16.gmra.mrb[24].mxu0 %vm696_vm4, %v22356_v26 }
 0x4c8   : > { %20234 = vmatprep.mubr.msk.bf16.mxu1 %vm696_vm4, %v17809_v38  ;;  %20882 = vmatprep.mubr.msk.bf16.mxu0 %vm696_vm4, %v22357_v5 }
 0x4cf   : > { %20235 = vmatmul.mubr.msk.bf16.gmra.mrb[28].mxu1 %vm696_vm4, %v17810_v37  ;;  %20883 = vmatmul.mubr.msk.bf16.gmra.mrb[28].mxu0 %vm696_vm4, %v22358_v3 }
 0x56a   : > { %v20208_v22 = vpop.f32.mrb[0].mxu1  ;;  %v20856_v7 = vpop.f32.mrb[0].mxu0 }
 0x56b   : > { %v9205_v55 = vpop.f32.mrb[1].mxu1  ;;  %v20886_v15 = vadd.f32 %v20856_v7, %v20208_v22  ;;  %v16237_v59 = vpop.f32.mrb[1].mxu0 }
 0x56c   : > { %v20209_v36 = vpop.f32.mrb[2].mxu1  ;;  %v20887_v41 = vadd.f32 %v16237_v59, %v9205_v55  ;;  %v20857_v62 = vpop.f32.mrb[2].mxu0 }
 0x56d   : > { %v9208_v56 = vpop.f32.mrb[3].mxu1  ;;  %v16405_v29 = vadd.f32 %v20886_v15, %v27941_v12  ;;  %v20888_v45 = vadd.f32 %v20857_v62, %v20209_v36  ;;  %v16240_v10 = vpop.f32.mrb[3].mxu0 }
 0x56e   : > { %v16403_v16 = vadd.f32 %v20887_v41, %v27941_v12  ;;  %v20889_v39 = vadd.f32 %v16240_v10, %v9208_v56 }
 0x56f   : > { %16438 = vst.msk [vmem:[%s27946_s27 + $0x10] sm:$0xff] %vm16435_vm0, %v16405_v29  ;;  %v16406_v33 = vadd.f32 %v20888_v45, %v27941_v12 }
 0x570   : > { %16436 = vst.msk [vmem:[%s27946_s27] sm:$0xff] %vm16435_vm0, %v16403_v16  ;;  %v16404_v14 = vadd.f32 %v20889_v39, %v27941_v12 }
 0x571   : > { %16439 = vst.msk [vmem:[%s27946_s27 + $0x18] sm:$0xff] %vm16435_vm0, %v16406_v33 }
 0x572   : > { %v20212_v9 = vpop.f32.mrb[4].mxu1  ;;  %16437 = vst.msk [vmem:[%s27946_s27 + $0x8] sm:$0xff] %vm16435_vm0, %v16404_v14  ;;  %v20860_v44 = vpop.f32.mrb[4].mxu0 }
 0x573   : > { %v9221_v60 = vpop.f32.mrb[5].mxu1  ;;  %v20890_v51 = vadd.f32 %v20860_v44, %v20212_v9  ;;  %v16253_v24 = vpop.f32.mrb[5].mxu0 }
 0x574   : > { %v20213_v18 = vpop.f32.mrb[6].mxu1  ;;  %v20891_v53 = vadd.f32 %v16253_v24, %v9221_v60  ;;  %v20861_v19 = vpop.f32.mrb[6].mxu0 }
 0x575   : > { %v9224_v52 = vpop.f32.mrb[7].mxu1  ;;  %v16409_v58 = vadd.f32 %v20890_v51, %v27941_v12  ;;  %v20892_v4 = vadd.f32 %v20861_v19, %v20213_v18  ;;  %v16256_v28 = vpop.f32.mrb[7].mxu0 }
 0x576   : > { %v16407_v54 = vadd.f32 %v20891_v53, %v27941_v12  ;;  %v20893_v20 = vadd.f32 %v16256_v28, %v9224_v52 }
 0x577   : > { %16442 = vst.msk [vmem:[%s27946_s27 + $0x30] sm:$0xff] %vm16435_vm0, %v16409_v58  ;;  %v16410_v49 = vadd.f32 %v20892_v4, %v27941_v12 }
 0x578   : > { %16440 = vst.msk [vmem:[%s27946_s27 + $0x20] sm:$0xff] %vm16435_vm0, %v16407_v54  ;;  %v16408_v27 = vadd.f32 %v20893_v20, %v27941_v12 }
 0x579   : > { %16443 = vst.msk [vmem:[%s27946_s27 + $0x38] sm:$0xff] %vm16435_vm0, %v16410_v49 }
 0x57a   : > { %v20216_v40 = vpop.f32.mrb[8].mxu1  ;;  %16441 = vst.msk [vmem:[%s27946_s27 + $0x28] sm:$0xff] %vm16435_vm0, %v16408_v27  ;;  %v20864_v6 = vpop.f32.mrb[8].mxu0 }
 0x57b   : > { %v9237_v61 = vpop.f32.mrb[9].mxu1  ;;  %v20894_v63 = vadd.f32 %v20864_v6, %v20216_v40  ;;  %v16269_v48 = vpop.f32.mrb[9].mxu0 }
 0x57c   : > { %v20217_v50 = vpop.f32.mrb[10].mxu1  ;;  %v20895_v13 = vadd.f32 %v16269_v48, %v9237_v61  ;;  %v20865_v1 = vpop.f32.mrb[10].mxu0 }
 0x57d   : > { %v9240_v47 = vpop.f32.mrb[11].mxu1  ;;  %v16413_v32 = vadd.f32 %v20894_v63, %v27941_v12  ;;  %v20896_v0 = vadd.f32 %v20865_v1, %v20217_v50  ;;  %v16272_v30 = vpop.f32.mrb[11].mxu0 }
 0x57e   : > { %v16411_v57 = vadd.f32 %v20895_v13, %v27941_v12  ;;  %v20897_v42 = vadd.f32 %v16272_v30, %v9240_v47 }
 0x57f   : > { %16446 = vst.msk [vmem:[%s27946_s27 + $0x50] sm:$0xff] %vm16435_vm0, %v16413_v32  ;;  %v16414_v34 = vadd.f32 %v20896_v0, %v27941_v12 }
 0x580   : > { %16444 = vst.msk [vmem:[%s27946_s27 + $0x40] sm:$0xff] %vm16435_vm0, %v16411_v57  ;;  %v16412_v2 = vadd.f32 %v20897_v42, %v27941_v12 }
 0x581   : > { %16447 = vst.msk [vmem:[%s27946_s27 + $0x58] sm:$0xff] %vm16435_vm0, %v16414_v34 }
 0x582   : > { %v20220_v46 = vpop.f32.mrb[12].mxu1  ;;  %16445 = vst.msk [vmem:[%s27946_s27 + $0x48] sm:$0xff] %vm16435_vm0, %v16412_v2  ;;  %v20868_v8 = vpop.f32.mrb[12].mxu0 }
 0x583   : > { %v9253_v23 = vpop.f32.mrb[13].mxu1  ;;  %v20898_v43 = vadd.f32 %v20868_v8, %v20220_v46  ;;  %v16285_v25 = vpop.f32.mrb[13].mxu0 }
 0x584   : > { %v20221_v26 = vpop.f32.mrb[14].mxu1  ;;  %v20899_v38 = vadd.f32 %v16285_v25, %v9253_v23  ;;  %v20869_v35 = vpop.f32.mrb[14].mxu0 }
 0x585   : > { %v9256_v31 = vpop.f32.mrb[15].mxu1  ;;  %v16417_v21 = vadd.f32 %v20898_v43, %v27941_v12  ;;  %v20900_v5 = vadd.f32 %v20869_v35, %v20221_v26  ;;  %v16288_v11 = vpop.f32.mrb[15].mxu0 }
 0x586   : > { %v16415_v17 = vadd.f32 %v20899_v38, %v27941_v12  ;;  %v20901_v37 = vadd.f32 %v16288_v11, %v9256_v31 }
 0x587   : > { %16450 = vst.msk [vmem:[%s27946_s27 + $0x70] sm:$0xff] %vm16435_vm0, %v16417_v21  ;;  %v16418_v3 = vadd.f32 %v20900_v5, %v27941_v12 }
 0x588   : > { %16448 = vst.msk [vmem:[%s27946_s27 + $0x60] sm:$0xff] %vm16435_vm0, %v16415_v17  ;;  %v16416_v22 = vadd.f32 %v20901_v37, %v27941_v12 }
 0x589   : > { %16451 = vst.msk [vmem:[%s27946_s27 + $0x78] sm:$0xff] %vm16435_vm0, %v16418_v3 }
 0x58a   : > { %v20224_v7 = vpop.f32.mrb[16].mxu1  ;;  %16449 = vst.msk [vmem:[%s27946_s27 + $0x68] sm:$0xff] %vm16435_vm0, %v16416_v22  ;;  %v20872_v55 = vpop.f32.mrb[16].mxu0 }
 0x58b   : > { %v9269_v15 = vpop.f32.mrb[17].mxu1  ;;  %v20902_v59 = vadd.f32 %v20872_v55, %v20224_v7  ;;  %v16301_v36 = vpop.f32.mrb[17].mxu0 }
 0x58c   : > { %v20225_v41 = vpop.f32.mrb[18].mxu1  ;;  %v20903_v62 = vadd.f32 %v16301_v36, %v9269_v15  ;;  %v20873_v56 = vpop.f32.mrb[18].mxu0 }
 0x58d   : > { %v9272_v29 = vpop.f32.mrb[19].mxu1  ;;  %v16421_v45 = vadd.f32 %v20902_v59, %v27941_v12  ;;  %v20904_v10 = vadd.f32 %v20873_v56, %v20225_v41  ;;  %v16304_v16 = vpop.f32.mrb[19].mxu0 }
 0x58e   : > { %v16419_v39 = vadd.f32 %v20903_v62, %v27941_v12  ;;  %v20905_v33 = vadd.f32 %v16304_v16, %v9272_v29 }
 0x58f   : > { %16454 = vst.msk [vmem:[%s27946_s27 + $0x90] sm:$0xff] %vm16435_vm0, %v16421_v45  ;;  %v16422_v14 = vadd.f32 %v20904_v10, %v27941_v12 }
 0x590   : > { %16452 = vst.msk [vmem:[%s27946_s27 + $0x80] sm:$0xff] %vm16435_vm0, %v16419_v39  ;;  %v16420_v9 = vadd.f32 %v20905_v33, %v27941_v12 }
 0x591   : > { %16455 = vst.msk [vmem:[%s27946_s27 + $0x98] sm:$0xff] %vm16435_vm0, %v16422_v14 }
 0x592   : > { %v20228_v44 = vpop.f32.mrb[20].mxu1  ;;  %16453 = vst.msk [vmem:[%s27946_s27 + $0x88] sm:$0xff] %vm16435_vm0, %v16420_v9  ;;  %v20876_v60 = vpop.f32.mrb[20].mxu0 }
 0x593   : > { %v9285_v51 = vpop.f32.mrb[21].mxu1  ;;  %v20906_v24 = vadd.f32 %v20876_v60, %v20228_v44  ;;  %v16317_v18 = vpop.f32.mrb[21].mxu0 }
 0x594   : > { %v20229_v53 = vpop.f32.mrb[22].mxu1  ;;  %v20907_v19 = vadd.f32 %v16317_v18, %v9285_v51  ;;  %v20877_v52 = vpop.f32.mrb[22].mxu0 }
 0x595   : > { %v9288_v58 = vpop.f32.mrb[23].mxu1  ;;  %v16425_v4 = vadd.f32 %v20906_v24, %v27941_v12  ;;  %v20908_v28 = vadd.f32 %v20877_v52, %v20229_v53  ;;  %v16320_v54 = vpop.f32.mrb[23].mxu0 }
 0x596   : > { %v16423_v20 = vadd.f32 %v20907_v19, %v27941_v12  ;;  %v20909_v49 = vadd.f32 %v16320_v54, %v9288_v58 }
 0x597   : > { %16458 = vst.msk [vmem:[%s27946_s27 + $0xb0] sm:$0xff] %vm16435_vm0, %v16425_v4  ;;  %v16426_v27 = vadd.f32 %v20908_v28, %v27941_v12 }
 0x598   : > { %16456 = vst.msk [vmem:[%s27946_s27 + $0xa0] sm:$0xff] %vm16435_vm0, %v16423_v20  ;;  %v16424_v40 = vadd.f32 %v20909_v49, %v27941_v12 }
 0x599   : > { %16459 = vst.msk [vmem:[%s27946_s27 + $0xb8] sm:$0xff] %vm16435_vm0, %v16426_v27 }
 0x59a   : > { %v20232_v6 = vpop.f32.mrb[24].mxu1  ;;  %16457 = vst.msk [vmem:[%s27946_s27 + $0xa8] sm:$0xff] %vm16435_vm0, %v16424_v40  ;;  %v20880_v61 = vpop.f32.mrb[24].mxu0 }
 0x59b   : > { %v9301_v63 = vpop.f32.mrb[25].mxu1  ;;  %v20910_v48 = vadd.f32 %v20880_v61, %v20232_v6  ;;  %v16333_v50 = vpop.f32.mrb[25].mxu0 }
 0x59c   : > { %v20233_v13 = vpop.f32.mrb[26].mxu1  ;;  %v20911_v1 = vadd.f32 %v16333_v50, %v9301_v63  ;;  %v20881_v47 = vpop.f32.mrb[26].mxu0 }
 0x59d   : > { %v9304_v32 = vpop.f32.mrb[27].mxu1  ;;  %v16429_v0 = vadd.f32 %v20910_v48, %v27941_v12  ;;  %v20912_v30 = vadd.f32 %v20881_v47, %v20233_v13  ;;  %v16336_v57 = vpop.f32.mrb[27].mxu0 }
 0x59e   : > { %v16427_v42 = vadd.f32 %v20911_v1, %v27941_v12  ;;  %v20913_v34 = vadd.f32 %v16336_v57, %v9304_v32 }
 0x59f   : > { %16462 = vst.msk [vmem:[%s27946_s27 + $0xd0] sm:$0xff] %vm16435_vm0, %v16429_v0  ;;  %v16430_v2 = vadd.f32 %v20912_v30, %v27941_v12 }
 0x5a0   : > { %16460 = vst.msk [vmem:[%s27946_s27 + $0xc0] sm:$0xff] %vm16435_vm0, %v16427_v42  ;;  %v16428_v46 = vadd.f32 %v20913_v34, %v27941_v12 }
 0x5a1   : > { %16463 = vst.msk [vmem:[%s27946_s27 + $0xd8] sm:$0xff] %vm16435_vm0, %v16430_v2 }
 0x5a2   : > { %v20236_v8 = vpop.f32.mrb[28].mxu1  ;;  %16461 = vst.msk [vmem:[%s27946_s27 + $0xc8] sm:$0xff] %vm16435_vm0, %v16428_v46  ;;  %v20884_v23 = vpop.f32.mrb[28].mxu0 }
 0x5a3   : > { %v9317_v43 = vpop.f32.mrb[29].mxu1  ;;  %v20914_v25 = vadd.f32 %v20884_v23, %v20236_v8  ;;  %v16349_v26 = vpop.f32.mrb[29].mxu0 }
 0x5a4   : > { %v20237_v38 = vpop.f32.mrb[30].mxu1  ;;  %v20915_v35 = vadd.f32 %v16349_v26, %v9317_v43  ;;  %v20885_v31 = vpop.f32.mrb[30].mxu0 }
 0x5a5   : > { %v9320_v21 = vpop.f32.mrb[31].mxu1  ;;  %v16433_v5 = vadd.f32 %v20914_v25, %v27941_v12  ;;  %v20916_v11 = vadd.f32 %v20885_v31, %v20237_v38  ;;  %v16352_v17 = vpop.f32.mrb[31].mxu0 }
 0x5a6   : > { %v16431_v37 = vadd.f32 %v20915_v35, %v27941_v12  ;;  %v20917_v3 = vadd.f32 %v16352_v17, %v9320_v21 }
 0x5a7   : > { %16466 = vst.msk [vmem:[%s27946_s27 + $0xf0] sm:$0xff] %vm16435_vm0, %v16433_v5  ;;  %v16434_v22 = vadd.f32 %v20916_v11, %v27941_v12 }
 0x5a8   : > { %16464 = vst.msk [vmem:[%s27946_s27 + $0xe0] sm:$0xff] %vm16435_vm0, %v16431_v37  ;;  %v16432_v7 = vadd.f32 %v20917_v3, %v27941_v12 }
 0x5a9   : > { %16467 = vst.msk [vmem:[%s27946_s27 + $0xf8] sm:$0xff] %vm16435_vm0, %v16434_v22 }
 0x5aa   : > { %16465 = vst.msk [vmem:[%s27946_s27 + $0xe8] sm:$0xff] %vm16435_vm0, %v16432_v7 }
 0x5ab PF: > { %p13_p8 = scmp.ge.s32.totalorder %s22544_s17, 4   ;;  %s28349_s12 = smov %s22489_s13 }
 0x5ac   : > { %s28350_s13 = smov %s22493_s14  ;;  %s28351_s14 = smov %s22554_s20 }
 0x5ad   : > { %s28352_s15 = smov %s22544_s17  ;;  %15 = sbr.rel (!%p13_p8) target bundleno = 3 (0x3), region = 80 }
 0x5b4   :  { %16489 = vsyncpa [#allocation3], 1 }
 0x5b5   :  { %16491 = vsyncpa [#allocation3 + $0x1], 1 }

</bundles_post_ra>
